<compile_context>
chip_gen: v7x
topology: tpu7x:2x2x1
jax: 0.10.0
libtpu: 0.0.40
codegen_flags: <defaults>
</compile_context>

<pallas_src>
import functools

import jax
import jax.numpy as jnp
from jax import lax
from jax.experimental import pallas as pl
from jax.experimental.pallas import tpu as pltpu

EPS = 1e-5
MM_DTYPE = jnp.bfloat16          # MXU operand / activation-storage dtype (f32 accum)


# --------------------------------------------------------------------------------------
# small helpers
# --------------------------------------------------------------------------------------
def _pick_block_rows(total_rows, bytes_per_row, target=256, vmem_budget=8 << 20):
    """Largest 16-row-granular tile that divides total_rows, fits a per-step VMEM
    budget, and (when the row count allows) leaves >=4 grid steps for the pipeline /
    the second TensorCore [R9/R10]; falls back to the full extent."""
    cap = min(target, max(16, vmem_budget // max(bytes_per_row, 1)))
    cap = min(cap, max(16, total_rows // 4))
    cap = min(cap, total_rows)
    best = total_rows
    r = 16
    while r <= cap:
        if total_rows % r == 0:
            best = r
        r += 16
    return best


def _mosaic_params():
    # explicit VMEM limit so the same code does not silently hit v7x's smaller budget
    return pltpu.CompilerParams(dimension_semantics=("parallel",),
                                vmem_limit_bytes=32 * 1024 * 1024)


def _bilinear_matrix(n_in, n_out):
    """Interpolation matrix for bilinear resize, align_corners=False (PyTorch rule)."""
    if n_in == 1:
        return jnp.ones((n_out, 1), jnp.float32)
    o = jnp.arange(n_out, dtype=jnp.float32)
    src = jnp.clip((o + 0.5) * (n_in / n_out) - 0.5, 0.0, n_in - 1.0)
    i0 = jnp.clip(jnp.floor(src).astype(jnp.int32), 0, n_in - 2)
    frac = src - i0.astype(jnp.float32)
    rows = jnp.arange(n_out)
    a = jnp.zeros((n_out, n_in), jnp.float32)
    a = a.at[rows, i0].add(1.0 - frac)
    a = a.at[rows, i0 + 1].add(frac)
    return a


def _bn_scale_shift(stats, count, gamma, beta):
    """stats: (G, 2, Q) per-grid-step [sum; sum_sq] with Q = fold*C ->
    per-channel (scale, shift) for training-mode BatchNorm (biased variance)."""
    s = stats.sum(axis=0)                          # (2, Q)
    c = gamma.shape[0]
    s = s.reshape(2, -1, c).sum(axis=1)            # (2, C)
    mean = s[0] / count
    var = jnp.maximum(s[1] / count - mean * mean, 0.0)
    scale = gamma * lax.rsqrt(var + EPS)
    shift = beta - mean * scale
    return scale, shift


# --------------------------------------------------------------------------------------
# Kernel 1: "row matmul" -- ConvTranspose2d(k=2,s=2) over a full pixel row, with the
#           producer's BN affine + ReLU fused on the input and BN statistics emitted.
# --------------------------------------------------------------------------------------
def _rowmm_kernel(*refs, apply_input_act):
    i = 0
    x_ref = refs[i]; i += 1
    if apply_input_act:
        scale_ref, shift_ref = refs[i], refs[i + 1]; i += 2
    w_ref, b_ref, o_ref, stats_ref = refs[i], refs[i + 1], refs[i + 2], refs[i + 3]

    x = x_ref[...]
    if apply_input_act:                      # fused BN affine + ReLU of the producer
        x = jnp.maximum(x.astype(jnp.float32) * scale_ref[...] + shift_ref[...], 0.0)
    y = jnp.dot(x.astype(MM_DTYPE), w_ref[...],
                preferred_element_type=jnp.float32) + b_ref[...]
    o_ref[...] = y.astype(o_ref.dtype)       # bf16 activation storage [R7]
    # fused BN statistics in f32, two direct row stores (no sublane concat) [R11]
    stats_ref[0:1, :] = jnp.sum(y, axis=0, keepdims=True)
    stats_ref[1:2, :] = jnp.sum(y * y, axis=0, keepdims=True)


def _rowmm(x, w_big, b_big, scale=None, shift=None):
    """x: (R, K) bf16 slab; w_big: (K, Q) bf16 -> (R, Q) bf16, (G, 2, Q) f32 stats."""
    R, K = x.shape
    Q = w_big.shape[1]
    tr = _pick_block_rows(R, bytes_per_row=2 * K + 6 * Q)
    G = R // tr
    apply_act = scale is not None

    in_specs = [pl.BlockSpec((tr, K), lambda g: (g, 0))]
    args = [x]
    if apply_act:
        in_specs += [pl.BlockSpec((1, K), lambda g: (0, 0)),
                     pl.BlockSpec((1, K), lambda g: (0, 0))]
        args += [scale.reshape(1, K), shift.reshape(1, K)]
    in_specs += [pl.BlockSpec((K, Q), lambda g: (0, 0)),
                 pl.BlockSpec((1, Q), lambda g: (0, 0))]
    args += [w_big, b_big.reshape(1, Q)]

    y, st = pl.pallas_call(
        functools.partial(_rowmm_kernel, apply_input_act=apply_act),
        out_shape=(jax.ShapeDtypeStruct((R, Q), MM_DTYPE),
                   jax.ShapeDtypeStruct((G, 2, Q), jnp.float32)),
        grid=(G,),
        in_specs=in_specs,
        out_specs=(pl.BlockSpec((tr, Q), lambda g: (g, 0)),
                   pl.BlockSpec((None, 2, Q), lambda g: (g, 0, 0))),
        compiler_params=_mosaic_params(),
    )(*args)
    return y, st


# --------------------------------------------------------------------------------------
# Kernel 2: 3x3 "same" conv on a whole image slab.  Horizontal zero padding is folded
#           into the banded weights [R3]; vertical +/-1-row taps are applied as row
#           shifts of the f32 tap outputs [R4]; producer BN affine+ReLU and BN stats
#           are fused.
# --------------------------------------------------------------------------------------
def _conv3_kernel(x_ref, scale_ref, shift_ref, w_ref, b_ref, o_ref, stats_ref):
    x = jnp.maximum(x_ref[...].astype(jnp.float32) * scale_ref[...] + shift_ref[...],
                    0.0).astype(MM_DTYPE)
    # three row-tap matmuls against banded, spatially packed weights (K = W*C)
    t0 = jnp.dot(x, w_ref[0], preferred_element_type=jnp.float32)
    t1 = jnp.dot(x, w_ref[1], preferred_element_type=jnp.float32)
    t2 = jnp.dot(x, w_ref[2], preferred_element_type=jnp.float32)
    r, q = t1.shape
    zrow = jnp.zeros((1, q), jnp.float32)
    from_above = jnp.concatenate([zrow, t0[:r - 1, :]], axis=0)   # row i gets t0[i-1]
    from_below = jnp.concatenate([t2[1:, :], zrow], axis=0)       # row i gets t2[i+1]
    y = from_above + t1 + from_below + b_ref[...]
    o_ref[...] = y.astype(o_ref.dtype)                            # bf16 storage [R7]
    stats_ref[0:1, :] = jnp.sum(y, axis=0, keepdims=True)
    stats_ref[1:2, :] = jnp.sum(y * y, axis=0, keepdims=True)


def _conv3x3(x, w_big, b_big, rows_per_image, scale, shift):
    """x: (n_img*rows, W*C) bf16; w_big: (3, W*C, W*C) bf16 -> bf16 out + f32 stats."""
    R_tot, L = x.shape
    n_img = R_tot // rows_per_image
    Q = w_big.shape[2]
    y, st = pl.pallas_call(
        _conv3_kernel,
        out_shape=(jax.ShapeDtypeStruct((R_tot, Q), MM_DTYPE),
                   jax.ShapeDtypeStruct((n_img, 2, Q), jnp.float32)),
        grid=(n_img,),
        in_specs=[pl.BlockSpec((rows_per_image, L), lambda n: (n, 0)),
                  pl.BlockSpec((1, L), lambda n: (0, 0)),
                  pl.BlockSpec((1, L), lambda n: (0, 0)),
                  pl.BlockSpec(w_big.shape, lambda n: (0, 0, 0)),
                  pl.BlockSpec((1, Q), lambda n: (0, 0))],
        out_specs=(pl.BlockSpec((rows_per_image, Q), lambda n: (n, 0)),
                   pl.BlockSpec((None, 2, Q), lambda n: (n, 0, 0))),
        compiler_params=_mosaic_params(),
    )(x, scale.reshape(1, L), shift.reshape(1, L), w_big, b_big.reshape(1, Q))
    return y, st


# --------------------------------------------------------------------------------------
# Kernel 3: fused tail -- block-3 BN affine + ReLU -> final 1x1 conv | token head
#           (1x1 conv + bilinear resize, K-first order [R5]) -> 3x3 fusion conv ->
#           sigmoid.  pred_conv / pred_token never leave VMEM [R6].
# --------------------------------------------------------------------------------------
def _fusion_kernel(y3_ref, sc_ref, sh_ref, tok_ref, ah_ref, mp_ref,
                   wfin_ref, wfu_ref, fb_ref, o_ref):
    # conv branch
    z3 = jnp.maximum(y3_ref[...].astype(jnp.float32) * sc_ref[...] + sh_ref[...], 0.0)
    pred_conv = jnp.dot(z3.astype(MM_DTYPE), wfin_ref[...],
                        preferred_element_type=jnp.float32) + fb_ref[0:1, :]
    # token branch (f32 operands; tiny matmuls)
    u = jnp.dot(tok_ref[...], mp_ref[...], preferred_element_type=jnp.float32)
    pred_token = jnp.dot(ah_ref[...], u,
                         preferred_element_type=jnp.float32) + fb_ref[1:2, :]
    # fusion 3x3 conv over the two single-channel maps (banded horizontal taps,
    # vertical taps as f32 row shifts)
    pc = pred_conv.astype(MM_DTYPE)
    pt = pred_token.astype(MM_DTYPE)
    taps = []
    for di in range(3):
        taps.append(jnp.dot(pc, wfu_ref[di], preferred_element_type=jnp.float32) +
                    jnp.dot(pt, wfu_ref[3 + di], preferred_element_type=jnp.float32))
    t0, t1, t2 = taps
    r, q = t1.shape
    zrow = jnp.zeros((1, q), jnp.float32)
    from_above = jnp.concatenate([zrow, t0[:r - 1, :]], axis=0)
    from_below = jnp.concatenate([t2[1:, :], zrow], axis=0)
    logits = from_above + t1 + from_below + fb_ref[2:3, :]
    o_ref[...] = 1.0 / (1.0 + jnp.exp(-logits))


def _fusion_head(y3, scale3, shift3, tok2d, a_h, m_proj, wfin_big, wfu_big, fbias,
                 h, h_out, w_out):
    B = tok2d.shape[0] // h
    Lc = y3.shape[1]
    Lt = tok2d.shape[1]
    return pl.pallas_call(
        _fusion_kernel,
        out_shape=jax.ShapeDtypeStruct((B * h_out, w_out), jnp.float32),
        grid=(B,),
        in_specs=[pl.BlockSpec((h_out, Lc), lambda n: (n, 0)),
                  pl.BlockSpec((1, Lc), lambda n: (0, 0)),
                  pl.BlockSpec((1, Lc), lambda n: (0, 0)),
                  pl.BlockSpec((h, Lt), lambda n: (n, 0)),
                  pl.BlockSpec((h_out, h), lambda n: (0, 0)),
                  pl.BlockSpec((Lt, w_out), lambda n: (0, 0)),
                  pl.BlockSpec((Lc, w_out), lambda n: (0, 0)),
                  pl.BlockSpec(wfu_big.shape, lambda n: (0, 0, 0)),
                  pl.BlockSpec((3, w_out), lambda n: (0, 0))],
        out_specs=pl.BlockSpec((h_out, w_out), lambda n: (n, 0)),
        compiler_params=_mosaic_params(),
    )(y3, scale3.reshape(1, Lc), shift3.reshape(1, Lc), tok2d,
      a_h, m_proj, wfin_big, wfu_big, fbias)


# --------------------------------------------------------------------------------------
# Weight packing (done ONCE at init time, outside the jitted forward) [R1]
# --------------------------------------------------------------------------------------
def _convt_big_weights(wt, bt, w):
    """ConvTranspose2d(k=2,s=2) over a full W-pixel row as one matmul; columns ordered
    (a, j, b, co) so the kernel output is already de-interleaved NHWC (free reshape)."""
    cin, cout = wt.shape[0], wt.shape[1]
    m = jnp.transpose(wt, (0, 2, 3, 1))                       # (ci, a, b, co)
    eye_w = jnp.eye(w, dtype=jnp.float32)
    big = jnp.concatenate(
        [jnp.kron(eye_w, m[:, a].reshape(cin, 2 * cout)) for a in (0, 1)], axis=1)
    return big.astype(MM_DTYPE), jnp.tile(bt, 2 * w * 2).astype(jnp.float32)


def _conv3_big_weights(w2, b2, w):
    """3x3 conv over a (rows, w*cin) slab: banded (w*cin) x (w*cout) weight per row tap;
    the horizontal zero padding is folded into the band (eye(w, w, k=1-dj)) [R3]."""
    wr = jnp.transpose(w2, (2, 3, 1, 0)).astype(jnp.float32)  # (di, dj, ci, co)
    taps = []
    for di in range(3):
        acc = 0.0
        for dj in range(3):
            acc = acc + jnp.kron(jnp.eye(w, w, k=1 - dj, dtype=jnp.float32), wr[di, dj])
        taps.append(acc)
    big = jnp.stack(taps, axis=0)                             # (3, w*cin, w*cout)
    return big.astype(MM_DTYPE), jnp.tile(b2, w).astype(jnp.float32)


def pack_params(params, h, w):
    """One-time packing of all static weights into lane-dense, MXU-ready operands."""
    c0 = params['w_mask'].shape[1]
    c3 = params['w_final'].shape[1]
    packed_blocks = []
    cw = w
    for blk in params['blocks']:
        wt_big, bt_big = _convt_big_weights(blk['wt'], blk['bt'], cw)
        wc_big, bc_big = _conv3_big_weights(blk['w2'], blk['b2'], 2 * cw)
        packed_blocks.append(dict(
            wt_big=wt_big, bt_big=bt_big, wc_big=wc_big, bc_big=bc_big,
            gamma1=blk['gamma1'], beta1=blk['beta1'],
            gamma2=blk['gamma2'], beta2=blk['beta2']))
        cw = 2 * cw
    h_out, w_out = 8 * h, 8 * w

    wfin_big = jnp.kron(jnp.eye(w_out, dtype=jnp.float32),
                        params['w_final'].reshape(c3, 1)).astype(MM_DTYPE)
    a_h = _bilinear_matrix(h, h_out)
    a_w = _bilinear_matrix(w, w_out)
    m_proj = jnp.kron(a_w.T, params['w_mask'].reshape(c0, 1)).astype(jnp.float32)

    wf = params['w_fuse'].astype(jnp.float32)                 # (1, 2, 3, 3)
    wfu = []
    for ch_idx in range(2):                                   # ch0=pred_conv, ch1=token
        for di in range(3):
            acc = 0.0
            for dj in range(3):
                acc = acc + (jnp.eye(w_out, w_out, k=1 - dj, dtype=jnp.float32)
                             * wf[0, ch_idx, di, dj])
            wfu.append(acc)
    wfu_big = jnp.stack(wfu, axis=0).astype(MM_DTYPE)         # (6, w_out, w_out)

    fbias = jnp.stack([jnp.tile(params['b_final'].astype(jnp.float32), w_out),
                       jnp.tile(params['b_mask'].astype(jnp.float32), w_out),
                       jnp.tile(params['b_fuse'].astype(jnp.float32), w_out)], axis=0)
    return dict(blocks=packed_blocks, wfin_big=wfin_big, a_h=a_h, m_proj=m_proj,
                wfu_big=wfu_big, fbias=fbias)


# --------------------------------------------------------------------------------------
# FullMaskDecoder forward
# --------------------------------------------------------------------------------------
def full_mask_decoder_forward(fused_feat, token_feat, packed):
    """fused_feat: (B, C, H, W) NCHW; token_feat: (B, H*W, C).  Returns (B, 1, 8H, 8W)."""
    b, c0, h, w = fused_feat.shape
    h_out, w_out = 8 * h, 8 * w

    # NCHW -> lane-dense NHWC slab (rows = B*H, lanes = W*C), bf16 storage [R7]
    cur = jnp.transpose(fused_feat, (0, 2, 3, 1)).astype(MM_DTYPE).reshape(b * h, w * c0)

    scale = shift = None
    ch, cw = h, w
    for blk in packed['blocks']:
        cout = blk['gamma1'].shape[0]
        # ConvTranspose2d(2,2) with the previous block's BN affine + ReLU fused in
        sc_in = jnp.tile(scale, cw) if scale is not None else None
        sh_in = jnp.tile(shift, cw) if shift is not None else None
        y1, st1 = _rowmm(cur, blk['wt_big'], blk['bt_big'], scale=sc_in, shift=sh_in)
        h2, w2 = 2 * ch, 2 * cw
        y1 = y1.reshape(b * h2, w2 * cout)        # free row-major reshape (NHWC order)
        count = b * h2 * w2
        scale1, shift1 = _bn_scale_shift(st1, count, blk['gamma1'], blk['beta1'])
        # 3x3 conv with BN1 affine + ReLU fused in; emits BN2 statistics
        y2, st2 = _conv3x3(y1, blk['wc_big'], blk['bc_big'], rows_per_image=h2,
                           scale=jnp.tile(scale1, w2), shift=jnp.tile(shift1, w2))
        scale, shift = _bn_scale_shift(st2, count, blk['gamma2'], blk['beta2'])
        cur, ch, cw = y2, h2, w2

    # fused tail: BN2+ReLU of block 3 -> final 1x1 conv | token head -> fusion -> sigmoid
    tok2d = token_feat.astype(jnp.float32).reshape(b * h, w * c0)
    out = _fusion_head(cur, jnp.tile(scale, cw), jnp.tile(shift, cw), tok2d,
                       packed['a_h'], packed['m_proj'], packed['wfin_big'],
                       packed['wfu_big'], packed['fbias'], h, h_out, w_out)
    return out.reshape(b, 1, h_out, w_out)


# --------------------------------------------------------------------------------------
# Deterministic parameters
# --------------------------------------------------------------------------------------
def init_params(key, token_dim=32):
    keys = iter(jax.random.split(key, 64))

    def uni(shape, bound):
        return jax.random.uniform(next(keys), shape, jnp.float32, -bound, bound)

    dims = [token_dim, token_dim // 2, token_dim // 4, token_dim // 8]
    blocks = []
    for cin, cout in zip(dims[:-1], dims[1:]):
        bt_bound = 1.0 / (cin * 4) ** 0.5
        c_bound = 1.0 / (cout * 9) ** 0.5
        blocks.append(dict(
            wt=uni((cin, cout, 2, 2), bt_bound), bt=uni((cout,), bt_bound),
            gamma1=1.0 + 0.1 * jax.random.normal(next(keys), (cout,), jnp.float32),
            beta1=0.1 * jax.random.normal(next(keys), (cout,), jnp.float32),
            w2=uni((cout, cout, 3, 3), c_bound), b2=uni((cout,), c_bound),
            gamma2=1.0 + 0.1 * jax.random.normal(next(keys), (cout,), jnp.float32),
            beta2=0.1 * jax.random.normal(next(keys), (cout,), jnp.float32),
        ))
    c3 = dims[-1]
    fb, mb, fu = 1.0 / c3 ** 0.5, 1.0 / token_dim ** 0.5, 1.0 / (2 * 9) ** 0.5
    return dict(blocks=blocks,
                w_final=uni((1, c3, 1, 1), fb), b_final=uni((1,), fb),
                w_mask=uni((1, token_dim, 1, 1), mb), b_mask=uni((1,), mb),
                w_fuse=uni((1, 2, 3, 3), fu), b_fuse=uni((1,), fu))


# --------------------------------------------------------------------------------------
# Pure-JAX reference.  It mirrors the kernels' mixed-precision policy (bf16 MXU
# operands, bf16 inter-layer activation storage, f32 accumulation / BN statistics) so
# that the only residual difference is MXU-vs-XLA summation order.
# --------------------------------------------------------------------------------------
def reference_forward(fused_feat, token_feat, params):
    f32 = jnp.float32
    cast = lambda a: a.astype(MM_DTYPE)
    q = lambda a: a.astype(MM_DTYPE).astype(f32)   # models bf16 HBM activation storage

    def bn_relu(y, g, bb):
        mean = jnp.mean(y, axis=(0, 1, 2))
        var = jnp.mean((y - mean) ** 2, axis=(0, 1, 2))
        scale = g * lax.rsqrt(var + EPS)
        return jnp.maximum(q(y) * scale + (bb - mean * scale), 0.0)

    cur = jnp.transpose(fused_feat, (0, 2, 3, 1)).astype(f32)
    for blk in params['blocks']:
        n, hh, ww, _ = cur.shape
        co = blk['wt'].shape[1]
        t = jnp.einsum('nhwi,ioab->nhawbo', cast(cur), cast(blk['wt']),
                       preferred_element_type=f32)
        y1 = t.reshape(n, 2 * hh, 2 * ww, co) + blk['bt']
        z1 = bn_relu(y1, blk['gamma1'], blk['beta1'])
        y2 = lax.conv_general_dilated(
            cast(z1), cast(jnp.transpose(blk['w2'], (2, 3, 1, 0))), (1, 1), 'SAME',
            dimension_numbers=('NHWC', 'HWIO', 'NHWC'),
            preferred_element_type=f32) + blk['b2']
        cur = bn_relu(y2, blk['gamma2'], blk['beta2'])

    pred_conv = jnp.einsum('nhwc,c->nhw', cast(cur), cast(params['w_final'].reshape(-1)),
                           preferred_element_type=f32) + params['b_final'][0]

    b, _, h, w = fused_feat.shape
    h_out, w_out = 8 * h, 8 * w
    g = (jnp.einsum('npc,c->np', token_feat.astype(f32),
                    params['w_mask'].reshape(-1).astype(f32),
                    precision=lax.Precision.HIGHEST).reshape(b, h, w)
         + params['b_mask'][0])
    a_h, a_w = _bilinear_matrix(h, h_out), _bilinear_matrix(w, w_out)
    pred_token = jnp.einsum('oi,nij,pj->nop', a_h, g, a_w,
                            precision=lax.Precision.HIGHEST)

    cat = jnp.stack([pred_conv, pred_token], axis=-1)
    logits = lax.conv_general_dilated(
        cast(cat), cast(jnp.transpose(params['w_fuse'], (2, 3, 1, 0))), (1, 1), 'SAME',
        dimension_numbers=('NHWC', 'HWIO', 'NHWC'),
        preferred_element_type=f32)[..., 0] + params['b_fuse'][0]
    return jax.nn.sigmoid(logits).reshape(b, 1, h_out, w_out)


# --------------------------------------------------------------------------------------
if __name__ == "__main__":
    key = jax.random.PRNGKey(0)
    token_dim, b, h, w = 32, 2, 8, 8

    pkey, fkey, tkey = jax.random.split(key, 3)
    params = init_params(pkey, token_dim=token_dim)
    packed = pack_params(params, h, w)           # one-time packing, outside the jit [R1]
    fused_feat = jax.random.normal(fkey, (b, token_dim, h, w), jnp.float32)
    token_feat = jax.random.normal(tkey, (b, h * w, token_dim), jnp.float32)

    fwd = jax.jit(full_mask_decoder_forward)
    out = jax.block_until_ready(fwd(fused_feat, token_feat, packed))
    assert out.shape == (b, 1, 8 * h, 8 * w), out.shape

    ref = jax.block_until_ready(jax.jit(reference_forward)(fused_feat, token_feat, params))
    max_err = float(jnp.max(jnp.abs(out - ref)))
    assert max_err < 1e-2, f"max abs err {max_err}"

    print("KERNEL_OK")
</pallas_src>

<mosaic_0001>
module attributes {stable_mosaic.version = 11 : i64} {
  func.func @_rowmm_kernel(%arg0: i32, %arg1: memref<16x256xbf16, #tpu.memory_space<vmem>>, %arg2: memref<256x512xbf16, #tpu.memory_space<vmem>>, %arg3: memref<1x512xf32, #tpu.memory_space<vmem>>, %arg4: memref<16x512xbf16, #tpu.memory_space<vmem>>, %arg5: memref<1x2x512xf32, #tpu.memory_space<vmem>>) attributes {dimension_semantics = [#tpu.dimension_semantics<parallel>], iteration_bounds = array<i64: 1>, scalar_prefetch = 0 : i64, scratch_operands = 0 : i64, tpu.core_type = #tpu.core_type<tc>, window_params = [{transform_indices = @transform_0, window_bounds = array<i64: 16, 256>}, {pipeline_mode = #tpu.pipeline_mode<synchronous>, transform_indices = @transform_1, window_bounds = array<i64: 256, 512>}, {pipeline_mode = #tpu.pipeline_mode<synchronous>, transform_indices = @transform_2, window_bounds = array<i64: 1, 512>}, {transform_indices = @transform_3, window_bounds = array<i64: 16, 512>}, {transform_indices = @transform_4, window_bounds = array<i64: 1, 2, 512>}]} {
    %c0 = arith.constant 0 : index
    %c0_0 = arith.constant 0 : index
    %0 = vector.load %arg1[%c0, %c0_0] : memref<16x256xbf16, #tpu.memory_space<vmem>>, vector<16x256xbf16>
    %c0_1 = arith.constant 0 : index
    %c0_2 = arith.constant 0 : index
    %1 = vector.load %arg2[%c0_1, %c0_2] : memref<256x512xbf16, #tpu.memory_space<vmem>>, vector<256x512xbf16>
    %cst = arith.constant dense<0.000000e+00> : vector<16x512xf32>
    %2 = tpu.matmul %0, %1, %cst {dimension_numbers = #tpu.dot_dimension_numbers<[1], [0], [0], [1], [0, 0, 1, 1], [], []>} : vector<16x256xbf16>, vector<256x512xbf16>, vector<16x512xf32> -> vector<16x512xf32>
    %c0_3 = arith.constant 0 : index
    %c0_4 = arith.constant 0 : index
    %3 = vector.load %arg3[%c0_3, %c0_4] : memref<1x512xf32, #tpu.memory_space<vmem>>, vector<1x512xf32>
    %4 = vector.broadcast %3 : vector<1x512xf32> to vector<16x512xf32>
    %5 = arith.addf %2, %4 : vector<16x512xf32>
    %6 = arith.truncf %5 : vector<16x512xf32> to vector<16x512xbf16>
    %c0_5 = arith.constant 0 : index
    %c0_6 = arith.constant 0 : index
    %7 = vector.load %arg4[%c0_5, %c0_6] : memref<16x512xbf16, #tpu.memory_space<vmem>>, vector<16x512xbf16>
    tpu.vector_store %arg4[%c0_5, %c0_6], %6 {strides = array<i32>} : memref<16x512xbf16, #tpu.memory_space<vmem>>, vector<16x512xbf16>,
    %cst_7 = arith.constant dense<0.000000e+00> : vector<512xf32>
    %8 = vector.multi_reduction <add>, %5, %cst_7 [0] : vector<16x512xf32> to vector<512xf32>
    %9 = vector.shape_cast %8 : vector<512xf32> to vector<1x512xf32>
    %c0_8 = arith.constant 0 : index
    %c0_9 = arith.constant 0 : index
    %c0_10 = arith.constant 0 : index
    %10 = vector.load %arg5[%c0_8, %c0_9, %c0_10] : memref<1x2x512xf32, #tpu.memory_space<vmem>>, vector<1x1x512xf32>
    %11 = vector.shape_cast %10 : vector<1x1x512xf32> to vector<1x512xf32>
    %12 = vector.shape_cast %9 : vector<1x512xf32> to vector<1x1x512xf32>
    tpu.vector_store %arg5[%c0_8, %c0_9, %c0_10], %12 {strides = array<i32>} : memref<1x2x512xf32, #tpu.memory_space<vmem>>, vector<1x1x512xf32>,
    %13 = arith.mulf %5, %5 : vector<16x512xf32>
    %cst_11 = arith.constant dense<0.000000e+00> : vector<512xf32>
    %14 = vector.multi_reduction <add>, %13, %cst_11 [0] : vector<16x512xf32> to vector<512xf32>
    %15 = vector.shape_cast %14 : vector<512xf32> to vector<1x512xf32>
    %c0_12 = arith.constant 0 : index
    %c1 = arith.constant 1 : index
    %c0_13 = arith.constant 0 : index
    %16 = vector.load %arg5[%c0_12, %c1, %c0_13] : memref<1x2x512xf32, #tpu.memory_space<vmem>>, vector<1x1x512xf32>
    %17 = vector.shape_cast %16 : vector<1x1x512xf32> to vector<1x512xf32>
    %18 = vector.shape_cast %15 : vector<1x512xf32> to vector<1x1x512xf32>
    tpu.vector_store %arg5[%c0_12, %c1, %c0_13], %18 {strides = array<i32>} : memref<1x2x512xf32, #tpu.memory_space<vmem>>, vector<1x1x512xf32>,
    return
  }
  func.func @transform_0(%arg0: i32) -> (i32, i32) {
    %c0_i32 = arith.constant 0 : i32
    %c0_i32_0 = arith.constant 0 : i32
    return %arg0, %c0_i32 : i32, i32
  }
  func.func @transform_1(%arg0: i32) -> (i32, i32) {
    %c0_i32 = arith.constant 0 : i32
    %c0_i32_0 = arith.constant 0 : i32
    %c0_i32_1 = arith.constant 0 : i32
    return %c0_i32, %c0_i32_0 : i32, i32
  }
  func.func @transform_2(%arg0: i32) -> (i32, i32) {
    %c0_i32 = arith.constant 0 : i32
    %c0_i32_0 = arith.constant 0 : i32
    %c0_i32_1 = arith.constant 0 : i32
    return %c0_i32, %c0_i32_0 : i32, i32
  }
  func.func @transform_3(%arg0: i32) -> (i32, i32) {
    %c0_i32 = arith.constant 0 : i32
    %c0_i32_0 = arith.constant 0 : i32
    return %arg0, %c0_i32 : i32, i32
  }
  func.func @transform_4(%arg0: i32) -> (i32, i32, i32) {
    %c0_i32 = arith.constant 0 : i32
    %c0_i32_0 = arith.constant 0 : i32
    %c0_i32_1 = arith.constant 0 : i32
    return %arg0, %c0_i32, %c0_i32_0 : i32, i32, i32
  }
}

module attributes {stable_mosaic.version = 11 : i64} {
  func.func @_conv3_kernel(%arg0: i32, %arg1: memref<16x256xbf16, #tpu.memory_space<vmem>>, %arg2: memref<1x256xf32, #tpu.memory_space<vmem>>, %arg3: memref<1x256xf32, #tpu.memory_space<vmem>>, %arg4: memref<3x256x256xbf16, #tpu.memory_space<vmem>>, %arg5: memref<1x256xf32, #tpu.memory_space<vmem>>, %arg6: memref<16x256xbf16, #tpu.memory_space<vmem>>, %arg7: memref<1x2x256xf32, #tpu.memory_space<vmem>>) attributes {dimension_semantics = [#tpu.dimension_semantics<parallel>], iteration_bounds = array<i64: 2>, scalar_prefetch = 0 : i64, scratch_operands = 0 : i64, tpu.core_type = #tpu.core_type<tc>, window_params = [{transform_indices = @transform_0, window_bounds = array<i64: 16, 256>}, {pipeline_mode = #tpu.pipeline_mode<synchronous>, transform_indices = @transform_1, window_bounds = array<i64: 1, 256>}, {pipeline_mode = #tpu.pipeline_mode<synchronous>, transform_indices = @transform_2, window_bounds = array<i64: 1, 256>}, {pipeline_mode = #tpu.pipeline_mode<synchronous>, transform_indices = @transform_3, window_bounds = array<i64: 3, 256, 256>}, {pipeline_mode = #tpu.pipeline_mode<synchronous>, transform_indices = @transform_4, window_bounds = array<i64: 1, 256>}, {transform_indices = @transform_5, window_bounds = array<i64: 16, 256>}, {transform_indices = @transform_6, window_bounds = array<i64: 1, 2, 256>}]} {
    %c0 = arith.constant 0 : index
    %c0_0 = arith.constant 0 : index
    %0 = vector.load %arg1[%c0, %c0_0] : memref<16x256xbf16, #tpu.memory_space<vmem>>, vector<16x256xbf16>
    %1 = arith.extf %0 : vector<16x256xbf16> to vector<16x256xf32>
    %c0_1 = arith.constant 0 : index
    %c0_2 = arith.constant 0 : index
    %2 = vector.load %arg2[%c0_1, %c0_2] : memref<1x256xf32, #tpu.memory_space<vmem>>, vector<1x256xf32>
    %3 = vector.broadcast %2 : vector<1x256xf32> to vector<16x256xf32>
    %4 = arith.mulf %1, %3 : vector<16x256xf32>
    %c0_3 = arith.constant 0 : index
    %c0_4 = arith.constant 0 : index
    %5 = vector.load %arg3[%c0_3, %c0_4] : memref<1x256xf32, #tpu.memory_space<vmem>>, vector<1x256xf32>
    %6 = vector.broadcast %5 : vector<1x256xf32> to vector<16x256xf32>
    %7 = arith.addf %4, %6 : vector<16x256xf32>
    %cst = arith.constant 0.000000e+00 : f32
    %8 = vector.broadcast %cst : f32 to vector<16x256xf32>
    %9 = arith.maximumf %7, %8 : vector<16x256xf32>
    %10 = arith.truncf %9 : vector<16x256xf32> to vector<16x256xbf16>
    %c0_5 = arith.constant 0 : index
    %c0_6 = arith.constant 0 : index
    %c0_7 = arith.constant 0 : index
    %11 = vector.load %arg4[%c0_5, %c0_6, %c0_7] : memref<3x256x256xbf16, #tpu.memory_space<vmem>>, vector<1x256x256xbf16>
    %12 = vector.shape_cast %11 : vector<1x256x256xbf16> to vector<256x256xbf16>
    %cst_8 = arith.constant dense<0.000000e+00> : vector<16x256xf32>
    %13 = tpu.matmul %10, %12, %cst_8 {dimension_numbers = #tpu.dot_dimension_numbers<[1], [0], [0], [1], [0, 0, 1, 1], [], []>} : vector<16x256xbf16>, vector<256x256xbf16>, vector<16x256xf32> -> vector<16x256xf32>
    %c1 = arith.constant 1 : index
    %c0_9 = arith.constant 0 : index
    %c0_10 = arith.constant 0 : index
    %14 = vector.load %arg4[%c1, %c0_9, %c0_10] : memref<3x256x256xbf16, #tpu.memory_space<vmem>>, vector<1x256x256xbf16>
    %15 = vector.shape_cast %14 : vector<1x256x256xbf16> to vector<256x256xbf16>
    %cst_11 = arith.constant dense<0.000000e+00> : vector<16x256xf32>
    %16 = tpu.matmul %10, %15, %cst_11 {dimension_numbers = #tpu.dot_dimension_numbers<[1], [0], [0], [1], [0, 0, 1, 1], [], []>} : vector<16x256xbf16>, vector<256x256xbf16>, vector<16x256xf32> -> vector<16x256xf32>
    %c2 = arith.constant 2 : index
    %c0_12 = arith.constant 0 : index
    %c0_13 = arith.constant 0 : index
    %17 = vector.load %arg4[%c2, %c0_12, %c0_13] : memref<3x256x256xbf16, #tpu.memory_space<vmem>>, vector<1x256x256xbf16>
    %18 = vector.shape_cast %17 : vector<1x256x256xbf16> to vector<256x256xbf16>
    %cst_14 = arith.constant dense<0.000000e+00> : vector<16x256xf32>
    %19 = tpu.matmul %10, %18, %cst_14 {dimension_numbers = #tpu.dot_dimension_numbers<[1], [0], [0], [1], [0, 0, 1, 1], [], []>} : vector<16x256xbf16>, vector<256x256xbf16>, vector<16x256xf32> -> vector<16x256xf32>
    %cst_15 = arith.constant 0.000000e+00 : f32
    %20 = vector.broadcast %cst_15 : f32 to vector<1x256xf32>
    %21 = vector.extract_strided_slice %13 {offsets = [0, 0], sizes = [15, 256], strides = [1, 1]} : vector<16x256xf32> to vector<15x256xf32>
    %22 = tpu.concatenate %20, %21 in 0 : vector<1x256xf32>, vector<15x256xf32> -> vector<16x256xf32>
    %23 = vector.extract_strided_slice %19 {offsets = [1, 0], sizes = [15, 256], strides = [1, 1]} : vector<16x256xf32> to vector<15x256xf32>
    %24 = tpu.concatenate %23, %20 in 0 : vector<15x256xf32>, vector<1x256xf32> -> vector<16x256xf32>
    %25 = arith.addf %22, %16 : vector<16x256xf32>
    %26 = arith.addf %25, %24 : vector<16x256xf32>
    %c0_16 = arith.constant 0 : index
    %c0_17 = arith.constant 0 : index
    %27 = vector.load %arg5[%c0_16, %c0_17] : memref<1x256xf32, #tpu.memory_space<vmem>>, vector<1x256xf32>
    %28 = vector.broadcast %27 : vector<1x256xf32> to vector<16x256xf32>
    %29 = arith.addf %26, %28 : vector<16x256xf32>
    %30 = arith.truncf %29 : vector<16x256xf32> to vector<16x256xbf16>
    %c0_18 = arith.constant 0 : index
    %c0_19 = arith.constant 0 : index
    %31 = vector.load %arg6[%c0_18, %c0_19] : memref<16x256xbf16, #tpu.memory_space<vmem>>, vector<16x256xbf16>
    tpu.vector_store %arg6[%c0_18, %c0_19], %30 {strides = array<i32>} : memref<16x256xbf16, #tpu.memory_space<vmem>>, vector<16x256xbf16>,
    %cst_20 = arith.constant dense<0.000000e+00> : vector<256xf32>
    %32 = vector.multi_reduction <add>, %29, %cst_20 [0] : vector<16x256xf32> to vector<256xf32>
    %33 = vector.shape_cast %32 : vector<256xf32> to vector<1x256xf32>
    %c0_21 = arith.constant 0 : index
    %c0_22 = arith.constant 0 : index
    %c0_23 = arith.constant 0 : index
    %34 = vector.load %arg7[%c0_21, %c0_22, %c0_23] : memref<1x2x256xf32, #tpu.memory_space<vmem>>, vector<1x1x256xf32>
    %35 = vector.shape_cast %34 : vector<1x1x256xf32> to vector<1x256xf32>
    %36 = vector.shape_cast %33 : vector<1x256xf32> to vector<1x1x256xf32>
    tpu.vector_store %arg7[%c0_21, %c0_22, %c0_23], %36 {strides = array<i32>} : memref<1x2x256xf32, #tpu.memory_space<vmem>>, vector<1x1x256xf32>,
    %37 = arith.mulf %29, %29 : vector<16x256xf32>
    %cst_24 = arith.constant dense<0.000000e+00> : vector<256xf32>
    %38 = vector.multi_reduction <add>, %37, %cst_24 [0] : vector<16x256xf32> to vector<256xf32>
    %39 = vector.shape_cast %38 : vector<256xf32> to vector<1x256xf32>
    %c0_25 = arith.constant 0 : index
    %c1_26 = arith.constant 1 : index
    %c0_27 = arith.constant 0 : index
    %40 = vector.load %arg7[%c0_25, %c1_26, %c0_27] : memref<1x2x256xf32, #tpu.memory_space<vmem>>, vector<1x1x256xf32>
    %41 = vector.shape_cast %40 : vector<1x1x256xf32> to vector<1x256xf32>
    %42 = vector.shape_cast %39 : vector<1x256xf32> to vector<1x1x256xf32>
    tpu.vector_store %arg7[%c0_25, %c1_26, %c0_27], %42 {strides = array<i32>} : memref<1x2x256xf32, #tpu.memory_space<vmem>>, vector<1x1x256xf32>,
    return
  }
  func.func @transform_0(%arg0: i32) -> (i32, i32) {
    %c0_i32 = arith.constant 0 : i32
    %c0_i32_0 = arith.constant 0 : i32
    return %arg0, %c0_i32 : i32, i32
  }
  func.func @transform_1(%arg0: i32) -> (i32, i32) {
    %c0_i32 = arith.constant 0 : i32
    %c0_i32_0 = arith.constant 0 : i32
    %c0_i32_1 = arith.constant 0 : i32
    return %c0_i32, %c0_i32_0 : i32, i32
  }
  func.func @transform_2(%arg0: i32) -> (i32, i32) {
    %c0_i32 = arith.constant 0 : i32
    %c0_i32_0 = arith.constant 0 : i32
    %c0_i32_1 = arith.constant 0 : i32
    return %c0_i32, %c0_i32_0 : i32, i32
  }
  func.func @transform_3(%arg0: i32) -> (i32, i32, i32) {
    %c0_i32 = arith.constant 0 : i32
    %c0_i32_0 = arith.constant 0 : i32
    %c0_i32_1 = arith.constant 0 : i32
    %c0_i32_2 = arith.constant 0 : i32
    return %c0_i32, %c0_i32_0, %c0_i32_1 : i32, i32, i32
  }
  func.func @transform_4(%arg0: i32) -> (i32, i32) {
    %c0_i32 = arith.constant 0 : i32
    %c0_i32_0 = arith.constant 0 : i32
    %c0_i32_1 = arith.constant 0 : i32
    return %c0_i32, %c0_i32_0 : i32, i32
  }
  func.func @transform_5(%arg0: i32) -> (i32, i32) {
    %c0_i32 = arith.constant 0 : i32
    %c0_i32_0 = arith.constant 0 : i32
    return %arg0, %c0_i32 : i32, i32
  }
  func.func @transform_6(%arg0: i32) -> (i32, i32, i32) {
    %c0_i32 = arith.constant 0 : i32
    %c0_i32_0 = arith.constant 0 : i32
    %c0_i32_1 = arith.constant 0 : i32
    return %arg0, %c0_i32, %c0_i32_0 : i32, i32, i32
  }
}

module attributes {stable_mosaic.version = 11 : i64} {
  func.func @_rowmm_kernel(%arg0: i32, %arg1: memref<16x256xbf16, #tpu.memory_space<vmem>>, %arg2: memref<1x256xf32, #tpu.memory_space<vmem>>, %arg3: memref<1x256xf32, #tpu.memory_space<vmem>>, %arg4: memref<256x512xbf16, #tpu.memory_space<vmem>>, %arg5: memref<1x512xf32, #tpu.memory_space<vmem>>, %arg6: memref<16x512xbf16, #tpu.memory_space<vmem>>, %arg7: memref<1x2x512xf32, #tpu.memory_space<vmem>>) attributes {dimension_semantics = [#tpu.dimension_semantics<parallel>], iteration_bounds = array<i64: 2>, scalar_prefetch = 0 : i64, scratch_operands = 0 : i64, tpu.core_type = #tpu.core_type<tc>, window_params = [{transform_indices = @transform_0, window_bounds = array<i64: 16, 256>}, {pipeline_mode = #tpu.pipeline_mode<synchronous>, transform_indices = @transform_1, window_bounds = array<i64: 1, 256>}, {pipeline_mode = #tpu.pipeline_mode<synchronous>, transform_indices = @transform_2, window_bounds = array<i64: 1, 256>}, {pipeline_mode = #tpu.pipeline_mode<synchronous>, transform_indices = @transform_3, window_bounds = array<i64: 256, 512>}, {pipeline_mode = #tpu.pipeline_mode<synchronous>, transform_indices = @transform_4, window_bounds = array<i64: 1, 512>}, {transform_indices = @transform_5, window_bounds = array<i64: 16, 512>}, {transform_indices = @transform_6, window_bounds = array<i64: 1, 2, 512>}]} {
    %c0 = arith.constant 0 : index
    %c0_0 = arith.constant 0 : index
    %0 = vector.load %arg1[%c0, %c0_0] : memref<16x256xbf16, #tpu.memory_space<vmem>>, vector<16x256xbf16>
    %1 = arith.extf %0 : vector<16x256xbf16> to vector<16x256xf32>
    %c0_1 = arith.constant 0 : index
    %c0_2 = arith.constant 0 : index
    %2 = vector.load %arg2[%c0_1, %c0_2] : memref<1x256xf32, #tpu.memory_space<vmem>>, vector<1x256xf32>
    %3 = vector.broadcast %2 : vector<1x256xf32> to vector<16x256xf32>
    %4 = arith.mulf %1, %3 : vector<16x256xf32>
    %c0_3 = arith.constant 0 : index
    %c0_4 = arith.constant 0 : index
    %5 = vector.load %arg3[%c0_3, %c0_4] : memref<1x256xf32, #tpu.memory_space<vmem>>, vector<1x256xf32>
    %6 = vector.broadcast %5 : vector<1x256xf32> to vector<16x256xf32>
    %7 = arith.addf %4, %6 : vector<16x256xf32>
    %cst = arith.constant 0.000000e+00 : f32
    %8 = vector.broadcast %cst : f32 to vector<16x256xf32>
    %9 = arith.maximumf %7, %8 : vector<16x256xf32>
    %10 = arith.truncf %9 : vector<16x256xf32> to vector<16x256xbf16>
    %c0_5 = arith.constant 0 : index
    %c0_6 = arith.constant 0 : index
    %11 = vector.load %arg4[%c0_5, %c0_6] : memref<256x512xbf16, #tpu.memory_space<vmem>>, vector<256x512xbf16>
    %cst_7 = arith.constant dense<0.000000e+00> : vector<16x512xf32>
    %12 = tpu.matmul %10, %11, %cst_7 {dimension_numbers = #tpu.dot_dimension_numbers<[1], [0], [0], [1], [0, 0, 1, 1], [], []>} : vector<16x256xbf16>, vector<256x512xbf16>, vector<16x512xf32> -> vector<16x512xf32>
    %c0_8 = arith.constant 0 : index
    %c0_9 = arith.constant 0 : index
    %13 = vector.load %arg5[%c0_8, %c0_9] : memref<1x512xf32, #tpu.memory_space<vmem>>, vector<1x512xf32>
    %14 = vector.broadcast %13 : vector<1x512xf32> to vector<16x512xf32>
    %15 = arith.addf %12, %14 : vector<16x512xf32>
    %16 = arith.truncf %15 : vector<16x512xf32> to vector<16x512xbf16>
    %c0_10 = arith.constant 0 : index
    %c0_11 = arith.constant 0 : index
    %17 = vector.load %arg6[%c0_10, %c0_11] : memref<16x512xbf16, #tpu.memory_space<vmem>>, vector<16x512xbf16>
    tpu.vector_store %arg6[%c0_10, %c0_11], %16 {strides = array<i32>} : memref<16x512xbf16, #tpu.memory_space<vmem>>, vector<16x512xbf16>,
    %cst_12 = arith.constant dense<0.000000e+00> : vector<512xf32>
    %18 = vector.multi_reduction <add>, %15, %cst_12 [0] : vector<16x512xf32> to vector<512xf32>
    %19 = vector.shape_cast %18 : vector<512xf32> to vector<1x512xf32>
    %c0_13 = arith.constant 0 : index
    %c0_14 = arith.constant 0 : index
    %c0_15 = arith.constant 0 : index
    %20 = vector.load %arg7[%c0_13, %c0_14, %c0_15] : memref<1x2x512xf32, #tpu.memory_space<vmem>>, vector<1x1x512xf32>
    %21 = vector.shape_cast %20 : vector<1x1x512xf32> to vector<1x512xf32>
    %22 = vector.shape_cast %19 : vector<1x512xf32> to vector<1x1x512xf32>
    tpu.vector_store %arg7[%c0_13, %c0_14, %c0_15], %22 {strides = array<i32>} : memref<1x2x512xf32, #tpu.memory_space<vmem>>, vector<1x1x512xf32>,
    %23 = arith.mulf %15, %15 : vector<16x512xf32>
    %cst_16 = arith.constant dense<0.000000e+00> : vector<512xf32>
    %24 = vector.multi_reduction <add>, %23, %cst_16 [0] : vector<16x512xf32> to vector<512xf32>
    %25 = vector.shape_cast %24 : vector<512xf32> to vector<1x512xf32>
    %c0_17 = arith.constant 0 : index
    %c1 = arith.constant 1 : index
    %c0_18 = arith.constant 0 : index
    %26 = vector.load %arg7[%c0_17, %c1, %c0_18] : memref<1x2x512xf32, #tpu.memory_space<vmem>>, vector<1x1x512xf32>
    %27 = vector.shape_cast %26 : vector<1x1x512xf32> to vector<1x512xf32>
    %28 = vector.shape_cast %25 : vector<1x512xf32> to vector<1x1x512xf32>
    tpu.vector_store %arg7[%c0_17, %c1, %c0_18], %28 {strides = array<i32>} : memref<1x2x512xf32, #tpu.memory_space<vmem>>, vector<1x1x512xf32>,
    return
  }
  func.func @transform_0(%arg0: i32) -> (i32, i32) {
    %c0_i32 = arith.constant 0 : i32
    %c0_i32_0 = arith.constant 0 : i32
    return %arg0, %c0_i32 : i32, i32
  }
  func.func @transform_1(%arg0: i32) -> (i32, i32) {
    %c0_i32 = arith.constant 0 : i32
    %c0_i32_0 = arith.constant 0 : i32
    %c0_i32_1 = arith.constant 0 : i32
    return %c0_i32, %c0_i32_0 : i32, i32
  }
  func.func @transform_2(%arg0: i32) -> (i32, i32) {
    %c0_i32 = arith.constant 0 : i32
    %c0_i32_0 = arith.constant 0 : i32
    %c0_i32_1 = arith.constant 0 : i32
    return %c0_i32, %c0_i32_0 : i32, i32
  }
  func.func @transform_3(%arg0: i32) -> (i32, i32) {
    %c0_i32 = arith.constant 0 : i32
    %c0_i32_0 = arith.constant 0 : i32
    %c0_i32_1 = arith.constant 0 : i32
    return %c0_i32, %c0_i32_0 : i32, i32
  }
  func.func @transform_4(%arg0: i32) -> (i32, i32) {
    %c0_i32 = arith.constant 0 : i32
    %c0_i32_0 = arith.constant 0 : i32
    %c0_i32_1 = arith.constant 0 : i32
    return %c0_i32, %c0_i32_0 : i32, i32
  }
  func.func @transform_5(%arg0: i32) -> (i32, i32) {
    %c0_i32 = arith.constant 0 : i32
    %c0_i32_0 = arith.constant 0 : i32
    return %arg0, %c0_i32 : i32, i32
  }
  func.func @transform_6(%arg0: i32) -> (i32, i32, i32) {
    %c0_i32 = arith.constant 0 : i32
    %c0_i32_0 = arith.constant 0 : i32
    %c0_i32_1 = arith.constant 0 : i32
    return %arg0, %c0_i32, %c0_i32_0 : i32, i32, i32
  }
}

module attributes {stable_mosaic.version = 11 : i64} {
  func.func @_conv3_kernel(%arg0: i32, %arg1: memref<32x256xbf16, #tpu.memory_space<vmem>>, %arg2: memref<1x256xf32, #tpu.memory_space<vmem>>, %arg3: memref<1x256xf32, #tpu.memory_space<vmem>>, %arg4: memref<3x256x256xbf16, #tpu.memory_space<vmem>>, %arg5: memref<1x256xf32, #tpu.memory_space<vmem>>, %arg6: memref<32x256xbf16, #tpu.memory_space<vmem>>, %arg7: memref<1x2x256xf32, #tpu.memory_space<vmem>>) attributes {dimension_semantics = [#tpu.dimension_semantics<parallel>], iteration_bounds = array<i64: 2>, scalar_prefetch = 0 : i64, scratch_operands = 0 : i64, tpu.core_type = #tpu.core_type<tc>, window_params = [{transform_indices = @transform_0, window_bounds = array<i64: 32, 256>}, {pipeline_mode = #tpu.pipeline_mode<synchronous>, transform_indices = @transform_1, window_bounds = array<i64: 1, 256>}, {pipeline_mode = #tpu.pipeline_mode<synchronous>, transform_indices = @transform_2, window_bounds = array<i64: 1, 256>}, {pipeline_mode = #tpu.pipeline_mode<synchronous>, transform_indices = @transform_3, window_bounds = array<i64: 3, 256, 256>}, {pipeline_mode = #tpu.pipeline_mode<synchronous>, transform_indices = @transform_4, window_bounds = array<i64: 1, 256>}, {transform_indices = @transform_5, window_bounds = array<i64: 32, 256>}, {transform_indices = @transform_6, window_bounds = array<i64: 1, 2, 256>}]} {
    %c0 = arith.constant 0 : index
    %c0_0 = arith.constant 0 : index
    %0 = vector.load %arg1[%c0, %c0_0] : memref<32x256xbf16, #tpu.memory_space<vmem>>, vector<32x256xbf16>
    %1 = arith.extf %0 : vector<32x256xbf16> to vector<32x256xf32>
    %c0_1 = arith.constant 0 : index
    %c0_2 = arith.constant 0 : index
    %2 = vector.load %arg2[%c0_1, %c0_2] : memref<1x256xf32, #tpu.memory_space<vmem>>, vector<1x256xf32>
    %3 = vector.broadcast %2 : vector<1x256xf32> to vector<32x256xf32>
    %4 = arith.mulf %1, %3 : vector<32x256xf32>
    %c0_3 = arith.constant 0 : index
    %c0_4 = arith.constant 0 : index
    %5 = vector.load %arg3[%c0_3, %c0_4] : memref<1x256xf32, #tpu.memory_space<vmem>>, vector<1x256xf32>
    %6 = vector.broadcast %5 : vector<1x256xf32> to vector<32x256xf32>
    %7 = arith.addf %4, %6 : vector<32x256xf32>
    %cst = arith.constant 0.000000e+00 : f32
    %8 = vector.broadcast %cst : f32 to vector<32x256xf32>
    %9 = arith.maximumf %7, %8 : vector<32x256xf32>
    %10 = arith.truncf %9 : vector<32x256xf32> to vector<32x256xbf16>
    %c0_5 = arith.constant 0 : index
    %c0_6 = arith.constant 0 : index
    %c0_7 = arith.constant 0 : index
    %11 = vector.load %arg4[%c0_5, %c0_6, %c0_7] : memref<3x256x256xbf16, #tpu.memory_space<vmem>>, vector<1x256x256xbf16>
    %12 = vector.shape_cast %11 : vector<1x256x256xbf16> to vector<256x256xbf16>
    %cst_8 = arith.constant dense<0.000000e+00> : vector<32x256xf32>
    %13 = tpu.matmul %10, %12, %cst_8 {dimension_numbers = #tpu.dot_dimension_numbers<[1], [0], [0], [1], [0, 0, 1, 1], [], []>} : vector<32x256xbf16>, vector<256x256xbf16>, vector<32x256xf32> -> vector<32x256xf32>
    %c1 = arith.constant 1 : index
    %c0_9 = arith.constant 0 : index
    %c0_10 = arith.constant 0 : index
    %14 = vector.load %arg4[%c1, %c0_9, %c0_10] : memref<3x256x256xbf16, #tpu.memory_space<vmem>>, vector<1x256x256xbf16>
    %15 = vector.shape_cast %14 : vector<1x256x256xbf16> to vector<256x256xbf16>
    %cst_11 = arith.constant dense<0.000000e+00> : vector<32x256xf32>
    %16 = tpu.matmul %10, %15, %cst_11 {dimension_numbers = #tpu.dot_dimension_numbers<[1], [0], [0], [1], [0, 0, 1, 1], [], []>} : vector<32x256xbf16>, vector<256x256xbf16>, vector<32x256xf32> -> vector<32x256xf32>
    %c2 = arith.constant 2 : index
    %c0_12 = arith.constant 0 : index
    %c0_13 = arith.constant 0 : index
    %17 = vector.load %arg4[%c2, %c0_12, %c0_13] : memref<3x256x256xbf16, #tpu.memory_space<vmem>>, vector<1x256x256xbf16>
    %18 = vector.shape_cast %17 : vector<1x256x256xbf16> to vector<256x256xbf16>
    %cst_14 = arith.constant dense<0.000000e+00> : vector<32x256xf32>
    %19 = tpu.matmul %10, %18, %cst_14 {dimension_numbers = #tpu.dot_dimension_numbers<[1], [0], [0], [1], [0, 0, 1, 1], [], []>} : vector<32x256xbf16>, vector<256x256xbf16>, vector<32x256xf32> -> vector<32x256xf32>
    %cst_15 = arith.constant 0.000000e+00 : f32
    %20 = vector.broadcast %cst_15 : f32 to vector<1x256xf32>
    %21 = vector.extract_strided_slice %13 {offsets = [0, 0], sizes = [31, 256], strides = [1, 1]} : vector<32x256xf32> to vector<31x256xf32>
    %22 = tpu.concatenate %20, %21 in 0 : vector<1x256xf32>, vector<31x256xf32> -> vector<32x256xf32>
    %23 = vector.extract_strided_slice %19 {offsets = [1, 0], sizes = [31, 256], strides = [1, 1]} : vector<32x256xf32> to vector<31x256xf32>
    %24 = tpu.concatenate %23, %20 in 0 : vector<31x256xf32>, vector<1x256xf32> -> vector<32x256xf32>
    %25 = arith.addf %22, %16 : vector<32x256xf32>
    %26 = arith.addf %25, %24 : vector<32x256xf32>
    %c0_16 = arith.constant 0 : index
    %c0_17 = arith.constant 0 : index
    %27 = vector.load %arg5[%c0_16, %c0_17] : memref<1x256xf32, #tpu.memory_space<vmem>>, vector<1x256xf32>
    %28 = vector.broadcast %27 : vector<1x256xf32> to vector<32x256xf32>
    %29 = arith.addf %26, %28 : vector<32x256xf32>
    %30 = arith.truncf %29 : vector<32x256xf32> to vector<32x256xbf16>
    %c0_18 = arith.constant 0 : index
    %c0_19 = arith.constant 0 : index
    %31 = vector.load %arg6[%c0_18, %c0_19] : memref<32x256xbf16, #tpu.memory_space<vmem>>, vector<32x256xbf16>
    tpu.vector_store %arg6[%c0_18, %c0_19], %30 {strides = array<i32>} : memref<32x256xbf16, #tpu.memory_space<vmem>>, vector<32x256xbf16>,
    %cst_20 = arith.constant dense<0.000000e+00> : vector<256xf32>
    %32 = vector.multi_reduction <add>, %29, %cst_20 [0] : vector<32x256xf32> to vector<256xf32>
    %33 = vector.shape_cast %32 : vector<256xf32> to vector<1x256xf32>
    %c0_21 = arith.constant 0 : index
    %c0_22 = arith.constant 0 : index
    %c0_23 = arith.constant 0 : index
    %34 = vector.load %arg7[%c0_21, %c0_22, %c0_23] : memref<1x2x256xf32, #tpu.memory_space<vmem>>, vector<1x1x256xf32>
    %35 = vector.shape_cast %34 : vector<1x1x256xf32> to vector<1x256xf32>
    %36 = vector.shape_cast %33 : vector<1x256xf32> to vector<1x1x256xf32>
    tpu.vector_store %arg7[%c0_21, %c0_22, %c0_23], %36 {strides = array<i32>} : memref<1x2x256xf32, #tpu.memory_space<vmem>>, vector<1x1x256xf32>,
    %37 = arith.mulf %29, %29 : vector<32x256xf32>
    %cst_24 = arith.constant dense<0.000000e+00> : vector<256xf32>
    %38 = vector.multi_reduction <add>, %37, %cst_24 [0] : vector<32x256xf32> to vector<256xf32>
    %39 = vector.shape_cast %38 : vector<256xf32> to vector<1x256xf32>
    %c0_25 = arith.constant 0 : index
    %c1_26 = arith.constant 1 : index
    %c0_27 = arith.constant 0 : index
    %40 = vector.load %arg7[%c0_25, %c1_26, %c0_27] : memref<1x2x256xf32, #tpu.memory_space<vmem>>, vector<1x1x256xf32>
    %41 = vector.shape_cast %40 : vector<1x1x256xf32> to vector<1x256xf32>
    %42 = vector.shape_cast %39 : vector<1x256xf32> to vector<1x1x256xf32>
    tpu.vector_store %arg7[%c0_25, %c1_26, %c0_27], %42 {strides = array<i32>} : memref<1x2x256xf32, #tpu.memory_space<vmem>>, vector<1x1x256xf32>,
    return
  }
  func.func @transform_0(%arg0: i32) -> (i32, i32) {
    %c0_i32 = arith.constant 0 : i32
    %c0_i32_0 = arith.constant 0 : i32
    return %arg0, %c0_i32 : i32, i32
  }
  func.func @transform_1(%arg0: i32) -> (i32, i32) {
    %c0_i32 = arith.constant 0 : i32
    %c0_i32_0 = arith.constant 0 : i32
    %c0_i32_1 = arith.constant 0 : i32
    return %c0_i32, %c0_i32_0 : i32, i32
  }
  func.func @transform_2(%arg0: i32) -> (i32, i32) {
    %c0_i32 = arith.constant 0 : i32
    %c0_i32_0 = arith.constant 0 : i32
    %c0_i32_1 = arith.constant 0 : i32
    return %c0_i32, %c0_i32_0 : i32, i32
  }
  func.func @transform_3(%arg0: i32) -> (i32, i32, i32) {
    %c0_i32 = arith.constant 0 : i32
    %c0_i32_0 = arith.constant 0 : i32
    %c0_i32_1 = arith.constant 0 : i32
    %c0_i32_2 = arith.constant 0 : i32
    return %c0_i32, %c0_i32_0, %c0_i32_1 : i32, i32, i32
  }
  func.func @transform_4(%arg0: i32) -> (i32, i32) {
    %c0_i32 = arith.constant 0 : i32
    %c0_i32_0 = arith.constant 0 : i32
    %c0_i32_1 = arith.constant 0 : i32
    return %c0_i32, %c0_i32_0 : i32, i32
  }
  func.func @transform_5(%arg0: i32) -> (i32, i32) {
    %c0_i32 = arith.constant 0 : i32
    %c0_i32_0 = arith.constant 0 : i32
    return %arg0, %c0_i32 : i32, i32
  }
  func.func @transform_6(%arg0: i32) -> (i32, i32, i32) {
    %c0_i32 = arith.constant 0 : i32
    %c0_i32_0 = arith.constant 0 : i32
    %c0_i32_1 = arith.constant 0 : i32
    return %arg0, %c0_i32, %c0_i32_0 : i32, i32, i32
  }
}

module attributes {stable_mosaic.version = 11 : i64} {
  func.func @_rowmm_kernel(%arg0: i32, %arg1: memref<16x256xbf16, #tpu.memory_space<vmem>>, %arg2: memref<1x256xf32, #tpu.memory_space<vmem>>, %arg3: memref<1x256xf32, #tpu.memory_space<vmem>>, %arg4: memref<256x512xbf16, #tpu.memory_space<vmem>>, %arg5: memref<1x512xf32, #tpu.memory_space<vmem>>, %arg6: memref<16x512xbf16, #tpu.memory_space<vmem>>, %arg7: memref<1x2x512xf32, #tpu.memory_space<vmem>>) attributes {dimension_semantics = [#tpu.dimension_semantics<parallel>], iteration_bounds = array<i64: 4>, scalar_prefetch = 0 : i64, scratch_operands = 0 : i64, tpu.core_type = #tpu.core_type<tc>, window_params = [{transform_indices = @transform_0, window_bounds = array<i64: 16, 256>}, {pipeline_mode = #tpu.pipeline_mode<synchronous>, transform_indices = @transform_1, window_bounds = array<i64: 1, 256>}, {pipeline_mode = #tpu.pipeline_mode<synchronous>, transform_indices = @transform_2, window_bounds = array<i64: 1, 256>}, {pipeline_mode = #tpu.pipeline_mode<synchronous>, transform_indices = @transform_3, window_bounds = array<i64: 256, 512>}, {pipeline_mode = #tpu.pipeline_mode<synchronous>, transform_indices = @transform_4, window_bounds = array<i64: 1, 512>}, {transform_indices = @transform_5, window_bounds = array<i64: 16, 512>}, {transform_indices = @transform_6, window_bounds = array<i64: 1, 2, 512>}]} {
    %c0 = arith.constant 0 : index
    %c0_0 = arith.constant 0 : index
    %0 = vector.load %arg1[%c0, %c0_0] : memref<16x256xbf16, #tpu.memory_space<vmem>>, vector<16x256xbf16>
    %1 = arith.extf %0 : vector<16x256xbf16> to vector<16x256xf32>
    %c0_1 = arith.constant 0 : index
    %c0_2 = arith.constant 0 : index
    %2 = vector.load %arg2[%c0_1, %c0_2] : memref<1x256xf32, #tpu.memory_space<vmem>>, vector<1x256xf32>
    %3 = vector.broadcast %2 : vector<1x256xf32> to vector<16x256xf32>
    %4 = arith.mulf %1, %3 : vector<16x256xf32>
    %c0_3 = arith.constant 0 : index
    %c0_4 = arith.constant 0 : index
    %5 = vector.load %arg3[%c0_3, %c0_4] : memref<1x256xf32, #tpu.memory_space<vmem>>, vector<1x256xf32>
    %6 = vector.broadcast %5 : vector<1x256xf32> to vector<16x256xf32>
    %7 = arith.addf %4, %6 : vector<16x256xf32>
    %cst = arith.constant 0.000000e+00 : f32
    %8 = vector.broadcast %cst : f32 to vector<16x256xf32>
    %9 = arith.maximumf %7, %8 : vector<16x256xf32>
    %10 = arith.truncf %9 : vector<16x256xf32> to vector<16x256xbf16>
    %c0_5 = arith.constant 0 : index
    %c0_6 = arith.constant 0 : index
    %11 = vector.load %arg4[%c0_5, %c0_6] : memref<256x512xbf16, #tpu.memory_space<vmem>>, vector<256x512xbf16>
    %cst_7 = arith.constant dense<0.000000e+00> : vector<16x512xf32>
    %12 = tpu.matmul %10, %11, %cst_7 {dimension_numbers = #tpu.dot_dimension_numbers<[1], [0], [0], [1], [0, 0, 1, 1], [], []>} : vector<16x256xbf16>, vector<256x512xbf16>, vector<16x512xf32> -> vector<16x512xf32>
    %c0_8 = arith.constant 0 : index
    %c0_9 = arith.constant 0 : index
    %13 = vector.load %arg5[%c0_8, %c0_9] : memref<1x512xf32, #tpu.memory_space<vmem>>, vector<1x512xf32>
    %14 = vector.broadcast %13 : vector<1x512xf32> to vector<16x512xf32>
    %15 = arith.addf %12, %14 : vector<16x512xf32>
    %16 = arith.truncf %15 : vector<16x512xf32> to vector<16x512xbf16>
    %c0_10 = arith.constant 0 : index
    %c0_11 = arith.constant 0 : index
    %17 = vector.load %arg6[%c0_10, %c0_11] : memref<16x512xbf16, #tpu.memory_space<vmem>>, vector<16x512xbf16>
    tpu.vector_store %arg6[%c0_10, %c0_11], %16 {strides = array<i32>} : memref<16x512xbf16, #tpu.memory_space<vmem>>, vector<16x512xbf16>,
    %cst_12 = arith.constant dense<0.000000e+00> : vector<512xf32>
    %18 = vector.multi_reduction <add>, %15, %cst_12 [0] : vector<16x512xf32> to vector<512xf32>
    %19 = vector.shape_cast %18 : vector<512xf32> to vector<1x512xf32>
    %c0_13 = arith.constant 0 : index
    %c0_14 = arith.constant 0 : index
    %c0_15 = arith.constant 0 : index
    %20 = vector.load %arg7[%c0_13, %c0_14, %c0_15] : memref<1x2x512xf32, #tpu.memory_space<vmem>>, vector<1x1x512xf32>
    %21 = vector.shape_cast %20 : vector<1x1x512xf32> to vector<1x512xf32>
    %22 = vector.shape_cast %19 : vector<1x512xf32> to vector<1x1x512xf32>
    tpu.vector_store %arg7[%c0_13, %c0_14, %c0_15], %22 {strides = array<i32>} : memref<1x2x512xf32, #tpu.memory_space<vmem>>, vector<1x1x512xf32>,
    %23 = arith.mulf %15, %15 : vector<16x512xf32>
    %cst_16 = arith.constant dense<0.000000e+00> : vector<512xf32>
    %24 = vector.multi_reduction <add>, %23, %cst_16 [0] : vector<16x512xf32> to vector<512xf32>
    %25 = vector.shape_cast %24 : vector<512xf32> to vector<1x512xf32>
    %c0_17 = arith.constant 0 : index
    %c1 = arith.constant 1 : index
    %c0_18 = arith.constant 0 : index
    %26 = vector.load %arg7[%c0_17, %c1, %c0_18] : memref<1x2x512xf32, #tpu.memory_space<vmem>>, vector<1x1x512xf32>
    %27 = vector.shape_cast %26 : vector<1x1x512xf32> to vector<1x512xf32>
    %28 = vector.shape_cast %25 : vector<1x512xf32> to vector<1x1x512xf32>
    tpu.vector_store %arg7[%c0_17, %c1, %c0_18], %28 {strides = array<i32>} : memref<1x2x512xf32, #tpu.memory_space<vmem>>, vector<1x1x512xf32>,
    return
  }
  func.func @transform_0(%arg0: i32) -> (i32, i32) {
    %c0_i32 = arith.constant 0 : i32
    %c0_i32_0 = arith.constant 0 : i32
    return %arg0, %c0_i32 : i32, i32
  }
  func.func @transform_1(%arg0: i32) -> (i32, i32) {
    %c0_i32 = arith.constant 0 : i32
    %c0_i32_0 = arith.constant 0 : i32
    %c0_i32_1 = arith.constant 0 : i32
    return %c0_i32, %c0_i32_0 : i32, i32
  }
  func.func @transform_2(%arg0: i32) -> (i32, i32) {
    %c0_i32 = arith.constant 0 : i32
    %c0_i32_0 = arith.constant 0 : i32
    %c0_i32_1 = arith.constant 0 : i32
    return %c0_i32, %c0_i32_0 : i32, i32
  }
  func.func @transform_3(%arg0: i32) -> (i32, i32) {
    %c0_i32 = arith.constant 0 : i32
    %c0_i32_0 = arith.constant 0 : i32
    %c0_i32_1 = arith.constant 0 : i32
    return %c0_i32, %c0_i32_0 : i32, i32
  }
  func.func @transform_4(%arg0: i32) -> (i32, i32) {
    %c0_i32 = arith.constant 0 : i32
    %c0_i32_0 = arith.constant 0 : i32
    %c0_i32_1 = arith.constant 0 : i32
    return %c0_i32, %c0_i32_0 : i32, i32
  }
  func.func @transform_5(%arg0: i32) -> (i32, i32) {
    %c0_i32 = arith.constant 0 : i32
    %c0_i32_0 = arith.constant 0 : i32
    return %arg0, %c0_i32 : i32, i32
  }
  func.func @transform_6(%arg0: i32) -> (i32, i32, i32) {
    %c0_i32 = arith.constant 0 : i32
    %c0_i32_0 = arith.constant 0 : i32
    %c0_i32_1 = arith.constant 0 : i32
    return %arg0, %c0_i32, %c0_i32_0 : i32, i32, i32
  }
}

module attributes {stable_mosaic.version = 11 : i64} {
  func.func @_conv3_kernel(%arg0: i32, %arg1: memref<64x256xbf16, #tpu.memory_space<vmem>>, %arg2: memref<1x256xf32, #tpu.memory_space<vmem>>, %arg3: memref<1x256xf32, #tpu.memory_space<vmem>>, %arg4: memref<3x256x256xbf16, #tpu.memory_space<vmem>>, %arg5: memref<1x256xf32, #tpu.memory_space<vmem>>, %arg6: memref<64x256xbf16, #tpu.memory_space<vmem>>, %arg7: memref<1x2x256xf32, #tpu.memory_space<vmem>>) attributes {dimension_semantics = [#tpu.dimension_semantics<parallel>], iteration_bounds = array<i64: 2>, scalar_prefetch = 0 : i64, scratch_operands = 0 : i64, tpu.core_type = #tpu.core_type<tc>, window_params = [{transform_indices = @transform_0, window_bounds = array<i64: 64, 256>}, {pipeline_mode = #tpu.pipeline_mode<synchronous>, transform_indices = @transform_1, window_bounds = array<i64: 1, 256>}, {pipeline_mode = #tpu.pipeline_mode<synchronous>, transform_indices = @transform_2, window_bounds = array<i64: 1, 256>}, {pipeline_mode = #tpu.pipeline_mode<synchronous>, transform_indices = @transform_3, window_bounds = array<i64: 3, 256, 256>}, {pipeline_mode = #tpu.pipeline_mode<synchronous>, transform_indices = @transform_4, window_bounds = array<i64: 1, 256>}, {transform_indices = @transform_5, window_bounds = array<i64: 64, 256>}, {transform_indices = @transform_6, window_bounds = array<i64: 1, 2, 256>}]} {
    %c0 = arith.constant 0 : index
    %c0_0 = arith.constant 0 : index
    %0 = vector.load %arg1[%c0, %c0_0] : memref<64x256xbf16, #tpu.memory_space<vmem>>, vector<64x256xbf16>
    %1 = arith.extf %0 : vector<64x256xbf16> to vector<64x256xf32>
    %c0_1 = arith.constant 0 : index
    %c0_2 = arith.constant 0 : index
    %2 = vector.load %arg2[%c0_1, %c0_2] : memref<1x256xf32, #tpu.memory_space<vmem>>, vector<1x256xf32>
    %3 = vector.broadcast %2 : vector<1x256xf32> to vector<64x256xf32>
    %4 = arith.mulf %1, %3 : vector<64x256xf32>
    %c0_3 = arith.constant 0 : index
    %c0_4 = arith.constant 0 : index
    %5 = vector.load %arg3[%c0_3, %c0_4] : memref<1x256xf32, #tpu.memory_space<vmem>>, vector<1x256xf32>
    %6 = vector.broadcast %5 : vector<1x256xf32> to vector<64x256xf32>
    %7 = arith.addf %4, %6 : vector<64x256xf32>
    %cst = arith.constant 0.000000e+00 : f32
    %8 = vector.broadcast %cst : f32 to vector<64x256xf32>
    %9 = arith.maximumf %7, %8 : vector<64x256xf32>
    %10 = arith.truncf %9 : vector<64x256xf32> to vector<64x256xbf16>
    %c0_5 = arith.constant 0 : index
    %c0_6 = arith.constant 0 : index
    %c0_7 = arith.constant 0 : index
    %11 = vector.load %arg4[%c0_5, %c0_6, %c0_7] : memref<3x256x256xbf16, #tpu.memory_space<vmem>>, vector<1x256x256xbf16>
    %12 = vector.shape_cast %11 : vector<1x256x256xbf16> to vector<256x256xbf16>
    %cst_8 = arith.constant dense<0.000000e+00> : vector<64x256xf32>
    %13 = tpu.matmul %10, %12, %cst_8 {dimension_numbers = #tpu.dot_dimension_numbers<[1], [0], [0], [1], [0, 0, 1, 1], [], []>} : vector<64x256xbf16>, vector<256x256xbf16>, vector<64x256xf32> -> vector<64x256xf32>
    %c1 = arith.constant 1 : index
    %c0_9 = arith.constant 0 : index
    %c0_10 = arith.constant 0 : index
    %14 = vector.load %arg4[%c1, %c0_9, %c0_10] : memref<3x256x256xbf16, #tpu.memory_space<vmem>>, vector<1x256x256xbf16>
    %15 = vector.shape_cast %14 : vector<1x256x256xbf16> to vector<256x256xbf16>
    %cst_11 = arith.constant dense<0.000000e+00> : vector<64x256xf32>
    %16 = tpu.matmul %10, %15, %cst_11 {dimension_numbers = #tpu.dot_dimension_numbers<[1], [0], [0], [1], [0, 0, 1, 1], [], []>} : vector<64x256xbf16>, vector<256x256xbf16>, vector<64x256xf32> -> vector<64x256xf32>
    %c2 = arith.constant 2 : index
    %c0_12 = arith.constant 0 : index
    %c0_13 = arith.constant 0 : index
    %17 = vector.load %arg4[%c2, %c0_12, %c0_13] : memref<3x256x256xbf16, #tpu.memory_space<vmem>>, vector<1x256x256xbf16>
    %18 = vector.shape_cast %17 : vector<1x256x256xbf16> to vector<256x256xbf16>
    %cst_14 = arith.constant dense<0.000000e+00> : vector<64x256xf32>
    %19 = tpu.matmul %10, %18, %cst_14 {dimension_numbers = #tpu.dot_dimension_numbers<[1], [0], [0], [1], [0, 0, 1, 1], [], []>} : vector<64x256xbf16>, vector<256x256xbf16>, vector<64x256xf32> -> vector<64x256xf32>
    %cst_15 = arith.constant 0.000000e+00 : f32
    %20 = vector.broadcast %cst_15 : f32 to vector<1x256xf32>
    %21 = vector.extract_strided_slice %13 {offsets = [0, 0], sizes = [63, 256], strides = [1, 1]} : vector<64x256xf32> to vector<63x256xf32>
    %22 = tpu.concatenate %20, %21 in 0 : vector<1x256xf32>, vector<63x256xf32> -> vector<64x256xf32>
    %23 = vector.extract_strided_slice %19 {offsets = [1, 0], sizes = [63, 256], strides = [1, 1]} : vector<64x256xf32> to vector<63x256xf32>
    %24 = tpu.concatenate %23, %20 in 0 : vector<63x256xf32>, vector<1x256xf32> -> vector<64x256xf32>
    %25 = arith.addf %22, %16 : vector<64x256xf32>
    %26 = arith.addf %25, %24 : vector<64x256xf32>
    %c0_16 = arith.constant 0 : index
    %c0_17 = arith.constant 0 : index
    %27 = vector.load %arg5[%c0_16, %c0_17] : memref<1x256xf32, #tpu.memory_space<vmem>>, vector<1x256xf32>
    %28 = vector.broadcast %27 : vector<1x256xf32> to vector<64x256xf32>
    %29 = arith.addf %26, %28 : vector<64x256xf32>
    %30 = arith.truncf %29 : vector<64x256xf32> to vector<64x256xbf16>
    %c0_18 = arith.constant 0 : index
    %c0_19 = arith.constant 0 : index
    %31 = vector.load %arg6[%c0_18, %c0_19] : memref<64x256xbf16, #tpu.memory_space<vmem>>, vector<64x256xbf16>
    tpu.vector_store %arg6[%c0_18, %c0_19], %30 {strides = array<i32>} : memref<64x256xbf16, #tpu.memory_space<vmem>>, vector<64x256xbf16>,
    %cst_20 = arith.constant dense<0.000000e+00> : vector<256xf32>
    %32 = vector.multi_reduction <add>, %29, %cst_20 [0] : vector<64x256xf32> to vector<256xf32>
    %33 = vector.shape_cast %32 : vector<256xf32> to vector<1x256xf32>
    %c0_21 = arith.constant 0 : index
    %c0_22 = arith.constant 0 : index
    %c0_23 = arith.constant 0 : index
    %34 = vector.load %arg7[%c0_21, %c0_22, %c0_23] : memref<1x2x256xf32, #tpu.memory_space<vmem>>, vector<1x1x256xf32>
    %35 = vector.shape_cast %34 : vector<1x1x256xf32> to vector<1x256xf32>
    %36 = vector.shape_cast %33 : vector<1x256xf32> to vector<1x1x256xf32>
    tpu.vector_store %arg7[%c0_21, %c0_22, %c0_23], %36 {strides = array<i32>} : memref<1x2x256xf32, #tpu.memory_space<vmem>>, vector<1x1x256xf32>,
    %37 = arith.mulf %29, %29 : vector<64x256xf32>
    %cst_24 = arith.constant dense<0.000000e+00> : vector<256xf32>
    %38 = vector.multi_reduction <add>, %37, %cst_24 [0] : vector<64x256xf32> to vector<256xf32>
    %39 = vector.shape_cast %38 : vector<256xf32> to vector<1x256xf32>
    %c0_25 = arith.constant 0 : index
    %c1_26 = arith.constant 1 : index
    %c0_27 = arith.constant 0 : index
    %40 = vector.load %arg7[%c0_25, %c1_26, %c0_27] : memref<1x2x256xf32, #tpu.memory_space<vmem>>, vector<1x1x256xf32>
    %41 = vector.shape_cast %40 : vector<1x1x256xf32> to vector<1x256xf32>
    %42 = vector.shape_cast %39 : vector<1x256xf32> to vector<1x1x256xf32>
    tpu.vector_store %arg7[%c0_25, %c1_26, %c0_27], %42 {strides = array<i32>} : memref<1x2x256xf32, #tpu.memory_space<vmem>>, vector<1x1x256xf32>,
    return
  }
  func.func @transform_0(%arg0: i32) -> (i32, i32) {
    %c0_i32 = arith.constant 0 : i32
    %c0_i32_0 = arith.constant 0 : i32
    return %arg0, %c0_i32 : i32, i32
  }
  func.func @transform_1(%arg0: i32) -> (i32, i32) {
    %c0_i32 = arith.constant 0 : i32
    %c0_i32_0 = arith.constant 0 : i32
    %c0_i32_1 = arith.constant 0 : i32
    return %c0_i32, %c0_i32_0 : i32, i32
  }
  func.func @transform_2(%arg0: i32) -> (i32, i32) {
    %c0_i32 = arith.constant 0 : i32
    %c0_i32_0 = arith.constant 0 : i32
    %c0_i32_1 = arith.constant 0 : i32
    return %c0_i32, %c0_i32_0 : i32, i32
  }
  func.func @transform_3(%arg0: i32) -> (i32, i32, i32) {
    %c0_i32 = arith.constant 0 : i32
    %c0_i32_0 = arith.constant 0 : i32
    %c0_i32_1 = arith.constant 0 : i32
    %c0_i32_2 = arith.constant 0 : i32
    return %c0_i32, %c0_i32_0, %c0_i32_1 : i32, i32, i32
  }
  func.func @transform_4(%arg0: i32) -> (i32, i32) {
    %c0_i32 = arith.constant 0 : i32
    %c0_i32_0 = arith.constant 0 : i32
    %c0_i32_1 = arith.constant 0 : i32
    return %c0_i32, %c0_i32_0 : i32, i32
  }
  func.func @transform_5(%arg0: i32) -> (i32, i32) {
    %c0_i32 = arith.constant 0 : i32
    %c0_i32_0 = arith.constant 0 : i32
    return %arg0, %c0_i32 : i32, i32
  }
  func.func @transform_6(%arg0: i32) -> (i32, i32, i32) {
    %c0_i32 = arith.constant 0 : i32
    %c0_i32_0 = arith.constant 0 : i32
    %c0_i32_1 = arith.constant 0 : i32
    return %arg0, %c0_i32, %c0_i32_0 : i32, i32, i32
  }
}

module attributes {stable_mosaic.version = 11 : i64} {
  func.func @_fusion_kernel(%arg0: i32, %arg1: memref<64x256xbf16, #tpu.memory_space<vmem>>, %arg2: memref<1x256xf32, #tpu.memory_space<vmem>>, %arg3: memref<1x256xf32, #tpu.memory_space<vmem>>, %arg4: memref<8x256xf32, #tpu.memory_space<vmem>>, %arg5: memref<64x8xf32, #tpu.memory_space<vmem>>, %arg6: memref<256x64xf32, #tpu.memory_space<vmem>>, %arg7: memref<256x64xbf16, #tpu.memory_space<vmem>>, %arg8: memref<6x64x64xbf16, #tpu.memory_space<vmem>>, %arg9: memref<3x64xf32, #tpu.memory_space<vmem>>, %arg10: memref<64x64xf32, #tpu.memory_space<vmem>>) attributes {dimension_semantics = [#tpu.dimension_semantics<parallel>], iteration_bounds = array<i64: 2>, scalar_prefetch = 0 : i64, scratch_operands = 0 : i64, tpu.core_type = #tpu.core_type<tc>, window_params = [{transform_indices = @transform_0, window_bounds = array<i64: 64, 256>}, {pipeline_mode = #tpu.pipeline_mode<synchronous>, transform_indices = @transform_1, window_bounds = array<i64: 1, 256>}, {pipeline_mode = #tpu.pipeline_mode<synchronous>, transform_indices = @transform_2, window_bounds = array<i64: 1, 256>}, {transform_indices = @transform_3, window_bounds = array<i64: 8, 256>}, {pipeline_mode = #tpu.pipeline_mode<synchronous>, transform_indices = @transform_4, window_bounds = array<i64: 64, 8>}, {pipeline_mode = #tpu.pipeline_mode<synchronous>, transform_indices = @transform_5, window_bounds = array<i64: 256, 64>}, {pipeline_mode = #tpu.pipeline_mode<synchronous>, transform_indices = @transform_6, window_bounds = array<i64: 256, 64>}, {pipeline_mode = #tpu.pipeline_mode<synchronous>, transform_indices = @transform_7, window_bounds = array<i64: 6, 64, 64>}, {pipeline_mode = #tpu.pipeline_mode<synchronous>, transform_indices = @transform_8, window_bounds = array<i64: 3, 64>}, {transform_indices = @transform_9, window_bounds = array<i64: 64, 64>}]} {
    %c0 = arith.constant 0 : index
    %c0_0 = arith.constant 0 : index
    %0 = vector.load %arg1[%c0, %c0_0] : memref<64x256xbf16, #tpu.memory_space<vmem>>, vector<64x256xbf16>
    %1 = arith.extf %0 : vector<64x256xbf16> to vector<64x256xf32>
    %c0_1 = arith.constant 0 : index
    %c0_2 = arith.constant 0 : index
    %2 = vector.load %arg2[%c0_1, %c0_2] : memref<1x256xf32, #tpu.memory_space<vmem>>, vector<1x256xf32>
    %3 = vector.broadcast %2 : vector<1x256xf32> to vector<64x256xf32>
    %4 = arith.mulf %1, %3 : vector<64x256xf32>
    %c0_3 = arith.constant 0 : index
    %c0_4 = arith.constant 0 : index
    %5 = vector.load %arg3[%c0_3, %c0_4] : memref<1x256xf32, #tpu.memory_space<vmem>>, vector<1x256xf32>
    %6 = vector.broadcast %5 : vector<1x256xf32> to vector<64x256xf32>
    %7 = arith.addf %4, %6 : vector<64x256xf32>
    %cst = arith.constant 0.000000e+00 : f32
    %8 = vector.broadcast %cst : f32 to vector<64x256xf32>
    %9 = arith.maximumf %7, %8 : vector<64x256xf32>
    %10 = arith.truncf %9 : vector<64x256xf32> to vector<64x256xbf16>
    %c0_5 = arith.constant 0 : index
    %c0_6 = arith.constant 0 : index
    %11 = vector.load %arg7[%c0_5, %c0_6] : memref<256x64xbf16, #tpu.memory_space<vmem>>, vector<256x64xbf16>
    %cst_7 = arith.constant dense<0.000000e+00> : vector<64x64xf32>
    %12 = tpu.matmul %10, %11, %cst_7 {dimension_numbers = #tpu.dot_dimension_numbers<[1], [0], [0], [1], [0, 0, 1, 1], [], []>} : vector<64x256xbf16>, vector<256x64xbf16>, vector<64x64xf32> -> vector<64x64xf32>
    %c0_8 = arith.constant 0 : index
    %c0_9 = arith.constant 0 : index
    %13 = vector.load %arg9[%c0_8, %c0_9] : memref<3x64xf32, #tpu.memory_space<vmem>>, vector<1x64xf32>
    %14 = vector.broadcast %13 : vector<1x64xf32> to vector<64x64xf32>
    %15 = arith.addf %12, %14 : vector<64x64xf32>
    %c0_10 = arith.constant 0 : index
    %c0_11 = arith.constant 0 : index
    %16 = vector.load %arg4[%c0_10, %c0_11] : memref<8x256xf32, #tpu.memory_space<vmem>>, vector<8x256xf32>
    %c0_12 = arith.constant 0 : index
    %c0_13 = arith.constant 0 : index
    %17 = vector.load %arg6[%c0_12, %c0_13] : memref<256x64xf32, #tpu.memory_space<vmem>>, vector<256x64xf32>
    %cst_14 = arith.constant dense<0.000000e+00> : vector<8x64xf32>
    %18 = tpu.matmul %16, %17, %cst_14 {dimension_numbers = #tpu.dot_dimension_numbers<[1], [0], [0], [1], [0, 0, 1, 1], [], []>} : vector<8x256xf32>, vector<256x64xf32>, vector<8x64xf32> -> vector<8x64xf32>
    %c0_15 = arith.constant 0 : index
    %c0_16 = arith.constant 0 : index
    %19 = vector.load %arg5[%c0_15, %c0_16] : memref<64x8xf32, #tpu.memory_space<vmem>>, vector<64x8xf32>
    %cst_17 = arith.constant dense<0.000000e+00> : vector<64x64xf32>
    %20 = tpu.matmul %19, %18, %cst_17 {dimension_numbers = #tpu.dot_dimension_numbers<[1], [0], [0], [1], [0, 0, 1, 1], [], []>} : vector<64x8xf32>, vector<8x64xf32>, vector<64x64xf32> -> vector<64x64xf32>
    %c1 = arith.constant 1 : index
    %c0_18 = arith.constant 0 : index
    %21 = vector.load %arg9[%c1, %c0_18] : memref<3x64xf32, #tpu.memory_space<vmem>>, vector<1x64xf32>
    %22 = vector.broadcast %21 : vector<1x64xf32> to vector<64x64xf32>
    %23 = arith.addf %20, %22 : vector<64x64xf32>
    %24 = arith.truncf %15 : vector<64x64xf32> to vector<64x64xbf16>
    %25 = arith.truncf %23 : vector<64x64xf32> to vector<64x64xbf16>
    %c0_19 = arith.constant 0 : index
    %c0_20 = arith.constant 0 : index
    %c0_21 = arith.constant 0 : index
    %26 = vector.load %arg8[%c0_19, %c0_20, %c0_21] : memref<6x64x64xbf16, #tpu.memory_space<vmem>>, vector<1x64x64xbf16>
    %27 = vector.shape_cast %26 : vector<1x64x64xbf16> to vector<64x64xbf16>
    %cst_22 = arith.constant dense<0.000000e+00> : vector<64x64xf32>
    %28 = tpu.matmul %24, %27, %cst_22 {dimension_numbers = #tpu.dot_dimension_numbers<[1], [0], [0], [1], [0, 0, 1, 1], [], []>} : vector<64x64xbf16>, vector<64x64xbf16>, vector<64x64xf32> -> vector<64x64xf32>
    %c3 = arith.constant 3 : index
    %c0_23 = arith.constant 0 : index
    %c0_24 = arith.constant 0 : index
    %29 = vector.load %arg8[%c3, %c0_23, %c0_24] : memref<6x64x64xbf16, #tpu.memory_space<vmem>>, vector<1x64x64xbf16>
    %30 = vector.shape_cast %29 : vector<1x64x64xbf16> to vector<64x64xbf16>
    %cst_25 = arith.constant dense<0.000000e+00> : vector<64x64xf32>
    %31 = tpu.matmul %25, %30, %cst_25 {dimension_numbers = #tpu.dot_dimension_numbers<[1], [0], [0], [1], [0, 0, 1, 1], [], []>} : vector<64x64xbf16>, vector<64x64xbf16>, vector<64x64xf32> -> vector<64x64xf32>
    %32 = arith.addf %28, %31 : vector<64x64xf32>
    %c1_26 = arith.constant 1 : index
    %c0_27 = arith.constant 0 : index
    %c0_28 = arith.constant 0 : index
    %33 = vector.load %arg8[%c1_26, %c0_27, %c0_28] : memref<6x64x64xbf16, #tpu.memory_space<vmem>>, vector<1x64x64xbf16>
    %34 = vector.shape_cast %33 : vector<1x64x64xbf16> to vector<64x64xbf16>
    %cst_29 = arith.constant dense<0.000000e+00> : vector<64x64xf32>
    %35 = tpu.matmul %24, %34, %cst_29 {dimension_numbers = #tpu.dot_dimension_numbers<[1], [0], [0], [1], [0, 0, 1, 1], [], []>} : vector<64x64xbf16>, vector<64x64xbf16>, vector<64x64xf32> -> vector<64x64xf32>
    %c4 = arith.constant 4 : index
    %c0_30 = arith.constant 0 : index
    %c0_31 = arith.constant 0 : index
    %36 = vector.load %arg8[%c4, %c0_30, %c0_31] : memref<6x64x64xbf16, #tpu.memory_space<vmem>>, vector<1x64x64xbf16>
    %37 = vector.shape_cast %36 : vector<1x64x64xbf16> to vector<64x64xbf16>
    %cst_32 = arith.constant dense<0.000000e+00> : vector<64x64xf32>
    %38 = tpu.matmul %25, %37, %cst_32 {dimension_numbers = #tpu.dot_dimension_numbers<[1], [0], [0], [1], [0, 0, 1, 1], [], []>} : vector<64x64xbf16>, vector<64x64xbf16>, vector<64x64xf32> -> vector<64x64xf32>
    %39 = arith.addf %35, %38 : vector<64x64xf32>
    %c2 = arith.constant 2 : index
    %c0_33 = arith.constant 0 : index
    %c0_34 = arith.constant 0 : index
    %40 = vector.load %arg8[%c2, %c0_33, %c0_34] : memref<6x64x64xbf16, #tpu.memory_space<vmem>>, vector<1x64x64xbf16>
    %41 = vector.shape_cast %40 : vector<1x64x64xbf16> to vector<64x64xbf16>
    %cst_35 = arith.constant dense<0.000000e+00> : vector<64x64xf32>
    %42 = tpu.matmul %24, %41, %cst_35 {dimension_numbers = #tpu.dot_dimension_numbers<[1], [0], [0], [1], [0, 0, 1, 1], [], []>} : vector<64x64xbf16>, vector<64x64xbf16>, vector<64x64xf32> -> vector<64x64xf32>
    %c5 = arith.constant 5 : index
    %c0_36 = arith.constant 0 : index
    %c0_37 = arith.constant 0 : index
    %43 = vector.load %arg8[%c5, %c0_36, %c0_37] : memref<6x64x64xbf16, #tpu.memory_space<vmem>>, vector<1x64x64xbf16>
    %44 = vector.shape_cast %43 : vector<1x64x64xbf16> to vector<64x64xbf16>
    %cst_38 = arith.constant dense<0.000000e+00> : vector<64x64xf32>
    %45 = tpu.matmul %25, %44, %cst_38 {dimension_numbers = #tpu.dot_dimension_numbers<[1], [0], [0], [1], [0, 0, 1, 1], [], []>} : vector<64x64xbf16>, vector<64x64xbf16>, vector<64x64xf32> -> vector<64x64xf32>
    %46 = arith.addf %42, %45 : vector<64x64xf32>
    %cst_39 = arith.constant 0.000000e+00 : f32
    %47 = vector.broadcast %cst_39 : f32 to vector<1x64xf32>
    %48 = vector.extract_strided_slice %32 {offsets = [0, 0], sizes = [63, 64], strides = [1, 1]} : vector<64x64xf32> to vector<63x64xf32>
    %49 = tpu.concatenate %47, %48 in 0 : vector<1x64xf32>, vector<63x64xf32> -> vector<64x64xf32>
    %50 = vector.extract_strided_slice %46 {offsets = [1, 0], sizes = [63, 64], strides = [1, 1]} : vector<64x64xf32> to vector<63x64xf32>
    %51 = tpu.concatenate %50, %47 in 0 : vector<63x64xf32>, vector<1x64xf32> -> vector<64x64xf32>
    %52 = arith.addf %49, %39 : vector<64x64xf32>
    %53 = arith.addf %52, %51 : vector<64x64xf32>
    %c2_40 = arith.constant 2 : index
    %c0_41 = arith.constant 0 : index
    %54 = vector.load %arg9[%c2_40, %c0_41] : memref<3x64xf32, #tpu.memory_space<vmem>>, vector<1x64xf32>
    %55 = vector.broadcast %54 : vector<1x64xf32> to vector<64x64xf32>
    %56 = arith.addf %53, %55 : vector<64x64xf32>
    %cst_42 = arith.constant 0.000000e+00 : f32
    %57 = vector.broadcast %cst_42 : f32 to vector<64x64xf32>
    %58 = arith.subf %57, %56 : vector<64x64xf32>
    %59 = math.exp %58 : vector<64x64xf32>
    %cst_43 = arith.constant 1.000000e+00 : f32
    %60 = vector.broadcast %cst_43 : f32 to vector<64x64xf32>
    %61 = arith.addf %60, %59 : vector<64x64xf32>
    %cst_44 = arith.constant 1.000000e+00 : f32
    %62 = vector.broadcast %cst_44 : f32 to vector<64x64xf32>
    %63 = arith.divf %62, %61 : vector<64x64xf32>
    %c0_45 = arith.constant 0 : index
    %c0_46 = arith.constant 0 : index
    %64 = vector.load %arg10[%c0_45, %c0_46] : memref<64x64xf32, #tpu.memory_space<vmem>>, vector<64x64xf32>
    tpu.vector_store %arg10[%c0_45, %c0_46], %63 {strides = array<i32>} : memref<64x64xf32, #tpu.memory_space<vmem>>, vector<64x64xf32>,
    return
  }
  func.func @transform_0(%arg0: i32) -> (i32, i32) {
    %c0_i32 = arith.constant 0 : i32
    %c0_i32_0 = arith.constant 0 : i32
    return %arg0, %c0_i32 : i32, i32
  }
  func.func @transform_1(%arg0: i32) -> (i32, i32) {
    %c0_i32 = arith.constant 0 : i32
    %c0_i32_0 = arith.constant 0 : i32
    %c0_i32_1 = arith.constant 0 : i32
    return %c0_i32, %c0_i32_0 : i32, i32
  }
  func.func @transform_2(%arg0: i32) -> (i32, i32) {
    %c0_i32 = arith.constant 0 : i32
    %c0_i32_0 = arith.constant 0 : i32
    %c0_i32_1 = arith.constant 0 : i32
    return %c0_i32, %c0_i32_0 : i32, i32
  }
  func.func @transform_3(%arg0: i32) -> (i32, i32) {
    %c0_i32 = arith.constant 0 : i32
    %c0_i32_0 = arith.constant 0 : i32
    return %arg0, %c0_i32 : i32, i32
  }
  func.func @transform_4(%arg0: i32) -> (i32, i32) {
    %c0_i32 = arith.constant 0 : i32
    %c0_i32_0 = arith.constant 0 : i32
    %c0_i32_1 = arith.constant 0 : i32
    return %c0_i32, %c0_i32_0 : i32, i32
  }
  func.func @transform_5(%arg0: i32) -> (i32, i32) {
    %c0_i32 = arith.constant 0 : i32
    %c0_i32_0 = arith.constant 0 : i32
    %c0_i32_1 = arith.constant 0 : i32
    return %c0_i32, %c0_i32_0 : i32, i32
  }
  func.func @transform_6(%arg0: i32) -> (i32, i32) {
    %c0_i32 = arith.constant 0 : i32
    %c0_i32_0 = arith.constant 0 : i32
    %c0_i32_1 = arith.constant 0 : i32
    return %c0_i32, %c0_i32_0 : i32, i32
  }
  func.func @transform_7(%arg0: i32) -> (i32, i32, i32) {
    %c0_i32 = arith.constant 0 : i32
    %c0_i32_0 = arith.constant 0 : i32
    %c0_i32_1 = arith.constant 0 : i32
    %c0_i32_2 = arith.constant 0 : i32
    return %c0_i32, %c0_i32_0, %c0_i32_1 : i32, i32, i32
  }
  func.func @transform_8(%arg0: i32) -> (i32, i32) {
    %c0_i32 = arith.constant 0 : i32
    %c0_i32_0 = arith.constant 0 : i32
    %c0_i32_1 = arith.constant 0 : i32
    return %c0_i32, %c0_i32_0 : i32, i32
  }
  func.func @transform_9(%arg0: i32) -> (i32, i32) {
    %c0_i32 = arith.constant 0 : i32
    %c0_i32_0 = arith.constant 0 : i32
    return %arg0, %c0_i32 : i32, i32
  }
}

</mosaic_0001>

<bundles_post_ra>
// kernel: tile.67
= control target key start
LH: loop header
LB: loop body
LE: loop exit
PB: predicated region body
PF: predicated region fallthrough
CT: control target
= control target key end

     0   :  { %s28_s0 = inlined_call_operand.vmem [shape: f32[16], index: 0, kind: input, shape index: {}]   ;;  %s29_s1 = inlined_call_operand.vmem [shape: f32[16,16], index: 1, kind: output, shape index: {}]  }
   0x1   :  { %v4_v0 = vld [vmem:[%s28_s0] ss:$0 sm:$0xff] }
   0x2   :  { %5 = vst [vmem:[%s29_s1] sm:$0xff] %v4_v0  ;;  %8 = vst [vmem:[%s29_s1 + $0x8] sm:$0xff] %v4_v0 }

// kernel: tile.69
= control target key start
LH: loop header
LB: loop body
LE: loop exit
PB: predicated region body
PF: predicated region fallthrough
CT: control target
= control target key end

     0   :  { %s7_s6 = smov 3  ;;  %s21_s9 = smov 3  ;;  %vm4_vm0 = vcmask 130048   ;;  %vm11_vm1 = vcmask 1048448   ;;  %vm18_vm2 = vcmask 917248   ;;  %vm25_vm3 = vcmask 786048   ;;  %s128_s0 = inlined_call_operand.vmem [shape: f32[16,16], index: 0, kind: input, shape index: {}]   ;;  %s129_s1 = inlined_call_operand.vmem [shape: f32[1,256], index: 1, kind: output, shape index: {}]  }
   0x1   :  { %v66_v0 = vld [vmem:[%s128_s0 + $0x7] ss:$8 sm:%s7_s6]   ;;  %s81_s10 = smov 112   ;;  %v68_v1 = vld [vmem:[%s128_s0 + $0x5] ss:$8 sm:%s21_s9]   ;;  %s14_s13 = smov 3 }
   0x2   :  { %9 = vrot.lane.b32.xlu0 %v66_v0, %s81_s10  ;;  %s82_s14 = smov 80   ;;  %v67_v2 = vld [vmem:[%s128_s0 + $0x6] ss:$8 sm:%s14_s13]   ;;  %s28_s17 = smov 3  ;;  %vm32_vm4 = vcmask 654848   ;;  %vm39_vm5 = vcmask 523648  }
   0x3   :  { %23 = vrot.lane.b32.xlu1 %v68_v1, %s82_s14  ;;  %v69_v3 = vld [vmem:[%s128_s0 + $0x4] ss:$8 sm:%s28_s17]   ;;  %s35_s20 = smov 3  ;;  %s42_s21 = smov 3  ;;  %vm46_vm6 = vcmask 392448   ;;  %vm53_vm7 = vcmask 261248  }
   0x4   :  { %s83_s22 = smov 96   ;;  %s84_s23 = smov 64   ;;  %v70_v4 = vld [vmem:[%s128_s0 + $0x3] ss:$8 sm:%s35_s20]   ;;  %v71_v5 = vld [vmem:[%s128_s0 + $0x2] ss:$8 sm:%s42_s21]  }
   0x5   :  { %s2_s26 = smov 3  ;;  %s49_s29 = smov 3 }
   0x6   :  { %16 = vrot.lane.b32.xlu0 %v67_v2, %s83_s22  ;;  %v3_v6 = vld [vmem:[%s128_s0] ss:$8 sm:%s2_s26]   ;;  %s85_s3 = smov 48   ;;  %s86_s4 = smov 32  }
   0x7   :  { %30 = vrot.lane.b32.xlu1 %v69_v3, %s84_s23  ;;  %5 = vst.msk [vmem:[#allocation0] ss:$8 sm:$0x3] %vm4_vm0, %v3_v6   ;;  %v72_v7 = vld [vmem:[%s128_s0 + $0x1] ss:$8 sm:%s49_s29]   ;;  %s87_s0 = smov 16  }
   0xa   :  { %37 = vrot.lane.b32.xlu0 %v70_v4, %s85_s3 }
   0xb   :  { %44 = vrot.lane.b32.xlu1 %v71_v5, %s86_s4 }
   0xe   :  { %51 = vrot.lane.b32.xlu0 %v72_v7, %s87_s0 }
  0x74   :  { %v10_v8 = vpop.permute.xlu0 %9  }
  0x75   :  { %12 = vst.msk [vmem:[#allocation0] ss:$8 sm:$0x3] %vm11_vm1, %v10_v8   ;;  %v24_v9 = vpop.permute.xlu1 %23  }
  0x78   :  { %v17_v10 = vpop.permute.xlu0 %16  }
  0x79   :  { %19 = vst.msk [vmem:[#allocation0] ss:$8 sm:$0x3] %vm18_vm2, %v17_v10   ;;  %v31_v11 = vpop.permute.xlu1 %30  }
  0x7a   :  { %26 = vst.msk [vmem:[#allocation0] ss:$8 sm:$0x3] %vm25_vm3, %v24_v9  }
  0x7b   :  { %33 = vst.msk [vmem:[#allocation0] ss:$8 sm:$0x3] %vm32_vm4, %v31_v11  }
  0x7c   :  { %v38_v12 = vpop.permute.xlu0 %37  }
  0x7d   :  { %40 = vst.msk [vmem:[#allocation0] ss:$8 sm:$0x3] %vm39_vm5, %v38_v12   ;;  %v45_v13 = vpop.permute.xlu1 %44  }
  0x7e   :  { %47 = vst.msk [vmem:[#allocation0] ss:$8 sm:$0x3] %vm46_vm6, %v45_v13  }
  0x80   :  { %v52_v14 = vpop.permute.xlu0 %51  }
  0x81   :  { %54 = vst.msk [vmem:[#allocation0] ss:$8 sm:$0x3] %vm53_vm7, %v52_v14  }
  0x88   :  { %v58_v15 = vld [vmem:[#allocation0] sm:$0x1]  ;;  %v62_v16 = vld [vmem:[#allocation0 + $0x8] sm:$0x1] }
  0x89   :  { %60 = vst [vmem:[%s129_s1] sm:$0x1] %v58_v15  ;;  %73 = vst [vmem:[%s129_s1 + $0x1] sm:$0x1] %v62_v16 }

// kernel: full_mask_decoder_forward.7
= control target key start
LH: loop header
LB: loop body
LE: loop exit
PB: predicated region body
PF: predicated region fallthrough
CT: control target
= control target key end

     0   :  { %10 = vsyncpa [#allocation3], 0  ;;  %s1032_s0 = inlined_call_operand.vmem [shape: bf16[16,256], index: 0, kind: input, shape index: {}]   ;;  %s1033_s1 = inlined_call_operand.hbm [shape: bf16[256,512], index: 1, kind: input, shape index: {}]   ;;  %s1034_s2 = inlined_call_operand.hbm [shape: f32[1,512], index: 2, kind: input, shape index: {}]   ;;  %s1035_s3 = inlined_call_operand.vmem [shape: bf16[16,512], index: 3, kind: output, shape index: {0}]   ;;  %s1036_s4 = inlined_call_operand.vmem [shape: f32[1,2,512], index: 4, kind: output, shape index: {1}]  }
   0x1   :  { %11 = vsyncpa [#allocation5], 0  ;;  %s940_s15 = smov [#allocation2]   ;;  %s892_s19 = scalar_lea.hbm %s1033_s1, 8192 }
   0x2   :  { %s19_s16 = sshll.u32 %s940_s15, 4  ;;  %p893_p0 = scmp.ne.s32.totalorder %s1033_s1, %s892_s19  ;;  %s20_s16 = int_to_ptr.vmem [resolvable:$true] %s19_s16 }
   0x3   :  { %p896_p1 = scmp.lt.u32.totalorder %s892_s19, %s1033_s1 }
   0x5   :  { %p898_p2 = pnand %p896_p1, %p893_p0 }
   0x7   :  { %901 = shalt.err (!%p898_p2)
}
   0x8   :  { %s902_s24 = scalar_lea.vmem %s20_s16, 8192  ;;  %p907_p4 = scmp.lt.s32.totalorder %s20_s16, %s20_s16 }
   0x9   :  { %p903_p3 = scmp.ne.s32.totalorder %s20_s16, %s902_s24  ;;  %p908_p5 = scmp.lt.s32.totalorder %s902_s24, %s902_s24 }
   0xb   :  { %p909_p6 = por %p908_p5, %p907_p4 }
   0xd   :  { %p910_p7 = pnand %p909_p6, %p903_p3 }
   0xf   :  { %913 = shalt.err (!%p910_p7)
}
  0x10   :  { %s941_s25 = smov 256   ;;  %s942_s26 = smov 16  }
  0x11   :  { %25 = dma.hbm_to_vmem [thread:$0]  %s1033_s1, 8192, %s20_s16, [#allocation3], %s941_s25, %s941_s25, %s942_s26  }
  0x12   :  { %s943_s29 = smov [#allocation4]   ;;  %s914_s7 = scalar_lea.hbm %s1034_s2, 64 }
  0x13   :  { %s32_s30 = sshll.u32 %s943_s29, 4  ;;  %p915_p8 = scmp.ne.s32.totalorder %s1034_s2, %s914_s7  ;;  %s33_s30 = int_to_ptr.vmem [resolvable:$true] %s32_s30 }
  0x14   :  { %p918_p9 = scmp.lt.u32.totalorder %s914_s7, %s1034_s2 }
  0x16   :  { %p920_p10 = pnand %p918_p9, %p915_p8 }
  0x18   :  { %923 = shalt.err (!%p920_p10)
}
  0x19   :  { %s924_s12 = scalar_lea.vmem %s33_s30, 64  ;;  %p929_p12 = scmp.lt.s32.totalorder %s33_s30, %s33_s30 }
  0x1a   :  { %p925_p11 = scmp.ne.s32.totalorder %s33_s30, %s924_s12  ;;  %p930_p13 = scmp.lt.s32.totalorder %s924_s12, %s924_s12 }
  0x1c   :  { %p931_p0 = por %p930_p13, %p929_p12 }
  0x1e   :  { %p932_p1 = pnand %p931_p0, %p925_p11 }
  0x20   :  { %935 = shalt.err (!%p932_p1)
}
  0x21   :  { %35 = dma.hbm_to_vmem [thread:$0]  %s1034_s2, 64, %s33_s30, [#allocation5]  }
  0x22   :  { %936 = dma.done.wait [#allocation3], 8192  }
  0x23   :  { %937 = vsyncadd [#allocation3], 4294959104 }
  0x24   :  { %938 = dma.done.wait [#allocation5], 64  }
  0x25   :  { %939 = vsyncadd [#allocation5], 4294967232  ;;  %v793_v0 = vld [vmem:[#allocation2 + $0x4] ss:$16 sps:$4 sm:$0xff]   ;;  %v795_v1 = vld [vmem:[#allocation2 + $0xc] ss:$16 sps:$4 sm:$0xff]  }
  0x26   :  { %460 = vmatprep.subr.bf16.mxu0 %v793_v0  ;;  %v797_v2 = vld [vmem:[#allocation2] ss:$16 sps:$4 sm:$0xff]   ;;  %v798_v3 = vld [vmem:[#allocation2 + $0x8] ss:$16 sps:$4 sm:$0xff]   ;;  %503 = vmatprep.subr.bf16.mxu1 %v795_v1  ;;  %v799_v4 = vld [vmem:[#allocation2 + $0x24] ss:$16 sps:$4 sm:$0xff]  }
  0x27   :  { %461 = vmatpush1.bf16.msra.mxu0 %v797_v2  ;;  %504 = vmatpush1.bf16.msra.mxu1 %v798_v3  ;;  %v801_v5 = vld [vmem:[#allocation2 + $0x2c] ss:$16 sps:$4 sm:$0xff]   ;;  %v803_v6 = vld [vmem:[#allocation2 + $0x20] ss:$16 sps:$4 sm:$0xff]   ;;  %v804_v7 = vld [vmem:[#allocation2 + $0x28] ss:$16 sps:$4 sm:$0xff]   ;;  %v110_v2 = vlaneseq }
  0x28   :  { %462 = vmatprep.subr.bf16.mxu0 %v799_v4  ;;  %505 = vmatprep.subr.bf16.mxu1 %v801_v5  ;;  %v805_v8 = vld [vmem:[#allocation2 + $0x44] ss:$16 sps:$4 sm:$0xff]   ;;  %v807_v9 = vld [vmem:[#allocation2 + $0x4c] ss:$16 sps:$4 sm:$0xff]   ;;  %v809_v10 = vld [vmem:[#allocation2 + $0x40] ss:$16 sps:$4 sm:$0xff]  }
  0x29   :  { %v810_v11 = vld [vmem:[#allocation2 + $0x48] ss:$16 sps:$4 sm:$0xff]   ;;  %v811_v12 = vld [vmem:[#allocation2 + $0x64] ss:$16 sps:$4 sm:$0xff]   ;;  %v813_v13 = vld [vmem:[#allocation2 + $0x6c] ss:$16 sps:$4 sm:$0xff]  }
  0x2a   :  { %v815_v14 = vld [vmem:[#allocation2 + $0x60] ss:$16 sps:$4 sm:$0xff]   ;;  %v816_v15 = vld [vmem:[#allocation2 + $0x68] ss:$16 sps:$4 sm:$0xff]   ;;  %v817_v16 = vld [vmem:[#allocation2 + $0x84] ss:$16 sps:$4 sm:$0xff]  }
  0x2b   :  { %463 = vmatpush1.bf16.msra.mxu0 %v803_v6  ;;  %506 = vmatpush1.bf16.msra.mxu1 %v804_v7  ;;  %v819_v17 = vld [vmem:[#allocation2 + $0x8c] ss:$16 sps:$4 sm:$0xff]   ;;  %v821_v18 = vld [vmem:[#allocation2 + $0x80] ss:$16 sps:$4 sm:$0xff]   ;;  %v822_v19 = vld [vmem:[#allocation2 + $0x88] ss:$16 sps:$4 sm:$0xff]  }
  0x2c   :  { %464 = vmatprep.subr.bf16.mxu0 %v805_v8  ;;  %507 = vmatprep.subr.bf16.mxu1 %v807_v9  ;;  %v823_v20 = vld [vmem:[#allocation2 + $0xa4] ss:$16 sps:$4 sm:$0xff]   ;;  %v825_v21 = vld [vmem:[#allocation2 + $0xac] ss:$16 sps:$4 sm:$0xff]   ;;  %v827_v22 = vld [vmem:[#allocation2 + $0xa0] ss:$16 sps:$4 sm:$0xff]  }
  0x2d   :  { %v828_v23 = vld [vmem:[#allocation2 + $0xa8] ss:$16 sps:$4 sm:$0xff]   ;;  %v829_v24 = vld [vmem:[#allocation2 + $0xc4] ss:$16 sps:$4 sm:$0xff]   ;;  %v831_v25 = vld [vmem:[#allocation2 + $0xcc] ss:$16 sps:$4 sm:$0xff]  }
  0x2e   :  { %v833_v26 = vld [vmem:[#allocation2 + $0xc0] ss:$16 sps:$4 sm:$0xff]   ;;  %v834_v27 = vld [vmem:[#allocation2 + $0xc8] ss:$16 sps:$4 sm:$0xff]   ;;  %v835_v28 = vld [vmem:[#allocation2 + $0xe4] ss:$16 sps:$4 sm:$0xff]  }
  0x2f   :  { %465 = vmatpush1.bf16.msra.mxu0 %v809_v10  ;;  %508 = vmatpush1.bf16.msra.mxu1 %v810_v11  ;;  %v837_v29 = vld [vmem:[#allocation2 + $0xec] ss:$16 sps:$4 sm:$0xff]   ;;  %v839_v30 = vld [vmem:[#allocation2 + $0xe0] ss:$16 sps:$4 sm:$0xff]   ;;  %v840_v31 = vld [vmem:[#allocation2 + $0xe8] ss:$16 sps:$4 sm:$0xff]  }
  0x30   :  { %466 = vmatprep.subr.bf16.mxu0 %v811_v12  ;;  %509 = vmatprep.subr.bf16.mxu1 %v813_v13  ;;  %v841_v32 = vld [vmem:[#allocation2 + $0x104] ss:$16 sps:$4 sm:$0xff]   ;;  %v843_v33 = vld [vmem:[#allocation2 + $0x10c] ss:$16 sps:$4 sm:$0xff]   ;;  %v845_v34 = vld [vmem:[#allocation2 + $0x100] ss:$16 sps:$4 sm:$0xff]  }
  0x31   :  { %v846_v35 = vld [vmem:[#allocation2 + $0x108] ss:$16 sps:$4 sm:$0xff]   ;;  %v847_v36 = vld [vmem:[#allocation2 + $0x124] ss:$16 sps:$4 sm:$0xff]   ;;  %v849_v37 = vld [vmem:[#allocation2 + $0x12c] ss:$16 sps:$4 sm:$0xff]  }
  0x32   :  { %v851_v38 = vld [vmem:[#allocation2 + $0x120] ss:$16 sps:$4 sm:$0xff]   ;;  %v852_v39 = vld [vmem:[#allocation2 + $0x128] ss:$16 sps:$4 sm:$0xff]   ;;  %v853_v40 = vld [vmem:[#allocation2 + $0x144] ss:$16 sps:$4 sm:$0xff]  }
  0x33   :  { %467 = vmatpush1.bf16.msra.mxu0 %v815_v14  ;;  %510 = vmatpush1.bf16.msra.mxu1 %v816_v15  ;;  %v855_v41 = vld [vmem:[#allocation2 + $0x14c] ss:$16 sps:$4 sm:$0xff]   ;;  %v857_v42 = vld [vmem:[#allocation2 + $0x140] ss:$16 sps:$4 sm:$0xff]   ;;  %v858_v43 = vld [vmem:[#allocation2 + $0x148] ss:$16 sps:$4 sm:$0xff]  }
  0x34   :  { %468 = vmatprep.subr.bf16.mxu0 %v817_v16  ;;  %511 = vmatprep.subr.bf16.mxu1 %v819_v17  ;;  %v859_v44 = vld [vmem:[#allocation2 + $0x164] ss:$16 sps:$4 sm:$0xff]   ;;  %v861_v45 = vld [vmem:[#allocation2 + $0x16c] ss:$16 sps:$4 sm:$0xff]   ;;  %v863_v47 = vld [vmem:[#allocation2 + $0x160] ss:$16 sps:$4 sm:$0xff]  }
  0x35   :  { %v891_v46 = vld [vmem:[%s1032_s0 + $0x4] ss:$8 sps:$4 sm:$0xff]   ;;  %v864_v48 = vld [vmem:[#allocation2 + $0x168] ss:$16 sps:$4 sm:$0xff]   ;;  %v869_v51 = vld [vmem:[#allocation2 + $0x180] ss:$16 sps:$4 sm:$0xff]  }
  0x36   :  { %v865_v49 = vld [vmem:[#allocation2 + $0x184] ss:$16 sps:$4 sm:$0xff]   ;;  %v867_v50 = vld [vmem:[#allocation2 + $0x18c] ss:$16 sps:$4 sm:$0xff]   ;;  %492 = vmatprep.mubr.bf16.mxu0 %v891_v46  ;;  %535 = vmatprep.mubr.bf16.mxu1 %v891_v46  ;;  %v870_v52 = vld [vmem:[#allocation2 + $0x188] ss:$16 sps:$4 sm:$0xff]  }
  0x37   :  { %469 = vmatpush1.bf16.msra.mxu0 %v821_v18  ;;  %512 = vmatpush1.bf16.msra.mxu1 %v822_v19  ;;  %v871_v53 = vld [vmem:[#allocation2 + $0x1a4] ss:$16 sps:$4 sm:$0xff]   ;;  %v873_v54 = vld [vmem:[#allocation2 + $0x1ac] ss:$16 sps:$4 sm:$0xff]   ;;  %v875_v55 = vld [vmem:[#allocation2 + $0x1a0] ss:$16 sps:$4 sm:$0xff]  }
  0x38   :  { %470 = vmatprep.subr.bf16.mxu0 %v823_v20  ;;  %513 = vmatprep.subr.bf16.mxu1 %v825_v21  ;;  %v876_v56 = vld [vmem:[#allocation2 + $0x1a8] ss:$16 sps:$4 sm:$0xff]   ;;  %v877_v57 = vld [vmem:[#allocation2 + $0x1c4] ss:$16 sps:$4 sm:$0xff]   ;;  %v879_v58 = vld [vmem:[#allocation2 + $0x1cc] ss:$16 sps:$4 sm:$0xff]  }
  0x39   :  { %v881_v59 = vld [vmem:[#allocation2 + $0x1c0] ss:$16 sps:$4 sm:$0xff]   ;;  %v882_v60 = vld [vmem:[#allocation2 + $0x1c8] ss:$16 sps:$4 sm:$0xff]   ;;  %v883_v61 = vld [vmem:[#allocation2 + $0x1e4] ss:$16 sps:$4 sm:$0xff]  }
  0x3a   :  { %v885_v62 = vld [vmem:[#allocation2 + $0x1ec] ss:$16 sps:$4 sm:$0xff]   ;;  %v887_v63 = vld [vmem:[#allocation2 + $0x1e0] ss:$16 sps:$4 sm:$0xff]   ;;  %v888_v0 = vld [vmem:[#allocation2 + $0x1e8] ss:$16 sps:$4 sm:$0xff]  }
  0x3b   :  { %471 = vmatpush1.bf16.msra.mxu0 %v827_v22  ;;  %514 = vmatpush1.bf16.msra.mxu1 %v828_v23  ;;  %v889_v1 = vld [vmem:[%s1032_s0] ss:$8 sps:$4 sm:$0xff]   ;;  %v1001_v3 = vshrl.u32 %v110_v2, 7  ;;  %v944_v13 = vmov 1966171168   ;;  %vm633_vm0 = vcmp.lt.s32.totalorder %v110_v2, 512 }
  0x3c   :  { %472 = vmatprep.subr.bf16.mxu0 %v829_v24  ;;  %515 = vmatprep.subr.bf16.mxu1 %v831_v25  ;;  %v108_v6 = vld [vmem:[#allocation4] sm:$0xf]  ;;  %v1007_v14 = vunpack.c.l.s4 %v944_v13 }
  0x3d   :  { %v112_v4 = vsub.s32 0, %v1001_v3  ;;  %v120_v5 = vsub.s32 2, %v1001_v3  ;;  %v116_v7 = vsub.s32 1, %v1001_v3  ;;  %v124_v8 = vsub.s32 3, %v1001_v3 }
  0x3e   :  { %v610_v25 = vunpack.c.0.s8 %v1007_v14 }
  0x3f   :  { %473 = vmatpush1.bf16.msra.mxu0 %v833_v26  ;;  %516 = vmatpush1.bf16.msra.mxu1 %v834_v27  ;;  %v113_v9 = vrot.slane %v108_v6, %v112_v4  ;;  %v121_v10 = vrot.slane %v108_v6, %v120_v5  ;;  %v117_v11 = vrot.slane %v108_v6, %v116_v7 }
  0x40   :  { %474 = vmatprep.subr.bf16.mxu0 %v835_v28  ;;  %517 = vmatprep.subr.bf16.mxu1 %v837_v29  ;;  %v125_v12 = vrot.slane %v108_v6, %v124_v8 }
  0x43   :  { %475 = vmatpush1.bf16.msra.mxu0 %v839_v30  ;;  %518 = vmatpush1.bf16.msra.mxu1 %v840_v31 }
  0x44   :  { %476 = vmatprep.subr.bf16.mxu0 %v841_v32  ;;  %519 = vmatprep.subr.bf16.mxu1 %v843_v33 }
  0x47   :  { %477 = vmatpush1.bf16.msra.mxu0 %v845_v34  ;;  %520 = vmatpush1.bf16.msra.mxu1 %v846_v35 }
  0x48   :  { %478 = vmatprep.subr.bf16.mxu0 %v847_v36  ;;  %521 = vmatprep.subr.bf16.mxu1 %v849_v37 }
  0x4b   :  { %479 = vmatpush1.bf16.msra.mxu0 %v851_v38  ;;  %522 = vmatpush1.bf16.msra.mxu1 %v852_v39 }
  0x4c   :  { %480 = vmatprep.subr.bf16.mxu0 %v853_v40  ;;  %523 = vmatprep.subr.bf16.mxu1 %v855_v41 }
  0x4f   :  { %481 = vmatpush1.bf16.msra.mxu0 %v857_v42  ;;  %524 = vmatpush1.bf16.msra.mxu1 %v858_v43 }
  0x50   :  { %482 = vmatprep.subr.bf16.mxu0 %v859_v44  ;;  %525 = vmatprep.subr.bf16.mxu1 %v861_v45 }
  0x53   :  { %483 = vmatpush1.bf16.msra.mxu0 %v863_v47  ;;  %526 = vmatpush1.bf16.msra.mxu1 %v864_v48 }
  0x54   :  { %484 = vmatprep.subr.bf16.mxu0 %v865_v49  ;;  %527 = vmatprep.subr.bf16.mxu1 %v867_v50 }
  0x57   :  { %485 = vmatpush1.bf16.msra.mxu0 %v869_v51  ;;  %528 = vmatpush1.bf16.msra.mxu1 %v870_v52 }
  0x58   :  { %486 = vmatprep.subr.bf16.mxu0 %v871_v53  ;;  %529 = vmatprep.subr.bf16.mxu1 %v873_v54 }
  0x5b   :  { %487 = vmatpush1.bf16.msra.mxu0 %v875_v55  ;;  %530 = vmatpush1.bf16.msra.mxu1 %v876_v56 }
  0x5c   :  { %488 = vmatprep.subr.bf16.mxu0 %v877_v57  ;;  %531 = vmatprep.subr.bf16.mxu1 %v879_v58 }
  0x5f   :  { %489 = vmatpush1.bf16.msra.mxu0 %v881_v59  ;;  %532 = vmatpush1.bf16.msra.mxu1 %v882_v60 }
  0x60   :  { %490 = vmatprep.subr.bf16.mxu0 %v883_v61  ;;  %533 = vmatprep.subr.bf16.mxu1 %v885_v62 }
  0x63   :  { %491 = vmatpush1.bf16.msra.mxu0 %v887_v63  ;;  %534 = vmatpush1.bf16.msra.mxu1 %v888_v0 }
  0x66   :  { %493 = vmatmul.mubr.bf16.vlgmr.msra.gmra.mrb[0].mxu0 %v889_v1  ;;  %536 = vmatmul.mubr.bf16.vlgmr.msra.gmra.mrb[0].mxu1 %v889_v1 }
 0x139   :  { %v494_v15 = vpop.f32.mrb[0].mxu0  ;;  %v537_v16 = vpop.f32.mrb[0].mxu1 }
 0x13a   :  { %v495_v17 = vadd.f32 %v494_v15, %v113_v9  ;;  %v538_v18 = vadd.f32 %v537_v16, %v121_v10  ;;  %v496_v19 = vpop.f32.mrb[1].mxu0  ;;  %v539_v20 = vpop.f32.mrb[1].mxu1 }
 0x13b   :  { %v497_v21 = vadd.f32 %v496_v19, %v117_v11  ;;  %v540_v22 = vadd.f32 %v539_v20, %v125_v12  ;;  %v498_v23 = vpop.f32.mrb[2].mxu0  ;;  %v541_v24 = vpop.f32.mrb[2].mxu1 }
 0x13c   :  { %v499_v26 = vadd.f32 %v498_v23, %v113_v9  ;;  %v542_v27 = vadd.f32 %v541_v24, %v121_v10  ;;  %v500_v28 = vpop.f32.mrb[3].mxu0  ;;  %v543_v29 = vpop.f32.mrb[3].mxu1  ;;  %v636_v30 = vmul.f32 %v495_v17, %v495_v17  ;;  %v638_v31 = vmul.f32 %v538_v18, %v538_v18 }
 0x13d   :  { %v784_v32 = vpack.c.bf16 %v497_v21, %v495_v17  ;;  %v785_v33 = vpack.c.bf16 %v540_v22, %v538_v18  ;;  %v637_v38 = vmul.f32 %v497_v21, %v497_v21  ;;  %v639_v39 = vmul.f32 %v540_v22, %v540_v22 }
 0x13e   :  { %v574_v34 = vadd.f32 %v499_v26, %v495_v17  ;;  %v640_v35 = vmul.f32 %v499_v26, %v499_v26  ;;  %v588_v36 = vadd.f32 %v542_v27, %v538_v18  ;;  %v642_v37 = vmul.f32 %v542_v27, %v542_v27 }
 0x13f   :  { %570 = vst [vmem:[%s1035_s3] sm:$0xff] %v784_v32  ;;  %571 = vst [vmem:[%s1035_s3 + $0x8] sm:$0xff] %v785_v33  ;;  %v501_v40 = vadd.f32 %v500_v28, %v117_v11  ;;  %v544_v41 = vadd.f32 %v543_v29, %v125_v12  ;;  %v613_v29 = vsub.s32 %v610_v25, %v1001_v3 }
 0x140   :  { %v575_v42 = vrot.slane %v574_v34, 4  ;;  %v644_v43 = vadd.f32 %v640_v35, %v636_v30  ;;  %v589_v44 = vrot.slane %v588_v36, 4  ;;  %v658_v45 = vadd.f32 %v642_v37, %v638_v31 }
 0x141   :  { %v786_v46 = vpack.c.bf16 %v501_v40, %v499_v26  ;;  %v581_v47 = vadd.f32 %v501_v40, %v497_v21  ;;  %v641_v48 = vmul.f32 %v501_v40, %v501_v40  ;;  %v787_v49 = vpack.c.bf16 %v544_v41, %v542_v27 }
 0x142   :  { %v576_v50 = vadd.f32 %v575_v42, %v574_v34  ;;  %v645_v51 = vrot.slane %v644_v43, 4  ;;  %v590_v52 = vadd.f32 %v589_v44, %v588_v36  ;;  %v659_v53 = vrot.slane %v658_v45, 4 }
 0x143   :  { %572 = vst [vmem:[%s1035_s3 + $0x10] sm:$0xff] %v786_v46  ;;  %v582_v54 = vrot.slane %v581_v47, 4  ;;  %v651_v55 = vadd.f32 %v641_v48, %v637_v38  ;;  %573 = vst [vmem:[%s1035_s3 + $0x18] sm:$0xff] %v787_v49  ;;  %v595_v56 = vadd.f32 %v544_v41, %v540_v22  ;;  %v643_v57 = vmul.f32 %v544_v41, %v544_v41 }
 0x144   :  { %v577_v58 = vrot.slane %v576_v50, 2  ;;  %v646_v59 = vadd.f32 %v645_v51, %v644_v43  ;;  %v591_v60 = vrot.slane %v590_v52, 2  ;;  %v660_v61 = vadd.f32 %v659_v53, %v658_v45 }
 0x145   :  { %v583_v62 = vadd.f32 %v582_v54, %v581_v47  ;;  %v652_v63 = vrot.slane %v651_v55, 4  ;;  %v596_v0 = vrot.slane %v595_v56, 4  ;;  %v665_v1 = vadd.f32 %v643_v57, %v639_v39 }
 0x146   :  { %v578_v4 = vadd.f32 %v577_v58, %v576_v50  ;;  %v647_v5 = vrot.slane %v646_v59, 2  ;;  %v592_v6 = vadd.f32 %v591_v60, %v590_v52  ;;  %v661_v7 = vrot.slane %v660_v61, 2 }
 0x147   :  { %v584_v8 = vrot.slane %v583_v62, 2  ;;  %v653_v9 = vadd.f32 %v652_v63, %v651_v55  ;;  %v597_v10 = vadd.f32 %v596_v0, %v595_v56  ;;  %v666_v11 = vrot.slane %v665_v1, 4 }
 0x148   :  { %v579_v12 = vrot.slane %v578_v4, 1  ;;  %v648_v13 = vadd.f32 %v647_v5, %v646_v59  ;;  %v593_v15 = vrot.slane %v592_v6, 1  ;;  %v662_v16 = vadd.f32 %v661_v7, %v660_v61 }
 0x149   :  { %v585_v17 = vadd.f32 %v584_v8, %v583_v62  ;;  %v654_v18 = vrot.slane %v653_v9, 2  ;;  %v598_v19 = vrot.slane %v597_v10, 2  ;;  %v667_v20 = vadd.f32 %v666_v11, %v665_v1 }
 0x14a   :  { %v580_v21 = vadd.f32 %v579_v12, %v578_v4  ;;  %v649_v22 = vrot.slane %v648_v13, 1  ;;  %v663_v23 = vrot.slane %v662_v16, 1  ;;  %v594_v31 = vadd.f32 %v593_v15, %v592_v6 }
 0x14b   :  { %v586_v24 = vrot.slane %v585_v17, 1  ;;  %v655_v26 = vadd.f32 %v654_v18, %v653_v9  ;;  %v599_v27 = vadd.f32 %v598_v19, %v597_v10  ;;  %v668_v28 = vrot.slane %v667_v20, 2 }
 0x14c   :  { %v650_v30 = vadd.f32 %v649_v22, %v648_v13  ;;  %v664_v36 = vadd.f32 %v663_v23, %v662_v16 }
 0x14d   :  { %v587_v32 = vadd.f32 %v586_v24, %v585_v17  ;;  %v656_v33 = vrot.slane %v655_v26, 1  ;;  %v600_v34 = vrot.slane %v599_v27, 1  ;;  %v669_v35 = vadd.f32 %v668_v28, %v667_v20 }
 0x14f   :  { %v606_v37 = vcombine.low %v580_v21, %v587_v32  ;;  %v657_v38 = vadd.f32 %v656_v33, %v655_v26  ;;  %v601_v39 = vadd.f32 %v600_v34, %v599_v27  ;;  %v670_v40 = vrot.slane %v669_v35, 1 }
 0x151   :  { %v614_v41 = vrot.slane %v606_v37, %v613_v29  ;;  %v676_v42 = vcombine.low %v650_v30, %v657_v38  ;;  %v607_v43 = vcombine.low %v594_v31, %v601_v39  ;;  %v671_v44 = vadd.f32 %v670_v40, %v669_v35 }
 0x153   :  { %v684_v45 = vrot.slane %v676_v42, %v613_v29  ;;  %v621_v46 = vrot.slane %v607_v43, %v613_v29  ;;  %v677_v47 = vcombine.low %v664_v36, %v671_v44 }
 0x155   :  { %v622_v14 = vcombine.low %v614_v41, %v621_v46  ;;  %v691_v3 = vrot.slane %v677_v47, %v613_v29 }
 0x157   :  { %v629_v25 = vrot.slane %v622_v14, %v613_v29  ;;  %v692_v48 = vcombine.low %v684_v45, %v691_v3 }
 0x159   :  { %635 = vst.msk [vmem:[%s1036_s4] ss:$2 sm:$0xf] %vm633_vm0, %v629_v25  ;;  %v699_v49 = vrot.slane %v692_v48, %v613_v29 }
 0x15b   :  { %783 = vst.msk [vmem:[%s1036_s4 + $0x1] ss:$2 sm:$0xf] %vm633_vm0, %v699_v49 }
 0x15c   :  { %711 = vsyncpa [#allocation3], 1 }
 0x15d   :  { %712 = vsyncpa [#allocation5], 1 }

// kernel: tile.87
= control target key start
LH: loop header
LB: loop body
LE: loop exit
PB: predicated region body
PF: predicated region fallthrough
CT: control target
= control target key end

     0   :  { %s40_s0 = inlined_call_operand.vmem [shape: f32[8], index: 0, kind: input, shape index: {}]   ;;  %s41_s1 = inlined_call_operand.vmem [shape: f32[32,8], index: 1, kind: output, shape index: {}]  }
   0x1   :  { %v4_v0 = vld [vmem:[%s40_s0] ss:$0 sm:$0xff] }
   0x2   :  { %5 = vst [vmem:[%s41_s1] sm:$0xff] %v4_v0  ;;  %12 = vst [vmem:[%s41_s1 + $0x8] sm:$0xff] %v4_v0 }
   0x3   :  { %13 = vst [vmem:[%s41_s1 + $0x10] sm:$0xff] %v4_v0  ;;  %14 = vst [vmem:[%s41_s1 + $0x18] sm:$0xff] %v4_v0 }

// kernel: tile.89
= control target key start
LH: loop header
LB: loop body
LE: loop exit
PB: predicated region body
PF: predicated region fallthrough
CT: control target
= control target key end

     0   :  { %s7_s6 = smov 3  ;;  %s21_s9 = smov 3  ;;  %vm4_vm0 = vcmask 64512   ;;  %vm11_vm1 = vcmask 1048512   ;;  %vm18_vm2 = vcmask 982912   ;;  %vm25_vm3 = vcmask 917312   ;;  %s232_s0 = inlined_call_operand.vmem [shape: f32[32,8], index: 0, kind: input, shape index: {}]   ;;  %s233_s1 = inlined_call_operand.vmem [shape: f32[1,256], index: 1, kind: output, shape index: {}]  }
   0x1   :  { %v122_v0 = vld [vmem:[%s232_s0 + $0xf] ss:$16 sm:%s7_s6]   ;;  %s153_s10 = smov 120   ;;  %v124_v1 = vld [vmem:[%s232_s0 + $0xd] ss:$16 sm:%s21_s9]   ;;  %s14_s13 = smov 3 }
   0x2   :  { %9 = vrot.lane.b32.xlu0 %v122_v0, %s153_s10  ;;  %s154_s14 = smov 104   ;;  %v123_v2 = vld [vmem:[%s232_s0 + $0xe] ss:$16 sm:%s14_s13]   ;;  %s28_s17 = smov 3  ;;  %vm32_vm4 = vcmask 851712   ;;  %vm39_vm5 = vcmask 786112  }
   0x3   :  { %23 = vrot.lane.b32.xlu1 %v124_v1, %s154_s14  ;;  %v125_v3 = vld [vmem:[%s232_s0 + $0xc] ss:$16 sm:%s28_s17]   ;;  %s35_s20 = smov 3  ;;  %s42_s21 = smov 3  ;;  %vm46_vm6 = vcmask 720512   ;;  %vm53_vm7 = vcmask 654912  }
   0x4   :  { %s155_s22 = smov 112   ;;  %s156_s23 = smov 96   ;;  %v126_v4 = vld [vmem:[%s232_s0 + $0xb] ss:$16 sm:%s35_s20]   ;;  %v127_v5 = vld [vmem:[%s232_s0 + $0xa] ss:$16 sm:%s42_s21]  }
   0x5   :  { %s49_s28 = smov 3  ;;  %s56_s29 = smov 3  ;;  %vm60_vm8 = vcmask 589312   ;;  %vm67_vm9 = vcmask 523712   ;;  %vm74_vm10 = vcmask 458112   ;;  %vm81_vm11 = vcmask 392512  }
   0x6   :  { %16 = vrot.lane.b32.xlu0 %v123_v2, %s155_s22  ;;  %s157_s30 = smov 88   ;;  %s158_s2 = smov 80   ;;  %v128_v6 = vld [vmem:[%s232_s0 + $0x9] ss:$16 sm:%s49_s28]   ;;  %vm88_vm12 = vcmask 326912   ;;  %vm95_vm13 = vcmask 261312  }
   0x7   :  { %30 = vrot.lane.b32.xlu1 %v125_v3, %s156_s23  ;;  %v129_v7 = vld [vmem:[%s232_s0 + $0x8] ss:$16 sm:%s56_s29]   ;;  %s63_s7 = smov 3  ;;  %s70_s8 = smov 3  ;;  %vm102_vm14 = vcmask 195712   ;;  %vm109_vm15 = vcmask 130112  }
   0x8   :  { %s159_s9 = smov 72   ;;  %s160_s10 = smov 64   ;;  %v130_v8 = vld [vmem:[%s232_s0 + $0x7] ss:$16 sm:%s63_s7]   ;;  %v131_v9 = vld [vmem:[%s232_s0 + $0x6] ss:$16 sm:%s70_s8]  }
   0x9   :  { %s2_s13 = smov 3  ;;  %s77_s16 = smov 3 }
   0xa   :  { %37 = vrot.lane.b32.xlu0 %v126_v4, %s157_s30  ;;  %v3_v10 = vld [vmem:[%s232_s0] ss:$16 sm:%s2_s13]   ;;  %s84_s19 = smov 3  ;;  %s161_s20 = smov 56  }
   0xb   :  { %44 = vrot.lane.b32.xlu1 %v127_v5, %s158_s2  ;;  %5 = vst.msk [vmem:[#allocation0] ss:$8 sm:$0x3] %vm4_vm0, %v3_v10   ;;  %s162_s21 = smov 48   ;;  %v132_v11 = vld [vmem:[%s232_s0 + $0x5] ss:$16 sm:%s77_s16]  }
   0xc   :  { %v133_v12 = vld [vmem:[%s232_s0 + $0x4] ss:$16 sm:%s84_s19]   ;;  %s91_s26 = smov 3  ;;  %s98_s27 = smov 3 }
   0xd   :  { %s163_s28 = smov 40   ;;  %s164_s29 = smov 32   ;;  %v134_v13 = vld [vmem:[%s232_s0 + $0x3] ss:$16 sm:%s91_s26]   ;;  %v135_v14 = vld [vmem:[%s232_s0 + $0x2] ss:$16 sm:%s98_s27]  }
   0xe   :  { %51 = vrot.lane.b32.xlu0 %v128_v6, %s159_s9  ;;  %s105_s5 = smov 3  ;;  %s165_s6 = smov 24  }
   0xf   :  { %58 = vrot.lane.b32.xlu1 %v129_v7, %s160_s10  ;;  %s166_s7 = smov 16   ;;  %v136_v15 = vld [vmem:[%s232_s0 + $0x1] ss:$16 sm:%s105_s5]   ;;  %s167_s0 = smov 8  }
  0x12   :  { %65 = vrot.lane.b32.xlu0 %v130_v8, %s161_s20 }
  0x13   :  { %72 = vrot.lane.b32.xlu1 %v131_v9, %s162_s21 }
  0x16   :  { %79 = vrot.lane.b32.xlu0 %v132_v11, %s163_s28 }
  0x17   :  { %86 = vrot.lane.b32.xlu1 %v133_v12, %s164_s29 }
  0x1a   :  { %93 = vrot.lane.b32.xlu0 %v134_v13, %s165_s6 }
  0x1b   :  { %100 = vrot.lane.b32.xlu1 %v135_v14, %s166_s7 }
  0x1e   :  { %107 = vrot.lane.b32.xlu0 %v136_v15, %s167_s0 }
  0x74   :  { %v10_v16 = vpop.permute.xlu0 %9  }
  0x75   :  { %12 = vst.msk [vmem:[#allocation0] ss:$8 sm:$0x3] %vm11_vm1, %v10_v16   ;;  %v24_v17 = vpop.permute.xlu1 %23  }
  0x78   :  { %v17_v18 = vpop.permute.xlu0 %16  }
  0x79   :  { %19 = vst.msk [vmem:[#allocation0] ss:$8 sm:$0x3] %vm18_vm2, %v17_v18   ;;  %v31_v19 = vpop.permute.xlu1 %30  }
  0x7a   :  { %26 = vst.msk [vmem:[#allocation0] ss:$8 sm:$0x3] %vm25_vm3, %v24_v17  }
  0x7b   :  { %33 = vst.msk [vmem:[#allocation0] ss:$8 sm:$0x3] %vm32_vm4, %v31_v19  }
  0x7c   :  { %v38_v20 = vpop.permute.xlu0 %37  }
  0x7d   :  { %40 = vst.msk [vmem:[#allocation0] ss:$8 sm:$0x3] %vm39_vm5, %v38_v20   ;;  %v45_v21 = vpop.permute.xlu1 %44  }
  0x7e   :  { %47 = vst.msk [vmem:[#allocation0] ss:$8 sm:$0x3] %vm46_vm6, %v45_v21  }
  0x80   :  { %v52_v22 = vpop.permute.xlu0 %51  }
  0x81   :  { %54 = vst.msk [vmem:[#allocation0] ss:$8 sm:$0x3] %vm53_vm7, %v52_v22   ;;  %v59_v23 = vpop.permute.xlu1 %58  }
  0x82   :  { %61 = vst.msk [vmem:[#allocation0] ss:$8 sm:$0x3] %vm60_vm8, %v59_v23  }
  0x84   :  { %v66_v24 = vpop.permute.xlu0 %65  }
  0x85   :  { %68 = vst.msk [vmem:[#allocation0] ss:$8 sm:$0x3] %vm67_vm9, %v66_v24   ;;  %v73_v25 = vpop.permute.xlu1 %72  }
  0x86   :  { %75 = vst.msk [vmem:[#allocation0] ss:$8 sm:$0x3] %vm74_vm10, %v73_v25  }
  0x88   :  { %v80_v26 = vpop.permute.xlu0 %79  }
  0x89   :  { %82 = vst.msk [vmem:[#allocation0] ss:$8 sm:$0x3] %vm81_vm11, %v80_v26   ;;  %v87_v27 = vpop.permute.xlu1 %86  }
  0x8a   :  { %89 = vst.msk [vmem:[#allocation0] ss:$8 sm:$0x3] %vm88_vm12, %v87_v27  }
  0x8c   :  { %v94_v28 = vpop.permute.xlu0 %93  }
  0x8d   :  { %96 = vst.msk [vmem:[#allocation0] ss:$8 sm:$0x3] %vm95_vm13, %v94_v28   ;;  %v101_v29 = vpop.permute.xlu1 %100  }
  0x8e   :  { %103 = vst.msk [vmem:[#allocation0] ss:$8 sm:$0x3] %vm102_vm14, %v101_v29  }
  0x90   :  { %v108_v30 = vpop.permute.xlu0 %107  }
  0x91   :  { %110 = vst.msk [vmem:[#allocation0] ss:$8 sm:$0x3] %vm109_vm15, %v108_v30  }
  0x98   :  { %v114_v31 = vld [vmem:[#allocation0] sm:$0x1]  ;;  %v118_v32 = vld [vmem:[#allocation0 + $0x8] sm:$0x1] }
  0x99   :  { %116 = vst [vmem:[%s233_s1] sm:$0x1] %v114_v31  ;;  %137 = vst [vmem:[%s233_s1 + $0x1] sm:$0x1] %v118_v32 }

// kernel: full_mask_decoder_forward.8
= control target key start
LH: loop header
LB: loop body
LE: loop exit
PB: predicated region body
PF: predicated region fallthrough
CT: control target
= control target key end

     0   :  { %s1642_s21 = smov 0   ;;  %s1997_s0 = inlined_call_operand.vmem [shape: bf16[32,256], index: 0, kind: input, shape index: {}]   ;;  %s1998_s1 = inlined_call_operand.vmem [shape: f32[1,256], index: 1, kind: input, shape index: {}]   ;;  %s1999_s2 = inlined_call_operand.vmem [shape: f32[1,256], index: 2, kind: input, shape index: {}]   ;;  %s2000_s3 = inlined_call_operand.vmem [shape: bf16[3,256,256], index: 3, kind: input, shape index: {}]   ;;  %s2001_s4 = inlined_call_operand.vmem [shape: f32[1,256], index: 4, kind: input, shape index: {}]   ;;  %s2002_s5 = inlined_call_operand.vmem [shape: bf16[32,256], index: 5, kind: output, shape index: {0}]   ;;  %s2003_s6 = inlined_call_operand.vmem [shape: f32[2,2,256], index: 6, kind: output, shape index: {1}]  }
   0x1 LB: > { %s1648_s22 = sadd.s32 4294967295, %s1604_s21   ;;  %p1266_p0 = scmp.ge.s32.totalorder %s1604_s21, 1  ;;  %s1604_s21 = sphi %s1642_s21, %s17_s21  }
   0x2   : > { %p217_p1 = scmp.lt.s32.totalorder %s1604_s21, 3 }
   0x4   : > { %p218_p2 = pnand %p1266_p0, %p217_p1 }
   0x5   : > { %v1454_v0 = vld [vmem:[%s2000_s3 + $0x4] ss:$8 sps:$4 sm:$0xff] (!%p218_p2)   ;;  %v1456_v1 = vld [vmem:[%s2000_s3] ss:$8 sps:$4 sm:$0xff] (!%p218_p2)   ;;  %v1459_v3 = vld [vmem:[%s2000_s3 + $0x14] ss:$8 sps:$4 sm:$0xff] (!%p218_p2)   ;;  %v281_v35 = vlaneseq (!%p218_p2) }
   0x6   : > { %221 = sbr.rel (%p218_p2) target bundleno = 380 (0x17c), region = 40  ;;  %509 = vmatprep.subr.bf16.mxu0 (!%p218_p2), %v1454_v0  ;;  %v1457_v2 = vld [vmem:[%s2000_s3 + $0x104] ss:$8 sps:$4 sm:$0xff] (!%p218_p2)   ;;  %v1461_v4 = vld [vmem:[%s2000_s3 + $0x100] ss:$8 sps:$4 sm:$0xff] (!%p218_p2)   ;;  %s1267_s11 = sshll.u32 (!%p218_p2), %s1648_s22, 1 }
   0x7   : > { %510 = vmatpush1.bf16.msra.mxu0 (!%p218_p2), %v1456_v1  ;;  %v1462_v5 = vld [vmem:[%s2000_s3 + $0x10] ss:$8 sps:$4 sm:$0xff] (!%p218_p2)   ;;  %745 = vmatprep.subr.bf16.mxu1 (!%p218_p2), %v1457_v2  ;;  %v1463_v6 = vld [vmem:[%s2000_s3 + $0x114] ss:$8 sps:$4 sm:$0xff] (!%p218_p2)   ;;  %v1465_v7 = vld [vmem:[%s2000_s3 + $0x24] ss:$8 sps:$4 sm:$0xff] (!%p218_p2)  }
   0x8   : > { %511 = vmatprep.subr.bf16.mxu0 (!%p218_p2), %v1459_v3  ;;  %746 = vmatpush1.bf16.msra.mxu1 (!%p218_p2), %v1461_v4  ;;  %v1467_v8 = vld [vmem:[%s2000_s3 + $0x110] ss:$8 sps:$4 sm:$0xff] (!%p218_p2)   ;;  %v1468_v9 = vld [vmem:[%s2000_s3 + $0x20] ss:$8 sps:$4 sm:$0xff] (!%p218_p2)   ;;  %v1469_v10 = vld [vmem:[%s2000_s3 + $0x124] ss:$8 sps:$4 sm:$0xff] (!%p218_p2)  }
   0x9   : > { %747 = vmatprep.subr.bf16.mxu1 (!%p218_p2), %v1463_v6  ;;  %v1471_v11 = vld [vmem:[%s2000_s3 + $0x34] ss:$8 sps:$4 sm:$0xff] (!%p218_p2)   ;;  %v1473_v12 = vld [vmem:[%s2000_s3 + $0x120] ss:$8 sps:$4 sm:$0xff] (!%p218_p2)   ;;  %v1474_v14 = vld [vmem:[%s2000_s3 + $0x30] ss:$8 sps:$4 sm:$0xff] (!%p218_p2)  }
   0xa   : > { %v1475_v13 = vld [vmem:[%s2000_s3 + $0x134] ss:$8 sps:$4 sm:$0xff] (!%p218_p2)   ;;  %v1477_v15 = vld [vmem:[%s2000_s3 + $0x44] ss:$8 sps:$4 sm:$0xff] (!%p218_p2)   ;;  %v1479_v16 = vld [vmem:[%s2000_s3 + $0x130] ss:$8 sps:$4 sm:$0xff] (!%p218_p2)  }
   0xb   : > { %512 = vmatpush1.bf16.msra.mxu0 (!%p218_p2), %v1462_v5  ;;  %v1481_v17 = vld [vmem:[%s2000_s3 + $0x144] ss:$8 sps:$4 sm:$0xff] (!%p218_p2)   ;;  %v1480_v18 = vld [vmem:[%s2000_s3 + $0x40] ss:$8 sps:$4 sm:$0xff] (!%p218_p2)   ;;  %v1483_v19 = vld [vmem:[%s2000_s3 + $0x54] ss:$8 sps:$4 sm:$0xff] (!%p218_p2)  }
   0xc   : > { %513 = vmatprep.subr.bf16.mxu0 (!%p218_p2), %v1465_v7  ;;  %748 = vmatpush1.bf16.msra.mxu1 (!%p218_p2), %v1467_v8  ;;  %v1485_v20 = vld [vmem:[%s2000_s3 + $0x140] ss:$8 sps:$4 sm:$0xff] (!%p218_p2)   ;;  %v1487_v21 = vld [vmem:[%s2000_s3 + $0x154] ss:$8 sps:$4 sm:$0xff] (!%p218_p2)   ;;  %v1486_v22 = vld [vmem:[%s2000_s3 + $0x50] ss:$8 sps:$4 sm:$0xff] (!%p218_p2)  }
   0xd   : > { %749 = vmatprep.subr.bf16.mxu1 %v1469_v10  ;;  %v1489_v23 = vld [vmem:[%s2000_s3 + $0x64] ss:$8 sps:$4 sm:$0xff]   ;;  %v1491_v24 = vld [vmem:[%s2000_s3 + $0x150] ss:$8 sps:$4 sm:$0xff]   ;;  %v1492_v26 = vld [vmem:[%s2000_s3 + $0x60] ss:$8 sps:$4 sm:$0xff]  }
   0xe   : > { %v1493_v25 = vld [vmem:[%s2000_s3 + $0x164] ss:$8 sps:$4 sm:$0xff]   ;;  %v1495_v27 = vld [vmem:[%s2000_s3 + $0x74] ss:$8 sps:$4 sm:$0xff]   ;;  %v1497_v28 = vld [vmem:[%s2000_s3 + $0x160] ss:$8 sps:$4 sm:$0xff]  }
   0xf   : > { %514 = vmatpush1.bf16.msra.mxu0 %v1468_v9  ;;  %v1499_v29 = vld [vmem:[%s2000_s3 + $0x174] ss:$8 sps:$4 sm:$0xff]   ;;  %v1498_v30 = vld [vmem:[%s2000_s3 + $0x70] ss:$8 sps:$4 sm:$0xff]   ;;  %p255_p3 = scmp.lt.s32.totalorder %s1267_s11, 3  ;;  %v1774_v40 = vshrl.u32 %v281_v35, 7 }
  0x10   : > { %515 = vmatprep.subr.bf16.mxu0 %v1471_v11  ;;  %750 = vmatpush1.bf16.msra.mxu1 %v1473_v12  ;;  %v1501_v31 = vld [vmem:[%s2000_s3 + $0x84] ss:$8 sps:$4 sm:$0xff]   ;;  %v1503_v32 = vld [vmem:[%s2000_s3 + $0x170] ss:$8 sps:$4 sm:$0xff]   ;;  %v1504_v34 = vld [vmem:[%s2000_s3 + $0x80] ss:$8 sps:$4 sm:$0xff]  }
  0x11   : > { %751 = vmatprep.subr.bf16.mxu1 %v1475_v13  ;;  %v1505_v33 = vld [vmem:[%s2000_s3 + $0x184] ss:$8 sps:$4 sm:$0xff]   ;;  %s2005_s11 = smov (!%p255_p3, %s1267_s11), 3  ;;  %v1507_v36 = vld [vmem:[%s2000_s3 + $0x94] ss:$8 sps:$4 sm:$0xff]   ;;  %v1794_v45 = vsub.s32 1, %v1774_v40 }
  0x12   : > { %v1509_v37 = vld [vmem:[%s2000_s3 + $0x180] ss:$8 sps:$4 sm:$0xff]   ;;  %v1511_v38 = vld [vmem:[%s2000_s3 + $0x194] ss:$8 sps:$4 sm:$0xff]   ;;  %v1510_v39 = vld [vmem:[%s2000_s3 + $0x90] ss:$8 sps:$4 sm:$0xff]  }
  0x13   : > { %516 = vmatpush1.bf16.msra.mxu0 %v1474_v14  ;;  %s1440_s13 = sshll.u32 %s2005_s11, 3  ;;  %v1513_v41 = vld [vmem:[%s2000_s3 + $0xa4] ss:$8 sps:$4 sm:$0xff]   ;;  %v1515_v42 = vld [vmem:[%s2000_s3 + $0x190] ss:$8 sps:$4 sm:$0xff]   ;;  %v1812_v55 = vsub.s32 0, %v1774_v40 }
  0x14   : > { %517 = vmatprep.subr.bf16.mxu0 %v1477_v15  ;;  %752 = vmatpush1.bf16.msra.mxu1 %v1479_v16  ;;  %v1517_v43 = vld [vmem:[%s2000_s3 + $0x1a4] ss:$8 sps:$4 sm:$0xff]   ;;  %s259_s24 = scalar_lea.vmem %s1997_s0, %s1440_s13  ;;  %v1516_v44 = vld [vmem:[%s2000_s3 + $0xa0] ss:$8 sps:$4 sm:$0xff]   ;;  %v1519_v46 = vld [vmem:[%s2000_s3 + $0xb4] ss:$8 sps:$4 sm:$0xff]   ;;  %s266_s19 = scalar_lea.vmem %s2002_s5, %s1440_s13 }
  0x15   : > { %753 = vmatprep.subr.bf16.mxu1 %v1481_v17  ;;  %v1521_v47 = vld [vmem:[%s2000_s3 + $0x1a0] ss:$8 sps:$4 sm:$0xff]   ;;  %v1523_v48 = vld [vmem:[%s2000_s3 + $0x1b4] ss:$8 sps:$4 sm:$0xff]   ;;  %v1522_v56 = vld [vmem:[%s2000_s3 + $0xb0] ss:$8 sps:$4 sm:$0xff]  }
  0x16   : > { %v273_v49 = vld [vmem:[%s259_s24] sm:$0xff]  ;;  %v274_v50 = vld [vmem:[%s259_s24 + $0x8] sm:$0xff]  ;;  %v1527_v60 = vld [vmem:[%s2000_s3 + $0x1b0] ss:$8 sps:$4 sm:$0xff]   ;;  %vm1028_vm0 = vcmask 1040384   ;;  %vm1045_vm1 = vcmask 1046528  }
  0x17   : > { %518 = vmatpush1.bf16.msra.mxu0 %v1480_v18  ;;  %v276_v51 = vunpack.c.h.bf16 %v273_v49  ;;  %v278_v52 = vunpack.c.h.bf16 %v274_v50  ;;  %v279_v53 = vld [vmem:[%s1998_s1] sm:$0x3]  ;;  %v1525_v59 = vld [vmem:[%s2000_s3 + $0xc4] ss:$8 sps:$4 sm:$0xff]   ;;  %v275_v0 = vunpack.c.l.bf16 %v273_v49  ;;  %v277_v1 = vunpack.c.l.bf16 %v274_v50  ;;  %v1531_v6 = vld [vmem:[%s2000_s3 + $0xd4] ss:$8 sps:$4 sm:$0xff]  }
  0x18   : > { %519 = vmatprep.subr.bf16.mxu0 %v1483_v19  ;;  %754 = vmatpush1.bf16.msra.mxu1 %v1485_v20  ;;  %v295_v54 = vld [vmem:[%s1999_s2] sm:$0x3]  ;;  %v288_v57 = vrot.slane %v279_v53, %v1794_v45  ;;  %v1529_v63 = vld [vmem:[%s2000_s3 + $0x1c4] ss:$8 sps:$4 sm:$0xff]   ;;  %v284_v2 = vrot.slane %v279_v53, %v1812_v55  ;;  %v1535_v10 = vld [vmem:[%s2000_s3 + $0x1d4] ss:$8 sps:$4 sm:$0xff]  }
  0x19   : > { %755 = vmatprep.subr.bf16.mxu1 %v1487_v21  ;;  %v304_v58 = vrot.slane %v295_v54, %v1794_v45  ;;  %v1528_v3 = vld [vmem:[%s2000_s3 + $0xc0] ss:$8 sps:$4 sm:$0xff]   ;;  %v300_v13 = vrot.slane %v295_v54, %v1812_v55  ;;  %v1534_v14 = vld [vmem:[%s2000_s3 + $0xd0] ss:$8 sps:$4 sm:$0xff]   ;;  %v1537_v16 = vld [vmem:[%s2000_s3 + $0xe4] ss:$8 sps:$4 sm:$0xff]  }
  0x1a   : > { %v292_v61 = vmul.f32 %v288_v57, %v276_v51  ;;  %v294_v62 = vmul.f32 %v288_v57, %v278_v52  ;;  %v1533_v7 = vld [vmem:[%s2000_s3 + $0x1c0] ss:$8 sps:$4 sm:$0xff]   ;;  %v291_v11 = vmul.f32 %v284_v2, %v275_v0  ;;  %v293_v12 = vmul.f32 %v284_v2, %v277_v1  ;;  %v1539_v17 = vld [vmem:[%s2000_s3 + $0x1d0] ss:$8 sps:$4 sm:$0xff]   ;;  %v1541_v18 = vld [vmem:[%s2000_s3 + $0x1e4] ss:$8 sps:$4 sm:$0xff]  }
  0x1b   : > { %520 = vmatpush1.bf16.msra.mxu0 %v1486_v22  ;;  %v1540_v21 = vld [vmem:[%s2000_s3 + $0xe0] ss:$8 sps:$4 sm:$0xff]   ;;  %v1543_v22 = vld [vmem:[%s2000_s3 + $0xf4] ss:$8 sps:$4 sm:$0xff]   ;;  %v1576_v49 = vld [vmem:[%s2000_s3 + $0x284] ss:$8 sps:$4 sm:$0xff]  }
  0x1c   : > { %521 = vmatprep.subr.bf16.mxu0 %v1489_v23  ;;  %756 = vmatpush1.bf16.msra.mxu1 %v1491_v24  ;;  %v308_v4 = vadd.f32 %v304_v58, %v292_v61  ;;  %v310_v5 = vadd.f32 %v304_v58, %v294_v62  ;;  %v307_v19 = vadd.f32 %v300_v13, %v291_v11  ;;  %v1545_v23 = vld [vmem:[%s2000_s3 + $0x1e0] ss:$8 sps:$4 sm:$0xff]   ;;  %v1547_v24 = vld [vmem:[%s2000_s3 + $0x1f4] ss:$8 sps:$4 sm:$0xff]   ;;  %v1577_v52 = vld [vmem:[%s2000_s3 + $0x290] ss:$8 sps:$4 sm:$0xff]  }
  0x1d   : > { %757 = vmatprep.subr.bf16.mxu1 %v1493_v25  ;;  %v309_v20 = vadd.f32 %v300_v13, %v293_v12  ;;  %v1574_v50 = vld [vmem:[%s2000_s3 + $0x280] ss:$8 sps:$4 sm:$0xff]   ;;  %v1579_v51 = vld [vmem:[%s2000_s3 + $0x294] ss:$8 sps:$4 sm:$0xff]   ;;  %v1582_v53 = vld [vmem:[%s2000_s3 + $0x2a4] ss:$8 sps:$4 sm:$0xff]  }
  0x1e   : > { %v312_v8 = vmax.f32 %v308_v4, 0.0  ;;  %v314_v9 = vmax.f32 %v310_v5, 0.0  ;;  %v311_v25 = vmax.f32 %v307_v19, 0.0  ;;  %v1580_v54 = vld [vmem:[%s2000_s3 + $0x2a0] ss:$8 sps:$4 sm:$0xff]   ;;  %p268_p4 = scmp.lt.s32.totalorder %s1648_s22, 1 }
  0x1f   : > { %522 = vmatpush1.bf16.msra.mxu0 %v1492_v26  ;;  %v313_v26 = vmax.f32 %v309_v20, 0.0  ;;  %v1583_v57 = vld [vmem:[%s2000_s3 + $0x2b0] ss:$8 sps:$4 sm:$0xff]   ;;  %v1588_v58 = vld [vmem:[%s2000_s3 + $0x2c4] ss:$8 sps:$4 sm:$0xff]   ;;  %vm1130_vm2 = vcmp.lt.s32.totalorder %v281_v35, 256 }
  0x20   : > { %523 = vmatprep.subr.bf16.mxu0 %v1495_v27  ;;  %758 = vmatpush1.bf16.msra.mxu1 %v1497_v28  ;;  %v316_v15 = vpack.c.bf16 %v314_v9, %v312_v8  ;;  %v1546_v27 = vld [vmem:[%s2000_s3 + $0xf0] ss:$8 sps:$4 sm:$0xff]   ;;  %v1552_v28 = vld [vmem:[%s2000_s3 + $0x204] ss:$8 sps:$4 sm:$0xff]   ;;  %v1597_v0 = vld [vmem:[%s2000_s3 + $0x2f4] ss:$8 sps:$4 sm:$0xff]  }
  0x21   : > { %759 = vmatprep.subr.bf16.mxu1 %v1499_v29  ;;  %v1549_v29 = vld [vmem:[%s2000_s3 + $0x1f0] ss:$8 sps:$4 sm:$0xff]   ;;  %v1594_v62 = vld [vmem:[%s2000_s3 + $0x2e4] ss:$8 sps:$4 sm:$0xff]   ;;  %s2007_s22 = smov (!%p268_p4, %s1648_s22), 1 }
  0x22   : > { %541 = vmatprep.mubr.bf16.mxu0 %v316_v15  ;;  %777 = vmatprep.mubr.bf16.mxu1 %v316_v15  ;;  %v1589_v61 = vld [vmem:[%s2000_s3 + $0x2d0] ss:$8 sps:$4 sm:$0xff]   ;;  %s1442_s11 = sshll.u32 %s2007_s22, 2 }
  0x23   : > { %524 = vmatpush1.bf16.msra.mxu0 %v1498_v30  ;;  %v1875_v30 = vpack.c.bf16 %v313_v26, %v311_v25  ;;  %v1595_v1 = vld [vmem:[%s2000_s3 + $0x2f0] ss:$8 sps:$4 sm:$0xff]   ;;  %s272_s23 = scalar_lea.vmem %s2003_s6, %s1442_s11 }
  0x24   : > { %525 = vmatprep.subr.bf16.mxu0 %v1501_v31  ;;  %760 = vmatpush1.bf16.msra.mxu1 %v1503_v32  ;;  %v1550_v31 = vld [vmem:[%s2000_s3 + $0x200] ss:$8 sps:$4 sm:$0xff]   ;;  %v1555_v32 = vld [vmem:[%s2000_s3 + $0x214] ss:$8 sps:$4 sm:$0xff]  }
  0x25   : > { %761 = vmatprep.subr.bf16.mxu1 %v1505_v33  ;;  %v1553_v33 = vld [vmem:[%s2000_s3 + $0x210] ss:$8 sps:$4 sm:$0xff]  }
  0x27   : > { %526 = vmatpush1.bf16.msra.mxu0 %v1504_v34  ;;  %v1558_v34 = vld [vmem:[%s2000_s3 + $0x224] ss:$8 sps:$4 sm:$0xff]  }
  0x28   : > { %527 = vmatprep.subr.bf16.mxu0 %v1507_v36  ;;  %762 = vmatpush1.bf16.msra.mxu1 %v1509_v37  ;;  %v1556_v36 = vld [vmem:[%s2000_s3 + $0x220] ss:$8 sps:$4 sm:$0xff]   ;;  %v1561_v37 = vld [vmem:[%s2000_s3 + $0x234] ss:$8 sps:$4 sm:$0xff]  }
  0x29   : > { %763 = vmatprep.subr.bf16.mxu1 %v1511_v38  ;;  %v1559_v38 = vld [vmem:[%s2000_s3 + $0x230] ss:$8 sps:$4 sm:$0xff]  }
  0x2b   : > { %528 = vmatpush1.bf16.msra.mxu0 %v1510_v39  ;;  %v1564_v39 = vld [vmem:[%s2000_s3 + $0x244] ss:$8 sps:$4 sm:$0xff]  }
  0x2c   : > { %529 = vmatprep.subr.bf16.mxu0 %v1513_v41  ;;  %764 = vmatpush1.bf16.msra.mxu1 %v1515_v42  ;;  %v1562_v41 = vld [vmem:[%s2000_s3 + $0x240] ss:$8 sps:$4 sm:$0xff]   ;;  %v1567_v42 = vld [vmem:[%s2000_s3 + $0x254] ss:$8 sps:$4 sm:$0xff]  }
  0x2d   : > { %765 = vmatprep.subr.bf16.mxu1 %v1517_v43  ;;  %v1565_v43 = vld [vmem:[%s2000_s3 + $0x250] ss:$8 sps:$4 sm:$0xff]  }
  0x2f   : > { %530 = vmatpush1.bf16.msra.mxu0 %v1516_v44  ;;  %v1570_v44 = vld [vmem:[%s2000_s3 + $0x264] ss:$8 sps:$4 sm:$0xff]  }
  0x30   : > { %531 = vmatprep.subr.bf16.mxu0 %v1519_v46  ;;  %766 = vmatpush1.bf16.msra.mxu1 %v1521_v47  ;;  %v1568_v46 = vld [vmem:[%s2000_s3 + $0x260] ss:$8 sps:$4 sm:$0xff]   ;;  %v1573_v47 = vld [vmem:[%s2000_s3 + $0x274] ss:$8 sps:$4 sm:$0xff]  }
  0x31   : > { %767 = vmatprep.subr.bf16.mxu1 %v1523_v48  ;;  %v1571_v48 = vld [vmem:[%s2000_s3 + $0x270] ss:$8 sps:$4 sm:$0xff]  }
  0x33   : > { %532 = vmatpush1.bf16.msra.mxu0 %v1522_v56  ;;  %v1585_v56 = vld [vmem:[%s2000_s3 + $0x2b4] ss:$8 sps:$4 sm:$0xff]  }
  0x34   : > { %533 = vmatprep.subr.bf16.mxu0 %v1525_v59  ;;  %768 = vmatpush1.bf16.msra.mxu1 %v1527_v60  ;;  %v1586_v59 = vld [vmem:[%s2000_s3 + $0x2c0] ss:$8 sps:$4 sm:$0xff]   ;;  %v1591_v60 = vld [vmem:[%s2000_s3 + $0x2d4] ss:$8 sps:$4 sm:$0xff]  }
  0x35   : > { %769 = vmatprep.subr.bf16.mxu1 %v1529_v63  ;;  %v1592_v63 = vld [vmem:[%s2000_s3 + $0x2e0] ss:$8 sps:$4 sm:$0xff]  }
  0x37   : > { %534 = vmatpush1.bf16.msra.mxu0 %v1528_v3 }
  0x38   : > { %535 = vmatprep.subr.bf16.mxu0 %v1531_v6  ;;  %770 = vmatpush1.bf16.msra.mxu1 %v1533_v7 }
  0x39   : > { %771 = vmatprep.subr.bf16.mxu1 %v1535_v10 }
  0x3b   : > { %536 = vmatpush1.bf16.msra.mxu0 %v1534_v14 }
  0x3c   : > { %537 = vmatprep.subr.bf16.mxu0 %v1537_v16  ;;  %772 = vmatpush1.bf16.msra.mxu1 %v1539_v17 }
  0x3d   : > { %773 = vmatprep.subr.bf16.mxu1 %v1541_v18 }
  0x3f   : > { %538 = vmatpush1.bf16.msra.mxu0 %v1540_v21 }
  0x40   : > { %539 = vmatprep.subr.bf16.mxu0 %v1543_v22  ;;  %774 = vmatpush1.bf16.msra.mxu1 %v1545_v23 }
  0x41   : > { %775 = vmatprep.subr.bf16.mxu1 %v1547_v24  ;;  %v1066_v24 = vld [vmem:[%s2001_s4] sm:$0x3] }
  0x43   : > { %540 = vmatpush1.bf16.msra.mxu0 %v1546_v27 }
  0x44   : > { %981 = vmatprep.subr.bf16.mxu0 %v1552_v28  ;;  %776 = vmatpush1.bf16.msra.mxu1 %v1549_v29 }
  0x46   : > { %542 = vmatmul.mubr.bf16.vlgmr.msra.gmra.mrb[0].mxu0 %v1875_v30 }
  0x47   : > { %982 = vmatpush1.bf16.msra.mxu0 %v1550_v31  ;;  %1013 = vmatprep.mubr.bf16.mxu0 %v316_v15 }
  0x48   : > { %778 = vmatmul.mubr.bf16.vlgmr.msra.gmra.mrb[0].mxu1 %v1875_v30  ;;  %983 = vmatprep.subr.bf16.mxu0 %v1555_v32 }
  0x4b   : > { %984 = vmatpush1.bf16.msra.mxu0 %v1553_v33 }
  0x4c   : > { %985 = vmatprep.subr.bf16.mxu0 %v1558_v34  ;;  %v1075_v34 = vrot.slane %v1066_v24, %v1794_v45 }
  0x4f   : > { %986 = vmatpush1.bf16.msra.mxu0 %v1556_v36 }
  0x50   : > { %987 = vmatprep.subr.bf16.mxu0 %v1561_v37 }
  0x53   : > { %988 = vmatpush1.bf16.msra.mxu0 %v1559_v38 }
  0x54   : > { %989 = vmatprep.subr.bf16.mxu0 %v1564_v39 }
  0x57   : > { %990 = vmatpush1.bf16.msra.mxu0 %v1562_v41 }
  0x58   : > { %991 = vmatprep.subr.bf16.mxu0 %v1567_v42 }
  0x5b   : > { %992 = vmatpush1.bf16.msra.mxu0 %v1565_v43 }
  0x5c   : > { %993 = vmatprep.subr.bf16.mxu0 %v1570_v44 }
  0x5f   : > { %994 = vmatpush1.bf16.msra.mxu0 %v1568_v46 }
  0x60   : > { %995 = vmatprep.subr.bf16.mxu0 %v1573_v47 }
  0x63   : > { %996 = vmatpush1.bf16.msra.mxu0 %v1571_v48 }
  0x64   : > { %997 = vmatprep.subr.bf16.mxu0 %v1576_v49 }
  0x67   : > { %998 = vmatpush1.bf16.msra.mxu0 %v1574_v50 }
  0x68   : > { %999 = vmatprep.subr.bf16.mxu0 %v1579_v51 }
  0x6b   : > { %1000 = vmatpush1.bf16.msra.mxu0 %v1577_v52 }
  0x6c   : > { %1001 = vmatprep.subr.bf16.mxu0 %v1582_v53 }
  0x6f   : > { %1002 = vmatpush1.bf16.msra.mxu0 %v1580_v54 }
  0x70   : > { %1003 = vmatprep.subr.bf16.mxu0 %v1585_v56 }
  0x73   : > { %1004 = vmatpush1.bf16.msra.mxu0 %v1583_v57 }
  0x74   : > { %1005 = vmatprep.subr.bf16.mxu0 %v1588_v58 }
  0x77   : > { %1006 = vmatpush1.bf16.msra.mxu0 %v1586_v59 }
  0x78   : > { %1007 = vmatprep.subr.bf16.mxu0 %v1591_v60 }
  0x7b   : > { %1008 = vmatpush1.bf16.msra.mxu0 %v1589_v61  ;;  %v1606_v61 = vmov 1966171168  }
  0x7c   : > { %1009 = vmatprep.subr.bf16.mxu0 %v1594_v62  ;;  %v1114_v62 = vunpack.c.l.s4 %v1606_v61 }
  0x7f   : > { %1010 = vmatpush1.bf16.msra.mxu0 %v1592_v63 }
  0x80   : > { %1011 = vmatprep.subr.bf16.mxu0 %v1597_v0 }
  0x83   : > { %1012 = vmatpush1.bf16.msra.mxu0 %v1595_v1 }
  0x86   : > { %1014 = vmatmul.mubr.bf16.vlgmr.msra.gmra.mrb[4].mxu0 %v1875_v30  ;;  %v1071_v30 = vrot.slane %v1066_v24, %v1812_v55 }
 0x119   : > { %v543_v2 = vpop.f32.mrb[0].mxu0 }
 0x11a   : > { %v1029_v3 = vrot.slane %v543_v2, 7  ;;  %v545_v4 = vpop.f32.mrb[1].mxu0 }
 0x11b   : > { %v1030_v5 = vrot.slane %v545_v4, 7  ;;  %v547_v6 = vpop.f32.mrb[2].mxu0  ;;  %v779_v7 = vpop.f32.mrb[0].mxu1 }
 0x11c   : > { %v1031_v8 = vrot.slane %v547_v6, 7  ;;  %v549_v9 = vpop.f32.mrb[3].mxu0  ;;  %v1039_v10 = vsel %vm1028_vm0, 0.0, %v1029_v3  ;;  %v781_v11 = vpop.f32.mrb[1].mxu1 }
 0x11d   : > { %v1033_v12 = vrot.slane %v549_v9, 7  ;;  %v1058_v13 = vadd.f32 %v1039_v10, %v779_v7  ;;  %v1040_v14 = vsel %vm1028_vm0, 0.0, %v1030_v5  ;;  %v783_v15 = vpop.f32.mrb[2].mxu1  ;;  %v1115_v7 = vunpack.c.0.s8 %v1114_v62 }
 0x11e   : > { %v1059_v16 = vadd.f32 %v1040_v14, %v781_v11  ;;  %v1032_v17 = vsel %vm1028_vm0, %v1029_v3, %v1031_v8  ;;  %v785_v18 = vpop.f32.mrb[3].mxu1 }
 0x11f   : > { %v1060_v19 = vadd.f32 %v1032_v17, %v783_v15  ;;  %v1034_v20 = vsel %vm1028_vm0, %v1030_v5, %v1033_v12 }
 0x120   : > { %v1061_v21 = vadd.f32 %v1034_v20, %v785_v18 }
 0x159   : > { %v1015_v22 = vpop.f32.mrb[4].mxu0 }
 0x15a   : > { %v1017_v23 = vpop.f32.mrb[5].mxu0  ;;  %v1046_v26 = vrot.slane %v1015_v22, 1 }
 0x15b   : > { %v1019_v25 = vpop.f32.mrb[6].mxu0  ;;  %v1049_v29 = vrot.slane %v1017_v23, 1 }
 0x15c   : > { %v1047_v27 = vrot.slane %v1019_v25, 1  ;;  %v1021_v28 = vpop.f32.mrb[7].mxu0 }
 0x15d   : > { %v1050_v31 = vrot.slane %v1021_v28, 1 }
 0x15e   : > { %v1048_v32 = vsel %vm1045_vm1, %v1046_v26, %v1047_v27  ;;  %v1056_v33 = vsel %vm1045_vm1, %v1047_v27, 0.0 }
 0x15f   : > { %v1062_v36 = vadd.f32 %v1058_v13, %v1048_v32  ;;  %v1064_v37 = vadd.f32 %v1060_v19, %v1056_v33  ;;  %v1051_v38 = vsel %vm1045_vm1, %v1049_v29, %v1050_v31  ;;  %v1057_v39 = vsel %vm1045_vm1, %v1050_v31, 0.0 }
 0x160   : > { %v1063_v41 = vadd.f32 %v1059_v16, %v1051_v38  ;;  %v1065_v42 = vadd.f32 %v1061_v21, %v1057_v39  ;;  %v1118_v16 = vsub.s32 %v1115_v7, %v1774_v40 }
 0x161   : > { %v1078_v43 = vadd.f32 %v1071_v30, %v1062_v36  ;;  %v1080_v44 = vadd.f32 %v1071_v30, %v1064_v37 }
 0x162   : > { %v1079_v46 = vadd.f32 %v1075_v34, %v1063_v41  ;;  %v1081_v47 = vadd.f32 %v1075_v34, %v1065_v42 }
 0x163   : > { %v1096_v55 = vadd.f32 %v1080_v44, %v1078_v43  ;;  %v1133_v48 = vmul.f32 %v1078_v43, %v1078_v43  ;;  %v1135_v49 = vmul.f32 %v1080_v44, %v1080_v44 }
 0x164   : > { %v1443_v50 = vpack.c.bf16 %v1079_v46, %v1078_v43  ;;  %v1444_v45 = vpack.c.bf16 %v1081_v47, %v1080_v44  ;;  %v1103_v51 = vadd.f32 %v1081_v47, %v1079_v46  ;;  %v1134_v52 = vmul.f32 %v1079_v46, %v1079_v46 }
 0x165   : > { %v1097_v53 = vrot.slane %v1096_v55, 4  ;;  %v1137_v54 = vadd.f32 %v1135_v49, %v1133_v48  ;;  %v1136_v56 = vmul.f32 %v1081_v47, %v1081_v47 }
 0x166   : > { %1094 = vst [vmem:[%s266_s19] sm:$0xff] %v1443_v50  ;;  %v1104_v57 = vrot.slane %v1103_v51, 4  ;;  %1095 = vst [vmem:[%s266_s19 + $0x8] sm:$0xff] %v1444_v45 }
 0x167   : > { %v1098_v58 = vadd.f32 %v1097_v53, %v1096_v55  ;;  %v1138_v59 = vrot.slane %v1137_v54, 4  ;;  %v1144_v60 = vadd.f32 %v1136_v56, %v1134_v52 }
 0x168   : > { %v1105_v63 = vadd.f32 %v1104_v57, %v1103_v51 }
 0x169   : > { %v1099_v0 = vrot.slane %v1098_v58, 2  ;;  %v1139_v1 = vadd.f32 %v1138_v59, %v1137_v54  ;;  %v1145_v2 = vrot.slane %v1144_v60, 4 }
 0x16a   : > { %v1106_v3 = vrot.slane %v1105_v63, 2 }
 0x16b   : > { %v1100_v4 = vadd.f32 %v1099_v0, %v1098_v58  ;;  %v1140_v5 = vrot.slane %v1139_v1, 2  ;;  %v1146_v6 = vadd.f32 %v1145_v2, %v1144_v60 }
 0x16c   : > { %v1107_v8 = vadd.f32 %v1106_v3, %v1105_v63 }
 0x16d   : > { %v1101_v9 = vrot.slane %v1100_v4, 1  ;;  %v1141_v10 = vadd.f32 %v1140_v5, %v1139_v1  ;;  %v1147_v11 = vrot.slane %v1146_v6, 2 }
 0x16e   : > { %v1108_v12 = vrot.slane %v1107_v8, 1 }
 0x16f   : > { %v1102_v13 = vadd.f32 %v1101_v9, %v1100_v4  ;;  %v1142_v14 = vrot.slane %v1141_v10, 1  ;;  %v1148_v15 = vadd.f32 %v1147_v11, %v1146_v6 }
 0x170   : > { %v1109_v17 = vadd.f32 %v1108_v12, %v1107_v8 }
 0x171   : > { %v1143_v18 = vadd.f32 %v1142_v14, %v1141_v10  ;;  %v1149_v19 = vrot.slane %v1148_v15, 1 }
 0x172   : > { %v1112_v20 = vcombine.low %v1102_v13, %v1109_v17 }
 0x173   : > { %v1150_v21 = vadd.f32 %v1149_v19, %v1148_v15 }
 0x174   : > { %v1119_v22 = vrot.slane %v1112_v20, %v1118_v16 }
 0x175   : > { %v1153_v23 = vcombine.low %v1143_v18, %v1150_v21 }
 0x176   : > { %v1126_v24 = vrot.slane %v1119_v22, %v1118_v16 }
 0x177   : > { %v1160_v25 = vrot.slane %v1153_v23, %v1118_v16 }
 0x178   : > { %1132 = vst.msk [vmem:[%s272_s23] ss:$2 sm:$0x3] %vm1130_vm2, %v1126_v24 }
 0x179   : > { %v1167_v26 = vrot.slane %v1160_v25, %v1118_v16 }
 0x17b   : > { %1437 = vst.msk [vmem:[%s272_s23 + $0x1] ss:$2 sm:$0x3] %vm1130_vm2, %v1167_v26 }
 0x17c PF: > { %s17_s21 = sadd.s32 1, %s1604_s21  }
 0x17d   : > { %p14_p5 = scmp.ge.s32.totalorder %s17_s21, 4  }
 0x17f   :  { %16 = sbr.rel (!%p14_p5) target bundleno = 1 (0x1), region = 85 }

// kernel: full_mask_decoder_forward.9
= control target key start
LH: loop header
LB: loop body
LE: loop exit
PB: predicated region body
PF: predicated region fallthrough
CT: control target
= control target key end

     0   :  { %s1297_s21 = smov 0   ;;  %s1557_s0 = inlined_call_operand.vmem [shape: bf16[32,256], index: 0, kind: input, shape index: {}]   ;;  %s1558_s1 = inlined_call_operand.vmem [shape: f32[1,256], index: 1, kind: input, shape index: {}]   ;;  %s1559_s2 = inlined_call_operand.vmem [shape: f32[1,256], index: 2, kind: input, shape index: {}]   ;;  %s1560_s3 = inlined_call_operand.vmem [shape: bf16[256,512], index: 3, kind: input, shape index: {}]   ;;  %s1561_s4 = inlined_call_operand.vmem [shape: f32[1,512], index: 4, kind: input, shape index: {}]   ;;  %s1562_s5 = inlined_call_operand.vmem [shape: bf16[32,512], index: 5, kind: output, shape index: {0}]   ;;  %s1563_s6 = inlined_call_operand.vmem [shape: f32[2,2,512], index: 6, kind: output, shape index: {1}]  }
   0x1 LB: > { %s1303_s22 = sadd.s32 4294967295, %s1259_s21   ;;  %p1061_p0 = scmp.ge.s32.totalorder %s1259_s21, 1  ;;  %s1259_s21 = sphi %s1297_s21, %s17_s21  }
   0x2   : > { %p217_p1 = scmp.lt.s32.totalorder %s1259_s21, 3 }
   0x4   : > { %p218_p2 = pnand %p1061_p0, %p217_p1 }
   0x5   : > { %v1157_v0 = vld [vmem:[%s1560_s3 + $0x4] ss:$16 sps:$4 sm:$0xff] (!%p218_p2)   ;;  %v1159_v1 = vld [vmem:[%s1560_s3 + $0xc] ss:$16 sps:$4 sm:$0xff] (!%p218_p2)   ;;  %v1161_v2 = vld [vmem:[%s1560_s3] ss:$16 sps:$4 sm:$0xff] (!%p218_p2)   ;;  %v281_v36 = vlaneseq (!%p218_p2) }
   0x6   : > { %221 = sbr.rel (%p218_p2) target bundleno = 316 (0x13c), region = 40  ;;  %723 = vmatprep.subr.bf16.mxu0 (!%p218_p2), %v1157_v0  ;;  %v1162_v3 = vld [vmem:[%s1560_s3 + $0x8] ss:$16 sps:$4 sm:$0xff] (!%p218_p2)   ;;  %766 = vmatprep.subr.bf16.mxu1 (!%p218_p2), %v1159_v1  ;;  %v1163_v4 = vld [vmem:[%s1560_s3 + $0x24] ss:$16 sps:$4 sm:$0xff] (!%p218_p2)   ;;  %s1062_s15 = sshll.u32 (!%p218_p2), %s1303_s22, 1 }
   0x7   : > { %724 = vmatpush1.bf16.msra.mxu0 (!%p218_p2), %v1161_v2  ;;  %767 = vmatpush1.bf16.msra.mxu1 (!%p218_p2), %v1162_v3  ;;  %v1165_v5 = vld [vmem:[%s1560_s3 + $0x2c] ss:$16 sps:$4 sm:$0xff] (!%p218_p2)   ;;  %v1167_v6 = vld [vmem:[%s1560_s3 + $0x20] ss:$16 sps:$4 sm:$0xff] (!%p218_p2)   ;;  %v1168_v7 = vld [vmem:[%s1560_s3 + $0x28] ss:$16 sps:$4 sm:$0xff] (!%p218_p2)  }
   0x8   : > { %725 = vmatprep.subr.bf16.mxu0 (!%p218_p2), %v1163_v4  ;;  %768 = vmatprep.subr.bf16.mxu1 (!%p218_p2), %v1165_v5  ;;  %v1169_v8 = vld [vmem:[%s1560_s3 + $0x44] ss:$16 sps:$4 sm:$0xff] (!%p218_p2)   ;;  %v1171_v9 = vld [vmem:[%s1560_s3 + $0x4c] ss:$16 sps:$4 sm:$0xff] (!%p218_p2)   ;;  %v1173_v10 = vld [vmem:[%s1560_s3 + $0x40] ss:$16 sps:$4 sm:$0xff] (!%p218_p2)  }
   0x9   : > { %v1174_v11 = vld [vmem:[%s1560_s3 + $0x48] ss:$16 sps:$4 sm:$0xff] (!%p218_p2)   ;;  %v1175_v12 = vld [vmem:[%s1560_s3 + $0x64] ss:$16 sps:$4 sm:$0xff] (!%p218_p2)   ;;  %v1177_v13 = vld [vmem:[%s1560_s3 + $0x6c] ss:$16 sps:$4 sm:$0xff] (!%p218_p2)  }
   0xa   : > { %v1179_v14 = vld [vmem:[%s1560_s3 + $0x60] ss:$16 sps:$4 sm:$0xff] (!%p218_p2)   ;;  %v1180_v15 = vld [vmem:[%s1560_s3 + $0x68] ss:$16 sps:$4 sm:$0xff] (!%p218_p2)   ;;  %v1181_v16 = vld [vmem:[%s1560_s3 + $0x84] ss:$16 sps:$4 sm:$0xff] (!%p218_p2)  }
   0xb   : > { %726 = vmatpush1.bf16.msra.mxu0 (!%p218_p2), %v1167_v6  ;;  %769 = vmatpush1.bf16.msra.mxu1 (!%p218_p2), %v1168_v7  ;;  %v1183_v17 = vld [vmem:[%s1560_s3 + $0x8c] ss:$16 sps:$4 sm:$0xff] (!%p218_p2)   ;;  %v1185_v18 = vld [vmem:[%s1560_s3 + $0x80] ss:$16 sps:$4 sm:$0xff] (!%p218_p2)   ;;  %v1186_v19 = vld [vmem:[%s1560_s3 + $0x88] ss:$16 sps:$4 sm:$0xff] (!%p218_p2)  }
   0xc   : > { %727 = vmatprep.subr.bf16.mxu0 (!%p218_p2), %v1169_v8  ;;  %770 = vmatprep.subr.bf16.mxu1 (!%p218_p2), %v1171_v9  ;;  %v1187_v20 = vld [vmem:[%s1560_s3 + $0xa4] ss:$16 sps:$4 sm:$0xff] (!%p218_p2)   ;;  %v1189_v21 = vld [vmem:[%s1560_s3 + $0xac] ss:$16 sps:$4 sm:$0xff] (!%p218_p2)   ;;  %v1191_v22 = vld [vmem:[%s1560_s3 + $0xa0] ss:$16 sps:$4 sm:$0xff] (!%p218_p2)  }
   0xd   : > { %v1192_v23 = vld [vmem:[%s1560_s3 + $0xa8] ss:$16 sps:$4 sm:$0xff]   ;;  %v1193_v24 = vld [vmem:[%s1560_s3 + $0xc4] ss:$16 sps:$4 sm:$0xff]   ;;  %v1195_v25 = vld [vmem:[%s1560_s3 + $0xcc] ss:$16 sps:$4 sm:$0xff]  }
   0xe   : > { %v1197_v26 = vld [vmem:[%s1560_s3 + $0xc0] ss:$16 sps:$4 sm:$0xff]   ;;  %v1198_v27 = vld [vmem:[%s1560_s3 + $0xc8] ss:$16 sps:$4 sm:$0xff]   ;;  %v1199_v28 = vld [vmem:[%s1560_s3 + $0xe4] ss:$16 sps:$4 sm:$0xff]  }
   0xf   : > { %728 = vmatpush1.bf16.msra.mxu0 %v1173_v10  ;;  %771 = vmatpush1.bf16.msra.mxu1 %v1174_v11  ;;  %v1201_v29 = vld [vmem:[%s1560_s3 + $0xec] ss:$16 sps:$4 sm:$0xff]   ;;  %v1203_v30 = vld [vmem:[%s1560_s3 + $0xe0] ss:$16 sps:$4 sm:$0xff]   ;;  %v1204_v31 = vld [vmem:[%s1560_s3 + $0xe8] ss:$16 sps:$4 sm:$0xff]  }
  0x10   : > { %729 = vmatprep.subr.bf16.mxu0 %v1175_v12  ;;  %772 = vmatprep.subr.bf16.mxu1 %v1177_v13  ;;  %v1205_v32 = vld [vmem:[%s1560_s3 + $0x104] ss:$16 sps:$4 sm:$0xff]   ;;  %p255_p3 = scmp.lt.s32.totalorder %s1062_s15, 3  ;;  %v1207_v33 = vld [vmem:[%s1560_s3 + $0x10c] ss:$16 sps:$4 sm:$0xff]   ;;  %v1428_v40 = vshrl.u32 %v281_v36, 7 }
  0x11   : > { %v1209_v34 = vld [vmem:[%s1560_s3 + $0x100] ss:$16 sps:$4 sm:$0xff]   ;;  %v1210_v35 = vld [vmem:[%s1560_s3 + $0x108] ss:$16 sps:$4 sm:$0xff]   ;;  %v1211_v37 = vld [vmem:[%s1560_s3 + $0x124] ss:$16 sps:$4 sm:$0xff]  }
  0x12   : > { %s1565_s15 = smov (!%p255_p3, %s1062_s15), 3  ;;  %v1213_v38 = vld [vmem:[%s1560_s3 + $0x12c] ss:$16 sps:$4 sm:$0xff]   ;;  %v1215_v39 = vld [vmem:[%s1560_s3 + $0x120] ss:$16 sps:$4 sm:$0xff]   ;;  %v1453_v47 = vsub.s32 1, %v1428_v40 }
  0x13   : > { %730 = vmatpush1.bf16.msra.mxu0 %v1179_v14  ;;  %773 = vmatpush1.bf16.msra.mxu1 %v1180_v15  ;;  %v1216_v41 = vld [vmem:[%s1560_s3 + $0x128] ss:$16 sps:$4 sm:$0xff]   ;;  %v1217_v42 = vld [vmem:[%s1560_s3 + $0x144] ss:$16 sps:$4 sm:$0xff]   ;;  %s1141_s17 = sshll.u32 %s1565_s15, 3  ;;  %v1462_v53 = vsub.s32 0, %v1428_v40 }
  0x14   : > { %731 = vmatprep.subr.bf16.mxu0 %v1181_v16  ;;  %774 = vmatprep.subr.bf16.mxu1 %v1183_v17  ;;  %v1219_v43 = vld [vmem:[%s1560_s3 + $0x14c] ss:$16 sps:$4 sm:$0xff]   ;;  %v1221_v44 = vld [vmem:[%s1560_s3 + $0x140] ss:$16 sps:$4 sm:$0xff]   ;;  %v1222_v45 = vld [vmem:[%s1560_s3 + $0x148] ss:$16 sps:$4 sm:$0xff]   ;;  %s259_s28 = scalar_lea.vmem %s1557_s0, %s1141_s17 }
  0x15   : > { %v1223_v46 = vld [vmem:[%s1560_s3 + $0x164] ss:$16 sps:$4 sm:$0xff]   ;;  %v1225_v48 = vld [vmem:[%s1560_s3 + $0x16c] ss:$16 sps:$4 sm:$0xff]   ;;  %v279_v52 = vld [vmem:[%s1558_s1] sm:$0x3] }
  0x16   : > { %v273_v49 = vld [vmem:[%s259_s28] sm:$0xff]  ;;  %v274_v50 = vld [vmem:[%s259_s28 + $0x8] sm:$0xff]  ;;  %v288_v58 = vrot.slane %v279_v52, %v1453_v47  ;;  %v284_v2 = vrot.slane %v279_v52, %v1462_v53  ;;  %s1142_s9 = sshll.u32 %s1565_s15, 4  ;;  %p268_p4 = scmp.lt.s32.totalorder %s1303_s22, 1  ;;  %vm896_vm0 = vcmp.lt.s32.totalorder %v281_v36, 512 }
  0x17   : > { %732 = vmatpush1.bf16.msra.mxu0 %v1185_v18  ;;  %775 = vmatpush1.bf16.msra.mxu1 %v1186_v19  ;;  %v276_v51 = vunpack.c.h.bf16 %v273_v49  ;;  %v295_v54 = vld [vmem:[%s1559_s2] sm:$0x3]  ;;  %v1228_v56 = vld [vmem:[%s1560_s3 + $0x168] ss:$16 sps:$4 sm:$0xff]   ;;  %v278_v57 = vunpack.c.h.bf16 %v274_v50  ;;  %v1229_v59 = vld [vmem:[%s1560_s3 + $0x184] ss:$16 sps:$4 sm:$0xff]   ;;  %v275_v0 = vunpack.c.l.bf16 %v273_v49  ;;  %v277_v1 = vunpack.c.l.bf16 %v274_v50  ;;  %s1538_s12 = scalar_lea.vmem %s1562_s5, %s1142_s9 }
  0x18   : > { %733 = vmatprep.subr.bf16.mxu0 %v1187_v20  ;;  %776 = vmatprep.subr.bf16.mxu1 %v1189_v21  ;;  %v1227_v55 = vld [vmem:[%s1560_s3 + $0x160] ss:$16 sps:$4 sm:$0xff]   ;;  %v1231_v60 = vld [vmem:[%s1560_s3 + $0x18c] ss:$16 sps:$4 sm:$0xff]   ;;  %v304_v61 = vrot.slane %v295_v54, %v1453_v47  ;;  %v1234_v4 = vld [vmem:[%s1560_s3 + $0x188] ss:$16 sps:$4 sm:$0xff]   ;;  %v300_v11 = vrot.slane %v295_v54, %v1462_v53 }
  0x19   : > { %v292_v62 = vmul.f32 %v288_v58, %v276_v51  ;;  %v294_v63 = vmul.f32 %v288_v58, %v278_v57  ;;  %v1233_v3 = vld [vmem:[%s1560_s3 + $0x180] ss:$16 sps:$4 sm:$0xff]   ;;  %v1235_v7 = vld [vmem:[%s1560_s3 + $0x1a4] ss:$16 sps:$4 sm:$0xff]   ;;  %v1237_v8 = vld [vmem:[%s1560_s3 + $0x1ac] ss:$16 sps:$4 sm:$0xff]   ;;  %v291_v12 = vmul.f32 %v284_v2, %v275_v0  ;;  %v293_v13 = vmul.f32 %v284_v2, %v277_v1 }
  0x1a   : > { %v1239_v14 = vld [vmem:[%s1560_s3 + $0x1a0] ss:$16 sps:$4 sm:$0xff]   ;;  %v1240_v15 = vld [vmem:[%s1560_s3 + $0x1a8] ss:$16 sps:$4 sm:$0xff]   ;;  %v1241_v17 = vld [vmem:[%s1560_s3 + $0x1c4] ss:$16 sps:$4 sm:$0xff]  }
  0x1b   : > { %734 = vmatpush1.bf16.msra.mxu0 %v1191_v22  ;;  %777 = vmatpush1.bf16.msra.mxu1 %v1192_v23  ;;  %v308_v5 = vadd.f32 %v304_v61, %v292_v62  ;;  %v310_v6 = vadd.f32 %v304_v61, %v294_v63  ;;  %v1243_v18 = vld [vmem:[%s1560_s3 + $0x1cc] ss:$16 sps:$4 sm:$0xff]   ;;  %v307_v19 = vadd.f32 %v300_v11, %v291_v12  ;;  %v1245_v21 = vld [vmem:[%s1560_s3 + $0x1c0] ss:$16 sps:$4 sm:$0xff]   ;;  %v1246_v22 = vld [vmem:[%s1560_s3 + $0x1c8] ss:$16 sps:$4 sm:$0xff]  }
  0x1c   : > { %735 = vmatprep.subr.bf16.mxu0 %v1193_v24  ;;  %778 = vmatprep.subr.bf16.mxu1 %v1195_v25  ;;  %v309_v20 = vadd.f32 %v300_v11, %v293_v13  ;;  %v1247_v23 = vld [vmem:[%s1560_s3 + $0x1e4] ss:$16 sps:$4 sm:$0xff]   ;;  %v1249_v24 = vld [vmem:[%s1560_s3 + $0x1ec] ss:$16 sps:$4 sm:$0xff]   ;;  %s1567_s22 = smov (!%p268_p4, %s1303_s22), 1 }
  0x1d   : > { %v312_v9 = vmax.f32 %v308_v5, 0.0  ;;  %v314_v10 = vmax.f32 %v310_v6, 0.0  ;;  %v311_v25 = vmax.f32 %v307_v19, 0.0  ;;  %s1143_s15 = sshll.u32 %s1567_s22, 3 }
  0x1e   : > { %s272_s16 = scalar_lea.vmem %s1563_s6, %s1143_s15 }
  0x1f   : > { %736 = vmatpush1.bf16.msra.mxu0 %v1197_v26  ;;  %779 = vmatpush1.bf16.msra.mxu1 %v1198_v27  ;;  %v316_v16 = vpack.c.bf16 %v314_v10, %v312_v9  ;;  %v313_v26 = vmax.f32 %v309_v20, 0.0  ;;  %v1251_v27 = vld [vmem:[%s1560_s3 + $0x1e0] ss:$16 sps:$4 sm:$0xff]  }
  0x20   : > { %737 = vmatprep.subr.bf16.mxu0 %v1199_v28  ;;  %780 = vmatprep.subr.bf16.mxu1 %v1201_v29  ;;  %v1252_v28 = vld [vmem:[%s1560_s3 + $0x1e8] ss:$16 sps:$4 sm:$0xff]  }
  0x21   : > { %755 = vmatprep.mubr.bf16.mxu0 %v316_v16  ;;  %798 = vmatprep.mubr.bf16.mxu1 %v316_v16  ;;  %v315_v29 = vpack.c.bf16 %v313_v26, %v311_v25 }
  0x23   : > { %738 = vmatpush1.bf16.msra.mxu0 %v1203_v30  ;;  %781 = vmatpush1.bf16.msra.mxu1 %v1204_v31  ;;  %v393_v30 = vsub.s32 2, %v1428_v40  ;;  %v381_v31 = vld [vmem:[%s1561_s4] sm:$0xf] }
  0x24   : > { %739 = vmatprep.subr.bf16.mxu0 %v1205_v32  ;;  %782 = vmatprep.subr.bf16.mxu1 %v1207_v33  ;;  %v397_v32 = vsub.s32 3, %v1428_v40  ;;  %v386_v33 = vrot.slane %v381_v31, %v1462_v53 }
  0x27   : > { %740 = vmatpush1.bf16.msra.mxu0 %v1209_v34  ;;  %783 = vmatpush1.bf16.msra.mxu1 %v1210_v35  ;;  %v394_v34 = vrot.slane %v381_v31, %v393_v30  ;;  %v390_v35 = vrot.slane %v381_v31, %v1453_v47 }
  0x28   : > { %741 = vmatprep.subr.bf16.mxu0 %v1211_v37  ;;  %784 = vmatprep.subr.bf16.mxu1 %v1213_v38  ;;  %v398_v37 = vrot.slane %v381_v31, %v397_v32  ;;  %v1261_v38 = vmov 1966171168  }
  0x2b   : > { %742 = vmatpush1.bf16.msra.mxu0 %v1215_v39  ;;  %785 = vmatpush1.bf16.msra.mxu1 %v1216_v41  ;;  %v1532_v39 = vunpack.c.l.s4 %v1261_v38 }
  0x2c   : > { %743 = vmatprep.subr.bf16.mxu0 %v1217_v42  ;;  %786 = vmatprep.subr.bf16.mxu1 %v1219_v43 }
  0x2d   : > { %v873_v54 = vunpack.c.0.s8 %v1532_v39 }
  0x2f   : > { %744 = vmatpush1.bf16.msra.mxu0 %v1221_v44  ;;  %787 = vmatpush1.bf16.msra.mxu1 %v1222_v45 }
  0x30   : > { %745 = vmatprep.subr.bf16.mxu0 %v1223_v46  ;;  %788 = vmatprep.subr.bf16.mxu1 %v1225_v48 }
  0x33   : > { %746 = vmatpush1.bf16.msra.mxu0 %v1227_v55  ;;  %789 = vmatpush1.bf16.msra.mxu1 %v1228_v56 }
  0x34   : > { %747 = vmatprep.subr.bf16.mxu0 %v1229_v59  ;;  %790 = vmatprep.subr.bf16.mxu1 %v1231_v60 }
  0x37   : > { %748 = vmatpush1.bf16.msra.mxu0 %v1233_v3  ;;  %791 = vmatpush1.bf16.msra.mxu1 %v1234_v4 }
  0x38   : > { %749 = vmatprep.subr.bf16.mxu0 %v1235_v7  ;;  %792 = vmatprep.subr.bf16.mxu1 %v1237_v8 }
  0x3b   : > { %750 = vmatpush1.bf16.msra.mxu0 %v1239_v14  ;;  %793 = vmatpush1.bf16.msra.mxu1 %v1240_v15 }
  0x3c   : > { %751 = vmatprep.subr.bf16.mxu0 %v1241_v17  ;;  %794 = vmatprep.subr.bf16.mxu1 %v1243_v18 }
  0x3f   : > { %752 = vmatpush1.bf16.msra.mxu0 %v1245_v21  ;;  %795 = vmatpush1.bf16.msra.mxu1 %v1246_v22 }
  0x40   : > { %753 = vmatprep.subr.bf16.mxu0 %v1247_v23  ;;  %796 = vmatprep.subr.bf16.mxu1 %v1249_v24 }
  0x43   : > { %754 = vmatpush1.bf16.msra.mxu0 %v1251_v27  ;;  %797 = vmatpush1.bf16.msra.mxu1 %v1252_v28 }
  0x46   : > { %756 = vmatmul.mubr.bf16.vlgmr.msra.gmra.mrb[0].mxu0 %v315_v29  ;;  %799 = vmatmul.mubr.bf16.vlgmr.msra.gmra.mrb[0].mxu1 %v315_v29 }
 0x119   : > { %v757_v41 = vpop.f32.mrb[0].mxu0  ;;  %v800_v42 = vpop.f32.mrb[0].mxu1 }
 0x11a   : > { %v758_v43 = vadd.f32 %v757_v41, %v386_v33  ;;  %v801_v44 = vadd.f32 %v800_v42, %v394_v34  ;;  %v759_v45 = vpop.f32.mrb[1].mxu0  ;;  %v802_v46 = vpop.f32.mrb[1].mxu1 }
 0x11b   : > { %v760_v48 = vadd.f32 %v759_v45, %v390_v35  ;;  %v803_v49 = vadd.f32 %v802_v46, %v398_v37  ;;  %v761_v50 = vpop.f32.mrb[2].mxu0  ;;  %v804_v51 = vpop.f32.mrb[2].mxu1 }
 0x11c   : > { %v762_v47 = vadd.f32 %v761_v50, %v386_v33  ;;  %v805_v52 = vadd.f32 %v804_v51, %v394_v34  ;;  %v763_v53 = vpop.f32.mrb[3].mxu0  ;;  %v806_v55 = vpop.f32.mrb[3].mxu1  ;;  %v899_v56 = vmul.f32 %v758_v43, %v758_v43  ;;  %v901_v57 = vmul.f32 %v801_v44, %v801_v44 }
 0x11d   : > { %v1144_v58 = vpack.c.bf16 %v760_v48, %v758_v43  ;;  %v1145_v59 = vpack.c.bf16 %v803_v49, %v801_v44  ;;  %v900_v0 = vmul.f32 %v760_v48, %v760_v48  ;;  %v902_v1 = vmul.f32 %v803_v49, %v803_v49 }
 0x11e   : > { %v837_v60 = vadd.f32 %v762_v47, %v758_v43  ;;  %v903_v61 = vmul.f32 %v762_v47, %v762_v47  ;;  %v851_v62 = vadd.f32 %v805_v52, %v801_v44  ;;  %v905_v63 = vmul.f32 %v805_v52, %v805_v52 }
 0x11f   : > { %833 = vst [vmem:[%s1538_s12] sm:$0xff] %v1144_v58  ;;  %834 = vst [vmem:[%s1538_s12 + $0x8] sm:$0xff] %v1145_v59  ;;  %v764_v2 = vadd.f32 %v763_v53, %v390_v35  ;;  %v807_v3 = vadd.f32 %v806_v55, %v398_v37 }
 0x120   : > { %v838_v4 = vrot.slane %v837_v60, 4  ;;  %v907_v5 = vadd.f32 %v903_v61, %v899_v56  ;;  %v852_v6 = vrot.slane %v851_v62, 4  ;;  %v921_v7 = vadd.f32 %v905_v63, %v901_v57 }
 0x121   : > { %v1146_v8 = vpack.c.bf16 %v764_v2, %v762_v47  ;;  %v844_v9 = vadd.f32 %v764_v2, %v760_v48  ;;  %v904_v10 = vmul.f32 %v764_v2, %v764_v2  ;;  %v1147_v11 = vpack.c.bf16 %v807_v3, %v805_v52 }
 0x122   : > { %v839_v12 = vadd.f32 %v838_v4, %v837_v60  ;;  %v908_v13 = vrot.slane %v907_v5, 4  ;;  %v853_v14 = vadd.f32 %v852_v6, %v851_v62  ;;  %v922_v15 = vrot.slane %v921_v7, 4 }
 0x123   : > { %835 = vst [vmem:[%s1538_s12 + $0x10] sm:$0xff] %v1146_v8  ;;  %v845_v16 = vrot.slane %v844_v9, 4  ;;  %v914_v17 = vadd.f32 %v904_v10, %v900_v0  ;;  %836 = vst [vmem:[%s1538_s12 + $0x18] sm:$0xff] %v1147_v11  ;;  %v858_v18 = vadd.f32 %v807_v3, %v803_v49  ;;  %v906_v19 = vmul.f32 %v807_v3, %v807_v3 }
 0x124   : > { %v840_v20 = vrot.slane %v839_v12, 2  ;;  %v909_v21 = vadd.f32 %v908_v13, %v907_v5  ;;  %v854_v22 = vrot.slane %v853_v14, 2  ;;  %v923_v23 = vadd.f32 %v922_v15, %v921_v7 }
 0x125   : > { %v846_v24 = vadd.f32 %v845_v16, %v844_v9  ;;  %v915_v25 = vrot.slane %v914_v17, 4  ;;  %v859_v26 = vrot.slane %v858_v18, 4  ;;  %v928_v27 = vadd.f32 %v906_v19, %v902_v1 }
 0x126   : > { %v841_v28 = vadd.f32 %v840_v20, %v839_v12  ;;  %v910_v29 = vrot.slane %v909_v21, 2  ;;  %v855_v30 = vadd.f32 %v854_v22, %v853_v14  ;;  %v924_v31 = vrot.slane %v923_v23, 2 }
 0x127   : > { %v847_v32 = vrot.slane %v846_v24, 2  ;;  %v916_v33 = vadd.f32 %v915_v25, %v914_v17  ;;  %v860_v34 = vadd.f32 %v859_v26, %v858_v18  ;;  %v929_v35 = vrot.slane %v928_v27, 4 }
 0x128   : > { %v842_v37 = vrot.slane %v841_v28, 1  ;;  %v911_v38 = vadd.f32 %v910_v29, %v909_v21  ;;  %v856_v41 = vrot.slane %v855_v30, 1  ;;  %v925_v42 = vadd.f32 %v924_v31, %v923_v23 }
 0x129   : > { %v848_v43 = vadd.f32 %v847_v32, %v846_v24  ;;  %v917_v44 = vrot.slane %v916_v33, 2  ;;  %v861_v45 = vrot.slane %v860_v34, 2  ;;  %v930_v46 = vadd.f32 %v929_v35, %v928_v27 }
 0x12a   : > { %v843_v48 = vadd.f32 %v842_v37, %v841_v28  ;;  %v912_v49 = vrot.slane %v911_v38, 1  ;;  %v926_v50 = vrot.slane %v925_v42, 1  ;;  %v857_v56 = vadd.f32 %v856_v41, %v855_v30 }
 0x12b   : > { %v849_v51 = vrot.slane %v848_v43, 1  ;;  %v918_v47 = vadd.f32 %v917_v44, %v916_v33  ;;  %v862_v52 = vadd.f32 %v861_v45, %v860_v34  ;;  %v931_v53 = vrot.slane %v930_v46, 2 }
 0x12c   : > { %v913_v55 = vadd.f32 %v912_v49, %v911_v38  ;;  %v876_v57 = vsub.s32 %v873_v54, %v1428_v40  ;;  %v927_v62 = vadd.f32 %v926_v50, %v925_v42 }
 0x12d   : > { %v850_v58 = vadd.f32 %v849_v51, %v848_v43  ;;  %v919_v59 = vrot.slane %v918_v47, 1  ;;  %v863_v60 = vrot.slane %v862_v52, 1  ;;  %v932_v61 = vadd.f32 %v931_v53, %v930_v46 }
 0x12f   : > { %v869_v63 = vcombine.low %v843_v48, %v850_v58  ;;  %v920_v0 = vadd.f32 %v919_v59, %v918_v47  ;;  %v864_v1 = vadd.f32 %v863_v60, %v862_v52  ;;  %v933_v2 = vrot.slane %v932_v61, 1 }
 0x131   : > { %v877_v3 = vrot.slane %v869_v63, %v876_v57  ;;  %v939_v4 = vcombine.low %v913_v55, %v920_v0  ;;  %v870_v5 = vcombine.low %v857_v56, %v864_v1  ;;  %v934_v6 = vadd.f32 %v933_v2, %v932_v61 }
 0x133   : > { %v947_v7 = vrot.slane %v939_v4, %v876_v57  ;;  %v884_v8 = vrot.slane %v870_v5, %v876_v57  ;;  %v940_v9 = vcombine.low %v927_v62, %v934_v6 }
 0x135   : > { %v885_v39 = vcombine.low %v877_v3, %v884_v8  ;;  %v954_v40 = vrot.slane %v940_v9, %v876_v57 }
 0x137   : > { %v892_v54 = vrot.slane %v885_v39, %v876_v57  ;;  %v955_v10 = vcombine.low %v947_v7, %v954_v40 }
 0x139   : > { %898 = vst.msk [vmem:[%s272_s16] ss:$2 sm:$0xf] %vm896_vm0, %v892_v54  ;;  %v962_v11 = vrot.slane %v955_v10, %v876_v57 }
 0x13b   : > { %1138 = vst.msk [vmem:[%s272_s16 + $0x1] ss:$2 sm:$0xf] %vm896_vm0, %v962_v11 }
 0x13c PF: > { %s17_s21 = sadd.s32 1, %s1259_s21  }
 0x13d   : > { %p14_p5 = scmp.ge.s32.totalorder %s17_s21, 4  }
 0x13f   :  { %16 = sbr.rel (!%p14_p5) target bundleno = 1 (0x1), region = 83 }

// kernel: tile.107
= control target key start
LH: loop header
LB: loop body
LE: loop exit
PB: predicated region body
PF: predicated region fallthrough
CT: control target
= control target key end

     0   :  { %s64_s0 = inlined_call_operand.vmem [shape: f32[4], index: 0, kind: input, shape index: {}]   ;;  %s65_s1 = inlined_call_operand.vmem [shape: f32[64,4], index: 1, kind: output, shape index: {}]  }
   0x1   :  { %v4_v0 = vld [vmem:[%s64_s0] ss:$0 sm:$0xff] }
   0x2   :  { %5 = vst [vmem:[%s65_s1] sm:$0xff] %v4_v0  ;;  %20 = vst [vmem:[%s65_s1 + $0x8] sm:$0xff] %v4_v0 }
   0x3   :  { %21 = vst [vmem:[%s65_s1 + $0x10] sm:$0xff] %v4_v0  ;;  %22 = vst [vmem:[%s65_s1 + $0x18] sm:$0xff] %v4_v0 }
   0x4   :  { %23 = vst [vmem:[%s65_s1 + $0x20] sm:$0xff] %v4_v0  ;;  %24 = vst [vmem:[%s65_s1 + $0x28] sm:$0xff] %v4_v0 }
   0x5   :  { %25 = vst [vmem:[%s65_s1 + $0x30] sm:$0xff] %v4_v0  ;;  %26 = vst [vmem:[%s65_s1 + $0x38] sm:$0xff] %v4_v0 }

// kernel: tile.109
= control target key start
LH: loop header
LB: loop body
LE: loop exit
PB: predicated region body
PF: predicated region fallthrough
CT: control target
= control target key end

     0   :  { %vm5_vm0 = vcmask 1041409   ;;  %s425_s14 = smov 124   ;;  %s426_s21 = smov 116   ;;  %vm7_vm1 = vcmask 31744   ;;  %vm17_vm2 = vcmask 1048544   ;;  %vm27_vm3 = vcmask 1015744   ;;  %s696_s0 = inlined_call_operand.vmem [shape: f32[64,4], index: 0, kind: input, shape index: {}]   ;;  %s697_s1 = inlined_call_operand.vmem [shape: f32[1,256], index: 1, kind: output, shape index: {}]  }
   0x1   :  { %v331_v0 = vld [vmem:[%s696_s0 + $0x1f] sm:$0x1]   ;;  %v335_v3 = vld [vmem:[%s696_s0 + $0x1d] sm:$0x1]   ;;  %v333_v6 = vld [vmem:[%s696_s0 + $0x1e] sm:$0x1]  }
   0x2   :  { %v332_v1 = vld [vmem:[%s696_s0 + $0x3e] sm:$0x2]   ;;  %v336_v4 = vld [vmem:[%s696_s0 + $0x3c] sm:$0x2]   ;;  %v334_v7 = vld [vmem:[%s696_s0 + $0x3d] sm:$0x2]  }
   0x3   :  { %v14_v2 = vsel %vm5_vm0, %v332_v1, %v331_v0  ;;  %v34_v5 = vsel %vm5_vm0, %v336_v4, %v335_v3  ;;  %v337_v8 = vld [vmem:[%s696_s0 + $0x1c] sm:$0x1]   ;;  %v24_v9 = vsel %vm5_vm0, %v334_v7, %v333_v6  ;;  %v339_v12 = vld [vmem:[%s696_s0 + $0x1b] sm:$0x1]   ;;  %v341_v14 = vld [vmem:[%s696_s0 + $0x1a] sm:$0x1]  }
   0x4   :  { %15 = vrot.lane.b32.xlu0 %v14_v2, %s425_s14  ;;  %35 = vrot.lane.b32.xlu1 %v34_v5, %s426_s21  ;;  %v338_v10 = vld [vmem:[%s696_s0 + $0x3b] sm:$0x2]   ;;  %v340_v13 = vld [vmem:[%s696_s0 + $0x3a] sm:$0x2]   ;;  %s427_s3 = smov 120   ;;  %s428_s4 = smov 112  }
   0x5   :  { %v44_v11 = vsel %vm5_vm0, %v338_v10, %v337_v8  ;;  %v342_v15 = vld [vmem:[%s696_s0 + $0x39] sm:$0x2]   ;;  %v54_v16 = vsel %vm5_vm0, %v340_v13, %v339_v12  ;;  %v343_v18 = vld [vmem:[%s696_s0 + $0x19] sm:$0x1]   ;;  %v345_v20 = vld [vmem:[%s696_s0 + $0x18] sm:$0x1]  }
   0x6   :  { %v64_v17 = vsel %vm5_vm0, %v342_v15, %v341_v14  ;;  %v344_v19 = vld [vmem:[%s696_s0 + $0x38] sm:$0x2]   ;;  %v346_v21 = vld [vmem:[%s696_s0 + $0x37] sm:$0x2]   ;;  %s429_s13 = smov 108   ;;  %s430_s14 = smov 104  }
   0x7   :  { %v74_v22 = vsel %vm5_vm0, %v344_v19, %v343_v18  ;;  %v84_v23 = vsel %vm5_vm0, %v346_v21, %v345_v20  ;;  %v347_v24 = vld [vmem:[%s696_s0 + $0x17] sm:$0x1]   ;;  %v349_v26 = vld [vmem:[%s696_s0 + $0x16] sm:$0x1]   ;;  %s431_s23 = smov 100   ;;  %s432_s24 = smov 96  }
   0x8   :  { %25 = vrot.lane.b32.xlu0 %v24_v9, %s427_s3  ;;  %45 = vrot.lane.b32.xlu1 %v44_v11, %s428_s4  ;;  %v348_v25 = vld [vmem:[%s696_s0 + $0x36] sm:$0x2]   ;;  %v350_v27 = vld [vmem:[%s696_s0 + $0x35] sm:$0x2]   ;;  %s433_s4 = smov 92   ;;  %s434_s5 = smov 88  }
   0x9   :  { %v94_v28 = vsel %vm5_vm0, %v348_v25, %v347_v24  ;;  %v104_v29 = vsel %vm5_vm0, %v350_v27, %v349_v26  ;;  %v351_v30 = vld [vmem:[%s696_s0 + $0x15] sm:$0x1]   ;;  %v353_v32 = vld [vmem:[%s696_s0 + $0x14] sm:$0x1]   ;;  %v355_v36 = vld [vmem:[%s696_s0 + $0x13] sm:$0x1]  }
   0xa   :  { %v352_v31 = vld [vmem:[%s696_s0 + $0x34] sm:$0x2]   ;;  %v354_v33 = vld [vmem:[%s696_s0 + $0x33] sm:$0x2]   ;;  %v356_v37 = vld [vmem:[%s696_s0 + $0x32] sm:$0x2]  }
   0xb   :  { %v114_v34 = vsel %vm5_vm0, %v352_v31, %v351_v30  ;;  %v124_v35 = vsel %vm5_vm0, %v354_v33, %v353_v32  ;;  %v357_v38 = vld [vmem:[%s696_s0 + $0x12] sm:$0x1]   ;;  %s436_s15 = smov 80   ;;  %v134_v40 = vsel %vm5_vm0, %v356_v37, %v355_v36  ;;  %v359_v42 = vld [vmem:[%s696_s0 + $0x11] sm:$0x1]   ;;  %s438_s29 = smov 72  }
   0xc   :  { %55 = vrot.lane.b32.xlu0 %v54_v16, %s429_s13  ;;  %65 = vrot.lane.b32.xlu1 %v64_v17, %s430_s14  ;;  %v358_v39 = vld [vmem:[%s696_s0 + $0x31] sm:$0x2]   ;;  %s435_s14 = smov 84   ;;  %v360_v43 = vld [vmem:[%s696_s0 + $0x30] sm:$0x2]   ;;  %s439_s9 = smov 68  }
   0xd   :  { %v144_v41 = vsel %vm5_vm0, %v358_v39, %v357_v38  ;;  %v361_v44 = vld [vmem:[%s696_s0 + $0x10] sm:$0x1]   ;;  %v2_v46 = vld [vmem:[%s696_s0] sm:$0x1]   ;;  %v154_v48 = vsel %vm5_vm0, %v360_v43, %v359_v42  ;;  %v363_v51 = vld [vmem:[%s696_s0 + $0xf] sm:$0x1]  }
   0xe   :  { %v362_v45 = vld [vmem:[%s696_s0 + $0x2f] sm:$0x2]   ;;  %v330_v47 = vld [vmem:[%s696_s0 + $0x1f] sm:$0x2]   ;;  %v364_v52 = vld [vmem:[%s696_s0 + $0x2e] sm:$0x2]  }
   0xf   :  { %v6_v49 = vsel %vm5_vm0, %v330_v47, %v2_v46  ;;  %v164_v50 = vsel %vm5_vm0, %v362_v45, %v361_v44  ;;  %v365_v53 = vld [vmem:[%s696_s0 + $0xe] sm:$0x1]   ;;  %s440_s10 = smov 64   ;;  %v174_v55 = vsel %vm5_vm0, %v364_v52, %v363_v51  ;;  %v367_v57 = vld [vmem:[%s696_s0 + $0xd] sm:$0x1]   ;;  %s441_s19 = smov 60  }
  0x10   :  { %75 = vrot.lane.b32.xlu0 %v74_v22, %s431_s23  ;;  %85 = vrot.lane.b32.xlu1 %v84_v23, %s432_s24  ;;  %s437_s24 = smov 76   ;;  %8 = vst.msk [vmem:[#allocation0] ss:$8 sm:$0x3] %vm7_vm1, %v6_v49   ;;  %v366_v54 = vld [vmem:[%s696_s0 + $0x2d] sm:$0x2]  }
  0x11   :  { %v184_v56 = vsel %vm5_vm0, %v366_v54, %v365_v53  ;;  %v368_v58 = vld [vmem:[%s696_s0 + $0x2c] sm:$0x2]   ;;  %v369_v59 = vld [vmem:[%s696_s0 + $0xc] sm:$0x1]   ;;  %s442_s20 = smov 56   ;;  %s444_s30 = smov 48  }
  0x12   :  { %v370_v60 = vld [vmem:[%s696_s0 + $0x2b] sm:$0x2]   ;;  %v194_v61 = vsel %vm5_vm0, %v368_v58, %v367_v57  ;;  %v371_v63 = vld [vmem:[%s696_s0 + $0xb] sm:$0x1]   ;;  %v373_v1 = vld [vmem:[%s696_s0 + $0xa] sm:$0x1]  }
  0x13   :  { %v204_v62 = vsel %vm5_vm0, %v370_v60, %v369_v59  ;;  %v372_v0 = vld [vmem:[%s696_s0 + $0x2a] sm:$0x2]   ;;  %v374_v2 = vld [vmem:[%s696_s0 + $0x29] sm:$0x2]   ;;  %v375_v5 = vld [vmem:[%s696_s0 + $0x9] sm:$0x1]  }
  0x14   :  { %95 = vrot.lane.b32.xlu0 %v94_v28, %s433_s4  ;;  %105 = vrot.lane.b32.xlu1 %v104_v29, %s434_s5  ;;  %v214_v3 = vsel %vm5_vm0, %v372_v0, %v371_v63  ;;  %v224_v4 = vsel %vm5_vm0, %v374_v2, %v373_v1  ;;  %v376_v6 = vld [vmem:[%s696_s0 + $0x28] sm:$0x2]   ;;  %v377_v7 = vld [vmem:[%s696_s0 + $0x8] sm:$0x1]   ;;  %s446_s11 = smov 40   ;;  %s448_s21 = smov 32  }
  0x15   :  { %v378_v8 = vld [vmem:[%s696_s0 + $0x27] sm:$0x2]   ;;  %v234_v9 = vsel %vm5_vm0, %v376_v6, %v375_v5  ;;  %v379_v11 = vld [vmem:[%s696_s0 + $0x7] sm:$0x1]   ;;  %v381_v13 = vld [vmem:[%s696_s0 + $0x6] sm:$0x1]  }
  0x16   :  { %v244_v10 = vsel %vm5_vm0, %v378_v8, %v377_v7  ;;  %v380_v12 = vld [vmem:[%s696_s0 + $0x26] sm:$0x2]   ;;  %v382_v14 = vld [vmem:[%s696_s0 + $0x25] sm:$0x2]   ;;  %v383_v17 = vld [vmem:[%s696_s0 + $0x5] sm:$0x1]  }
  0x17   :  { %v254_v15 = vsel %vm5_vm0, %v380_v12, %v379_v11  ;;  %v264_v16 = vsel %vm5_vm0, %v382_v14, %v381_v13  ;;  %v384_v18 = vld [vmem:[%s696_s0 + $0x24] sm:$0x2]   ;;  %v385_v19 = vld [vmem:[%s696_s0 + $0x4] sm:$0x1]   ;;  %s450_s2 = smov 24   ;;  %s452_s12 = smov 16  }
  0x18   :  { %115 = vrot.lane.b32.xlu0 %v114_v34, %s435_s14  ;;  %125 = vrot.lane.b32.xlu1 %v124_v35, %s436_s15  ;;  %v386_v20 = vld [vmem:[%s696_s0 + $0x23] sm:$0x2]   ;;  %v274_v21 = vsel %vm5_vm0, %v384_v18, %v383_v17  ;;  %v387_v23 = vld [vmem:[%s696_s0 + $0x3] sm:$0x1]   ;;  %s454_s17 = smov 8   ;;  %s455_s18 = smov 4  }
  0x19   :  { %v284_v22 = vsel %vm5_vm0, %v386_v20, %v385_v19  ;;  %v388_v24 = vld [vmem:[%s696_s0 + $0x22] sm:$0x2]   ;;  %v389_v25 = vld [vmem:[%s696_s0 + $0x2] sm:$0x1]   ;;  %v391_v29 = vld [vmem:[%s696_s0 + $0x1] sm:$0x1]  }
  0x1a   :  { %v390_v26 = vld [vmem:[%s696_s0 + $0x21] sm:$0x2]   ;;  %v294_v27 = vsel %vm5_vm0, %v388_v24, %v387_v23  ;;  %v392_v30 = vld [vmem:[%s696_s0 + $0x20] sm:$0x2]   ;;  %s453_s0 = smov 12   ;;  %vm37_vm4 = vcmask 982944  }
  0x1b   :  { %v304_v28 = vsel %vm5_vm0, %v390_v26, %v389_v25  ;;  %v314_v31 = vsel %vm5_vm0, %v392_v30, %v391_v29  ;;  %vm47_vm5 = vcmask 950144   ;;  %vm57_vm6 = vcmask 917344  }
  0x1c   :  { %135 = vrot.lane.b32.xlu0 %v134_v40, %s437_s24  ;;  %145 = vrot.lane.b32.xlu1 %v144_v41, %s438_s29  ;;  %s443_s29 = smov 52   ;;  %vm67_vm7 = vcmask 884544   ;;  %vm77_vm8 = vcmask 851744   ;;  %vm87_vm9 = vcmask 818944   ;;  %vm97_vm10 = vcmask 786144  }
  0x1d   :  { %vm107_vm11 = vcmask 753344   ;;  %vm117_vm12 = vcmask 720544   ;;  %vm127_vm13 = vcmask 687744   ;;  %vm137_vm14 = vcmask 654944  }
  0x1e   :  { %vm147_vm15 = vcmask 622144   ;;  %vm157_vm0 = vcmask 589344   ;;  %vm167_vm1 = vcmask 556544  }
  0x20   :  { %155 = vrot.lane.b32.xlu0 %v154_v48, %s439_s9  ;;  %165 = vrot.lane.b32.xlu1 %v164_v50, %s440_s10  ;;  %s445_s10 = smov 44  }
  0x24   :  { %175 = vrot.lane.b32.xlu0 %v174_v55, %s441_s19  ;;  %185 = vrot.lane.b32.xlu1 %v184_v56, %s442_s20  ;;  %s447_s20 = smov 36  }
  0x28   :  { %195 = vrot.lane.b32.xlu0 %v194_v61, %s443_s29  ;;  %205 = vrot.lane.b32.xlu1 %v204_v62, %s444_s30  ;;  %s449_s30 = smov 28  }
  0x2c   :  { %215 = vrot.lane.b32.xlu0 %v214_v3, %s445_s10  ;;  %225 = vrot.lane.b32.xlu1 %v224_v4, %s446_s11  ;;  %s451_s11 = smov 20  }
  0x30   :  { %235 = vrot.lane.b32.xlu0 %v234_v9, %s447_s20  ;;  %245 = vrot.lane.b32.xlu1 %v244_v10, %s448_s21 }
  0x34   :  { %255 = vrot.lane.b32.xlu0 %v254_v15, %s449_s30  ;;  %265 = vrot.lane.b32.xlu1 %v264_v16, %s450_s2 }
  0x38   :  { %275 = vrot.lane.b32.xlu0 %v274_v21, %s451_s11  ;;  %285 = vrot.lane.b32.xlu1 %v284_v22, %s452_s12 }
  0x3c   :  { %295 = vrot.lane.b32.xlu0 %v294_v27, %s453_s0  ;;  %305 = vrot.lane.b32.xlu1 %v304_v28, %s454_s17 }
  0x40   :  { %315 = vrot.lane.b32.xlu0 %v314_v31, %s455_s18 }
  0x76   :  { %v16_v32 = vpop.permute.xlu0 %15   ;;  %v36_v33 = vpop.permute.xlu1 %35  }
  0x77   :  { %18 = vst.msk [vmem:[#allocation0] ss:$8 sm:$0x3] %vm17_vm2, %v16_v32   ;;  %vm177_vm2 = vcmask 523744  }
  0x7a   :  { %v26_v34 = vpop.permute.xlu0 %25   ;;  %v46_v35 = vpop.permute.xlu1 %45  }
  0x7b   :  { %28 = vst.msk [vmem:[#allocation0] ss:$8 sm:$0x3] %vm27_vm3, %v26_v34   ;;  %vm187_vm3 = vcmask 490944  }
  0x7c   :  { %38 = vst.msk [vmem:[#allocation0] ss:$8 sm:$0x3] %vm37_vm4, %v36_v33   ;;  %vm197_vm4 = vcmask 458144  }
  0x7d   :  { %48 = vst.msk [vmem:[#allocation0] ss:$8 sm:$0x3] %vm47_vm5, %v46_v35   ;;  %vm207_vm5 = vcmask 425344  }
  0x7e   :  { %v56_v36 = vpop.permute.xlu0 %55   ;;  %v66_v37 = vpop.permute.xlu1 %65  }
  0x7f   :  { %58 = vst.msk [vmem:[#allocation0] ss:$8 sm:$0x3] %vm57_vm6, %v56_v36   ;;  %vm217_vm6 = vcmask 392544  }
  0x80   :  { %68 = vst.msk [vmem:[#allocation0] ss:$8 sm:$0x3] %vm67_vm7, %v66_v37   ;;  %vm227_vm7 = vcmask 359744  }
  0x82   :  { %v76_v38 = vpop.permute.xlu0 %75   ;;  %v86_v39 = vpop.permute.xlu1 %85  }
  0x83   :  { %78 = vst.msk [vmem:[#allocation0] ss:$8 sm:$0x3] %vm77_vm8, %v76_v38   ;;  %vm237_vm8 = vcmask 326944  }
  0x84   :  { %88 = vst.msk [vmem:[#allocation0] ss:$8 sm:$0x3] %vm87_vm9, %v86_v39   ;;  %vm247_vm9 = vcmask 294144  }
  0x86   :  { %v96_v40 = vpop.permute.xlu0 %95   ;;  %v106_v41 = vpop.permute.xlu1 %105  }
  0x87   :  { %98 = vst.msk [vmem:[#allocation0] ss:$8 sm:$0x3] %vm97_vm10, %v96_v40   ;;  %vm257_vm10 = vcmask 261344  }
  0x88   :  { %108 = vst.msk [vmem:[#allocation0] ss:$8 sm:$0x3] %vm107_vm11, %v106_v41   ;;  %vm267_vm11 = vcmask 228544  }
  0x8a   :  { %v116_v42 = vpop.permute.xlu0 %115   ;;  %v126_v43 = vpop.permute.xlu1 %125  }
  0x8b   :  { %118 = vst.msk [vmem:[#allocation0] ss:$8 sm:$0x3] %vm117_vm12, %v116_v42   ;;  %vm277_vm12 = vcmask 195744  }
  0x8c   :  { %128 = vst.msk [vmem:[#allocation0] ss:$8 sm:$0x3] %vm127_vm13, %v126_v43   ;;  %vm287_vm13 = vcmask 162944  }
  0x8e   :  { %v136_v44 = vpop.permute.xlu0 %135   ;;  %v146_v45 = vpop.permute.xlu1 %145  }
  0x8f   :  { %138 = vst.msk [vmem:[#allocation0] ss:$8 sm:$0x3] %vm137_vm14, %v136_v44   ;;  %vm297_vm14 = vcmask 130144  }
  0x90   :  { %148 = vst.msk [vmem:[#allocation0] ss:$8 sm:$0x3] %vm147_vm15, %v146_v45   ;;  %vm307_vm15 = vcmask 97344  }
  0x92   :  { %v156_v46 = vpop.permute.xlu0 %155   ;;  %v166_v47 = vpop.permute.xlu1 %165  }
  0x93   :  { %158 = vst.msk [vmem:[#allocation0] ss:$8 sm:$0x3] %vm157_vm0, %v156_v46   ;;  %vm317_vm0 = vcmask 64544  }
  0x94   :  { %168 = vst.msk [vmem:[#allocation0] ss:$8 sm:$0x3] %vm167_vm1, %v166_v47  }
  0x96   :  { %v176_v48 = vpop.permute.xlu0 %175   ;;  %v186_v49 = vpop.permute.xlu1 %185  }
  0x97   :  { %178 = vst.msk [vmem:[#allocation0] ss:$8 sm:$0x3] %vm177_vm2, %v176_v48  }
  0x98   :  { %188 = vst.msk [vmem:[#allocation0] ss:$8 sm:$0x3] %vm187_vm3, %v186_v49  }
  0x9a   :  { %v196_v50 = vpop.permute.xlu0 %195   ;;  %v206_v51 = vpop.permute.xlu1 %205  }
  0x9b   :  { %198 = vst.msk [vmem:[#allocation0] ss:$8 sm:$0x3] %vm197_vm4, %v196_v50  }
  0x9c   :  { %208 = vst.msk [vmem:[#allocation0] ss:$8 sm:$0x3] %vm207_vm5, %v206_v51  }
  0x9e   :  { %v216_v52 = vpop.permute.xlu0 %215   ;;  %v226_v53 = vpop.permute.xlu1 %225  }
  0x9f   :  { %218 = vst.msk [vmem:[#allocation0] ss:$8 sm:$0x3] %vm217_vm6, %v216_v52  }
  0xa0   :  { %228 = vst.msk [vmem:[#allocation0] ss:$8 sm:$0x3] %vm227_vm7, %v226_v53  }
  0xa2   :  { %v236_v54 = vpop.permute.xlu0 %235   ;;  %v246_v55 = vpop.permute.xlu1 %245  }
  0xa3   :  { %238 = vst.msk [vmem:[#allocation0] ss:$8 sm:$0x3] %vm237_vm8, %v236_v54  }
  0xa4   :  { %248 = vst.msk [vmem:[#allocation0] ss:$8 sm:$0x3] %vm247_vm9, %v246_v55  }
  0xa6   :  { %v256_v56 = vpop.permute.xlu0 %255   ;;  %v266_v57 = vpop.permute.xlu1 %265  }
  0xa7   :  { %258 = vst.msk [vmem:[#allocation0] ss:$8 sm:$0x3] %vm257_vm10, %v256_v56  }
  0xa8   :  { %268 = vst.msk [vmem:[#allocation0] ss:$8 sm:$0x3] %vm267_vm11, %v266_v57  }
  0xaa   :  { %v276_v58 = vpop.permute.xlu0 %275   ;;  %v286_v59 = vpop.permute.xlu1 %285  }
  0xab   :  { %278 = vst.msk [vmem:[#allocation0] ss:$8 sm:$0x3] %vm277_vm12, %v276_v58  }
  0xac   :  { %288 = vst.msk [vmem:[#allocation0] ss:$8 sm:$0x3] %vm287_vm13, %v286_v59  }
  0xae   :  { %v296_v60 = vpop.permute.xlu0 %295   ;;  %v306_v61 = vpop.permute.xlu1 %305  }
  0xaf   :  { %298 = vst.msk [vmem:[#allocation0] ss:$8 sm:$0x3] %vm297_vm14, %v296_v60  }
  0xb0   :  { %308 = vst.msk [vmem:[#allocation0] ss:$8 sm:$0x3] %vm307_vm15, %v306_v61  }
  0xb2   :  { %v316_v62 = vpop.permute.xlu0 %315  }
  0xb3   :  { %318 = vst.msk [vmem:[#allocation0] ss:$8 sm:$0x3] %vm317_vm0, %v316_v62  }
  0xba   :  { %v322_v63 = vld [vmem:[#allocation0] sm:$0x1]  ;;  %v326_v0 = vld [vmem:[#allocation0 + $0x8] sm:$0x1] }
  0xbb   :  { %324 = vst [vmem:[%s697_s1] sm:$0x1] %v322_v63  ;;  %393 = vst [vmem:[%s697_s1 + $0x1] sm:$0x1] %v326_v0 }

// kernel: full_mask_decoder_forward.11
= control target key start
LH: loop header
LB: loop body
LE: loop exit
PB: predicated region body
PF: predicated region fallthrough
CT: control target
= control target key end

     0   :  { %s1297_s21 = smov 0   ;;  %s1557_s0 = inlined_call_operand.vmem [shape: bf16[64,256], index: 0, kind: input, shape index: {}]   ;;  %s1558_s1 = inlined_call_operand.vmem [shape: f32[1,256], index: 1, kind: input, shape index: {}]   ;;  %s1559_s2 = inlined_call_operand.vmem [shape: f32[1,256], index: 2, kind: input, shape index: {}]   ;;  %s1560_s3 = inlined_call_operand.vmem [shape: bf16[256,512], index: 3, kind: input, shape index: {}]   ;;  %s1561_s4 = inlined_call_operand.vmem [shape: f32[1,512], index: 4, kind: input, shape index: {}]   ;;  %s1562_s5 = inlined_call_operand.vmem [shape: bf16[64,512], index: 5, kind: output, shape index: {0}]   ;;  %s1563_s6 = inlined_call_operand.vmem [shape: f32[4,2,512], index: 6, kind: output, shape index: {1}]  }
   0x1 LB: > { %s1303_s22 = sadd.s32 4294967295, %s1259_s21   ;;  %p1061_p0 = scmp.ge.s32.totalorder %s1259_s21, 1  ;;  %s1259_s21 = sphi %s1297_s21, %s17_s21  }
   0x2   : > { %p217_p1 = scmp.lt.s32.totalorder %s1259_s21, 5 }
   0x4   : > { %p218_p2 = pnand %p1061_p0, %p217_p1 }
   0x5   : > { %v1157_v0 = vld [vmem:[%s1560_s3 + $0x4] ss:$16 sps:$4 sm:$0xff] (!%p218_p2)   ;;  %v1159_v1 = vld [vmem:[%s1560_s3 + $0xc] ss:$16 sps:$4 sm:$0xff] (!%p218_p2)   ;;  %v1161_v2 = vld [vmem:[%s1560_s3] ss:$16 sps:$4 sm:$0xff] (!%p218_p2)   ;;  %v281_v36 = vlaneseq (!%p218_p2) }
   0x6   : > { %221 = sbr.rel (%p218_p2) target bundleno = 316 (0x13c), region = 40  ;;  %723 = vmatprep.subr.bf16.mxu0 (!%p218_p2), %v1157_v0  ;;  %v1162_v3 = vld [vmem:[%s1560_s3 + $0x8] ss:$16 sps:$4 sm:$0xff] (!%p218_p2)   ;;  %766 = vmatprep.subr.bf16.mxu1 (!%p218_p2), %v1159_v1  ;;  %v1163_v4 = vld [vmem:[%s1560_s3 + $0x24] ss:$16 sps:$4 sm:$0xff] (!%p218_p2)   ;;  %s1062_s15 = sshll.u32 (!%p218_p2), %s1303_s22, 1 }
   0x7   : > { %724 = vmatpush1.bf16.msra.mxu0 (!%p218_p2), %v1161_v2  ;;  %767 = vmatpush1.bf16.msra.mxu1 (!%p218_p2), %v1162_v3  ;;  %v1165_v5 = vld [vmem:[%s1560_s3 + $0x2c] ss:$16 sps:$4 sm:$0xff] (!%p218_p2)   ;;  %v1167_v6 = vld [vmem:[%s1560_s3 + $0x20] ss:$16 sps:$4 sm:$0xff] (!%p218_p2)   ;;  %v1168_v7 = vld [vmem:[%s1560_s3 + $0x28] ss:$16 sps:$4 sm:$0xff] (!%p218_p2)  }
   0x8   : > { %725 = vmatprep.subr.bf16.mxu0 (!%p218_p2), %v1163_v4  ;;  %768 = vmatprep.subr.bf16.mxu1 (!%p218_p2), %v1165_v5  ;;  %v1169_v8 = vld [vmem:[%s1560_s3 + $0x44] ss:$16 sps:$4 sm:$0xff] (!%p218_p2)   ;;  %v1171_v9 = vld [vmem:[%s1560_s3 + $0x4c] ss:$16 sps:$4 sm:$0xff] (!%p218_p2)   ;;  %v1173_v10 = vld [vmem:[%s1560_s3 + $0x40] ss:$16 sps:$4 sm:$0xff] (!%p218_p2)  }
   0x9   : > { %v1174_v11 = vld [vmem:[%s1560_s3 + $0x48] ss:$16 sps:$4 sm:$0xff] (!%p218_p2)   ;;  %v1175_v12 = vld [vmem:[%s1560_s3 + $0x64] ss:$16 sps:$4 sm:$0xff] (!%p218_p2)   ;;  %v1177_v13 = vld [vmem:[%s1560_s3 + $0x6c] ss:$16 sps:$4 sm:$0xff] (!%p218_p2)  }
   0xa   : > { %v1179_v14 = vld [vmem:[%s1560_s3 + $0x60] ss:$16 sps:$4 sm:$0xff] (!%p218_p2)   ;;  %v1180_v15 = vld [vmem:[%s1560_s3 + $0x68] ss:$16 sps:$4 sm:$0xff] (!%p218_p2)   ;;  %v1181_v16 = vld [vmem:[%s1560_s3 + $0x84] ss:$16 sps:$4 sm:$0xff] (!%p218_p2)  }
   0xb   : > { %726 = vmatpush1.bf16.msra.mxu0 (!%p218_p2), %v1167_v6  ;;  %769 = vmatpush1.bf16.msra.mxu1 (!%p218_p2), %v1168_v7  ;;  %v1183_v17 = vld [vmem:[%s1560_s3 + $0x8c] ss:$16 sps:$4 sm:$0xff] (!%p218_p2)   ;;  %v1185_v18 = vld [vmem:[%s1560_s3 + $0x80] ss:$16 sps:$4 sm:$0xff] (!%p218_p2)   ;;  %v1186_v19 = vld [vmem:[%s1560_s3 + $0x88] ss:$16 sps:$4 sm:$0xff] (!%p218_p2)  }
   0xc   : > { %727 = vmatprep.subr.bf16.mxu0 (!%p218_p2), %v1169_v8  ;;  %770 = vmatprep.subr.bf16.mxu1 (!%p218_p2), %v1171_v9  ;;  %v1187_v20 = vld [vmem:[%s1560_s3 + $0xa4] ss:$16 sps:$4 sm:$0xff] (!%p218_p2)   ;;  %v1189_v21 = vld [vmem:[%s1560_s3 + $0xac] ss:$16 sps:$4 sm:$0xff] (!%p218_p2)   ;;  %v1191_v22 = vld [vmem:[%s1560_s3 + $0xa0] ss:$16 sps:$4 sm:$0xff] (!%p218_p2)  }
   0xd   : > { %v1192_v23 = vld [vmem:[%s1560_s3 + $0xa8] ss:$16 sps:$4 sm:$0xff]   ;;  %v1193_v24 = vld [vmem:[%s1560_s3 + $0xc4] ss:$16 sps:$4 sm:$0xff]   ;;  %v1195_v25 = vld [vmem:[%s1560_s3 + $0xcc] ss:$16 sps:$4 sm:$0xff]  }
   0xe   : > { %v1197_v26 = vld [vmem:[%s1560_s3 + $0xc0] ss:$16 sps:$4 sm:$0xff]   ;;  %v1198_v27 = vld [vmem:[%s1560_s3 + $0xc8] ss:$16 sps:$4 sm:$0xff]   ;;  %v1199_v28 = vld [vmem:[%s1560_s3 + $0xe4] ss:$16 sps:$4 sm:$0xff]  }
   0xf   : > { %728 = vmatpush1.bf16.msra.mxu0 %v1173_v10  ;;  %771 = vmatpush1.bf16.msra.mxu1 %v1174_v11  ;;  %v1201_v29 = vld [vmem:[%s1560_s3 + $0xec] ss:$16 sps:$4 sm:$0xff]   ;;  %v1203_v30 = vld [vmem:[%s1560_s3 + $0xe0] ss:$16 sps:$4 sm:$0xff]   ;;  %v1204_v31 = vld [vmem:[%s1560_s3 + $0xe8] ss:$16 sps:$4 sm:$0xff]  }
  0x10   : > { %729 = vmatprep.subr.bf16.mxu0 %v1175_v12  ;;  %772 = vmatprep.subr.bf16.mxu1 %v1177_v13  ;;  %v1205_v32 = vld [vmem:[%s1560_s3 + $0x104] ss:$16 sps:$4 sm:$0xff]   ;;  %p255_p3 = scmp.lt.s32.totalorder %s1062_s15, 7  ;;  %v1207_v33 = vld [vmem:[%s1560_s3 + $0x10c] ss:$16 sps:$4 sm:$0xff]   ;;  %v1428_v40 = vshrl.u32 %v281_v36, 7 }
  0x11   : > { %v1209_v34 = vld [vmem:[%s1560_s3 + $0x100] ss:$16 sps:$4 sm:$0xff]   ;;  %v1210_v35 = vld [vmem:[%s1560_s3 + $0x108] ss:$16 sps:$4 sm:$0xff]   ;;  %v1211_v37 = vld [vmem:[%s1560_s3 + $0x124] ss:$16 sps:$4 sm:$0xff]  }
  0x12   : > { %s1565_s15 = smov (!%p255_p3, %s1062_s15), 7  ;;  %v1213_v38 = vld [vmem:[%s1560_s3 + $0x12c] ss:$16 sps:$4 sm:$0xff]   ;;  %v1215_v39 = vld [vmem:[%s1560_s3 + $0x120] ss:$16 sps:$4 sm:$0xff]   ;;  %v1453_v47 = vsub.s32 1, %v1428_v40 }
  0x13   : > { %730 = vmatpush1.bf16.msra.mxu0 %v1179_v14  ;;  %773 = vmatpush1.bf16.msra.mxu1 %v1180_v15  ;;  %v1216_v41 = vld [vmem:[%s1560_s3 + $0x128] ss:$16 sps:$4 sm:$0xff]   ;;  %v1217_v42 = vld [vmem:[%s1560_s3 + $0x144] ss:$16 sps:$4 sm:$0xff]   ;;  %s1141_s17 = sshll.u32 %s1565_s15, 3  ;;  %v1462_v53 = vsub.s32 0, %v1428_v40 }
  0x14   : > { %731 = vmatprep.subr.bf16.mxu0 %v1181_v16  ;;  %774 = vmatprep.subr.bf16.mxu1 %v1183_v17  ;;  %v1219_v43 = vld [vmem:[%s1560_s3 + $0x14c] ss:$16 sps:$4 sm:$0xff]   ;;  %v1221_v44 = vld [vmem:[%s1560_s3 + $0x140] ss:$16 sps:$4 sm:$0xff]   ;;  %v1222_v45 = vld [vmem:[%s1560_s3 + $0x148] ss:$16 sps:$4 sm:$0xff]   ;;  %s259_s28 = scalar_lea.vmem %s1557_s0, %s1141_s17 }
  0x15   : > { %v1223_v46 = vld [vmem:[%s1560_s3 + $0x164] ss:$16 sps:$4 sm:$0xff]   ;;  %v1225_v48 = vld [vmem:[%s1560_s3 + $0x16c] ss:$16 sps:$4 sm:$0xff]   ;;  %v279_v52 = vld [vmem:[%s1558_s1] sm:$0x3] }
  0x16   : > { %v273_v49 = vld [vmem:[%s259_s28] sm:$0xff]  ;;  %v274_v50 = vld [vmem:[%s259_s28 + $0x8] sm:$0xff]  ;;  %v288_v58 = vrot.slane %v279_v52, %v1453_v47  ;;  %v284_v2 = vrot.slane %v279_v52, %v1462_v53  ;;  %s1142_s9 = sshll.u32 %s1565_s15, 4  ;;  %p268_p4 = scmp.lt.s32.totalorder %s1303_s22, 3  ;;  %vm896_vm0 = vcmp.lt.s32.totalorder %v281_v36, 512 }
  0x17   : > { %732 = vmatpush1.bf16.msra.mxu0 %v1185_v18  ;;  %775 = vmatpush1.bf16.msra.mxu1 %v1186_v19  ;;  %v276_v51 = vunpack.c.h.bf16 %v273_v49  ;;  %v295_v54 = vld [vmem:[%s1559_s2] sm:$0x3]  ;;  %v1228_v56 = vld [vmem:[%s1560_s3 + $0x168] ss:$16 sps:$4 sm:$0xff]   ;;  %v278_v57 = vunpack.c.h.bf16 %v274_v50  ;;  %v1229_v59 = vld [vmem:[%s1560_s3 + $0x184] ss:$16 sps:$4 sm:$0xff]   ;;  %v275_v0 = vunpack.c.l.bf16 %v273_v49  ;;  %v277_v1 = vunpack.c.l.bf16 %v274_v50  ;;  %s1538_s12 = scalar_lea.vmem %s1562_s5, %s1142_s9 }
  0x18   : > { %733 = vmatprep.subr.bf16.mxu0 %v1187_v20  ;;  %776 = vmatprep.subr.bf16.mxu1 %v1189_v21  ;;  %v1227_v55 = vld [vmem:[%s1560_s3 + $0x160] ss:$16 sps:$4 sm:$0xff]   ;;  %v1231_v60 = vld [vmem:[%s1560_s3 + $0x18c] ss:$16 sps:$4 sm:$0xff]   ;;  %v304_v61 = vrot.slane %v295_v54, %v1453_v47  ;;  %v1234_v4 = vld [vmem:[%s1560_s3 + $0x188] ss:$16 sps:$4 sm:$0xff]   ;;  %v300_v11 = vrot.slane %v295_v54, %v1462_v53 }
  0x19   : > { %v292_v62 = vmul.f32 %v288_v58, %v276_v51  ;;  %v294_v63 = vmul.f32 %v288_v58, %v278_v57  ;;  %v1233_v3 = vld [vmem:[%s1560_s3 + $0x180] ss:$16 sps:$4 sm:$0xff]   ;;  %v1235_v7 = vld [vmem:[%s1560_s3 + $0x1a4] ss:$16 sps:$4 sm:$0xff]   ;;  %v1237_v8 = vld [vmem:[%s1560_s3 + $0x1ac] ss:$16 sps:$4 sm:$0xff]   ;;  %v291_v12 = vmul.f32 %v284_v2, %v275_v0  ;;  %v293_v13 = vmul.f32 %v284_v2, %v277_v1 }
  0x1a   : > { %v1239_v14 = vld [vmem:[%s1560_s3 + $0x1a0] ss:$16 sps:$4 sm:$0xff]   ;;  %v1240_v15 = vld [vmem:[%s1560_s3 + $0x1a8] ss:$16 sps:$4 sm:$0xff]   ;;  %v1241_v17 = vld [vmem:[%s1560_s3 + $0x1c4] ss:$16 sps:$4 sm:$0xff]  }
  0x1b   : > { %734 = vmatpush1.bf16.msra.mxu0 %v1191_v22  ;;  %777 = vmatpush1.bf16.msra.mxu1 %v1192_v23  ;;  %v308_v5 = vadd.f32 %v304_v61, %v292_v62  ;;  %v310_v6 = vadd.f32 %v304_v61, %v294_v63  ;;  %v1243_v18 = vld [vmem:[%s1560_s3 + $0x1cc] ss:$16 sps:$4 sm:$0xff]   ;;  %v307_v19 = vadd.f32 %v300_v11, %v291_v12  ;;  %v1245_v21 = vld [vmem:[%s1560_s3 + $0x1c0] ss:$16 sps:$4 sm:$0xff]   ;;  %v1246_v22 = vld [vmem:[%s1560_s3 + $0x1c8] ss:$16 sps:$4 sm:$0xff]  }
  0x1c   : > { %735 = vmatprep.subr.bf16.mxu0 %v1193_v24  ;;  %778 = vmatprep.subr.bf16.mxu1 %v1195_v25  ;;  %v309_v20 = vadd.f32 %v300_v11, %v293_v13  ;;  %v1247_v23 = vld [vmem:[%s1560_s3 + $0x1e4] ss:$16 sps:$4 sm:$0xff]   ;;  %v1249_v24 = vld [vmem:[%s1560_s3 + $0x1ec] ss:$16 sps:$4 sm:$0xff]   ;;  %s1567_s22 = smov (!%p268_p4, %s1303_s22), 3 }
  0x1d   : > { %v312_v9 = vmax.f32 %v308_v5, 0.0  ;;  %v314_v10 = vmax.f32 %v310_v6, 0.0  ;;  %v311_v25 = vmax.f32 %v307_v19, 0.0  ;;  %s1143_s15 = sshll.u32 %s1567_s22, 3 }
  0x1e   : > { %s272_s16 = scalar_lea.vmem %s1563_s6, %s1143_s15 }
  0x1f   : > { %736 = vmatpush1.bf16.msra.mxu0 %v1197_v26  ;;  %779 = vmatpush1.bf16.msra.mxu1 %v1198_v27  ;;  %v316_v16 = vpack.c.bf16 %v314_v10, %v312_v9  ;;  %v313_v26 = vmax.f32 %v309_v20, 0.0  ;;  %v1251_v27 = vld [vmem:[%s1560_s3 + $0x1e0] ss:$16 sps:$4 sm:$0xff]  }
  0x20   : > { %737 = vmatprep.subr.bf16.mxu0 %v1199_v28  ;;  %780 = vmatprep.subr.bf16.mxu1 %v1201_v29  ;;  %v1252_v28 = vld [vmem:[%s1560_s3 + $0x1e8] ss:$16 sps:$4 sm:$0xff]  }
  0x21   : > { %755 = vmatprep.mubr.bf16.mxu0 %v316_v16  ;;  %798 = vmatprep.mubr.bf16.mxu1 %v316_v16  ;;  %v315_v29 = vpack.c.bf16 %v313_v26, %v311_v25 }
  0x23   : > { %738 = vmatpush1.bf16.msra.mxu0 %v1203_v30  ;;  %781 = vmatpush1.bf16.msra.mxu1 %v1204_v31  ;;  %v393_v30 = vsub.s32 2, %v1428_v40  ;;  %v381_v31 = vld [vmem:[%s1561_s4] sm:$0xf] }
  0x24   : > { %739 = vmatprep.subr.bf16.mxu0 %v1205_v32  ;;  %782 = vmatprep.subr.bf16.mxu1 %v1207_v33  ;;  %v397_v32 = vsub.s32 3, %v1428_v40  ;;  %v386_v33 = vrot.slane %v381_v31, %v1462_v53 }
  0x27   : > { %740 = vmatpush1.bf16.msra.mxu0 %v1209_v34  ;;  %783 = vmatpush1.bf16.msra.mxu1 %v1210_v35  ;;  %v394_v34 = vrot.slane %v381_v31, %v393_v30  ;;  %v390_v35 = vrot.slane %v381_v31, %v1453_v47 }
  0x28   : > { %741 = vmatprep.subr.bf16.mxu0 %v1211_v37  ;;  %784 = vmatprep.subr.bf16.mxu1 %v1213_v38  ;;  %v398_v37 = vrot.slane %v381_v31, %v397_v32  ;;  %v1261_v38 = vmov 1966171168  }
  0x2b   : > { %742 = vmatpush1.bf16.msra.mxu0 %v1215_v39  ;;  %785 = vmatpush1.bf16.msra.mxu1 %v1216_v41  ;;  %v1532_v39 = vunpack.c.l.s4 %v1261_v38 }
  0x2c   : > { %743 = vmatprep.subr.bf16.mxu0 %v1217_v42  ;;  %786 = vmatprep.subr.bf16.mxu1 %v1219_v43 }
  0x2d   : > { %v873_v54 = vunpack.c.0.s8 %v1532_v39 }
  0x2f   : > { %744 = vmatpush1.bf16.msra.mxu0 %v1221_v44  ;;  %787 = vmatpush1.bf16.msra.mxu1 %v1222_v45 }
  0x30   : > { %745 = vmatprep.subr.bf16.mxu0 %v1223_v46  ;;  %788 = vmatprep.subr.bf16.mxu1 %v1225_v48 }
  0x33   : > { %746 = vmatpush1.bf16.msra.mxu0 %v1227_v55  ;;  %789 = vmatpush1.bf16.msra.mxu1 %v1228_v56 }
  0x34   : > { %747 = vmatprep.subr.bf16.mxu0 %v1229_v59  ;;  %790 = vmatprep.subr.bf16.mxu1 %v1231_v60 }
  0x37   : > { %748 = vmatpush1.bf16.msra.mxu0 %v1233_v3  ;;  %791 = vmatpush1.bf16.msra.mxu1 %v1234_v4 }
  0x38   : > { %749 = vmatprep.subr.bf16.mxu0 %v1235_v7  ;;  %792 = vmatprep.subr.bf16.mxu1 %v1237_v8 }
  0x3b   : > { %750 = vmatpush1.bf16.msra.mxu0 %v1239_v14  ;;  %793 = vmatpush1.bf16.msra.mxu1 %v1240_v15 }
  0x3c   : > { %751 = vmatprep.subr.bf16.mxu0 %v1241_v17  ;;  %794 = vmatprep.subr.bf16.mxu1 %v1243_v18 }
  0x3f   : > { %752 = vmatpush1.bf16.msra.mxu0 %v1245_v21  ;;  %795 = vmatpush1.bf16.msra.mxu1 %v1246_v22 }
  0x40   : > { %753 = vmatprep.subr.bf16.mxu0 %v1247_v23  ;;  %796 = vmatprep.subr.bf16.mxu1 %v1249_v24 }
  0x43   : > { %754 = vmatpush1.bf16.msra.mxu0 %v1251_v27  ;;  %797 = vmatpush1.bf16.msra.mxu1 %v1252_v28 }
  0x46   : > { %756 = vmatmul.mubr.bf16.vlgmr.msra.gmra.mrb[0].mxu0 %v315_v29  ;;  %799 = vmatmul.mubr.bf16.vlgmr.msra.gmra.mrb[0].mxu1 %v315_v29 }
 0x119   : > { %v757_v41 = vpop.f32.mrb[0].mxu0  ;;  %v800_v42 = vpop.f32.mrb[0].mxu1 }
 0x11a   : > { %v758_v43 = vadd.f32 %v757_v41, %v386_v33  ;;  %v801_v44 = vadd.f32 %v800_v42, %v394_v34  ;;  %v759_v45 = vpop.f32.mrb[1].mxu0  ;;  %v802_v46 = vpop.f32.mrb[1].mxu1 }
 0x11b   : > { %v760_v48 = vadd.f32 %v759_v45, %v390_v35  ;;  %v803_v49 = vadd.f32 %v802_v46, %v398_v37  ;;  %v761_v50 = vpop.f32.mrb[2].mxu0  ;;  %v804_v51 = vpop.f32.mrb[2].mxu1 }
 0x11c   : > { %v762_v47 = vadd.f32 %v761_v50, %v386_v33  ;;  %v805_v52 = vadd.f32 %v804_v51, %v394_v34  ;;  %v763_v53 = vpop.f32.mrb[3].mxu0  ;;  %v806_v55 = vpop.f32.mrb[3].mxu1  ;;  %v899_v56 = vmul.f32 %v758_v43, %v758_v43  ;;  %v901_v57 = vmul.f32 %v801_v44, %v801_v44 }
 0x11d   : > { %v1144_v58 = vpack.c.bf16 %v760_v48, %v758_v43  ;;  %v1145_v59 = vpack.c.bf16 %v803_v49, %v801_v44  ;;  %v900_v0 = vmul.f32 %v760_v48, %v760_v48  ;;  %v902_v1 = vmul.f32 %v803_v49, %v803_v49 }
 0x11e   : > { %v837_v60 = vadd.f32 %v762_v47, %v758_v43  ;;  %v903_v61 = vmul.f32 %v762_v47, %v762_v47  ;;  %v851_v62 = vadd.f32 %v805_v52, %v801_v44  ;;  %v905_v63 = vmul.f32 %v805_v52, %v805_v52 }
 0x11f   : > { %833 = vst [vmem:[%s1538_s12] sm:$0xff] %v1144_v58  ;;  %834 = vst [vmem:[%s1538_s12 + $0x8] sm:$0xff] %v1145_v59  ;;  %v764_v2 = vadd.f32 %v763_v53, %v390_v35  ;;  %v807_v3 = vadd.f32 %v806_v55, %v398_v37 }
 0x120   : > { %v838_v4 = vrot.slane %v837_v60, 4  ;;  %v907_v5 = vadd.f32 %v903_v61, %v899_v56  ;;  %v852_v6 = vrot.slane %v851_v62, 4  ;;  %v921_v7 = vadd.f32 %v905_v63, %v901_v57 }
 0x121   : > { %v1146_v8 = vpack.c.bf16 %v764_v2, %v762_v47  ;;  %v844_v9 = vadd.f32 %v764_v2, %v760_v48  ;;  %v904_v10 = vmul.f32 %v764_v2, %v764_v2  ;;  %v1147_v11 = vpack.c.bf16 %v807_v3, %v805_v52 }
 0x122   : > { %v839_v12 = vadd.f32 %v838_v4, %v837_v60  ;;  %v908_v13 = vrot.slane %v907_v5, 4  ;;  %v853_v14 = vadd.f32 %v852_v6, %v851_v62  ;;  %v922_v15 = vrot.slane %v921_v7, 4 }
 0x123   : > { %835 = vst [vmem:[%s1538_s12 + $0x10] sm:$0xff] %v1146_v8  ;;  %v845_v16 = vrot.slane %v844_v9, 4  ;;  %v914_v17 = vadd.f32 %v904_v10, %v900_v0  ;;  %836 = vst [vmem:[%s1538_s12 + $0x18] sm:$0xff] %v1147_v11  ;;  %v858_v18 = vadd.f32 %v807_v3, %v803_v49  ;;  %v906_v19 = vmul.f32 %v807_v3, %v807_v3 }
 0x124   : > { %v840_v20 = vrot.slane %v839_v12, 2  ;;  %v909_v21 = vadd.f32 %v908_v13, %v907_v5  ;;  %v854_v22 = vrot.slane %v853_v14, 2  ;;  %v923_v23 = vadd.f32 %v922_v15, %v921_v7 }
 0x125   : > { %v846_v24 = vadd.f32 %v845_v16, %v844_v9  ;;  %v915_v25 = vrot.slane %v914_v17, 4  ;;  %v859_v26 = vrot.slane %v858_v18, 4  ;;  %v928_v27 = vadd.f32 %v906_v19, %v902_v1 }
 0x126   : > { %v841_v28 = vadd.f32 %v840_v20, %v839_v12  ;;  %v910_v29 = vrot.slane %v909_v21, 2  ;;  %v855_v30 = vadd.f32 %v854_v22, %v853_v14  ;;  %v924_v31 = vrot.slane %v923_v23, 2 }
 0x127   : > { %v847_v32 = vrot.slane %v846_v24, 2  ;;  %v916_v33 = vadd.f32 %v915_v25, %v914_v17  ;;  %v860_v34 = vadd.f32 %v859_v26, %v858_v18  ;;  %v929_v35 = vrot.slane %v928_v27, 4 }
 0x128   : > { %v842_v37 = vrot.slane %v841_v28, 1  ;;  %v911_v38 = vadd.f32 %v910_v29, %v909_v21  ;;  %v856_v41 = vrot.slane %v855_v30, 1  ;;  %v925_v42 = vadd.f32 %v924_v31, %v923_v23 }
 0x129   : > { %v848_v43 = vadd.f32 %v847_v32, %v846_v24  ;;  %v917_v44 = vrot.slane %v916_v33, 2  ;;  %v861_v45 = vrot.slane %v860_v34, 2  ;;  %v930_v46 = vadd.f32 %v929_v35, %v928_v27 }
 0x12a   : > { %v843_v48 = vadd.f32 %v842_v37, %v841_v28  ;;  %v912_v49 = vrot.slane %v911_v38, 1  ;;  %v926_v50 = vrot.slane %v925_v42, 1  ;;  %v857_v56 = vadd.f32 %v856_v41, %v855_v30 }
 0x12b   : > { %v849_v51 = vrot.slane %v848_v43, 1  ;;  %v918_v47 = vadd.f32 %v917_v44, %v916_v33  ;;  %v862_v52 = vadd.f32 %v861_v45, %v860_v34  ;;  %v931_v53 = vrot.slane %v930_v46, 2 }
 0x12c   : > { %v913_v55 = vadd.f32 %v912_v49, %v911_v38  ;;  %v876_v57 = vsub.s32 %v873_v54, %v1428_v40  ;;  %v927_v62 = vadd.f32 %v926_v50, %v925_v42 }
 0x12d   : > { %v850_v58 = vadd.f32 %v849_v51, %v848_v43  ;;  %v919_v59 = vrot.slane %v918_v47, 1  ;;  %v863_v60 = vrot.slane %v862_v52, 1  ;;  %v932_v61 = vadd.f32 %v931_v53, %v930_v46 }
 0x12f   : > { %v869_v63 = vcombine.low %v843_v48, %v850_v58  ;;  %v920_v0 = vadd.f32 %v919_v59, %v918_v47  ;;  %v864_v1 = vadd.f32 %v863_v60, %v862_v52  ;;  %v933_v2 = vrot.slane %v932_v61, 1 }
 0x131   : > { %v877_v3 = vrot.slane %v869_v63, %v876_v57  ;;  %v939_v4 = vcombine.low %v913_v55, %v920_v0  ;;  %v870_v5 = vcombine.low %v857_v56, %v864_v1  ;;  %v934_v6 = vadd.f32 %v933_v2, %v932_v61 }
 0x133   : > { %v947_v7 = vrot.slane %v939_v4, %v876_v57  ;;  %v884_v8 = vrot.slane %v870_v5, %v876_v57  ;;  %v940_v9 = vcombine.low %v927_v62, %v934_v6 }
 0x135   : > { %v885_v39 = vcombine.low %v877_v3, %v884_v8  ;;  %v954_v40 = vrot.slane %v940_v9, %v876_v57 }
 0x137   : > { %v892_v54 = vrot.slane %v885_v39, %v876_v57  ;;  %v955_v10 = vcombine.low %v947_v7, %v954_v40 }
 0x139   : > { %898 = vst.msk [vmem:[%s272_s16] ss:$2 sm:$0xf] %vm896_vm0, %v892_v54  ;;  %v962_v11 = vrot.slane %v955_v10, %v876_v57 }
 0x13b   : > { %1138 = vst.msk [vmem:[%s272_s16 + $0x1] ss:$2 sm:$0xf] %vm896_vm0, %v962_v11 }
 0x13c PF: > { %s17_s21 = sadd.s32 1, %s1259_s21  }
 0x13d   : > { %p14_p5 = scmp.ge.s32.totalorder %s17_s21, 6  }
 0x13f   :  { %16 = sbr.rel (!%p14_p5) target bundleno = 1 (0x1), region = 83 }

// kernel: full_mask_decoder_forward.10
= control target key start
LH: loop header
LB: loop body
LE: loop exit
PB: predicated region body
PF: predicated region fallthrough
CT: control target
= control target key end

     0   :  { %s1798_s21 = smov 0   ;;  %s2181_s0 = inlined_call_operand.vmem [shape: bf16[64,256], index: 0, kind: input, shape index: {}]   ;;  %s2182_s1 = inlined_call_operand.vmem [shape: f32[1,256], index: 1, kind: input, shape index: {}]   ;;  %s2183_s2 = inlined_call_operand.vmem [shape: f32[1,256], index: 2, kind: input, shape index: {}]   ;;  %s2184_s3 = inlined_call_operand.vmem [shape: bf16[3,256,256], index: 3, kind: input, shape index: {}]   ;;  %s2185_s4 = inlined_call_operand.vmem [shape: f32[1,256], index: 4, kind: input, shape index: {}]   ;;  %s2186_s5 = inlined_call_operand.vmem [shape: bf16[64,256], index: 5, kind: output, shape index: {0}]   ;;  %s2187_s6 = inlined_call_operand.vmem [shape: f32[2,2,256], index: 6, kind: output, shape index: {1}]  }
   0x1 LB: > { %s1804_s22 = sadd.s32 4294967295, %s1760_s21   ;;  %p1386_p0 = scmp.ge.s32.totalorder %s1760_s21, 1  ;;  %s1760_s21 = sphi %s1798_s21, %s17_s21  }
   0x2   : > { %p217_p1 = scmp.lt.s32.totalorder %s1760_s21, 3 }
   0x4   : > { %p218_p2 = pnand %p1386_p0, %p217_p1 }
   0x5   : > { %v1610_v0 = vld [vmem:[%s2184_s3 + $0x4] ss:$8 sps:$4 sm:$0xff] (!%p218_p2)   ;;  %v1614_v2 = vld [vmem:[%s2184_s3] ss:$8 sps:$4 sm:$0xff] (!%p218_p2)   ;;  %v1616_v4 = vld [vmem:[%s2184_s3 + $0x14] ss:$8 sps:$4 sm:$0xff] (!%p218_p2)   ;;  %v287_v36 = vlaneseq (!%p218_p2) }
   0x6   : > { %221 = sbr.rel (%p218_p2) target bundleno = 386 (0x182), region = 40  ;;  %v1612_v1 = vld [vmem:[%s2184_s3 + $0x104] ss:$8 sps:$4 sm:$0xff] (!%p218_p2)   ;;  %529 = vmatprep.subr.bf16.mxu0 (!%p218_p2), %v1610_v0  ;;  %v1615_v3 = vld [vmem:[%s2184_s3 + $0x100] ss:$8 sps:$4 sm:$0xff] (!%p218_p2)   ;;  %s1387_s15 = sshll.u32 (!%p218_p2), %s1804_s22, 2 }
   0x7   : > { %775 = vmatprep.subr.bf16.mxu1 (!%p218_p2), %v1612_v1  ;;  %530 = vmatpush1.bf16.msra.mxu0 (!%p218_p2), %v1614_v2  ;;  %v1618_v5 = vld [vmem:[%s2184_s3 + $0x114] ss:$8 sps:$4 sm:$0xff] (!%p218_p2)   ;;  %v1620_v6 = vld [vmem:[%s2184_s3 + $0x10] ss:$8 sps:$4 sm:$0xff] (!%p218_p2)   ;;  %v1622_v8 = vld [vmem:[%s2184_s3 + $0x24] ss:$8 sps:$4 sm:$0xff] (!%p218_p2)  }
   0x8   : > { %776 = vmatpush1.bf16.msra.mxu1 (!%p218_p2), %v1615_v3  ;;  %531 = vmatprep.subr.bf16.mxu0 (!%p218_p2), %v1616_v4  ;;  %v1621_v7 = vld [vmem:[%s2184_s3 + $0x110] ss:$8 sps:$4 sm:$0xff] (!%p218_p2)   ;;  %v1624_v9 = vld [vmem:[%s2184_s3 + $0x124] ss:$8 sps:$4 sm:$0xff] (!%p218_p2)   ;;  %v1626_v10 = vld [vmem:[%s2184_s3 + $0x20] ss:$8 sps:$4 sm:$0xff] (!%p218_p2)  }
   0x9   : > { %777 = vmatprep.subr.bf16.mxu1 (!%p218_p2), %v1618_v5  ;;  %v1627_v11 = vld [vmem:[%s2184_s3 + $0x120] ss:$8 sps:$4 sm:$0xff] (!%p218_p2)   ;;  %v1628_v12 = vld [vmem:[%s2184_s3 + $0x34] ss:$8 sps:$4 sm:$0xff] (!%p218_p2)   ;;  %v1632_v14 = vld [vmem:[%s2184_s3 + $0x30] ss:$8 sps:$4 sm:$0xff] (!%p218_p2)  }
   0xa   : > { %v1630_v13 = vld [vmem:[%s2184_s3 + $0x134] ss:$8 sps:$4 sm:$0xff] (!%p218_p2)   ;;  %v1633_v15 = vld [vmem:[%s2184_s3 + $0x130] ss:$8 sps:$4 sm:$0xff] (!%p218_p2)   ;;  %v1634_v16 = vld [vmem:[%s2184_s3 + $0x44] ss:$8 sps:$4 sm:$0xff] (!%p218_p2)  }
   0xb   : > { %532 = vmatpush1.bf16.msra.mxu0 (!%p218_p2), %v1620_v6  ;;  %v1636_v17 = vld [vmem:[%s2184_s3 + $0x144] ss:$8 sps:$4 sm:$0xff] (!%p218_p2)   ;;  %v1638_v18 = vld [vmem:[%s2184_s3 + $0x40] ss:$8 sps:$4 sm:$0xff] (!%p218_p2)   ;;  %v1640_v20 = vld [vmem:[%s2184_s3 + $0x54] ss:$8 sps:$4 sm:$0xff] (!%p218_p2)  }
   0xc   : > { %778 = vmatpush1.bf16.msra.mxu1 (!%p218_p2), %v1621_v7  ;;  %533 = vmatprep.subr.bf16.mxu0 (!%p218_p2), %v1622_v8  ;;  %v1639_v19 = vld [vmem:[%s2184_s3 + $0x140] ss:$8 sps:$4 sm:$0xff] (!%p218_p2)   ;;  %v1642_v21 = vld [vmem:[%s2184_s3 + $0x154] ss:$8 sps:$4 sm:$0xff] (!%p218_p2)   ;;  %v1644_v22 = vld [vmem:[%s2184_s3 + $0x50] ss:$8 sps:$4 sm:$0xff] (!%p218_p2)  }
   0xd   : > { %779 = vmatprep.subr.bf16.mxu1 %v1624_v9  ;;  %v1645_v23 = vld [vmem:[%s2184_s3 + $0x150] ss:$8 sps:$4 sm:$0xff]   ;;  %v1646_v24 = vld [vmem:[%s2184_s3 + $0x64] ss:$8 sps:$4 sm:$0xff]   ;;  %v1650_v26 = vld [vmem:[%s2184_s3 + $0x60] ss:$8 sps:$4 sm:$0xff]  }
   0xe   : > { %v1648_v25 = vld [vmem:[%s2184_s3 + $0x164] ss:$8 sps:$4 sm:$0xff]   ;;  %v1651_v27 = vld [vmem:[%s2184_s3 + $0x160] ss:$8 sps:$4 sm:$0xff]   ;;  %v1652_v28 = vld [vmem:[%s2184_s3 + $0x74] ss:$8 sps:$4 sm:$0xff]  }
   0xf   : > { %534 = vmatpush1.bf16.msra.mxu0 %v1626_v10  ;;  %v1654_v29 = vld [vmem:[%s2184_s3 + $0x174] ss:$8 sps:$4 sm:$0xff]   ;;  %v1656_v30 = vld [vmem:[%s2184_s3 + $0x70] ss:$8 sps:$4 sm:$0xff]   ;;  %v1658_v32 = vld [vmem:[%s2184_s3 + $0x84] ss:$8 sps:$4 sm:$0xff]  }
  0x10   : > { %780 = vmatpush1.bf16.msra.mxu1 %v1627_v11  ;;  %535 = vmatprep.subr.bf16.mxu0 %v1628_v12  ;;  %v1657_v31 = vld [vmem:[%s2184_s3 + $0x170] ss:$8 sps:$4 sm:$0xff]   ;;  %p255_p3 = scmp.lt.s32.totalorder %s1387_s15, 7  ;;  %v1660_v33 = vld [vmem:[%s2184_s3 + $0x184] ss:$8 sps:$4 sm:$0xff]   ;;  %v1929_v40 = vshrl.u32 %v287_v36, 7 }
  0x11   : > { %781 = vmatprep.subr.bf16.mxu1 %v1630_v13  ;;  %v1662_v34 = vld [vmem:[%s2184_s3 + $0x80] ss:$8 sps:$4 sm:$0xff]   ;;  %v1664_v37 = vld [vmem:[%s2184_s3 + $0x94] ss:$8 sps:$4 sm:$0xff]   ;;  %v1668_v39 = vld [vmem:[%s2184_s3 + $0x90] ss:$8 sps:$4 sm:$0xff]  }
  0x12   : > { %v1663_v35 = vld [vmem:[%s2184_s3 + $0x180] ss:$8 sps:$4 sm:$0xff]   ;;  %s2189_s15 = smov (!%p255_p3, %s1387_s15), 7  ;;  %v1666_v38 = vld [vmem:[%s2184_s3 + $0x194] ss:$8 sps:$4 sm:$0xff]   ;;  %v1958_v47 = vsub.s32 1, %v1929_v40 }
  0x13   : > { %536 = vmatpush1.bf16.msra.mxu0 %v1632_v14  ;;  %v1669_v41 = vld [vmem:[%s2184_s3 + $0x190] ss:$8 sps:$4 sm:$0xff]   ;;  %v1670_v42 = vld [vmem:[%s2184_s3 + $0xa4] ss:$8 sps:$4 sm:$0xff]   ;;  %s1562_s17 = sshll.u32 %s2189_s15, 3  ;;  %v1978_v56 = vsub.s32 0, %v1929_v40 }
  0x14   : > { %782 = vmatpush1.bf16.msra.mxu1 %v1633_v15  ;;  %537 = vmatprep.subr.bf16.mxu0 %v1634_v16  ;;  %v1672_v43 = vld [vmem:[%s2184_s3 + $0x1a4] ss:$8 sps:$4 sm:$0xff]   ;;  %v1674_v44 = vld [vmem:[%s2184_s3 + $0xa0] ss:$8 sps:$4 sm:$0xff]   ;;  %s1952_s28 = scalar_lea.vmem %s2181_s0, %s1562_s17  ;;  %v1676_v46 = vld [vmem:[%s2184_s3 + $0xb4] ss:$8 sps:$4 sm:$0xff]   ;;  %s266_s19 = scalar_lea.vmem %s2186_s5, %s1562_s17 }
  0x15   : > { %783 = vmatprep.subr.bf16.mxu1 %v1636_v17  ;;  %v1675_v45 = vld [vmem:[%s2184_s3 + $0x1a0] ss:$8 sps:$4 sm:$0xff]   ;;  %v1678_v48 = vld [vmem:[%s2184_s3 + $0x1b4] ss:$8 sps:$4 sm:$0xff]   ;;  %v1680_v49 = vld [vmem:[%s2184_s3 + $0xb0] ss:$8 sps:$4 sm:$0xff]  }
  0x16   : > { %v1681_v50 = vld [vmem:[%s2184_s3 + $0x1b0] ss:$8 sps:$4 sm:$0xff]   ;;  %v273_v51 = vld [vmem:[%s1952_s28] sm:$0xff]  ;;  %v274_v52 = vld [vmem:[%s1952_s28 + $0x8] sm:$0xff]  ;;  %vm1082_vm0 = vcmask 1040384   ;;  %vm1115_vm1 = vcmask 1046528  }
  0x17   : > { %538 = vmatpush1.bf16.msra.mxu0 %v1638_v18  ;;  %v278_v53 = vunpack.c.h.bf16 %v273_v51  ;;  %v285_v54 = vld [vmem:[%s2182_s1] sm:$0x3]  ;;  %v1682_v57 = vld [vmem:[%s2184_s3 + $0xc4] ss:$8 sps:$4 sm:$0xff]   ;;  %v280_v58 = vunpack.c.h.bf16 %v274_v52  ;;  %v275_v0 = vld [vmem:[%s1952_s28 + $0x10] sm:$0xff]  ;;  %v277_v1 = vunpack.c.l.bf16 %v273_v51  ;;  %v279_v2 = vunpack.c.l.bf16 %v274_v52  ;;  %p268_p4 = scmp.lt.s32.totalorder %s1804_s22, 1 }
  0x18   : > { %784 = vmatpush1.bf16.msra.mxu1 %v1639_v19  ;;  %539 = vmatprep.subr.bf16.mxu0 %v1640_v20  ;;  %v305_v55 = vld [vmem:[%s2183_s2] sm:$0x3]  ;;  %v294_v59 = vrot.slane %v285_v54, %v1958_v47  ;;  %v1684_v61 = vld [vmem:[%s2184_s3 + $0x1c4] ss:$8 sps:$4 sm:$0xff]   ;;  %v290_v3 = vrot.slane %v285_v54, %v1978_v56  ;;  %v276_v4 = vld [vmem:[%s1952_s28 + $0x18] sm:$0xff]  ;;  %v282_v13 = vunpack.c.h.bf16 %v275_v0  ;;  %vm1242_vm2 = vcmp.lt.s32.totalorder %v287_v36, 256 }
  0x19   : > { %785 = vmatprep.subr.bf16.mxu1 %v1642_v21  ;;  %v314_v60 = vrot.slane %v305_v55, %v1958_v47  ;;  %v1686_v5 = vld [vmem:[%s2184_s3 + $0xc0] ss:$8 sps:$4 sm:$0xff]   ;;  %v1688_v9 = vld [vmem:[%s2184_s3 + $0xd4] ss:$8 sps:$4 sm:$0xff]   ;;  %v284_v14 = vunpack.c.h.bf16 %v276_v4  ;;  %v310_v17 = vrot.slane %v305_v55, %v1978_v56  ;;  %v1692_v18 = vld [vmem:[%s2184_s3 + $0xd0] ss:$8 sps:$4 sm:$0xff]  }
  0x1a   : > { %v298_v62 = vmul.f32 %v294_v59, %v278_v53  ;;  %v300_v63 = vmul.f32 %v294_v59, %v280_v58  ;;  %v1687_v6 = vld [vmem:[%s2184_s3 + $0x1c0] ss:$8 sps:$4 sm:$0xff]   ;;  %v1690_v10 = vld [vmem:[%s2184_s3 + $0x1d4] ss:$8 sps:$4 sm:$0xff]   ;;  %v297_v15 = vmul.f32 %v290_v3, %v277_v1  ;;  %v299_v16 = vmul.f32 %v290_v3, %v279_v2  ;;  %v1693_v19 = vld [vmem:[%s2184_s3 + $0x1d0] ss:$8 sps:$4 sm:$0xff]  }
  0x1b   : > { %540 = vmatpush1.bf16.msra.mxu0 %v1644_v22  ;;  %v1694_v21 = vld [vmem:[%s2184_s3 + $0xe4] ss:$8 sps:$4 sm:$0xff]   ;;  %v1711_v51 = vld [vmem:[%s2184_s3 + $0x214] ss:$8 sps:$4 sm:$0xff]   ;;  %v1709_v55 = vld [vmem:[%s2184_s3 + $0x210] ss:$8 sps:$4 sm:$0xff]  }
  0x1c   : > { %786 = vmatpush1.bf16.msra.mxu1 %v1645_v23  ;;  %541 = vmatprep.subr.bf16.mxu0 %v1646_v24  ;;  %v318_v7 = vadd.f32 %v314_v60, %v298_v62  ;;  %v320_v8 = vadd.f32 %v314_v60, %v300_v63  ;;  %v1696_v22 = vld [vmem:[%s2184_s3 + $0x1e4] ss:$8 sps:$4 sm:$0xff]   ;;  %v302_v23 = vmul.f32 %v294_v59, %v282_v13  ;;  %v1718_v63 = vld [vmem:[%s2184_s3 + $0x240] ss:$8 sps:$4 sm:$0xff]   ;;  %v1721_v1 = vld [vmem:[%s2184_s3 + $0x250] ss:$8 sps:$4 sm:$0xff]  }
  0x1d   : > { %787 = vmatprep.subr.bf16.mxu1 %v1648_v25  ;;  %v304_v24 = vmul.f32 %v294_v59, %v284_v14  ;;  %v317_v25 = vadd.f32 %v310_v17, %v297_v15  ;;  %v1712_v59 = vld [vmem:[%s2184_s3 + $0x220] ss:$8 sps:$4 sm:$0xff]   ;;  %v1720_v62 = vld [vmem:[%s2184_s3 + $0x244] ss:$8 sps:$4 sm:$0xff]   ;;  %v1739_v13 = vld [vmem:[%s2184_s3 + $0x2b0] ss:$8 sps:$4 sm:$0xff]  }
  0x1e   : > { %v326_v11 = vmax.f32 %v318_v7, 0.0  ;;  %v328_v12 = vmax.f32 %v320_v8, 0.0  ;;  %v1726_v2 = vld [vmem:[%s2184_s3 + $0x264] ss:$8 sps:$4 sm:$0xff]   ;;  %v1730_v7 = vld [vmem:[%s2184_s3 + $0x280] ss:$8 sps:$4 sm:$0xff]  }
  0x1f   : > { %542 = vmatpush1.bf16.msra.mxu0 %v1650_v26  ;;  %v319_v26 = vadd.f32 %v310_v17, %v299_v16  ;;  %v1735_v8 = vld [vmem:[%s2184_s3 + $0x294] ss:$8 sps:$4 sm:$0xff]   ;;  %v1744_v14 = vld [vmem:[%s2184_s3 + $0x2c4] ss:$8 sps:$4 sm:$0xff]   ;;  %v1742_v15 = vld [vmem:[%s2184_s3 + $0x2c0] ss:$8 sps:$4 sm:$0xff]  }
  0x20   : > { %788 = vmatpush1.bf16.msra.mxu1 %v1651_v27  ;;  %543 = vmatprep.subr.bf16.mxu0 %v1652_v28  ;;  %v2010_v20 = vpack.c.bf16 %v328_v12, %v326_v11  ;;  %v281_v27 = vunpack.c.l.bf16 %v275_v0  ;;  %v283_v28 = vunpack.c.l.bf16 %v276_v4  ;;  %v1723_v0 = vld [vmem:[%s2184_s3 + $0x254] ss:$8 sps:$4 sm:$0xff]   ;;  %v1736_v11 = vld [vmem:[%s2184_s3 + $0x2a0] ss:$8 sps:$4 sm:$0xff]   ;;  %s2191_s22 = smov (!%p268_p4, %s1804_s22), 1 }
  0x21   : > { %789 = vmatprep.subr.bf16.mxu1 %v1654_v29  ;;  %v1698_v29 = vld [vmem:[%s2184_s3 + $0xe0] ss:$8 sps:$4 sm:$0xff]   ;;  %v1729_v4 = vld [vmem:[%s2184_s3 + $0x274] ss:$8 sps:$4 sm:$0xff]   ;;  %s1564_s15 = sshll.u32 %s2191_s22, 2 }
  0x22   : > { %561 = vmatprep.mubr.bf16.mxu0 %v2010_v20  ;;  %807 = vmatprep.mubr.bf16.mxu1 %v2010_v20  ;;  %v1741_v12 = vld [vmem:[%s2184_s3 + $0x2b4] ss:$8 sps:$4 sm:$0xff]   ;;  %s272_s23 = scalar_lea.vmem %s2187_s6, %s1564_s15 }
  0x23   : > { %544 = vmatpush1.bf16.msra.mxu0 %v1656_v30  ;;  %v1699_v30 = vld [vmem:[%s2184_s3 + $0x1e0] ss:$8 sps:$4 sm:$0xff]   ;;  %v1747_v16 = vld [vmem:[%s2184_s3 + $0x2d4] ss:$8 sps:$4 sm:$0xff]  }
  0x24   : > { %790 = vmatpush1.bf16.msra.mxu1 %v1657_v31  ;;  %545 = vmatprep.subr.bf16.mxu0 %v1658_v32  ;;  %v1700_v31 = vld [vmem:[%s2184_s3 + $0xf4] ss:$8 sps:$4 sm:$0xff]  }
  0x25   : > { %791 = vmatprep.subr.bf16.mxu1 %v1660_v33  ;;  %v1702_v32 = vld [vmem:[%s2184_s3 + $0x1f4] ss:$8 sps:$4 sm:$0xff]   ;;  %v322_v33 = vadd.f32 %v314_v60, %v302_v23 }
  0x27   : > { %546 = vmatpush1.bf16.msra.mxu0 %v1662_v34  ;;  %v324_v34 = vadd.f32 %v314_v60, %v304_v24  ;;  %v1717_v60 = vld [vmem:[%s2184_s3 + $0x234] ss:$8 sps:$4 sm:$0xff]  }
  0x28   : > { %792 = vmatpush1.bf16.msra.mxu1 %v1663_v35  ;;  %547 = vmatprep.subr.bf16.mxu0 %v1664_v37  ;;  %v325_v35 = vmax.f32 %v317_v25, 0.0  ;;  %v327_v37 = vmax.f32 %v319_v26, 0.0 }
  0x29   : > { %793 = vmatprep.subr.bf16.mxu1 %v1666_v38  ;;  %v301_v38 = vmul.f32 %v290_v3, %v281_v27 }
  0x2b   : > { %548 = vmatpush1.bf16.msra.mxu0 %v1668_v39  ;;  %v303_v39 = vmul.f32 %v290_v3, %v283_v28  ;;  %v1724_v3 = vld [vmem:[%s2184_s3 + $0x260] ss:$8 sps:$4 sm:$0xff]  }
  0x2c   : > { %794 = vmatpush1.bf16.msra.mxu1 %v1669_v41  ;;  %549 = vmatprep.subr.bf16.mxu0 %v1670_v42  ;;  %v1704_v41 = vld [vmem:[%s2184_s3 + $0xf0] ss:$8 sps:$4 sm:$0xff]  }
  0x2d   : > { %795 = vmatprep.subr.bf16.mxu1 %v1672_v43  ;;  %v1705_v42 = vld [vmem:[%s2184_s3 + $0x1f0] ss:$8 sps:$4 sm:$0xff]   ;;  %v1708_v43 = vld [vmem:[%s2184_s3 + $0x204] ss:$8 sps:$4 sm:$0xff]  }
  0x2f   : > { %550 = vmatpush1.bf16.msra.mxu0 %v1674_v44  ;;  %v330_v44 = vmax.f32 %v322_v33, 0.0 }
  0x30   : > { %796 = vmatpush1.bf16.msra.mxu1 %v1675_v45  ;;  %551 = vmatprep.subr.bf16.mxu0 %v1676_v46  ;;  %v332_v45 = vmax.f32 %v324_v34, 0.0  ;;  %v2041_v46 = vpack.c.bf16 %v327_v37, %v325_v35 }
  0x31   : > { %797 = vmatprep.subr.bf16.mxu1 %v1678_v48  ;;  %v321_v48 = vadd.f32 %v310_v17, %v301_v38 }
  0x32   : > { %v336_v52 = vpack.c.bf16 %v332_v45, %v330_v44 }
  0x33   : > { %552 = vmatpush1.bf16.msra.mxu0 %v1680_v49  ;;  %v323_v49 = vadd.f32 %v310_v17, %v303_v39  ;;  %v329_v53 = vmax.f32 %v321_v48, 0.0  ;;  %v1745_v17 = vld [vmem:[%s2184_s3 + $0x2d0] ss:$8 sps:$4 sm:$0xff]  }
  0x34   : > { %798 = vmatpush1.bf16.msra.mxu1 %v1681_v50  ;;  %553 = vmatprep.subr.bf16.mxu0 %v1682_v57  ;;  %v1706_v50 = vld [vmem:[%s2184_s3 + $0x200] ss:$8 sps:$4 sm:$0xff]   ;;  %v1714_v57 = vld [vmem:[%s2184_s3 + $0x224] ss:$8 sps:$4 sm:$0xff]  }
  0x35   : > { %799 = vmatprep.subr.bf16.mxu1 %v1684_v61  ;;  %v331_v54 = vmax.f32 %v323_v49, 0.0  ;;  %v1715_v61 = vld [vmem:[%s2184_s3 + $0x230] ss:$8 sps:$4 sm:$0xff]  }
  0x37   : > { %554 = vmatpush1.bf16.msra.mxu0 %v1686_v5  ;;  %v2057_v58 = vpack.c.bf16 %v331_v54, %v329_v53  ;;  %v1727_v5 = vld [vmem:[%s2184_s3 + $0x270] ss:$8 sps:$4 sm:$0xff]  }
  0x38   : > { %800 = vmatpush1.bf16.msra.mxu1 %v1687_v6  ;;  %555 = vmatprep.subr.bf16.mxu0 %v1688_v9  ;;  %v1732_v6 = vld [vmem:[%s2184_s3 + $0x284] ss:$8 sps:$4 sm:$0xff]   ;;  %v1733_v9 = vld [vmem:[%s2184_s3 + $0x290] ss:$8 sps:$4 sm:$0xff]  }
  0x39   : > { %801 = vmatprep.subr.bf16.mxu1 %v1690_v10  ;;  %v1738_v10 = vld [vmem:[%s2184_s3 + $0x2a4] ss:$8 sps:$4 sm:$0xff]  }
  0x3b   : > { %556 = vmatpush1.bf16.msra.mxu0 %v1692_v18  ;;  %v1750_v18 = vld [vmem:[%s2184_s3 + $0x2e4] ss:$8 sps:$4 sm:$0xff]  }
  0x3c   : > { %802 = vmatpush1.bf16.msra.mxu1 %v1693_v19  ;;  %557 = vmatprep.subr.bf16.mxu0 %v1694_v21  ;;  %v1748_v19 = vld [vmem:[%s2184_s3 + $0x2e0] ss:$8 sps:$4 sm:$0xff]   ;;  %v1751_v21 = vld [vmem:[%s2184_s3 + $0x2f0] ss:$8 sps:$4 sm:$0xff]  }
  0x3d   : > { %803 = vmatprep.subr.bf16.mxu1 %v1696_v22 }
  0x3f   : > { %558 = vmatpush1.bf16.msra.mxu0 %v1698_v29 }
  0x40   : > { %804 = vmatpush1.bf16.msra.mxu1 %v1699_v30  ;;  %559 = vmatprep.subr.bf16.mxu0 %v1700_v31 }
  0x41   : > { %805 = vmatprep.subr.bf16.mxu1 %v1702_v32 }
  0x43   : > { %560 = vmatpush1.bf16.msra.mxu0 %v1704_v41 }
  0x44   : > { %806 = vmatpush1.bf16.msra.mxu1 %v1705_v42  ;;  %1021 = vmatprep.subr.bf16.mxu0 %v1708_v43 }
  0x45   : > { %1569 = vmatprep.subr.bf16.mxu1 %v1708_v43 }
  0x46   : > { %562 = vmatmul.mubr.bf16.vlgmr.msra.gmra.mrb[0].mxu0 %v2041_v46 }
  0x47   : > { %808 = vmatmul.mubr.bf16.vlgmr.msra.gmra.mrb[0].mxu1 %v2041_v46  ;;  %1022 = vmatpush1.bf16.msra.mxu0 %v1706_v50 }
  0x48   : > { %1585 = vmatpush1.bf16.msra.mxu1 %v1706_v50  ;;  %1023 = vmatprep.subr.bf16.mxu0 %v1711_v51 }
  0x49   : > { %1570 = vmatprep.subr.bf16.mxu1 %v1711_v51  ;;  %571 = vmatprep.mubr.bf16.mxu0 %v336_v52 }
  0x4a   : > { %817 = vmatprep.mubr.bf16.mxu1 %v336_v52 }
  0x4b   : > { %1024 = vmatpush1.bf16.msra.mxu0 %v1709_v55 }
  0x4c   : > { %1586 = vmatpush1.bf16.msra.mxu1 %v1709_v55  ;;  %1025 = vmatprep.subr.bf16.mxu0 %v1714_v57 }
  0x4d   : > { %1571 = vmatprep.subr.bf16.mxu1 %v1714_v57 }
  0x4e   : > { %572 = vmatmul.mubr.bf16.gmra.mrb[4].mxu0 %v2057_v58 }
  0x4f   : > { %818 = vmatmul.mubr.bf16.gmra.mrb[4].mxu1 %v2057_v58  ;;  %1026 = vmatpush1.bf16.msra.mxu0 %v1712_v59 }
  0x50   : > { %1587 = vmatpush1.bf16.msra.mxu1 %v1712_v59  ;;  %1027 = vmatprep.subr.bf16.mxu0 %v1717_v60 }
  0x51   : > { %1572 = vmatprep.subr.bf16.mxu1 %v1717_v60  ;;  %1053 = vmatprep.mubr.bf16.mxu0 %v2010_v20  ;;  %v1753_v20 = vld [vmem:[%s2184_s3 + $0x2f4] ss:$8 sps:$4 sm:$0xff]  }
  0x52   : > { %1063 = vmatprep.mubr.bf16.mxu1 %v336_v52 }
  0x53   : > { %1028 = vmatpush1.bf16.msra.mxu0 %v1715_v61 }
  0x54   : > { %1588 = vmatpush1.bf16.msra.mxu1 %v1715_v61  ;;  %1029 = vmatprep.subr.bf16.mxu0 %v1720_v62 }
  0x55   : > { %1573 = vmatprep.subr.bf16.mxu1 %v1720_v62 }
  0x57   : > { %1030 = vmatpush1.bf16.msra.mxu0 %v1718_v63 }
  0x58   : > { %1589 = vmatpush1.bf16.msra.mxu1 %v1718_v63  ;;  %1031 = vmatprep.subr.bf16.mxu0 %v1723_v0 }
  0x59   : > { %1574 = vmatprep.subr.bf16.mxu1 %v1723_v0 }
  0x5b   : > { %1032 = vmatpush1.bf16.msra.mxu0 %v1721_v1 }
  0x5c   : > { %1590 = vmatpush1.bf16.msra.mxu1 %v1721_v1  ;;  %1033 = vmatprep.subr.bf16.mxu0 %v1726_v2 }
  0x5d   : > { %1575 = vmatprep.subr.bf16.mxu1 %v1726_v2  ;;  %v1156_v2 = vld [vmem:[%s2185_s4] sm:$0x3] }
  0x5f   : > { %1034 = vmatpush1.bf16.msra.mxu0 %v1724_v3 }
  0x60   : > { %1591 = vmatpush1.bf16.msra.mxu1 %v1724_v3  ;;  %1035 = vmatprep.subr.bf16.mxu0 %v1729_v4 }
  0x61   : > { %1576 = vmatprep.subr.bf16.mxu1 %v1729_v4 }
  0x63   : > { %1036 = vmatpush1.bf16.msra.mxu0 %v1727_v5 }
  0x64   : > { %1592 = vmatpush1.bf16.msra.mxu1 %v1727_v5  ;;  %1037 = vmatprep.subr.bf16.mxu0 %v1732_v6 }
  0x65   : > { %1577 = vmatprep.subr.bf16.mxu1 %v1732_v6 }
  0x67   : > { %1038 = vmatpush1.bf16.msra.mxu0 %v1730_v7 }
  0x68   : > { %1593 = vmatpush1.bf16.msra.mxu1 %v1730_v7  ;;  %1039 = vmatprep.subr.bf16.mxu0 %v1735_v8 }
  0x69   : > { %1578 = vmatprep.subr.bf16.mxu1 %v1735_v8 }
  0x6b   : > { %1040 = vmatpush1.bf16.msra.mxu0 %v1733_v9 }
  0x6c   : > { %1594 = vmatpush1.bf16.msra.mxu1 %v1733_v9  ;;  %1041 = vmatprep.subr.bf16.mxu0 %v1738_v10  ;;  %v1161_v9 = vrot.slane %v1156_v2, %v1978_v56 }
  0x6d   : > { %1579 = vmatprep.subr.bf16.mxu1 %v1738_v10 }
  0x6f   : > { %1042 = vmatpush1.bf16.msra.mxu0 %v1736_v11 }
  0x70   : > { %1595 = vmatpush1.bf16.msra.mxu1 %v1736_v11  ;;  %1043 = vmatprep.subr.bf16.mxu0 %v1741_v12 }
  0x71   : > { %1580 = vmatprep.subr.bf16.mxu1 %v1741_v12 }
  0x73   : > { %1044 = vmatpush1.bf16.msra.mxu0 %v1739_v13 }
  0x74   : > { %1596 = vmatpush1.bf16.msra.mxu1 %v1739_v13  ;;  %1045 = vmatprep.subr.bf16.mxu0 %v1744_v14 }
  0x75   : > { %1581 = vmatprep.subr.bf16.mxu1 %v1744_v14 }
  0x77   : > { %1046 = vmatpush1.bf16.msra.mxu0 %v1742_v15 }
  0x78   : > { %1597 = vmatpush1.bf16.msra.mxu1 %v1742_v15  ;;  %1047 = vmatprep.subr.bf16.mxu0 %v1747_v16 }
  0x79   : > { %1582 = vmatprep.subr.bf16.mxu1 %v1747_v16 }
  0x7b   : > { %1048 = vmatpush1.bf16.msra.mxu0 %v1745_v17 }
  0x7c   : > { %1598 = vmatpush1.bf16.msra.mxu1 %v1745_v17  ;;  %1049 = vmatprep.subr.bf16.mxu0 %v1750_v18 }
  0x7d   : > { %1583 = vmatprep.subr.bf16.mxu1 %v1750_v18 }
  0x7f   : > { %1050 = vmatpush1.bf16.msra.mxu0 %v1748_v19 }
  0x80   : > { %1599 = vmatpush1.bf16.msra.mxu1 %v1748_v19  ;;  %1051 = vmatprep.subr.bf16.mxu0 %v1753_v20  ;;  %v1165_v19 = vrot.slane %v1156_v2, %v1958_v47 }
  0x81   : > { %1584 = vmatprep.subr.bf16.mxu1 %v1753_v20 }
  0x83   : > { %1052 = vmatpush1.bf16.msra.mxu0 %v1751_v21 }
  0x84   : > { %1600 = vmatpush1.bf16.msra.mxu1 %v1751_v21 }
  0x86   : > { %1054 = vmatmul.mubr.bf16.vlgmr.msra.gmra.mrb[8].mxu0 %v2041_v46 }
  0x87   : > { %1064 = vmatmul.mubr.bf16.vlgmr.msra.gmra.mrb[8].mxu1 %v2057_v58 }
 0x119   : > { %v563_v22 = vpop.f32.mrb[0].mxu0 }
 0x11a   : > { %v809_v23 = vpop.f32.mrb[0].mxu1  ;;  %v1083_v24 = vrot.slane %v563_v22, 7  ;;  %v565_v25 = vpop.f32.mrb[1].mxu0 }
 0x11b   : > { %v811_v26 = vpop.f32.mrb[1].mxu1  ;;  %v1084_v27 = vrot.slane %v565_v25, 7  ;;  %v567_v28 = vpop.f32.mrb[2].mxu0 }
 0x11c   : > { %v813_v29 = vpop.f32.mrb[2].mxu1  ;;  %v1105_v30 = vsel %vm1082_vm0, 0.0, %v1083_v24  ;;  %v1085_v31 = vrot.slane %v567_v28, 7  ;;  %v569_v32 = vpop.f32.mrb[3].mxu0 }
 0x11d   : > { %v815_v33 = vpop.f32.mrb[3].mxu1  ;;  %v1140_v34 = vadd.f32 %v1105_v30, %v809_v23  ;;  %v1106_v35 = vsel %vm1082_vm0, 0.0, %v1084_v27  ;;  %v1087_v37 = vrot.slane %v569_v32, 7 }
 0x11e   : > { %v1141_v38 = vadd.f32 %v1106_v35, %v811_v26  ;;  %v1086_v39 = vsel %vm1082_vm0, %v1083_v24, %v1085_v31 }
 0x11f   : > { %v1142_v41 = vadd.f32 %v1086_v39, %v813_v29  ;;  %v1088_v42 = vsel %vm1082_vm0, %v1084_v27, %v1087_v37 }
 0x120   : > { %v1143_v43 = vadd.f32 %v1088_v42, %v815_v33 }
 0x121   : > { %v573_v44 = vpop.f32.mrb[4].mxu0 }
 0x122   : > { %v819_v45 = vpop.f32.mrb[4].mxu1  ;;  %v1089_v46 = vrot.slane %v573_v44, 7  ;;  %v575_v48 = vpop.f32.mrb[5].mxu0 }
 0x123   : > { %v821_v49 = vpop.f32.mrb[5].mxu1  ;;  %v1091_v50 = vrot.slane %v575_v48, 7  ;;  %v577_v51 = vpop.f32.mrb[6].mxu0 }
 0x124   : > { %v823_v52 = vpop.f32.mrb[6].mxu1  ;;  %v1090_v53 = vsel %vm1082_vm0, %v1085_v31, %v1089_v46  ;;  %v1093_v54 = vrot.slane %v577_v51, 7  ;;  %v579_v55 = vpop.f32.mrb[7].mxu0 }
 0x125   : > { %v825_v57 = vpop.f32.mrb[7].mxu1  ;;  %v1144_v58 = vadd.f32 %v1090_v53, %v819_v45  ;;  %v1092_v59 = vsel %vm1082_vm0, %v1087_v37, %v1091_v50  ;;  %v1095_v60 = vrot.slane %v579_v55, 7 }
 0x126   : > { %v1145_v61 = vadd.f32 %v1092_v59, %v821_v49  ;;  %v1094_v62 = vsel %vm1082_vm0, %v1089_v46, %v1093_v54 }
 0x127   : > { %v1146_v63 = vadd.f32 %v1094_v62, %v823_v52  ;;  %v1096_v0 = vsel %vm1082_vm0, %v1091_v50, %v1095_v60 }
 0x128   : > { %v1147_v1 = vadd.f32 %v1096_v0, %v825_v57 }
 0x159   : > { %v1055_v3 = vpop.f32.mrb[8].mxu0 }
 0x15a   : > { %v1065_v4 = vpop.f32.mrb[8].mxu1  ;;  %v1057_v6 = vpop.f32.mrb[9].mxu0  ;;  %v1116_v11 = vrot.slane %v1055_v3, 1 }
 0x15b   : > { %v1122_v5 = vrot.slane %v1065_v4, 1  ;;  %v1067_v7 = vpop.f32.mrb[9].mxu1  ;;  %v1059_v8 = vpop.f32.mrb[10].mxu0  ;;  %v1119_v17 = vrot.slane %v1057_v6, 1 }
 0x15c   : > { %v1069_v10 = vpop.f32.mrb[10].mxu1  ;;  %v1124_v12 = vrot.slane %v1067_v7, 1  ;;  %v1117_v13 = vrot.slane %v1059_v8, 1  ;;  %v1061_v15 = vpop.f32.mrb[11].mxu0 }
 0x15d   : > { %v1126_v14 = vrot.slane %v1069_v10, 1  ;;  %v1071_v16 = vpop.f32.mrb[11].mxu1  ;;  %v1120_v18 = vrot.slane %v1061_v15, 1 }
 0x15e   : > { %v1128_v20 = vrot.slane %v1071_v16, 1  ;;  %v1118_v21 = vsel %vm1115_vm1, %v1116_v11, %v1117_v13  ;;  %v1123_v22 = vsel %vm1115_vm1, %v1117_v13, %v1122_v5 }
 0x15f   : > { %v1127_v23 = vsel %vm1115_vm1, %v1122_v5, %v1126_v14  ;;  %v1138_v56 = vsel %vm1115_vm1, %v1126_v14, 0.0  ;;  %v1148_v24 = vadd.f32 %v1140_v34, %v1118_v21  ;;  %v1150_v25 = vadd.f32 %v1142_v41, %v1123_v22 }
 0x160   : > { %v1152_v26 = vadd.f32 %v1144_v58, %v1127_v23  ;;  %v1154_v27 = vadd.f32 %v1146_v63, %v1138_v56  ;;  %v1121_v28 = vsel %vm1115_vm1, %v1119_v17, %v1120_v18  ;;  %v1125_v29 = vsel %vm1115_vm1, %v1120_v18, %v1124_v12 }
 0x161   : > { %v1129_v30 = vsel %vm1115_vm1, %v1124_v12, %v1128_v20  ;;  %v1139_v47 = vsel %vm1115_vm1, %v1128_v20, 0.0  ;;  %v1168_v31 = vadd.f32 %v1161_v9, %v1148_v24  ;;  %v1170_v32 = vadd.f32 %v1161_v9, %v1150_v25 }
 0x162   : > { %v1172_v33 = vadd.f32 %v1161_v9, %v1152_v26  ;;  %v1174_v35 = vadd.f32 %v1161_v9, %v1154_v27  ;;  %v1149_v37 = vadd.f32 %v1141_v38, %v1121_v28  ;;  %v1151_v39 = vadd.f32 %v1143_v43, %v1125_v29 }
 0x163   : > { %v1153_v42 = vadd.f32 %v1145_v61, %v1129_v30  ;;  %v1155_v34 = vadd.f32 %v1147_v1, %v1139_v47  ;;  %v1204_v41 = vadd.f32 %v1170_v32, %v1168_v31  ;;  %v1245_v44 = vmul.f32 %v1168_v31, %v1168_v31 }
 0x164   : > { %v1247_v45 = vmul.f32 %v1170_v32, %v1170_v32  ;;  %v1249_v46 = vmul.f32 %v1172_v33, %v1172_v33  ;;  %v1169_v48 = vadd.f32 %v1165_v19, %v1149_v37  ;;  %v1171_v49 = vadd.f32 %v1165_v19, %v1151_v39 }
 0x165   : > { %v1173_v50 = vadd.f32 %v1165_v19, %v1153_v42  ;;  %v1205_v52 = vadd.f32 %v1204_v41, %v1172_v33  ;;  %v1251_v53 = vmul.f32 %v1174_v35, %v1174_v35  ;;  %v1175_v54 = vadd.f32 %v1165_v19, %v1155_v34 }
 0x166   : > { %v1253_v51 = vadd.f32 %v1247_v45, %v1245_v44  ;;  %v1565_v38 = vpack.c.bf16 %v1169_v48, %v1168_v31  ;;  %v1566_v43 = vpack.c.bf16 %v1171_v49, %v1170_v32  ;;  %v1213_v55 = vadd.f32 %v1171_v49, %v1169_v48 }
 0x167   : > { %v1246_v57 = vmul.f32 %v1169_v48, %v1169_v48  ;;  %v1206_v58 = vadd.f32 %v1205_v52, %v1174_v35  ;;  %v1248_v60 = vmul.f32 %v1171_v49, %v1171_v49  ;;  %v1567_v61 = vpack.c.bf16 %v1173_v50, %v1172_v33 }
 0x168   : > { %v1254_v59 = vadd.f32 %v1253_v51, %v1249_v46  ;;  %1200 = vst [vmem:[%s266_s19] sm:$0xff] %v1565_v38  ;;  %v1568_v62 = vpack.c.bf16 %v1175_v54, %v1174_v35  ;;  %v1214_v63 = vadd.f32 %v1213_v55, %v1173_v50  ;;  %1201 = vst [vmem:[%s266_s19 + $0x8] sm:$0xff] %v1566_v43  ;;  %v1762_v14 = vmov 1966171168  }
 0x169   : > { %v1207_v0 = vrot.slane %v1206_v58, 4  ;;  %v1262_v2 = vadd.f32 %v1248_v60, %v1246_v57  ;;  %v1250_v3 = vmul.f32 %v1173_v50, %v1173_v50  ;;  %1202 = vst [vmem:[%s266_s19 + $0x10] sm:$0xff] %v1567_v61  ;;  %v1252_v7 = vmul.f32 %v1175_v54, %v1175_v54 }
 0x16a   : > { %v1255_v1 = vadd.f32 %v1254_v59, %v1251_v53  ;;  %v1215_v4 = vadd.f32 %v1214_v63, %v1175_v54  ;;  %1203 = vst [vmem:[%s266_s19 + $0x18] sm:$0xff] %v1568_v62  ;;  %v1226_v15 = vunpack.c.l.s4 %v1762_v14 }
 0x16b   : > { %v1208_v5 = vadd.f32 %v1207_v0, %v1206_v58  ;;  %v1263_v8 = vadd.f32 %v1262_v2, %v1250_v3 }
 0x16c   : > { %v1256_v6 = vrot.slane %v1255_v1, 4  ;;  %v1216_v9 = vrot.slane %v1215_v4, 4  ;;  %v1227_v56 = vunpack.c.0.s8 %v1226_v15 }
 0x16d   : > { %v1209_v10 = vrot.slane %v1208_v5, 2  ;;  %v1264_v12 = vadd.f32 %v1263_v8, %v1252_v7 }
 0x16e   : > { %v1257_v11 = vadd.f32 %v1256_v6, %v1255_v1  ;;  %v1217_v13 = vadd.f32 %v1216_v9, %v1215_v4  ;;  %v1230_v30 = vsub.s32 %v1227_v56, %v1929_v40 }
 0x16f   : > { %v1210_v16 = vadd.f32 %v1209_v10, %v1208_v5  ;;  %v1265_v18 = vrot.slane %v1264_v12, 4 }
 0x170   : > { %v1258_v17 = vrot.slane %v1257_v11, 2  ;;  %v1218_v19 = vrot.slane %v1217_v13, 2 }
 0x171   : > { %v1211_v20 = vrot.slane %v1210_v16, 1  ;;  %v1266_v22 = vadd.f32 %v1265_v18, %v1264_v12 }
 0x172   : > { %v1259_v21 = vadd.f32 %v1258_v17, %v1257_v11  ;;  %v1219_v23 = vadd.f32 %v1218_v19, %v1217_v13 }
 0x173   : > { %v1267_v25 = vrot.slane %v1266_v22, 2  ;;  %v1212_v26 = vadd.f32 %v1211_v20, %v1210_v16 }
 0x174   : > { %v1260_v24 = vrot.slane %v1259_v21, 1  ;;  %v1220_v27 = vrot.slane %v1219_v23, 1 }
 0x175   : > { %v1268_v28 = vadd.f32 %v1267_v25, %v1266_v22 }
 0x176   : > { %v1221_v29 = vadd.f32 %v1220_v27, %v1219_v23  ;;  %v1261_v47 = vadd.f32 %v1260_v24, %v1259_v21 }
 0x177   : > { %v1269_v31 = vrot.slane %v1268_v28, 1 }
 0x178   : > { %v1224_v32 = vcombine.low %v1212_v26, %v1221_v29 }
 0x179   : > { %v1270_v33 = vadd.f32 %v1269_v31, %v1268_v28 }
 0x17a   : > { %v1231_v35 = vrot.slane %v1224_v32, %v1230_v30 }
 0x17b   : > { %v1273_v37 = vcombine.low %v1261_v47, %v1270_v33 }
 0x17c   : > { %v1238_v39 = vrot.slane %v1231_v35, %v1230_v30 }
 0x17d   : > { %v1280_v42 = vrot.slane %v1273_v37, %v1230_v30 }
 0x17e   : > { %1244 = vst.msk [vmem:[%s272_s23] ss:$2 sm:$0x3] %vm1242_vm2, %v1238_v39 }
 0x17f   : > { %v1287_v34 = vrot.slane %v1280_v42, %v1230_v30 }
 0x181   : > { %1559 = vst.msk [vmem:[%s272_s23 + $0x1] ss:$2 sm:$0x3] %vm1242_vm2, %v1287_v34 }
 0x182 PF: > { %s17_s21 = sadd.s32 1, %s1760_s21  }
 0x183   : > { %p14_p5 = scmp.ge.s32.totalorder %s17_s21, 4  }
 0x185   :  { %16 = sbr.rel (!%p14_p5) target bundleno = 1 (0x1), region = 85 }

// kernel: full_mask_decoder_forward.13
= control target key start
LH: loop header
LB: loop body
LE: loop exit
PB: predicated region body
PF: predicated region fallthrough
CT: control target
= control target key end

     0   :  { %14 = vsyncpa [#allocation3], 0  ;;  %s2960_s0 = inlined_call_operand.vmem [shape: bf16[128,256], index: 0, kind: input, shape index: {}]   ;;  %s2961_s1 = inlined_call_operand.vmem [shape: f32[1,256], index: 1, kind: input, shape index: {}]   ;;  %s2962_s2 = inlined_call_operand.vmem [shape: f32[1,256], index: 2, kind: input, shape index: {}]   ;;  %s2963_s3 = inlined_call_operand.vmem [shape: f32[16,256], index: 3, kind: input, shape index: {}]   ;;  %s2964_s4 = inlined_call_operand.vmem [shape: f32[64,8], index: 4, kind: input, shape index: {}]   ;;  %s2965_s5 = inlined_call_operand.vmem [shape: f32[256,64], index: 5, kind: input, shape index: {}]   ;;  %s2966_s6 = inlined_call_operand.vmem [shape: bf16[256,64], index: 6, kind: input, shape index: {}]   ;;  %s2967_s7 = inlined_call_operand.vmem [shape: bf16[6,64,64], index: 7, kind: input, shape index: {}]   ;;  %s2968_s8 = inlined_call_operand.vmem [shape: f32[3,64], index: 8, kind: input, shape index: {}]   ;;  %s2969_s9 = inlined_call_operand.hbm [shape: f32[128,64], index: 9, kind: output, shape index: {}]  }
   0x1   :  { %16 = vsyncpa [#allocation3 + $0x1], 0  ;;  %s2435_s30 = smov 0   ;;  %s2437_s10 = smov 0  }
   0x2   :  { %s2439_s11 = smov 0   ;;  %s2441_s12 = smov 0  }
   0x3 LB: > { %s2456_s13 = sadd.s32 4294967295, %s2380_s12   ;;  %s1766_s14 = sadd.s32 4294967294, %s2380_s12   ;;  %s2380_s12 = sphi %s2441_s12, %s2975_s12   ;;  %s2376_s11 = sphi %s2439_s11, %s2974_s11   ;;  %s2372_s10 = sphi %s2437_s10, %s2973_s10   ;;  %s2368_s30 = sphi %s2435_s30, %s2972_s30  }
   0x4   : > { %s2460_s15 = sadd.s32 1, %s2380_s12   ;;  %s228_s16 = sadd.s32 1, %s2376_s11 }
   0x5   : > { %s225_s17 = ssub.s32 %s2380_s12, %s2460_s15  ;;  %p238_p0 = scmp.ne.s32.totalorder %s2376_s11, %s2372_s10 }
   0x6   : > { %p226_p1 = scmp.eq.s32.totalorder %s225_s17, 0  ;;  %p239_p2 = scmp.eq.s32.totalorder %s2456_s13, 1 }
   0x7   : > { %p244_p3 = scmp.ne.s32.totalorder %s2372_s10, %s2368_s30  ;;  %p245_p4 = scmp.eq.s32.totalorder %s1766_s14, 1 }
   0x8   : > { %s2471_s18 = scalar_select %p226_p1, %s2376_s11, %s228_s16  }
   0x9   : > { %p2473_p5 = por %p239_p2, %p238_p0  ;;  %p2477_p6 = por %p245_p4, %p244_p3 }
   0xa   : > { %p1769_p7 = scmp.ge.s32.totalorder %s2380_s12, 1  ;;  %p302_p8 = scmp.lt.s32.totalorder %s2380_s12, 3 }
   0xc   : > { %p303_p9 = pnand %p1769_p7, %p302_p8 }
   0xd   : > { %v678_v0 = vld [vmem:[%s2965_s5 + $0x80] sm:$0xff] (!%p303_p9)  ;;  %v679_v1 = vld [vmem:[%s2965_s5 + $0x88] sm:$0xff] (!%p303_p9)  ;;  %p351_p10 = scmp.lt.s32.totalorder (!%p303_p9), %s2456_s13, 1  ;;  %v680_v5 = vld [vmem:[%s2965_s5 + $0x90] sm:$0xff] (!%p303_p9)  ;;  %s1771_s28 = sshll.u32 (!%p303_p9), %s2456_s13, 3  ;;  %vm777_vm0 = vcmask (!%p303_p9), 64512  }
   0xe   : > { %306 = sbr.rel (%p303_p9) target bundleno = 806 (0x326), region = 56  ;;  %v662_v2 = vld [vmem:[%s2965_s5] sm:$0xff] (!%p303_p9)  ;;  %v2141_v3 = vpack.c.bf16 (!%p303_p9), %v679_v1, %v678_v0  ;;  %v663_v4 = vld [vmem:[%s2965_s5 + $0x8] sm:$0xff] (!%p303_p9)  ;;  %v681_v6 = vld [vmem:[%s2965_s5 + $0x98] sm:$0xff] (!%p303_p9)  ;;  %p345_p11 = scmp.lt.s32.totalorder (!%p303_p9), %s1771_s28, 15  ;;  %v384_v0 = vlaneseq (!%p303_p9)  ;;  %vm956_vm1 = vcmask (!%p303_p9), 523264  }
   0xf   : > { %v2143_v7 = vpack.c.bf16 (!%p303_p9), %v663_v4, %v662_v2  ;;  %v2145_v8 = vpack.c.bf16 (!%p303_p9), %v681_v6, %v680_v5  ;;  %v664_v9 = vld [vmem:[%s2965_s5 + $0x10] sm:$0xff] (!%p303_p9)  ;;  %v665_v10 = vld [vmem:[%s2965_s5 + $0x18] sm:$0xff] (!%p303_p9)  ;;  %v682_v11 = vld [vmem:[%s2965_s5 + $0xa0] sm:$0xff] (!%p303_p9)  ;;  %vm1535_vm2 = vcmask (!%p303_p9), 1040384   ;;  %vm1568_vm3 = vcmask (!%p303_p9), 1046528   ;;  %s341_s26 = sand.u32 (!%p303_p9), 1, %s2372_s10  }
  0x10   : > { %2142 = vmatprep.subr.bf16.mxu1 (!%p303_p9), %v2141_v3  ;;  %v683_v12 = vld [vmem:[%s2965_s5 + $0xa8] sm:$0xff] (!%p303_p9)  ;;  %v2147_v13 = vpack.c.bf16 (!%p303_p9), %v665_v10, %v664_v9  ;;  %v666_v15 = vld [vmem:[%s2965_s5 + $0x20] sm:$0xff] (!%p303_p9)  ;;  %v684_v17 = vld [vmem:[%s2965_s5 + $0xb0] sm:$0xff] (!%p303_p9)  ;;  %v385_v1 = vshrl.u32 (!%p303_p9), %v384_v0, 7  ;;  %s2382_s24 = smov (!%p303_p9), [#allocation2]  }
  0x11   : > { %2144 = vmatpush3.bf16.msra.mxu1 (!%p303_p9), %v2143_v7  ;;  %v2149_v14 = vpack.c.bf16 (!%p303_p9), %v683_v12, %v682_v11  ;;  %v667_v16 = vld [vmem:[%s2965_s5 + $0x28] sm:$0xff] (!%p303_p9)  ;;  %v685_v18 = vld [vmem:[%s2965_s5 + $0xb8] sm:$0xff] (!%p303_p9)  ;;  %v668_v21 = vld [vmem:[%s2965_s5 + $0x30] sm:$0xff] (!%p303_p9)  ;;  %s2322_s25 = sshll.u32 (!%p303_p9), %s2382_s24, 4  ;;  %s2323_s25 = int_to_ptr.vmem [resolvable:$false] %s2322_s25 }
  0x12   : > { %2146 = vmatprep.subr.bf16.mxu1 (!%p303_p9), %v2145_v8  ;;  %v2151_v19 = vpack.c.bf16 (!%p303_p9), %v667_v16, %v666_v15  ;;  %v2153_v20 = vpack.c.bf16 (!%p303_p9), %v685_v18, %v684_v17  ;;  %v669_v22 = vld [vmem:[%s2965_s5 + $0x38] sm:$0xff] (!%p303_p9)  ;;  %v686_v23 = vld [vmem:[%s2965_s5 + $0xc0] sm:$0xff] (!%p303_p9)  ;;  %v687_v24 = vld [vmem:[%s2965_s5 + $0xc8] sm:$0xff] (!%p303_p9)  ;;  %v390_v2 = vsub.s32 (!%p303_p9), 1, %v385_v1  ;;  %v386_v6 = vsub.s32 (!%p303_p9), 0, %v385_v1 }
  0x13   : > { %v670_v26 = vld [vmem:[%s2965_s5 + $0x40] sm:$0xff] (!%p303_p9)  ;;  %v671_v27 = vld [vmem:[%s2965_s5 + $0x48] sm:$0xff] (!%p303_p9)  ;;  %v2155_v28 = vpack.c.bf16 (!%p303_p9), %v669_v22, %v668_v21  ;;  %v688_v29 = vld [vmem:[%s2965_s5 + $0xd0] sm:$0xff] (!%p303_p9)  ;;  %v2157_v32 = vpack.c.bf16 (!%p303_p9), %v687_v24, %v686_v23 }
  0x14   : > { %v689_v30 = vld [vmem:[%s2965_s5 + $0xd8] sm:$0xff] (!%p303_p9)  ;;  %v2246_v31 = vld [vmem:[%s2966_s6 + $0x40] sm:$0xff] (!%p303_p9)   ;;  %v2248_v34 = vld [vmem:[%s2966_s6 + $0x48] sm:$0xff] (!%p303_p9)   ;;  %v2159_v38 = vpack.c.bf16 (!%p303_p9), %v671_v27, %v670_v26 }
  0x15   : > { %s352_s27 = scalar_select %p351_p10, %s2456_s13, 1  ;;  %2148 = vmatpush3.bf16.msra.mxu1 %v2147_v13  ;;  %v2247_v33 = vld [vmem:[%s2966_s6] sm:$0xff]   ;;  %1899 = vmatprep.subr.bf16.mxu0 %v2246_v31  ;;  %v672_v35 = vld [vmem:[%s2965_s5 + $0x50] sm:$0xff]  ;;  %v673_v36 = vld [vmem:[%s2965_s5 + $0x58] sm:$0xff]  ;;  %v2161_v40 = vpack.c.bf16 %v689_v30, %v688_v29 }
  0x16   : > { %2150 = vmatprep.subr.bf16.mxu1 %v2149_v14  ;;  %1900 = vmatpush3.bf16.msra.mxu0 %v2247_v33  ;;  %v2249_v37 = vld [vmem:[%s2966_s6 + $0x8] sm:$0xff]   ;;  %v2250_v39 = vld [vmem:[%s2966_s6 + $0x50] sm:$0xff]   ;;  %v690_v41 = vld [vmem:[%s2965_s5 + $0xe0] sm:$0xff]  ;;  %v2163_v46 = vpack.c.bf16 %v673_v36, %v672_v35  ;;  %s2977_s28 = smov (!%p345_p11, %s1771_s28), 15 }
  0x17   : > { %s1897_s14 = sshll.u32 %s352_s27, 4  ;;  %1901 = vmatprep.subr.bf16.mxu0 %v2248_v34  ;;  %v691_v42 = vld [vmem:[%s2965_s5 + $0xe8] sm:$0xff]  ;;  %v674_v43 = vld [vmem:[%s2965_s5 + $0x60] sm:$0xff]  ;;  %v2251_v45 = vld [vmem:[%s2966_s6 + $0x10] sm:$0xff]   ;;  %s1898_s27 = sshll.u32 %s2456_s13, 10 }
  0x18   : > { %s2530_s29 = scalar_lea.vmem %s2963_s3, %s1897_s14  ;;  %v675_v44 = vld [vmem:[%s2965_s5 + $0x68] sm:$0xff]  ;;  %v2252_v47 = vld [vmem:[%s2966_s6 + $0x58] sm:$0xff]   ;;  %v2165_v48 = vpack.c.bf16 %v691_v42, %v690_v41  ;;  %v692_v49 = vld [vmem:[%s2965_s5 + $0xf0] sm:$0xff]  ;;  %s2907_s22 = scalar_lea.hbm %s2969_s9, %s1898_s27 }
  0x19   : > { %v661_v25 = vld [vmem:[%s2530_s29 + $0x8] sm:$0xff]  ;;  %2152 = vmatpush3.bf16.msra.mxu1 %v2151_v19  ;;  %v693_v50 = vld [vmem:[%s2965_s5 + $0xf8] sm:$0xff]  ;;  %v676_v51 = vld [vmem:[%s2965_s5 + $0x70] sm:$0xff]  ;;  %v2167_v54 = vpack.c.bf16 %v675_v44, %v674_v43  ;;  %s2919_s13 = scalar_lea.sflag [#allocation3], %s341_s26  ;;  %s2324_s14 = scalar_lea.vmem %s2323_s25, 2048 }
  0x1a   : > { %758 = vmatprep.mubr.f32.mxu1 %v661_v25  ;;  %2154 = vmatprep.subr.bf16.mxu1 %v2153_v20  ;;  %v677_v52 = vld [vmem:[%s2965_s5 + $0x78] sm:$0xff]  ;;  %v2254_v55 = vld [vmem:[%s2966_s6 + $0x60] sm:$0xff]   ;;  %v2169_v56 = vpack.c.bf16 %v693_v50, %v692_v49  ;;  %v2256_v58 = vld [vmem:[%s2966_s6 + $0x68] sm:$0xff]  }
  0x1b   : > { %1902 = vmatpush3.bf16.msra.mxu0 %v2249_v37  ;;  %v2253_v53 = vld [vmem:[%s2966_s6 + $0x18] sm:$0xff]   ;;  %v2255_v57 = vld [vmem:[%s2966_s6 + $0x20] sm:$0xff]   ;;  %v2171_v59 = vpack.c.bf16 %v677_v52, %v676_v51  ;;  %v2257_v60 = vld [vmem:[%s2966_s6 + $0x28] sm:$0xff]  }
  0x1c   : > { %1903 = vmatprep.subr.bf16.mxu0 %v2250_v39  ;;  %v660_v61 = vld [vmem:[%s2530_s29] sm:$0xff]  ;;  %v2258_v62 = vld [vmem:[%s2966_s6 + $0x70] sm:$0xff]   ;;  %s1896_s29 = sshll.u32 %s2977_s28, 3  ;;  %v2260_v22 = vld [vmem:[%s2966_s6 + $0x78] sm:$0xff]   ;;  %s1770_s28 = sshll.u32 %s341_s26, 6 }
  0x1d   : > { %2156 = vmatpush3.bf16.msra.mxu1 %v2155_v28  ;;  %v2259_v63 = vld [vmem:[%s2966_s6 + $0x30] sm:$0xff]   ;;  %s2634_s17 = scalar_lea.vmem %s2960_s0, %s1896_s29  ;;  %v382_v5 = vld [vmem:[%s2961_s1] sm:$0x3]  ;;  %v2261_v25 = vld [vmem:[%s2966_s6 + $0x38] sm:$0xff]   ;;  %s2890_s29 = scalar_lea.vmem [#allocation2], %s1770_s28 }
  0x1e   : > { %2158 = vmatprep.subr.bf16.mxu1 %v2157_v32  ;;  %v358_v3 = vld [vmem:[%s2634_s17] sm:$0xff]  ;;  %v359_v4 = vld [vmem:[%s2634_s17 + $0x8] sm:$0xff]  ;;  %v2641_v9 = vrot.slane %v382_v5, %v390_v2  ;;  %v2643_v12 = vrot.slane %v382_v5, %v386_v6  ;;  %v360_v30 = vld [vmem:[%s2634_s17 + $0x10] sm:$0xff]  ;;  %s1692_s16 = sshll.u32 %s2890_s29, 4  ;;  %s2909_s16 = int_to_ptr.vmem [resolvable:$true] %s1692_s16 }
  0x1f   : > { %1904 = vmatpush3.bf16.msra.mxu0 %v2251_v45  ;;  %v367_v7 = vunpack.c.h.bf16 %v358_v3  ;;  %v369_v8 = vunpack.c.h.bf16 %v359_v4  ;;  %v366_v10 = vunpack.c.l.bf16 %v358_v3  ;;  %v368_v11 = vunpack.c.l.bf16 %v359_v4  ;;  %v410_v13 = vld [vmem:[%s2962_s2] sm:$0x3]  ;;  %v361_v31 = vld [vmem:[%s2634_s17 + $0x18] sm:$0xff]  ;;  %v363_v52 = vld [vmem:[%s2634_s17 + $0x28] sm:$0xff]  ;;  %s2318_s23 = scalar_lea.vmem %s2909_s16, 1024  ;;  %p2325_p1 = scmp.lt.s32.totalorder %s2909_s16, %s2323_s25 }
  0x20   : > { %1905 = vmatprep.subr.bf16.mxu0 %v2252_v47  ;;  %v2650_v16 = vrot.slane %v410_v13, %v390_v2  ;;  %v2652_v17 = vrot.slane %v410_v13, %v386_v6  ;;  %v371_v33 = vunpack.c.h.bf16 %v360_v30  ;;  %v373_v34 = vunpack.c.h.bf16 %v361_v31  ;;  %v764_v42 = vld [vmem:[%s2964_s4] sm:$0xff]  ;;  %p2319_p12 = scmp.ne.s32.totalorder %s2909_s16, %s2318_s23  ;;  %p2326_p2 = scmp.lt.s32.totalorder %s2324_s14, %s2318_s23 }
  0x21   : > { %2160 = vmatpush3.bf16.msra.mxu1 %v2159_v38  ;;  %v395_v14 = vmul.f32 %v2641_v9, %v367_v7  ;;  %v397_v15 = vmul.f32 %v2641_v9, %v369_v8  ;;  %v394_v18 = vmul.f32 %v2643_v12, %v366_v10  ;;  %v396_v19 = vmul.f32 %v2643_v12, %v368_v11  ;;  %v362_v51 = vld [vmem:[%s2634_s17 + $0x20] sm:$0xff]  ;;  %v364_v7 = vld [vmem:[%s2634_s17 + $0x30] sm:$0xff]  ;;  %v365_v8 = vld [vmem:[%s2634_s17 + $0x38] sm:$0xff] }
  0x22   : > { %2162 = vmatprep.subr.bf16.mxu1 %v2161_v40  ;;  %v370_v36 = vunpack.c.l.bf16 %v360_v30  ;;  %v372_v37 = vunpack.c.l.bf16 %v361_v31  ;;  %v399_v38 = vmul.f32 %v2641_v9, %v371_v33  ;;  %v401_v39 = vmul.f32 %v2641_v9, %v373_v34  ;;  %p2320_p13 = pnand %p2319_p12, %p2473_p5  ;;  %p2327_p3 = por %p2326_p2, %p2325_p1 }
  0x23   : > { %1906 = vmatpush3.bf16.msra.mxu0 %v2253_v53  ;;  %v423_v20 = vadd.f32 %v2650_v16, %v395_v14  ;;  %v425_v21 = vadd.f32 %v2650_v16, %v397_v15  ;;  %v422_v23 = vadd.f32 %v2652_v17, %v394_v18  ;;  %v424_v24 = vadd.f32 %v2652_v17, %v396_v19 }
  0x24   : > { %1907 = vmatprep.subr.bf16.mxu0 %v2254_v55  ;;  %v398_v40 = vmul.f32 %v2643_v12, %v370_v36  ;;  %v400_v41 = vmul.f32 %v2643_v12, %v372_v37  ;;  %v427_v43 = vadd.f32 %v2650_v16, %v399_v38  ;;  %v429_v44 = vadd.f32 %v2650_v16, %v401_v39  ;;  %v766_v36 = vld [vmem:[%s2964_s4 + $0x10] sm:$0xff]  ;;  %v2264_v37 = vld [vmem:[%s2967_s7 + $0x68] sm:$0xff]   ;;  %v767_v38 = vld [vmem:[%s2964_s4 + $0x18] sm:$0xff]  ;;  %p2321_p0 = pneg %p2320_p13 }
  0x25   : > { %2164 = vmatpush3.bf16.msra.mxu1 %v2163_v46  ;;  %v439_v26 = vmax.f32 %v423_v20, 0.0  ;;  %v441_v27 = vmax.f32 %v425_v21, 0.0  ;;  %v438_v28 = vmax.f32 %v422_v23, 0.0  ;;  %v440_v29 = vmax.f32 %v424_v24, 0.0  ;;  %v2263_v21 = vld [vmem:[%s2967_s7 + $0x80] sm:$0xff]   ;;  %v2265_v24 = vld [vmem:[%s2967_s7 + $0x88] sm:$0xff]  }
  0x26   : > { %2166 = vmatprep.subr.bf16.mxu1 %v2165_v48  ;;  %v426_v45 = vadd.f32 %v2652_v17, %v398_v40  ;;  %v428_v46 = vadd.f32 %v2652_v17, %v400_v41  ;;  %v443_v47 = vmax.f32 %v427_v43, 0.0  ;;  %v445_v48 = vmax.f32 %v429_v44, 0.0  ;;  %v768_v39 = vld [vmem:[%s2964_s4 + $0x20] sm:$0xff]  ;;  %v769_v40 = vld [vmem:[%s2964_s4 + $0x28] sm:$0xff]  ;;  %v770_v41 = vld [vmem:[%s2964_s4 + $0x30] sm:$0xff]  ;;  %p2328_p4 = pnand %p2327_p3, %p2321_p0 }
  0x27   : > { %1908 = vmatpush3.bf16.msra.mxu0 %v2255_v57  ;;  %v455_v32 = vpack.c.bf16 %v441_v27, %v439_v26  ;;  %v454_v35 = vpack.c.bf16 %v440_v29, %v438_v28  ;;  %v377_v55 = vunpack.c.h.bf16 %v363_v52  ;;  %v374_v57 = vunpack.c.l.bf16 %v362_v51  ;;  %v1776_v44 = vld [vmem:[%s2968_s8] ss:$0 sm:$0xff] }
  0x28   : > { %1909 = vmatprep.subr.bf16.mxu0 %v2256_v58  ;;  %v442_v49 = vmax.f32 %v426_v45, 0.0  ;;  %v444_v50 = vmax.f32 %v428_v46, 0.0  ;;  %v457_v53 = vpack.c.bf16 %v445_v48, %v443_v47  ;;  %v376_v58 = vunpack.c.l.bf16 %v363_v52  ;;  %v2266_v48 = vld [vmem:[%s2967_s7 + $0x70] sm:$0xff]  }
  0x29   : > { %2168 = vmatpush3.bf16.msra.mxu1 %v2167_v54  ;;  %627 = vmatprep.mubr.bf16.mxu0 %v455_v32  ;;  %v375_v54 = vunpack.c.h.bf16 %v362_v51  ;;  %v379_v11 = vunpack.c.h.bf16 %v364_v7  ;;  %v381_v13 = vunpack.c.h.bf16 %v365_v8  ;;  %v378_v15 = vunpack.c.l.bf16 %v364_v7 }
  0x2a   : > { %2170 = vmatprep.subr.bf16.mxu1 %v2169_v56  ;;  %v456_v56 = vpack.c.bf16 %v444_v50, %v442_v49  ;;  %v380_v18 = vunpack.c.l.bf16 %v365_v8  ;;  %v2267_v49 = vld [vmem:[%s2967_s7 + $0x90] sm:$0xff]  }
  0x2b   : > { %1910 = vmatpush3.bf16.msra.mxu0 %v2257_v60  ;;  %v405_v60 = vmul.f32 %v2641_v9, %v377_v55  ;;  %v407_v19 = vmul.f32 %v2641_v9, %v379_v11  ;;  %v409_v20 = vmul.f32 %v2641_v9, %v381_v13  ;;  %v2269_v55 = vld [vmem:[%s2967_s7 + $0x98] sm:$0xff]  }
  0x2c   : > { %1911 = vmatprep.subr.bf16.mxu0 %v2258_v62  ;;  %v404_v62 = vmul.f32 %v2643_v12, %v376_v58  ;;  %v408_v23 = vmul.f32 %v2643_v12, %v380_v18 }
  0x2d   : > { %2172 = vmatpush3.bf16.msra.mxu1 %v2171_v59  ;;  %v403_v59 = vmul.f32 %v2641_v9, %v375_v54  ;;  %v433_v0 = vadd.f32 %v2650_v16, %v405_v60  ;;  %v437_v26 = vadd.f32 %v2650_v16, %v409_v20  ;;  %v2268_v54 = vld [vmem:[%s2967_s7 + $0x78] sm:$0xff]  }
  0x2e   : > { %v432_v2 = vadd.f32 %v2652_v17, %v404_v62  ;;  %v436_v27 = vadd.f32 %v2652_v17, %v408_v23  ;;  %v2271_v62 = vld [vmem:[%s2967_s7 + $0x20] sm:$0xff]  }
  0x2f   : > { %1912 = vmatpush3.bf16.msra.mxu0 %v2259_v63  ;;  %v431_v63 = vadd.f32 %v2650_v16, %v403_v59  ;;  %v449_v4 = vmax.f32 %v433_v0, 0.0  ;;  %v453_v29 = vmax.f32 %v437_v26, 0.0  ;;  %v1793_v26 = vld [vmem:[%s2968_s8 + $0x1] ss:$0 sm:$0xff] }
  0x30   : > { %759 = vmatmul.mubr.f32.vlgmr.msra.gmra.mrb[0].mxu1 %v660_v61  ;;  %1913 = vmatprep.subr.bf16.mxu0 %v2260_v22  ;;  %v402_v61 = vmul.f32 %v2643_v12, %v374_v57  ;;  %v448_v6 = vmax.f32 %v432_v2, 0.0  ;;  %v406_v22 = vmul.f32 %v2643_v12, %v378_v15  ;;  %v452_v31 = vmax.f32 %v436_v27, 0.0 }
  0x31   : > { %2033 = vmatprep.mubr.msk.f32.mxu1 %vm777_vm0, %v764_v42  ;;  %v447_v3 = vmax.f32 %v431_v63, 0.0  ;;  %v771_v42 = vld [vmem:[%s2964_s4 + $0x38] sm:$0xff] }
  0x32   : > { %v430_v1 = vadd.f32 %v2652_v17, %v402_v61  ;;  %v434_v9 = vadd.f32 %v2652_v17, %v406_v22  ;;  %v765_v17 = vld [vmem:[%s2964_s4 + $0x8] sm:$0xff]  ;;  %v2270_v61 = vld [vmem:[%s2967_s7] sm:$0xff]  }
  0x33   : > { %1914 = vmatpush3.bf16.msra.mxu0 %v2261_v25  ;;  %v459_v10 = vpack.c.bf16 %v449_v4, %v447_v3  ;;  %v435_v25 = vadd.f32 %v2650_v16, %v407_v19  ;;  %v2262_v16 = vld [vmem:[%s2967_s7 + $0x60] sm:$0xff]  }
  0x34   : > { %v446_v5 = vmax.f32 %v430_v1, 0.0  ;;  %2077 = vmatprep.subr.bf16.mxu0 %v2263_v21  ;;  %v450_v30 = vmax.f32 %v434_v9, 0.0 }
  0x35   : > { %v451_v28 = vmax.f32 %v435_v25, 0.0 }
  0x36   : > { %628 = vmatmul.mubr.bf16.vlgmr.msra.gmra.mrb[0].mxu0 %v454_v35  ;;  %v458_v14 = vpack.c.bf16 %v448_v6, %v446_v5  ;;  %v460_v32 = vpack.c.bf16 %v452_v31, %v450_v30 }
  0x37   : > { %635 = vmatprep.mubr.bf16.mxu0 %v457_v53  ;;  %2078 = vmatpush3.bf16.msra.mxu0 %v2263_v21  ;;  %v461_v12 = vpack.c.bf16 %v453_v29, %v451_v28 }
  0x38   : > { %2079 = vmatprep.subr.bf16.mxu0 %v2265_v24 }
  0x3b   : > { %2080 = vmatpush3.bf16.msra.mxu0 %v2265_v24 }
  0x3c   : > { %2081 = vmatprep.subr.bf16.mxu0 %v2267_v49 }
  0x3e   : > { %636 = vmatmul.mubr.bf16.gmra.mrb[4].mxu0 %v456_v56 }
  0x3f   : > { %643 = vmatprep.mubr.bf16.mxu0 %v459_v10  ;;  %2082 = vmatpush3.bf16.msra.mxu0 %v2267_v49  ;;  %v2278_v49 = vld [vmem:[%s2967_s7 + $0xa0] sm:$0xff]  }
  0x40   : > { %2083 = vmatprep.subr.bf16.mxu0 %v2269_v55 }
  0x43   : > { %2084 = vmatpush3.bf16.msra.mxu0 %v2269_v55  ;;  %v2284_v55 = vld [vmem:[%s2967_s7 + $0xb8] sm:$0xff]  }
  0x44   : > { %2093 = vmatprep.subr.bf16.mxu0 %v2271_v62 }
  0x46   : > { %644 = vmatmul.mubr.bf16.gmra.mrb[8].mxu0 %v458_v14 }
  0x47   : > { %651 = vmatprep.mubr.bf16.mxu0 %v461_v12 }
  0x4e   : > { %652 = vmatmul.mubr.bf16.gmra.mrb[12].mxu0 %v460_v32 }
 0x103   : > { %v1971_v33 = vpop.f32.mrb[0].mxu1 }
 0x104   : > { %v1972_v34 = vpop.f32.mrb[1].mxu1 }
 0x105   : > { %v1973_v35 = vadd.f32 %v1972_v34, %v1971_v33 }
 0x107   : > { %2031 = vmatprep.subr.mxu1 %v1973_v35 }
 0x108   : > { %2032 = vmatpush3.msra.mxu1 %v1973_v35 }
 0x109   : > { %2034 = vmatmul.mubr.msk.f32.vlgmr.msra.gmra.mrb[2].mxu1 %vm777_vm0, %v765_v17  ;;  %2045 = vmatprep.subr.bf16.mxu1 %v2262_v16  ;;  %v1915_v43 = vpop.f32.mrb[0].mxu0  ;;  %v2273_v17 = vld [vmem:[%s2967_s7 + $0x28] sm:$0xff]  }
 0x10a   : > { %2036 = vmatprep.mubr.msk.f32.mxu1 %vm777_vm0, %v766_v36  ;;  %2046 = vmatpush3.bf16.msra.mxu1 %v2262_v16  ;;  %v1916_v45 = vpop.f32.mrb[1].mxu0  ;;  %v2272_v16 = vld [vmem:[%s2967_s7 + $0x8] sm:$0xff]  }
 0x10b   : > { %2047 = vmatprep.subr.bf16.mxu1 %v2264_v37  ;;  %v1917_v46 = vadd.f32 %v1916_v45, %v1915_v43  ;;  %v1918_v47 = vpop.f32.mrb[2].mxu0 }
 0x10c   : > { %v1919_v50 = vpop.f32.mrb[3].mxu0 }
 0x10d   : > { %2037 = vmatmul.mubr.msk.f32.gmra.mrb[4].mxu1 %vm777_vm0, %v767_v38  ;;  %v630_v51 = vadd.f32 %v1917_v46, %v1776_v44  ;;  %v1920_v52 = vadd.f32 %v1919_v50, %v1918_v47  ;;  %v2276_v47 = vld [vmem:[%s2967_s7 + $0x18] sm:$0xff]   ;;  %v2279_v50 = vld [vmem:[%s2967_s7 + $0x40] sm:$0xff]  }
 0x10e   : > { %2039 = vmatprep.mubr.msk.f32.mxu1 %vm777_vm0, %v768_v39  ;;  %2048 = vmatpush3.bf16.msra.mxu1 %v2264_v37 }
 0x10f   : > { %2049 = vmatprep.subr.bf16.mxu1 %v2266_v48  ;;  %v633_v53 = vadd.f32 %v1920_v52, %v1776_v44  ;;  %v2281_v52 = vld [vmem:[%s2967_s7 + $0x48] sm:$0xff]  }
 0x111   : > { %2040 = vmatmul.mubr.msk.f32.gmra.mrb[6].mxu1 %vm777_vm0, %v769_v40  ;;  %v2755_v56 = vpack.c.bf16 %v633_v53, %v630_v51  ;;  %v1921_v57 = vpop.f32.mrb[4].mxu0  ;;  %v2280_v51 = vld [vmem:[%s2967_s7 + $0xa8] sm:$0xff]   ;;  %v2282_v53 = vld [vmem:[%s2967_s7 + $0xb0] sm:$0xff]  }
 0x112   : > { %2042 = vmatprep.mubr.msk.f32.mxu1 %vm777_vm0, %v770_v41  ;;  %2050 = vmatpush3.bf16.msra.mxu1 %v2266_v48  ;;  %v1922_v58 = vpop.f32.mrb[5].mxu0  ;;  %v2274_v41 = vld [vmem:[%s2967_s7 + $0x10] sm:$0xff]   ;;  %v2277_v48 = vld [vmem:[%s2967_s7 + $0x38] sm:$0xff]  }
 0x113   : > { %2051 = vmatprep.subr.bf16.mxu1 %v2268_v54  ;;  %v1924_v59 = vpop.f32.mrb[6].mxu0  ;;  %v1923_v60 = vadd.f32 %v1922_v58, %v1921_v57  ;;  %v2285_v57 = vld [vmem:[%s2967_s7 + $0x58] sm:$0xff]  }
 0x114   : > { %v1925_v63 = vpop.f32.mrb[7].mxu0 }
 0x115   : > { %2043 = vmatmul.mubr.msk.f32.gmra.mrb[8].mxu1 %vm777_vm0, %v771_v42  ;;  %v1926_v0 = vadd.f32 %v1925_v63, %v1924_v59  ;;  %v638_v1 = vadd.f32 %v1923_v60, %v1776_v44  ;;  %v2275_v42 = vld [vmem:[%s2967_s7 + $0x30] sm:$0xff]  }
 0x116   : > { %2052 = vmatpush3.bf16.msra.mxu1 %v2268_v54  ;;  %v2283_v54 = vld [vmem:[%s2967_s7 + $0x50] sm:$0xff]  }
 0x117   : > { %2061 = vmatprep.subr.bf16.mxu1 %v2270_v61  ;;  %v641_v2 = vadd.f32 %v1926_v0, %v1776_v44 }
 0x119   : > { %v2763_v3 = vpack.c.bf16 %v641_v2, %v638_v1  ;;  %v1927_v4 = vpop.f32.mrb[8].mxu0 }
 0x11a   : > { %v1928_v5 = vpop.f32.mrb[9].mxu0 }
 0x11b   : > { %v1930_v6 = vpop.f32.mrb[10].mxu0  ;;  %v1929_v7 = vadd.f32 %v1928_v5, %v1927_v4 }
 0x11c   : > { %v1931_v8 = vpop.f32.mrb[11].mxu0 }
 0x11d   : > { %v1932_v10 = vadd.f32 %v1931_v8, %v1930_v6  ;;  %v646_v11 = vadd.f32 %v1929_v7, %v1776_v44 }
 0x11f   : > { %v649_v13 = vadd.f32 %v1932_v10, %v1776_v44 }
 0x121   : > { %v2765_v14 = vpack.c.bf16 %v649_v13, %v646_v11  ;;  %v1933_v15 = vpop.f32.mrb[12].mxu0 }
 0x122   : > { %v1934_v18 = vpop.f32.mrb[13].mxu0 }
 0x123   : > { %v1935_v19 = vadd.f32 %v1934_v18, %v1933_v15  ;;  %v1936_v20 = vpop.f32.mrb[14].mxu0 }
 0x124   : > { %v1937_v21 = vpop.f32.mrb[15].mxu0 }
 0x125   : > { %v654_v22 = vadd.f32 %v1935_v19, %v1776_v44  ;;  %v1938_v23 = vadd.f32 %v1937_v21, %v1936_v20 }
 0x127   : > { %v657_v24 = vadd.f32 %v1938_v23, %v1776_v44 }
 0x129   : > { %v2767_v25 = vpack.c.bf16 %v657_v24, %v654_v22 }
 0x1dc   : > { %v2035_v9 = vpop.f32.mrb[2].mxu1 }
 0x1dd   : > { %v874_v27 = vadd.f32 %v2035_v9, %v1793_v26  ;;  %v868_v28 = vpop.f32.mrb[3].mxu1 }
 0x1de   : > { %v869_v29 = vadd.f32 %v1793_v26, %v868_v28 }
 0x1e0   : > { %v2772_v30 = vpack.c.bf16 %v874_v27, %v869_v29  ;;  %v2038_v31 = vpop.f32.mrb[4].mxu1 }
 0x1e1   : > { %v884_v12 = vadd.f32 %v2038_v31, %v1793_v26  ;;  %v878_v32 = vpop.f32.mrb[5].mxu1 }
 0x1e2   : > { %v879_v33 = vadd.f32 %v1793_v26, %v878_v32  ;;  %2053 = vmatprep.mubr.msk.bf16.mxu1 %vm956_vm1, %v2772_v30  ;;  %2085 = vmatprep.mubr.msk.bf16.mxu0 %vm956_vm1, %v2772_v30 }
 0x1e4   : > { %v2778_v34 = vpack.c.bf16 %v884_v12, %v879_v33  ;;  %v2041_v35 = vpop.f32.mrb[6].mxu1 }
 0x1e5   : > { %v894_v36 = vadd.f32 %v2041_v35, %v1793_v26  ;;  %v888_v37 = vpop.f32.mrb[7].mxu1 }
 0x1e6   : > { %2054 = vmatmul.mubr.msk.bf16.vlgmr.msra.gmra.mrb[12].mxu1 %vm956_vm1, %v2778_v34  ;;  %2086 = vmatmul.mubr.msk.bf16.vlgmr.msra.gmra.mrb[16].mxu0 %vm956_vm1, %v2778_v34  ;;  %v889_v38 = vadd.f32 %v1793_v26, %v888_v37 }
 0x1e7   : > { %2062 = vmatpush3.bf16.msra.mxu1 %v2270_v61  ;;  %2094 = vmatpush3.bf16.msra.mxu0 %v2271_v62 }
 0x1e8   : > { %v2790_v39 = vpack.c.bf16 %v894_v36, %v889_v38  ;;  %v2044_v40 = vpop.f32.mrb[8].mxu1  ;;  %2063 = vmatprep.subr.bf16.mxu1 %v2272_v16  ;;  %2095 = vmatprep.subr.bf16.mxu0 %v2273_v17 }
 0x1e9   : > { %v904_v43 = vadd.f32 %v2044_v40, %v1793_v26  ;;  %v898_v44 = vpop.f32.mrb[9].mxu1 }
 0x1ea   : > { %v899_v45 = vadd.f32 %v1793_v26, %v898_v44  ;;  %2057 = vmatprep.mubr.msk.bf16.mxu1 %vm956_vm1, %v2790_v39  ;;  %2089 = vmatprep.mubr.msk.bf16.mxu0 %vm956_vm1, %v2790_v39 }
 0x1eb   : > { %2064 = vmatpush3.bf16.msra.mxu1 %v2272_v16  ;;  %2096 = vmatpush3.bf16.msra.mxu0 %v2273_v17 }
 0x1ec   : > { %v914_v46 = vpack.c.bf16 %v904_v43, %v899_v45  ;;  %2065 = vmatprep.subr.bf16.mxu1 %v2274_v41  ;;  %2097 = vmatprep.subr.bf16.mxu0 %v2275_v42 }
 0x1ee   : > { %2058 = vmatmul.mubr.msk.bf16.gmra.mrb[16].mxu1 %vm956_vm1, %v914_v46  ;;  %2090 = vmatmul.mubr.msk.bf16.gmra.mrb[20].mxu0 %vm956_vm1, %v914_v46 }
 0x1ef   : > { %2066 = vmatpush3.bf16.msra.mxu1 %v2274_v41  ;;  %2069 = vmatprep.mubr.msk.bf16.mxu1 %vm956_vm1, %v2755_v56 }
 0x1f0   : > { %2098 = vmatpush3.bf16.msra.mxu0 %v2275_v42  ;;  %2101 = vmatprep.mubr.msk.bf16.mxu0 %vm956_vm1, %v2755_v56 }
 0x1f1   : > { %2067 = vmatprep.subr.bf16.mxu1 %v2276_v47  ;;  %2099 = vmatprep.subr.bf16.mxu0 %v2277_v48 }
 0x1f3   : > { %2068 = vmatpush3.bf16.msra.mxu1 %v2276_v47 }
 0x1f4   : > { %2100 = vmatpush3.bf16.msra.mxu0 %v2277_v48  ;;  %2109 = vmatprep.subr.bf16.mxu1 %v2278_v49 }
 0x1f5   : > { %2125 = vmatprep.subr.bf16.mxu0 %v2279_v50 }
 0x1f6   : > { %2070 = vmatmul.mubr.msk.bf16.vlgmr.msra.gmra.mrb[12].mxu1 %vm956_vm1, %v2763_v3 }
 0x1f7   : > { %2102 = vmatmul.mubr.msk.bf16.vlgmr.msra.gmra.mrb[16].mxu0 %vm956_vm1, %v2763_v3  ;;  %2073 = vmatprep.mubr.msk.bf16.mxu1 %vm956_vm1, %v2765_v14 }
 0x1f8   : > { %2105 = vmatprep.mubr.msk.bf16.mxu0 %vm956_vm1, %v2765_v14  ;;  %2110 = vmatpush3.bf16.msra.mxu1 %v2278_v49 }
 0x1f9   : > { %2126 = vmatpush3.bf16.msra.mxu0 %v2279_v50  ;;  %2111 = vmatprep.subr.bf16.mxu1 %v2280_v51 }
 0x1fa   : > { %2127 = vmatprep.subr.bf16.mxu0 %v2281_v52 }
 0x1fc   : > { %2112 = vmatpush3.bf16.msra.mxu1 %v2280_v51 }
 0x1fd   : > { %2128 = vmatpush3.bf16.msra.mxu0 %v2281_v52  ;;  %2113 = vmatprep.subr.bf16.mxu1 %v2282_v53 }
 0x1fe   : > { %2074 = vmatmul.mubr.msk.bf16.gmra.mrb[16].mxu1 %vm956_vm1, %v2767_v25  ;;  %2129 = vmatprep.subr.bf16.mxu0 %v2283_v54 }
 0x1ff   : > { %2106 = vmatmul.mubr.msk.bf16.gmra.mrb[20].mxu0 %vm956_vm1, %v2767_v25  ;;  %2117 = vmatprep.mubr.msk.bf16.mxu1 %vm956_vm1, %v2772_v30 }
 0x200   : > { %2114 = vmatpush3.bf16.msra.mxu1 %v2282_v53  ;;  %2133 = vmatprep.mubr.msk.bf16.mxu0 %vm956_vm1, %v2755_v56 }
 0x201   : > { %2130 = vmatpush3.bf16.msra.mxu0 %v2283_v54  ;;  %2115 = vmatprep.subr.bf16.mxu1 %v2284_v55 }
 0x202   : > { %2131 = vmatprep.subr.bf16.mxu0 %v2285_v57 }
 0x204   : > { %2116 = vmatpush3.bf16.msra.mxu1 %v2284_v55 }
 0x205   : > { %2132 = vmatpush3.bf16.msra.mxu0 %v2285_v57  ;;  %2173 = vmatprep.subr.bf16.mxu1 %v2279_v50 }
 0x207   : > { %2118 = vmatmul.mubr.msk.bf16.vlgmr.msra.gmra.mrb[20].mxu1 %vm956_vm1, %v2778_v34 }
 0x208   : > { %2134 = vmatmul.mubr.msk.bf16.vlgmr.msra.gmra.mrb[24].mxu0 %vm956_vm1, %v2763_v3  ;;  %2121 = vmatprep.mubr.msk.bf16.mxu1 %vm956_vm1, %v2790_v39 }
 0x209   : > { %2177 = vmatpush3.bf16.msra.mxu1 %v2279_v50  ;;  %v1890_v50 = vld [vmem:[%s2968_s8 + $0x2] ss:$0 sm:$0xff] }
 0x20a   : > { %2174 = vmatprep.subr.bf16.mxu1 %v2281_v52 }
 0x20d   : > { %2178 = vmatpush3.bf16.msra.mxu1 %v2281_v52 }
 0x20e   : > { %2175 = vmatprep.subr.bf16.mxu1 %v2283_v54 }
 0x20f   : > { %2122 = vmatmul.mubr.msk.bf16.gmra.mrb[24].mxu1 %vm956_vm1, %v914_v46 }
 0x210   : > { %2137 = vmatprep.mubr.msk.bf16.mxu1 %vm956_vm1, %v2765_v14 }
 0x211   : > { %2179 = vmatpush3.bf16.msra.mxu1 %v2283_v54 }
 0x212   : > { %2176 = vmatprep.subr.bf16.mxu1 %v2285_v57 }
 0x215   : > { %2180 = vmatpush3.bf16.msra.mxu1 %v2285_v57 }
 0x21b   : > { %2138 = vmatmul.mubr.msk.bf16.vlgmr.msra.gmra.mrb[24].mxu1 %vm956_vm1, %v2767_v25 }
 0x2c9   : > { %v2071_v56 = vpop.f32.mrb[12].mxu1 }
 0x2ca   : > { %v2103_v58 = vpop.f32.mrb[16].mxu0  ;;  %v1104_v59 = vpop.f32.mrb[13].mxu1  ;;  %v1539_v63 = vrot.slane %v2071_v56, 7 }
 0x2cb   : > { %v1536_v60 = vrot.slane %v1104_v59, 7  ;;  %v1300_v61 = vpop.f32.mrb[17].mxu0  ;;  %v2072_v62 = vpop.f32.mrb[14].mxu1 }
 0x2cc   : > { %v1541_v0 = vrot.slane %v2072_v62, 7  ;;  %v2104_v1 = vpop.f32.mrb[18].mxu0  ;;  %v1107_v2 = vpop.f32.mrb[15].mxu1 }
 0x2cd   : > { %v1559_v3 = vsel %vm1535_vm2, 0.0, %v1536_v60  ;;  %v1537_v4 = vrot.slane %v1107_v2, 7  ;;  %v1303_v5 = vpop.f32.mrb[19].mxu0 }
 0x2ce   : > { %v1593_v6 = vadd.f32 %v1559_v3, %v1300_v61  ;;  %v1542_v7 = vsel %vm1535_vm2, %v1539_v63, %v1541_v0 }
 0x2cf   : > { %v2867_v8 = vadd.f32 %v2104_v1, %v1542_v7  ;;  %v1540_v10 = vsel %vm1535_vm2, %v1537_v4, %v1539_v63  ;;  %v1538_v11 = vsel %vm1535_vm2, %v1536_v60, %v1537_v4 }
 0x2d0   : > { %v1595_v13 = vadd.f32 %v2103_v58, %v1540_v10  ;;  %v1594_v14 = vadd.f32 %v1538_v11, %v1303_v5 }
 0x2d1   : > { %v2075_v15 = vpop.f32.mrb[16].mxu1 }
 0x2d2   : > { %v2107_v18 = vpop.f32.mrb[20].mxu0  ;;  %v1120_v19 = vpop.f32.mrb[17].mxu1  ;;  %v1547_v23 = vrot.slane %v2075_v15, 7 }
 0x2d3   : > { %v1543_v20 = vrot.slane %v1120_v19, 7  ;;  %v1316_v21 = vpop.f32.mrb[21].mxu0  ;;  %v2076_v22 = vpop.f32.mrb[18].mxu1 }
 0x2d4   : > { %v1549_v24 = vrot.slane %v2076_v22, 7  ;;  %v2108_v25 = vpop.f32.mrb[22].mxu0  ;;  %v1123_v26 = vpop.f32.mrb[19].mxu1 }
 0x2d5   : > { %v1544_v9 = vsel %vm1535_vm2, %v1541_v0, %v1543_v20  ;;  %v1545_v27 = vrot.slane %v1123_v26, 7  ;;  %v1319_v28 = vpop.f32.mrb[23].mxu0 }
 0x2d6   : > { %v1597_v29 = vadd.f32 %v1544_v9, %v1316_v21  ;;  %v1550_v30 = vsel %vm1535_vm2, %v1547_v23, %v1549_v24 }
 0x2d7   : > { %v1600_v31 = vadd.f32 %v2108_v25, %v1550_v30  ;;  %v1548_v12 = vsel %vm1535_vm2, %v1545_v27, %v1547_v23  ;;  %v1546_v32 = vsel %vm1535_vm2, %v1543_v20, %v1545_v27 }
 0x2d8   : > { %v1599_v33 = vadd.f32 %v2107_v18, %v1548_v12  ;;  %v1598_v34 = vadd.f32 %v1546_v32, %v1319_v28 }
 0x2da   : > { %v2119_v35 = vpop.f32.mrb[20].mxu1 }
 0x2db   : > { %v2135_v16 = vpop.f32.mrb[24].mxu0  ;;  %v1407_v17 = vpop.f32.mrb[21].mxu1 }
 0x2dc   : > { %v1505_v36 = vadd.f32 %v2135_v16, %v2119_v35  ;;  %v1496_v37 = vpop.f32.mrb[25].mxu0  ;;  %v2120_v38 = vpop.f32.mrb[22].mxu1 }
 0x2dd   : > { %v1497_v39 = vadd.f32 %v1496_v37, %v1407_v17  ;;  %v2136_v40 = vpop.f32.mrb[26].mxu0  ;;  %v1410_v41 = vpop.f32.mrb[23].mxu1 }
 0x2de   : > { %v1508_v42 = vadd.f32 %v2136_v40, %v2120_v38  ;;  %v1499_v43 = vpop.f32.mrb[27].mxu0  ;;  %v1572_v45 = vrot.slane %v1505_v36, 1 }
 0x2df   : > { %v1500_v44 = vadd.f32 %v1499_v43, %v1410_v41  ;;  %v1569_v47 = vrot.slane %v1497_v39, 1 }
 0x2e0   : > { %v1574_v46 = vrot.slane %v1508_v42, 1 }
 0x2e1   : > { %v1570_v48 = vrot.slane %v1500_v44, 1 }
 0x2e2   : > { %v1575_v49 = vsel %vm1568_vm3, %v1572_v45, %v1574_v46 }
 0x2e3   : > { %v1603_v51 = vadd.f32 %v1595_v13, %v1575_v49  ;;  %v1571_v52 = vsel %vm1568_vm3, %v1569_v47, %v1570_v48  ;;  %v1573_v53 = vsel %vm1568_vm3, %v1570_v48, %v1572_v45 }
 0x2e4   : > { %v1601_v54 = vadd.f32 %v1593_v6, %v1571_v52  ;;  %v1602_v55 = vadd.f32 %v1594_v14, %v1573_v53 }
 0x2e5   : > { %v1616_v57 = vadd.f32 %v1890_v50, %v1603_v51 }
 0x2e6   : > { %v1614_v56 = vadd.f32 %v1890_v50, %v1601_v54  ;;  %v1615_v58 = vadd.f32 %v1890_v50, %v1602_v55 }
 0x2e7   : > { %v1624_v59 = vsub.f32 0.0, %v1616_v57 }
 0x2e8   : > { %v1622_v60 = vsub.f32 0.0, %v1614_v56  ;;  %v1623_v61 = vsub.f32 0.0, %v1615_v58 }
 0x2e9   : > { %v1634_v62 = vmul.f32 1.442695, %v1624_v59 }
 0x2ea   : > { %v1630_v63 = vmul.f32 1.442695, %v1622_v60  ;;  %v1632_v0 = vmul.f32 1.442695, %v1623_v61 }
 0x2eb   : > { %2286 = vpow2.f32 %v1634_v62 }
 0x2ec   : > { %2288 = vpow2.f32 %v1630_v63 }
 0x2ed   : > { %2290 = vpow2.f32 %v1632_v0 }
 0x2ee   : > { %v2139_v1 = vpop.f32.mrb[24].mxu1 }
 0x2ef   : > { %v1512_v2 = vpop.f32.mrb[25].mxu1  ;;  %v1580_v5 = vrot.slane %v2139_v1, 1 }
 0x2f0   : > { %v1576_v3 = vrot.slane %v1512_v2, 1  ;;  %v2140_v4 = vpop.f32.mrb[26].mxu1 }
 0x2f1   : > { %v1582_v7 = vrot.slane %v2140_v4, 1  ;;  %v1515_v6 = vpop.f32.mrb[27].mxu1 }
 0x2f2   : > { %v1577_v10 = vsel %vm1568_vm3, %v1574_v46, %v1576_v3  ;;  %v1578_v11 = vrot.slane %v1515_v6, 1 }
 0x2f3   : > { %v1604_v13 = vadd.f32 %v2867_v8, %v1577_v10  ;;  %v1583_v14 = vsel %vm1568_vm3, %v1580_v5, %v1582_v7  ;;  %v1592_v15 = vsel %vm1568_vm3, %v1582_v7, 0.0 }
 0x2f4   : > { %v1607_v18 = vadd.f32 %v1599_v33, %v1583_v14  ;;  %v1608_v19 = vadd.f32 %v1600_v31, %v1592_v15  ;;  %v1579_v20 = vsel %vm1568_vm3, %v1576_v3, %v1578_v11  ;;  %v1581_v21 = vsel %vm1568_vm3, %v1578_v11, %v1580_v5 }
 0x2f5   : > { %v2287_v22 = vpop.eup %2286  ;;  %v1617_v23 = vadd.f32 %v1890_v50, %v1604_v13  ;;  %v1605_v24 = vadd.f32 %v1597_v29, %v1579_v20  ;;  %v1606_v25 = vadd.f32 %v1598_v34, %v1581_v21 }
 0x2f6   : > { %v2289_v26 = vpop.eup %2288  ;;  %v1648_v9 = vadd.f32 1.0, %v2287_v22  ;;  %v1620_v27 = vadd.f32 %v1890_v50, %v1607_v18  ;;  %v1621_v28 = vadd.f32 %v1890_v50, %v1608_v19 }
 0x2f7   : > { %v2291_v8 = vpop.eup %2290  ;;  %v1646_v30 = vadd.f32 1.0, %v2289_v26  ;;  %v1625_v12 = vsub.f32 0.0, %v1617_v23  ;;  %v1618_v32 = vadd.f32 %v1890_v50, %v1605_v24  ;;  %v1619_v35 = vadd.f32 %v1890_v50, %v1606_v25 }
 0x2f8   : > { %2292 = vrcp.f32 %v1648_v9  ;;  %v1647_v31 = vadd.f32 1.0, %v2291_v8  ;;  %v1628_v33 = vsub.f32 0.0, %v1620_v27  ;;  %v1629_v16 = vsub.f32 0.0, %v1621_v28 }
 0x2f9   : > { %2294 = vrcp.f32 %v1646_v30  ;;  %v1636_v17 = vmul.f32 1.442695, %v1625_v12  ;;  %v1626_v36 = vsub.f32 0.0, %v1618_v32  ;;  %v1627_v29 = vsub.f32 0.0, %v1619_v35 }
 0x2fa   : > { %2296 = vrcp.f32 %v1647_v31  ;;  %v1642_v34 = vmul.f32 1.442695, %v1628_v33  ;;  %v1644_v37 = vmul.f32 1.442695, %v1629_v16 }
 0x2fb   : > { %2298 = vpow2.f32 %v1636_v17  ;;  %v1638_v38 = vmul.f32 1.442695, %v1626_v36  ;;  %v1640_v39 = vmul.f32 1.442695, %v1627_v29 }
 0x2fc   : > { %2300 = vpow2.f32 %v1642_v34 }
 0x2fd   : > { %2302 = vpow2.f32 %v1644_v37 }
 0x2fe   : > { %2304 = vpow2.f32 %v1638_v38 }
 0x2ff   : > { %2306 = vpow2.f32 %v1640_v39 }
 0x302   : > { %v2293_v40 = vpop.eup %2292 }
 0x303   : > { %v2295_v41 = vpop.eup %2294  ;;  %1672 = vst.msk [vmem:[%s2890_s29 + $0x10] sm:$0xff] %vm956_vm1, %v2293_v40 }
 0x304   : > { %v2297_v42 = vpop.eup %2296  ;;  %1670 = vst.msk [vmem:[%s2890_s29] sm:$0xff] %vm956_vm1, %v2295_v41 }
 0x305   : > { %v2299_v43 = vpop.eup %2298  ;;  %1671 = vst.msk [vmem:[%s2890_s29 + $0x8] sm:$0xff] %vm956_vm1, %v2297_v42 }
 0x306   : > { %v2301_v44 = vpop.eup %2300  ;;  %v1649_v45 = vadd.f32 1.0, %v2299_v43 }
 0x307   : > { %v2303_v46 = vpop.eup %2302  ;;  %v1652_v47 = vadd.f32 1.0, %v2301_v44 }
 0x308   : > { %v2305_v48 = vpop.eup %2304  ;;  %2308 = vrcp.f32 %v1649_v45  ;;  %v1653_v49 = vadd.f32 1.0, %v2303_v46 }
 0x309   : > { %v2307_v50 = vpop.eup %2306  ;;  %2310 = vrcp.f32 %v1652_v47  ;;  %v1650_v51 = vadd.f32 1.0, %v2305_v48 }
 0x30a   : > { %2312 = vrcp.f32 %v1653_v49  ;;  %v1651_v52 = vadd.f32 1.0, %v2307_v50 }
 0x30b   : > { %2314 = vrcp.f32 %v1650_v51 }
 0x30c   : > { %2316 = vrcp.f32 %v1651_v52 }
 0x312   : > { %v2309_v53 = vpop.eup %2308 }
 0x313   : > { %v2311_v54 = vpop.eup %2310  ;;  %1673 = vst.msk [vmem:[%s2890_s29 + $0x18] sm:$0xff] %vm956_vm1, %v2309_v53 }
 0x314   : > { %v2313_v55 = vpop.eup %2312  ;;  %1676 = vst.msk [vmem:[%s2890_s29 + $0x30] sm:$0xff] %vm956_vm1, %v2311_v54 }
 0x315   : > { %v2315_v57 = vpop.eup %2314  ;;  %1677 = vst.msk [vmem:[%s2890_s29 + $0x38] sm:$0xff] %vm956_vm1, %v2313_v55 }
 0x316   : > { %v2317_v56 = vpop.eup %2316  ;;  %1674 = vst.msk [vmem:[%s2890_s29 + $0x20] sm:$0xff] %vm956_vm1, %v2315_v57 }
 0x317   : > { %1675 = vst.msk [vmem:[%s2890_s29 + $0x28] sm:$0xff] %vm956_vm1, %v2317_v56 }
 0x318   : > { %2331 = shalt.err (!%p2328_p4)
}
 0x319   : > { %s2332_s26 = scalar_lea.hbm %s2907_s22, 1024  ;;  %s2336_s27 = scalar_lea.hbm %s2969_s9, 2048 }
 0x31a   : > { %p2333_p7 = scmp.ne.s32.totalorder %s2907_s22, %s2332_s26  ;;  %p2337_p10 = scmp.lt.u32.totalorder %s2907_s22, %s2969_s9 }
 0x31b   : > { %p2338_p11 = scmp.lt.u32.totalorder %s2336_s27, %s2332_s26  ;;  %p2340_p13 = scmp.lt.u32.totalorder %s2332_s26, %s2907_s22 }
 0x31c   : > { %p2334_p8 = pnand %p2333_p7, %p2473_p5 }
 0x31d   : > { %p2339_p12 = por %p2338_p11, %p2337_p10 }
 0x31e   : > { %p2335_p9 = pneg %p2334_p8 }
 0x31f   : > { %p2341_p0 = por %p2340_p13, %p2339_p12 }
 0x321   : > { %p2342_p1 = pnand %p2341_p0, %p2335_p9 }
 0x323   : > { %2345 = shalt.err (!%p2342_p1)
}
 0x324   : > { %s2383_s23 = smov 128   ;;  %s2384_s24 = smov 8  }
 0x325   : > { %2205 = dma.vmem_to_hbm [thread:$0]  (%p2473_p5), %s2909_s16, 1024, %s2907_s22, %s2919_s13, %s2383_s23, %s2383_s23, %s2384_s24  }
 0x326 PF: > { %p2211_p2 = scmp.ge.s32.totalorder %s2380_s12, 2  ;;  %s1707_s25 = sand.u32 1, %s2368_s30  }
 0x327   : > { %s1708_s14 = scalar_lea.sflag [#allocation3], %s1707_s25 }
 0x328   : > { %p2208_p3 = pnand %p2211_p2, %p2477_p6 }
 0x32a   : > { %2363 = dma.done.wait (!%p2208_p3), %s1708_s14, 1024  }
 0x32b   : > { %2365 = vsyncadd (!%p2208_p3), %s1708_s14, 4294966272  ;;  %p19_p4 = scmp.ge.s32.totalorder %s2460_s15, 4   ;;  %s2972_s30 = smov %s2372_s10 }
 0x32c   : > { %s2973_s10 = smov %s2376_s11  ;;  %s2974_s11 = smov %s2471_s18 }
 0x32d   : > { %s2975_s12 = smov %s2460_s15  ;;  %21 = sbr.rel (!%p19_p4) target bundleno = 3 (0x3), region = 99 }
 0x334   :  { %1713 = vsyncpa [#allocation3], 1 }
 0x335   :  { %1715 = vsyncpa [#allocation3 + $0x1], 1 }

// kernel: full_mask_decoder_forward.12
= control target key start
LH: loop header
LB: loop body
LE: loop exit
PB: predicated region body
PF: predicated region fallthrough
CT: control target
= control target key end

     0   :  { %s2046_s21 = smov 0   ;;  %s2613_s0 = inlined_call_operand.vmem [shape: bf16[128,256], index: 0, kind: input, shape index: {}]   ;;  %s2614_s1 = inlined_call_operand.vmem [shape: f32[1,256], index: 1, kind: input, shape index: {}]   ;;  %s2615_s2 = inlined_call_operand.vmem [shape: f32[1,256], index: 2, kind: input, shape index: {}]   ;;  %s2616_s3 = inlined_call_operand.vmem [shape: bf16[3,256,256], index: 3, kind: input, shape index: {}]   ;;  %s2617_s4 = inlined_call_operand.vmem [shape: f32[1,256], index: 4, kind: input, shape index: {}]   ;;  %s2618_s5 = inlined_call_operand.vmem [shape: bf16[128,256], index: 5, kind: output, shape index: {0}]   ;;  %s2619_s6 = inlined_call_operand.vmem [shape: f32[2,2,256], index: 6, kind: output, shape index: {1}]  }
   0x1 LB: > { %s2052_s22 = sadd.s32 4294967295, %s2008_s21   ;;  %p1626_p0 = scmp.ge.s32.totalorder %s2008_s21, 1  ;;  %s2008_s21 = sphi %s2046_s21, %s17_s21  }
   0x2   : > { %p217_p1 = scmp.lt.s32.totalorder %s2008_s21, 3 }
   0x4   : > { %p218_p2 = pnand %p1626_p0, %p217_p1 }
   0x5   : > { %v1858_v0 = vld [vmem:[%s2616_s3 + $0x4] ss:$8 sps:$4 sm:$0xff] (!%p218_p2)   ;;  %v1862_v2 = vld [vmem:[%s2616_s3] ss:$8 sps:$4 sm:$0xff] (!%p218_p2)   ;;  %v1864_v4 = vld [vmem:[%s2616_s3 + $0x14] ss:$8 sps:$4 sm:$0xff] (!%p218_p2)   ;;  %v299_v36 = vlaneseq (!%p218_p2) }
   0x6   : > { %221 = sbr.rel (%p218_p2) target bundleno = 403 (0x193), region = 40  ;;  %v1860_v1 = vld [vmem:[%s2616_s3 + $0x104] ss:$8 sps:$4 sm:$0xff] (!%p218_p2)   ;;  %569 = vmatprep.subr.bf16.mxu0 (!%p218_p2), %v1858_v0  ;;  %v1863_v3 = vld [vmem:[%s2616_s3 + $0x100] ss:$8 sps:$4 sm:$0xff] (!%p218_p2)   ;;  %s1627_s15 = sshll.u32 (!%p218_p2), %s2052_s22, 3 }
   0x7   : > { %835 = vmatprep.subr.bf16.mxu1 (!%p218_p2), %v1860_v1  ;;  %570 = vmatpush1.bf16.msra.mxu0 (!%p218_p2), %v1862_v2  ;;  %v1866_v5 = vld [vmem:[%s2616_s3 + $0x114] ss:$8 sps:$4 sm:$0xff] (!%p218_p2)   ;;  %v1868_v6 = vld [vmem:[%s2616_s3 + $0x10] ss:$8 sps:$4 sm:$0xff] (!%p218_p2)   ;;  %v1870_v8 = vld [vmem:[%s2616_s3 + $0x24] ss:$8 sps:$4 sm:$0xff] (!%p218_p2)  }
   0x8   : > { %836 = vmatpush1.bf16.msra.mxu1 (!%p218_p2), %v1863_v3  ;;  %571 = vmatprep.subr.bf16.mxu0 (!%p218_p2), %v1864_v4  ;;  %v1869_v7 = vld [vmem:[%s2616_s3 + $0x110] ss:$8 sps:$4 sm:$0xff] (!%p218_p2)   ;;  %v1872_v9 = vld [vmem:[%s2616_s3 + $0x124] ss:$8 sps:$4 sm:$0xff] (!%p218_p2)   ;;  %v1874_v10 = vld [vmem:[%s2616_s3 + $0x20] ss:$8 sps:$4 sm:$0xff] (!%p218_p2)  }
   0x9   : > { %837 = vmatprep.subr.bf16.mxu1 (!%p218_p2), %v1866_v5  ;;  %v1875_v11 = vld [vmem:[%s2616_s3 + $0x120] ss:$8 sps:$4 sm:$0xff] (!%p218_p2)   ;;  %v1876_v12 = vld [vmem:[%s2616_s3 + $0x34] ss:$8 sps:$4 sm:$0xff] (!%p218_p2)   ;;  %v1880_v14 = vld [vmem:[%s2616_s3 + $0x30] ss:$8 sps:$4 sm:$0xff] (!%p218_p2)  }
   0xa   : > { %v1878_v13 = vld [vmem:[%s2616_s3 + $0x134] ss:$8 sps:$4 sm:$0xff] (!%p218_p2)   ;;  %v1881_v15 = vld [vmem:[%s2616_s3 + $0x130] ss:$8 sps:$4 sm:$0xff] (!%p218_p2)   ;;  %v1882_v16 = vld [vmem:[%s2616_s3 + $0x44] ss:$8 sps:$4 sm:$0xff] (!%p218_p2)  }
   0xb   : > { %572 = vmatpush1.bf16.msra.mxu0 (!%p218_p2), %v1868_v6  ;;  %v1884_v17 = vld [vmem:[%s2616_s3 + $0x144] ss:$8 sps:$4 sm:$0xff] (!%p218_p2)   ;;  %v1886_v18 = vld [vmem:[%s2616_s3 + $0x40] ss:$8 sps:$4 sm:$0xff] (!%p218_p2)   ;;  %v1888_v20 = vld [vmem:[%s2616_s3 + $0x54] ss:$8 sps:$4 sm:$0xff] (!%p218_p2)  }
   0xc   : > { %838 = vmatpush1.bf16.msra.mxu1 (!%p218_p2), %v1869_v7  ;;  %573 = vmatprep.subr.bf16.mxu0 (!%p218_p2), %v1870_v8  ;;  %v1887_v19 = vld [vmem:[%s2616_s3 + $0x140] ss:$8 sps:$4 sm:$0xff] (!%p218_p2)   ;;  %v1890_v21 = vld [vmem:[%s2616_s3 + $0x154] ss:$8 sps:$4 sm:$0xff] (!%p218_p2)   ;;  %v1892_v22 = vld [vmem:[%s2616_s3 + $0x50] ss:$8 sps:$4 sm:$0xff] (!%p218_p2)  }
   0xd   : > { %839 = vmatprep.subr.bf16.mxu1 %v1872_v9  ;;  %v1893_v23 = vld [vmem:[%s2616_s3 + $0x150] ss:$8 sps:$4 sm:$0xff]   ;;  %v1894_v24 = vld [vmem:[%s2616_s3 + $0x64] ss:$8 sps:$4 sm:$0xff]   ;;  %v1898_v26 = vld [vmem:[%s2616_s3 + $0x60] ss:$8 sps:$4 sm:$0xff]  }
   0xe   : > { %v1896_v25 = vld [vmem:[%s2616_s3 + $0x164] ss:$8 sps:$4 sm:$0xff]   ;;  %v1899_v27 = vld [vmem:[%s2616_s3 + $0x160] ss:$8 sps:$4 sm:$0xff]   ;;  %v1900_v28 = vld [vmem:[%s2616_s3 + $0x74] ss:$8 sps:$4 sm:$0xff]  }
   0xf   : > { %574 = vmatpush1.bf16.msra.mxu0 %v1874_v10  ;;  %v1902_v29 = vld [vmem:[%s2616_s3 + $0x174] ss:$8 sps:$4 sm:$0xff]   ;;  %v1904_v30 = vld [vmem:[%s2616_s3 + $0x70] ss:$8 sps:$4 sm:$0xff]   ;;  %v1906_v32 = vld [vmem:[%s2616_s3 + $0x84] ss:$8 sps:$4 sm:$0xff]  }
  0x10   : > { %840 = vmatpush1.bf16.msra.mxu1 %v1875_v11  ;;  %575 = vmatprep.subr.bf16.mxu0 %v1876_v12  ;;  %v1905_v31 = vld [vmem:[%s2616_s3 + $0x170] ss:$8 sps:$4 sm:$0xff]   ;;  %p255_p3 = scmp.lt.s32.totalorder %s1627_s15, 15  ;;  %v1908_v33 = vld [vmem:[%s2616_s3 + $0x184] ss:$8 sps:$4 sm:$0xff]   ;;  %v2177_v40 = vshrl.u32 %v299_v36, 7 }
  0x11   : > { %841 = vmatprep.subr.bf16.mxu1 %v1878_v13  ;;  %v1910_v34 = vld [vmem:[%s2616_s3 + $0x80] ss:$8 sps:$4 sm:$0xff]   ;;  %v1912_v37 = vld [vmem:[%s2616_s3 + $0x94] ss:$8 sps:$4 sm:$0xff]   ;;  %v1916_v39 = vld [vmem:[%s2616_s3 + $0x90] ss:$8 sps:$4 sm:$0xff]  }
  0x12   : > { %v1911_v35 = vld [vmem:[%s2616_s3 + $0x180] ss:$8 sps:$4 sm:$0xff]   ;;  %s2621_s15 = smov (!%p255_p3, %s1627_s15), 15  ;;  %v1914_v38 = vld [vmem:[%s2616_s3 + $0x194] ss:$8 sps:$4 sm:$0xff]   ;;  %v2206_v47 = vsub.s32 1, %v2177_v40 }
  0x13   : > { %576 = vmatpush1.bf16.msra.mxu0 %v1880_v14  ;;  %v1917_v41 = vld [vmem:[%s2616_s3 + $0x190] ss:$8 sps:$4 sm:$0xff]   ;;  %v1918_v42 = vld [vmem:[%s2616_s3 + $0xa4] ss:$8 sps:$4 sm:$0xff]   ;;  %s1806_s17 = sshll.u32 %s2621_s15, 3  ;;  %v2226_v56 = vsub.s32 0, %v2177_v40 }
  0x14   : > { %842 = vmatpush1.bf16.msra.mxu1 %v1881_v15  ;;  %577 = vmatprep.subr.bf16.mxu0 %v1882_v16  ;;  %v1920_v43 = vld [vmem:[%s2616_s3 + $0x1a4] ss:$8 sps:$4 sm:$0xff]   ;;  %v1922_v44 = vld [vmem:[%s2616_s3 + $0xa0] ss:$8 sps:$4 sm:$0xff]   ;;  %s2200_s28 = scalar_lea.vmem %s2613_s0, %s1806_s17  ;;  %v1924_v46 = vld [vmem:[%s2616_s3 + $0xb4] ss:$8 sps:$4 sm:$0xff]   ;;  %s2539_s20 = scalar_lea.vmem %s2618_s5, %s1806_s17 }
  0x15   : > { %843 = vmatprep.subr.bf16.mxu1 %v1884_v17  ;;  %v1923_v45 = vld [vmem:[%s2616_s3 + $0x1a0] ss:$8 sps:$4 sm:$0xff]   ;;  %v1926_v48 = vld [vmem:[%s2616_s3 + $0x1b4] ss:$8 sps:$4 sm:$0xff]   ;;  %v1928_v49 = vld [vmem:[%s2616_s3 + $0xb0] ss:$8 sps:$4 sm:$0xff]  }
  0x16   : > { %v1929_v50 = vld [vmem:[%s2616_s3 + $0x1b0] ss:$8 sps:$4 sm:$0xff]   ;;  %v273_v51 = vld [vmem:[%s2200_s28] sm:$0xff]  ;;  %v274_v52 = vld [vmem:[%s2200_s28 + $0x8] sm:$0xff]  ;;  %vm1190_vm0 = vcmask 1040384   ;;  %vm1255_vm1 = vcmask 1046528  }
  0x17   : > { %578 = vmatpush1.bf16.msra.mxu0 %v1886_v18  ;;  %v282_v53 = vunpack.c.h.bf16 %v273_v51  ;;  %v297_v54 = vld [vmem:[%s2614_s1] sm:$0x3]  ;;  %v1930_v57 = vld [vmem:[%s2616_s3 + $0xc4] ss:$8 sps:$4 sm:$0xff]   ;;  %v284_v58 = vunpack.c.h.bf16 %v274_v52  ;;  %v275_v0 = vld [vmem:[%s2200_s28 + $0x10] sm:$0xff]  ;;  %v281_v1 = vunpack.c.l.bf16 %v273_v51  ;;  %v283_v2 = vunpack.c.l.bf16 %v274_v52  ;;  %p268_p4 = scmp.lt.s32.totalorder %s2052_s22, 1 }
  0x18   : > { %844 = vmatpush1.bf16.msra.mxu1 %v1887_v19  ;;  %579 = vmatprep.subr.bf16.mxu0 %v1888_v20  ;;  %v325_v55 = vld [vmem:[%s2615_s2] sm:$0x3]  ;;  %v2232_v59 = vrot.slane %v297_v54, %v2206_v47  ;;  %v1932_v61 = vld [vmem:[%s2616_s3 + $0x1c4] ss:$8 sps:$4 sm:$0xff]   ;;  %v2244_v3 = vrot.slane %v297_v54, %v2226_v56  ;;  %v276_v4 = vld [vmem:[%s2200_s28 + $0x18] sm:$0xff]  ;;  %v286_v11 = vunpack.c.h.bf16 %v275_v0  ;;  %vm1466_vm2 = vcmp.lt.s32.totalorder %v299_v36, 256 }
  0x19   : > { %845 = vmatprep.subr.bf16.mxu1 %v1890_v21  ;;  %v2235_v60 = vrot.slane %v325_v55, %v2206_v47  ;;  %v1934_v5 = vld [vmem:[%s2616_s3 + $0xc0] ss:$8 sps:$4 sm:$0xff]   ;;  %v1936_v9 = vld [vmem:[%s2616_s3 + $0xd4] ss:$8 sps:$4 sm:$0xff]   ;;  %v288_v12 = vunpack.c.h.bf16 %v276_v4  ;;  %v2264_v17 = vrot.slane %v325_v55, %v2226_v56  ;;  %v1940_v18 = vld [vmem:[%s2616_s3 + $0xd0] ss:$8 sps:$4 sm:$0xff]   ;;  %v285_v21 = vunpack.c.l.bf16 %v275_v0 }
  0x1a   : > { %v310_v62 = vmul.f32 %v2232_v59, %v282_v53  ;;  %v312_v63 = vmul.f32 %v2232_v59, %v284_v58  ;;  %v1935_v6 = vld [vmem:[%s2616_s3 + $0x1c0] ss:$8 sps:$4 sm:$0xff]   ;;  %v1938_v10 = vld [vmem:[%s2616_s3 + $0x1d4] ss:$8 sps:$4 sm:$0xff]   ;;  %v309_v15 = vmul.f32 %v2244_v3, %v281_v1  ;;  %v311_v16 = vmul.f32 %v2244_v3, %v283_v2  ;;  %v1941_v19 = vld [vmem:[%s2616_s3 + $0x1d0] ss:$8 sps:$4 sm:$0xff]  }
  0x1b   : > { %580 = vmatpush1.bf16.msra.mxu0 %v1892_v22  ;;  %v1942_v22 = vld [vmem:[%s2616_s3 + $0xe4] ss:$8 sps:$4 sm:$0xff]   ;;  %v279_v55 = vld [vmem:[%s2200_s28 + $0x30] sm:$0xff]  ;;  %s2623_s22 = smov (!%p268_p4, %s2052_s22), 1 }
  0x1c   : > { %846 = vmatpush1.bf16.msra.mxu1 %v1893_v23  ;;  %581 = vmatprep.subr.bf16.mxu0 %v1894_v24  ;;  %v338_v7 = vadd.f32 %v2235_v60, %v310_v62  ;;  %v340_v8 = vadd.f32 %v2235_v60, %v312_v63  ;;  %v1944_v23 = vld [vmem:[%s2616_s3 + $0x1e4] ss:$8 sps:$4 sm:$0xff]   ;;  %v314_v24 = vmul.f32 %v2232_v59, %v286_v11  ;;  %v280_v62 = vld [vmem:[%s2200_s28 + $0x38] sm:$0xff]  ;;  %v1954_v63 = vld [vmem:[%s2616_s3 + $0x200] ss:$8 sps:$4 sm:$0xff]   ;;  %s1808_s15 = sshll.u32 %s2623_s22, 2 }
  0x1d   : > { %847 = vmatprep.subr.bf16.mxu1 %v1896_v25  ;;  %v316_v25 = vmul.f32 %v2232_v59, %v288_v12  ;;  %v1959_v0 = vld [vmem:[%s2616_s3 + $0x214] ss:$8 sps:$4 sm:$0xff]   ;;  %v1957_v11 = vld [vmem:[%s2616_s3 + $0x210] ss:$8 sps:$4 sm:$0xff]   ;;  %s272_s24 = scalar_lea.vmem %s2619_s6, %s1808_s15 }
  0x1e   : > { %v354_v13 = vmax.f32 %v338_v7, 0.0  ;;  %v356_v14 = vmax.f32 %v340_v8, 0.0  ;;  %v294_v7 = vunpack.c.h.bf16 %v279_v55  ;;  %v296_v8 = vunpack.c.h.bf16 %v280_v62 }
  0x1f   : > { %582 = vmatpush1.bf16.msra.mxu0 %v1898_v26  ;;  %v287_v26 = vunpack.c.l.bf16 %v276_v4 }
  0x20   : > { %848 = vmatpush1.bf16.msra.mxu1 %v1899_v27  ;;  %583 = vmatprep.subr.bf16.mxu0 %v1900_v28  ;;  %v2272_v20 = vpack.c.bf16 %v356_v14, %v354_v13  ;;  %v337_v27 = vadd.f32 %v2264_v17, %v309_v15  ;;  %v339_v28 = vadd.f32 %v2264_v17, %v311_v16  ;;  %v1962_v13 = vld [vmem:[%s2616_s3 + $0x224] ss:$8 sps:$4 sm:$0xff]  }
  0x21   : > { %849 = vmatprep.subr.bf16.mxu1 %v1902_v29  ;;  %v1946_v29 = vld [vmem:[%s2616_s3 + $0xe0] ss:$8 sps:$4 sm:$0xff]   ;;  %v322_v16 = vmul.f32 %v2232_v59, %v294_v7 }
  0x22   : > { %601 = vmatprep.mubr.bf16.mxu0 %v2272_v20  ;;  %867 = vmatprep.mubr.bf16.mxu1 %v2272_v20 }
  0x23   : > { %584 = vmatpush1.bf16.msra.mxu0 %v1904_v30  ;;  %v1947_v30 = vld [vmem:[%s2616_s3 + $0x1e0] ss:$8 sps:$4 sm:$0xff]  }
  0x24   : > { %850 = vmatpush1.bf16.msra.mxu1 %v1905_v31  ;;  %585 = vmatprep.subr.bf16.mxu0 %v1906_v32  ;;  %v313_v31 = vmul.f32 %v2244_v3, %v285_v21  ;;  %v1948_v32 = vld [vmem:[%s2616_s3 + $0xf4] ss:$8 sps:$4 sm:$0xff]  }
  0x25   : > { %851 = vmatprep.subr.bf16.mxu1 %v1908_v33  ;;  %v1950_v33 = vld [vmem:[%s2616_s3 + $0x1f4] ss:$8 sps:$4 sm:$0xff]  }
  0x26   : > { %v341_v51 = vadd.f32 %v2264_v17, %v313_v31 }
  0x27   : > { %586 = vmatpush1.bf16.msra.mxu0 %v1910_v34  ;;  %v342_v34 = vadd.f32 %v2235_v60, %v314_v24  ;;  %v1960_v24 = vld [vmem:[%s2616_s3 + $0x220] ss:$8 sps:$4 sm:$0xff]  }
  0x28   : > { %852 = vmatpush1.bf16.msra.mxu1 %v1911_v35  ;;  %587 = vmatprep.subr.bf16.mxu0 %v1912_v37  ;;  %v344_v35 = vadd.f32 %v2235_v60, %v316_v25  ;;  %v315_v37 = vmul.f32 %v2244_v3, %v287_v26  ;;  %v357_v2 = vmax.f32 %v341_v51, 0.0  ;;  %v1965_v25 = vld [vmem:[%s2616_s3 + $0x234] ss:$8 sps:$4 sm:$0xff]   ;;  %v1978_v51 = vld [vmem:[%s2616_s3 + $0x280] ss:$8 sps:$4 sm:$0xff]  }
  0x29   : > { %853 = vmatprep.subr.bf16.mxu1 %v1914_v38  ;;  %v277_v38 = vld [vmem:[%s2200_s28 + $0x20] sm:$0xff] }
  0x2a   : > { %v343_v52 = vadd.f32 %v2264_v17, %v315_v37  ;;  %v289_v58 = vunpack.c.l.bf16 %v277_v38 }
  0x2b   : > { %588 = vmatpush1.bf16.msra.mxu0 %v1916_v39  ;;  %v278_v39 = vld [vmem:[%s2200_s28 + $0x28] sm:$0xff] }
  0x2c   : > { %854 = vmatpush1.bf16.msra.mxu1 %v1917_v41  ;;  %589 = vmatprep.subr.bf16.mxu0 %v1918_v42  ;;  %v1952_v41 = vld [vmem:[%s2616_s3 + $0xf0] ss:$8 sps:$4 sm:$0xff]   ;;  %v353_v42 = vmax.f32 %v337_v27, 0.0  ;;  %v359_v4 = vmax.f32 %v343_v52, 0.0  ;;  %v1983_v52 = vld [vmem:[%s2616_s3 + $0x294] ss:$8 sps:$4 sm:$0xff]  }
  0x2d   : > { %855 = vmatprep.subr.bf16.mxu1 %v1920_v43  ;;  %v355_v43 = vmax.f32 %v339_v28, 0.0 }
  0x2e   : > { %v2338_v12 = vpack.c.bf16 %v359_v4, %v357_v2  ;;  %v1998_v2 = vld [vmem:[%s2616_s3 + $0x2e4] ss:$8 sps:$4 sm:$0xff]   ;;  %v1996_v4 = vld [vmem:[%s2616_s3 + $0x2e0] ss:$8 sps:$4 sm:$0xff]  }
  0x2f   : > { %590 = vmatpush1.bf16.msra.mxu0 %v1922_v44  ;;  %v290_v44 = vunpack.c.h.bf16 %v277_v38  ;;  %v1966_v38 = vld [vmem:[%s2616_s3 + $0x240] ss:$8 sps:$4 sm:$0xff]  }
  0x30   : > { %856 = vmatpush1.bf16.msra.mxu1 %v1923_v45  ;;  %591 = vmatprep.subr.bf16.mxu0 %v1924_v46  ;;  %v292_v45 = vunpack.c.h.bf16 %v278_v39  ;;  %v1953_v46 = vld [vmem:[%s2616_s3 + $0x1f0] ss:$8 sps:$4 sm:$0xff]  }
  0x31   : > { %857 = vmatprep.subr.bf16.mxu1 %v1926_v48  ;;  %v1956_v48 = vld [vmem:[%s2616_s3 + $0x204] ss:$8 sps:$4 sm:$0xff]   ;;  %v318_v53 = vmul.f32 %v2232_v59, %v290_v44 }
  0x32   : > { %v320_v54 = vmul.f32 %v2232_v59, %v292_v45  ;;  %v1974_v44 = vld [vmem:[%s2616_s3 + $0x264] ss:$8 sps:$4 sm:$0xff]  }
  0x33   : > { %592 = vmatpush1.bf16.msra.mxu0 %v1928_v49  ;;  %v358_v49 = vmax.f32 %v342_v34, 0.0 }
  0x34   : > { %858 = vmatpush1.bf16.msra.mxu1 %v1929_v50  ;;  %593 = vmatprep.subr.bf16.mxu0 %v1930_v57  ;;  %v360_v50 = vmax.f32 %v344_v35, 0.0  ;;  %v2318_v57 = vpack.c.bf16 %v355_v43, %v353_v42  ;;  %v1969_v43 = vld [vmem:[%s2616_s3 + $0x250] ss:$8 sps:$4 sm:$0xff]  }
  0x35   : > { %859 = vmatprep.subr.bf16.mxu1 %v1932_v61  ;;  %v291_v61 = vunpack.c.l.bf16 %v278_v39  ;;  %v1971_v39 = vld [vmem:[%s2616_s3 + $0x254] ss:$8 sps:$4 sm:$0xff]  }
  0x36   : > { %v2327_v1 = vpack.c.bf16 %v360_v50, %v358_v49  ;;  %v1975_v49 = vld [vmem:[%s2616_s3 + $0x270] ss:$8 sps:$4 sm:$0xff]   ;;  %v1980_v50 = vld [vmem:[%s2616_s3 + $0x284] ss:$8 sps:$4 sm:$0xff]  }
  0x37   : > { %594 = vmatpush1.bf16.msra.mxu0 %v1934_v5  ;;  %v346_v5 = vadd.f32 %v2235_v60, %v318_v53  ;;  %v1981_v53 = vld [vmem:[%s2616_s3 + $0x290] ss:$8 sps:$4 sm:$0xff]  }
  0x38   : > { %860 = vmatpush1.bf16.msra.mxu1 %v1935_v6  ;;  %595 = vmatprep.subr.bf16.mxu0 %v1936_v9  ;;  %v348_v6 = vadd.f32 %v2235_v60, %v320_v54  ;;  %v317_v9 = vmul.f32 %v2244_v3, %v289_v58  ;;  %v1984_v54 = vld [vmem:[%s2616_s3 + $0x2a0] ss:$8 sps:$4 sm:$0xff]   ;;  %v1987_v58 = vld [vmem:[%s2616_s3 + $0x2b0] ss:$8 sps:$4 sm:$0xff]  }
  0x39   : > { %861 = vmatprep.subr.bf16.mxu1 %v1938_v10  ;;  %v319_v10 = vmul.f32 %v2244_v3, %v291_v61  ;;  %v362_v14 = vmax.f32 %v346_v5, 0.0  ;;  %v1992_v61 = vld [vmem:[%s2616_s3 + $0x2c4] ss:$8 sps:$4 sm:$0xff]   ;;  %v2001_v5 = vld [vmem:[%s2616_s3 + $0x2f4] ss:$8 sps:$4 sm:$0xff]  }
  0x3a   : > { %v364_v15 = vmax.f32 %v348_v6, 0.0  ;;  %v1999_v6 = vld [vmem:[%s2616_s3 + $0x2f0] ss:$8 sps:$4 sm:$0xff]  }
  0x3b   : > { %596 = vmatpush1.bf16.msra.mxu0 %v1940_v18  ;;  %v324_v18 = vmul.f32 %v2232_v59, %v296_v8  ;;  %v347_v21 = vadd.f32 %v2264_v17, %v319_v10  ;;  %v350_v59 = vadd.f32 %v2235_v60, %v322_v16 }
  0x3c   : > { %862 = vmatpush1.bf16.msra.mxu1 %v1941_v19  ;;  %597 = vmatprep.subr.bf16.mxu0 %v1942_v22  ;;  %v345_v19 = vadd.f32 %v2264_v17, %v317_v9  ;;  %v293_v22 = vunpack.c.l.bf16 %v279_v55  ;;  %v374_v26 = vpack.c.bf16 %v364_v15, %v362_v14  ;;  %v1989_v55 = vld [vmem:[%s2616_s3 + $0x2b4] ss:$8 sps:$4 sm:$0xff]  }
  0x3d   : > { %863 = vmatprep.subr.bf16.mxu1 %v1944_v23  ;;  %v295_v23 = vunpack.c.l.bf16 %v280_v62  ;;  %v352_v27 = vadd.f32 %v2235_v60, %v324_v18  ;;  %v1968_v60 = vld [vmem:[%s2616_s3 + $0x244] ss:$8 sps:$4 sm:$0xff]   ;;  %v1990_v62 = vld [vmem:[%s2616_s3 + $0x2c0] ss:$8 sps:$4 sm:$0xff]  }
  0x3e   : > { %v361_v28 = vmax.f32 %v345_v19, 0.0 }
  0x3f   : > { %598 = vmatpush1.bf16.msra.mxu0 %v1946_v29  ;;  %v363_v29 = vmax.f32 %v347_v21, 0.0  ;;  %v323_v31 = vmul.f32 %v2244_v3, %v295_v23  ;;  %v368_v34 = vmax.f32 %v352_v27, 0.0 }
  0x40   : > { %864 = vmatpush1.bf16.msra.mxu1 %v1947_v30  ;;  %599 = vmatprep.subr.bf16.mxu0 %v1948_v32  ;;  %v321_v30 = vmul.f32 %v2244_v3, %v293_v22  ;;  %v1963_v32 = vld [vmem:[%s2616_s3 + $0x230] ss:$8 sps:$4 sm:$0xff]  }
  0x41   : > { %865 = vmatprep.subr.bf16.mxu1 %v1950_v33  ;;  %v366_v33 = vmax.f32 %v350_v59, 0.0  ;;  %v2367_v35 = vpack.c.bf16 %v363_v29, %v361_v28  ;;  %v351_v37 = vadd.f32 %v2264_v17, %v323_v31 }
  0x42   : > { %v349_v3 = vadd.f32 %v2264_v17, %v321_v30 }
  0x43   : > { %600 = vmatpush1.bf16.msra.mxu0 %v1952_v41  ;;  %v2377_v41 = vpack.c.bf16 %v368_v34, %v366_v33  ;;  %v367_v17 = vmax.f32 %v351_v37, 0.0 }
  0x44   : > { %866 = vmatpush1.bf16.msra.mxu1 %v1953_v46  ;;  %1101 = vmatprep.subr.bf16.mxu0 %v1956_v48  ;;  %v365_v42 = vmax.f32 %v349_v3, 0.0  ;;  %v1972_v46 = vld [vmem:[%s2616_s3 + $0x260] ss:$8 sps:$4 sm:$0xff]  }
  0x45   : > { %1817 = vmatprep.subr.bf16.mxu1 %v1956_v48  ;;  %v1977_v48 = vld [vmem:[%s2616_s3 + $0x274] ss:$8 sps:$4 sm:$0xff]  }
  0x46   : > { %602 = vmatmul.mubr.bf16.vlgmr.msra.gmra.mrb[0].mxu0 %v2318_v57  ;;  %v2389_v45 = vpack.c.bf16 %v367_v17, %v365_v42 }
  0x47   : > { %868 = vmatmul.mubr.bf16.vlgmr.msra.gmra.mrb[0].mxu1 %v2318_v57  ;;  %1102 = vmatpush1.bf16.msra.mxu0 %v1954_v63 }
  0x48   : > { %1833 = vmatpush1.bf16.msra.mxu1 %v1954_v63  ;;  %1103 = vmatprep.subr.bf16.mxu0 %v1959_v0  ;;  %v1995_v63 = vld [vmem:[%s2616_s3 + $0x2d4] ss:$8 sps:$4 sm:$0xff]  }
  0x49   : > { %1818 = vmatprep.subr.bf16.mxu1 %v1959_v0  ;;  %611 = vmatprep.mubr.bf16.mxu0 %v2327_v1  ;;  %v1993_v0 = vld [vmem:[%s2616_s3 + $0x2d0] ss:$8 sps:$4 sm:$0xff]  }
  0x4a   : > { %877 = vmatprep.mubr.bf16.mxu1 %v2327_v1 }
  0x4b   : > { %1104 = vmatpush1.bf16.msra.mxu0 %v1957_v11 }
  0x4c   : > { %1834 = vmatpush1.bf16.msra.mxu1 %v1957_v11  ;;  %1105 = vmatprep.subr.bf16.mxu0 %v1962_v13 }
  0x4d   : > { %1819 = vmatprep.subr.bf16.mxu1 %v1962_v13 }
  0x4e   : > { %612 = vmatmul.mubr.bf16.gmra.mrb[4].mxu0 %v2338_v12 }
  0x4f   : > { %878 = vmatmul.mubr.bf16.gmra.mrb[4].mxu1 %v2338_v12  ;;  %1106 = vmatpush1.bf16.msra.mxu0 %v1960_v24 }
  0x50   : > { %1835 = vmatpush1.bf16.msra.mxu1 %v1960_v24  ;;  %1107 = vmatprep.subr.bf16.mxu0 %v1965_v25 }
  0x51   : > { %1820 = vmatprep.subr.bf16.mxu1 %v1965_v25  ;;  %621 = vmatprep.mubr.bf16.mxu0 %v374_v26 }
  0x52   : > { %887 = vmatprep.mubr.bf16.mxu1 %v374_v26 }
  0x53   : > { %1108 = vmatpush1.bf16.msra.mxu0 %v1963_v32 }
  0x54   : > { %1836 = vmatpush1.bf16.msra.mxu1 %v1963_v32  ;;  %1109 = vmatprep.subr.bf16.mxu0 %v1968_v60 }
  0x55   : > { %1821 = vmatprep.subr.bf16.mxu1 %v1968_v60 }
  0x56   : > { %622 = vmatmul.mubr.bf16.gmra.mrb[8].mxu0 %v2367_v35 }
  0x57   : > { %888 = vmatmul.mubr.bf16.gmra.mrb[8].mxu1 %v2367_v35  ;;  %1110 = vmatpush1.bf16.msra.mxu0 %v1966_v38 }
  0x58   : > { %1837 = vmatpush1.bf16.msra.mxu1 %v1966_v38  ;;  %1111 = vmatprep.subr.bf16.mxu0 %v1971_v39 }
  0x59   : > { %1822 = vmatprep.subr.bf16.mxu1 %v1971_v39  ;;  %631 = vmatprep.mubr.bf16.mxu0 %v2377_v41 }
  0x5a   : > { %897 = vmatprep.mubr.bf16.mxu1 %v2377_v41 }
  0x5b   : > { %1112 = vmatpush1.bf16.msra.mxu0 %v1969_v43 }
  0x5c   : > { %1838 = vmatpush1.bf16.msra.mxu1 %v1969_v43  ;;  %1113 = vmatprep.subr.bf16.mxu0 %v1974_v44 }
  0x5d   : > { %1823 = vmatprep.subr.bf16.mxu1 %v1974_v44 }
  0x5e   : > { %632 = vmatmul.mubr.bf16.gmra.mrb[12].mxu0 %v2389_v45 }
  0x5f   : > { %898 = vmatmul.mubr.bf16.gmra.mrb[12].mxu1 %v2389_v45  ;;  %1114 = vmatpush1.bf16.msra.mxu0 %v1972_v46 }
  0x60   : > { %1839 = vmatpush1.bf16.msra.mxu1 %v1972_v46  ;;  %1115 = vmatprep.subr.bf16.mxu0 %v1977_v48 }
  0x61   : > { %1824 = vmatprep.subr.bf16.mxu1 %v1977_v48  ;;  %1133 = vmatprep.mubr.bf16.mxu0 %v2272_v20  ;;  %v1986_v20 = vld [vmem:[%s2616_s3 + $0x2a4] ss:$8 sps:$4 sm:$0xff]  }
  0x62   : > { %1153 = vmatprep.mubr.bf16.mxu1 %v374_v26 }
  0x63   : > { %1116 = vmatpush1.bf16.msra.mxu0 %v1975_v49 }
  0x64   : > { %1840 = vmatpush1.bf16.msra.mxu1 %v1975_v49  ;;  %1117 = vmatprep.subr.bf16.mxu0 %v1980_v50 }
  0x65   : > { %1825 = vmatprep.subr.bf16.mxu1 %v1980_v50 }
  0x67   : > { %1118 = vmatpush1.bf16.msra.mxu0 %v1978_v51 }
  0x68   : > { %1841 = vmatpush1.bf16.msra.mxu1 %v1978_v51  ;;  %1119 = vmatprep.subr.bf16.mxu0 %v1983_v52 }
  0x69   : > { %1826 = vmatprep.subr.bf16.mxu1 %v1983_v52 }
  0x6b   : > { %1120 = vmatpush1.bf16.msra.mxu0 %v1981_v53 }
  0x6c   : > { %1842 = vmatpush1.bf16.msra.mxu1 %v1981_v53  ;;  %1121 = vmatprep.subr.bf16.mxu0 %v1986_v20 }
  0x6d   : > { %1827 = vmatprep.subr.bf16.mxu1 %v1986_v20 }
  0x6f   : > { %1122 = vmatpush1.bf16.msra.mxu0 %v1984_v54 }
  0x70   : > { %1843 = vmatpush1.bf16.msra.mxu1 %v1984_v54  ;;  %1123 = vmatprep.subr.bf16.mxu0 %v1989_v55 }
  0x71   : > { %1828 = vmatprep.subr.bf16.mxu1 %v1989_v55 }
  0x73   : > { %1124 = vmatpush1.bf16.msra.mxu0 %v1987_v58 }
  0x74   : > { %1844 = vmatpush1.bf16.msra.mxu1 %v1987_v58  ;;  %1125 = vmatprep.subr.bf16.mxu0 %v1992_v61 }
  0x75   : > { %1829 = vmatprep.subr.bf16.mxu1 %v1992_v61 }
  0x77   : > { %1126 = vmatpush1.bf16.msra.mxu0 %v1990_v62 }
  0x78   : > { %1845 = vmatpush1.bf16.msra.mxu1 %v1990_v62  ;;  %1127 = vmatprep.subr.bf16.mxu0 %v1995_v63 }
  0x79   : > { %1830 = vmatprep.subr.bf16.mxu1 %v1995_v63 }
  0x7b   : > { %1128 = vmatpush1.bf16.msra.mxu0 %v1993_v0 }
  0x7c   : > { %1846 = vmatpush1.bf16.msra.mxu1 %v1993_v0  ;;  %1129 = vmatprep.subr.bf16.mxu0 %v1998_v2 }
  0x7d   : > { %1831 = vmatprep.subr.bf16.mxu1 %v1998_v2 }
  0x7f   : > { %1130 = vmatpush1.bf16.msra.mxu0 %v1996_v4 }
  0x80   : > { %1847 = vmatpush1.bf16.msra.mxu1 %v1996_v4  ;;  %1131 = vmatprep.subr.bf16.mxu0 %v2001_v5 }
  0x81   : > { %1832 = vmatprep.subr.bf16.mxu1 %v2001_v5 }
  0x83   : > { %1132 = vmatpush1.bf16.msra.mxu0 %v1999_v6 }
  0x84   : > { %1848 = vmatpush1.bf16.msra.mxu1 %v1999_v6 }
  0x86   : > { %1134 = vmatmul.mubr.bf16.vlgmr.msra.gmra.mrb[16].mxu0 %v2318_v57 }
  0x87   : > { %1154 = vmatmul.mubr.bf16.vlgmr.msra.gmra.mrb[16].mxu1 %v2367_v35  ;;  %1143 = vmatprep.mubr.bf16.mxu0 %v2327_v1 }
  0x88   : > { %1163 = vmatprep.mubr.bf16.mxu1 %v2377_v41 }
  0x8e   : > { %1144 = vmatmul.mubr.bf16.gmra.mrb[20].mxu0 %v2338_v12 }
  0x8f   : > { %1164 = vmatmul.mubr.bf16.gmra.mrb[20].mxu1 %v2389_v45 }
 0x119   : > { %v603_v7 = vpop.f32.mrb[0].mxu0 }
 0x11a   : > { %v869_v8 = vpop.f32.mrb[0].mxu1  ;;  %v1191_v9 = vrot.slane %v603_v7, 7  ;;  %v605_v10 = vpop.f32.mrb[1].mxu0 }
 0x11b   : > { %v871_v11 = vpop.f32.mrb[1].mxu1  ;;  %v1192_v13 = vrot.slane %v605_v10, 7  ;;  %v607_v14 = vpop.f32.mrb[2].mxu0 }
 0x11c   : > { %v873_v15 = vpop.f32.mrb[2].mxu1  ;;  %v1193_v57 = vrot.slane %v607_v14, 7  ;;  %v609_v16 = vpop.f32.mrb[3].mxu0  ;;  %v1237_v18 = vsel %vm1190_vm0, 0.0, %v1191_v9 }
 0x11d   : > { %v875_v1 = vpop.f32.mrb[3].mxu1  ;;  %v1195_v19 = vrot.slane %v609_v16, 7  ;;  %v2458_v21 = vadd.f32 %v1237_v18, %v869_v8  ;;  %v1238_v12 = vsel %vm1190_vm0, 0.0, %v1192_v13 }
 0x11e   : > { %v2461_v22 = vadd.f32 %v1238_v12, %v871_v11  ;;  %v1194_v23 = vsel %vm1190_vm0, %v1191_v9, %v1193_v57 }
 0x11f   : > { %v2464_v24 = vadd.f32 %v1194_v23, %v873_v15  ;;  %v1196_v25 = vsel %vm1190_vm0, %v1192_v13, %v1195_v19 }
 0x120   : > { %v2467_v26 = vadd.f32 %v1196_v25, %v875_v1 }
 0x121   : > { %v613_v59 = vpop.f32.mrb[4].mxu0 }
 0x122   : > { %v879_v27 = vpop.f32.mrb[4].mxu1  ;;  %v1197_v28 = vrot.slane %v613_v59, 7  ;;  %v615_v29 = vpop.f32.mrb[5].mxu0 }
 0x123   : > { %v881_v30 = vpop.f32.mrb[5].mxu1  ;;  %v1199_v31 = vrot.slane %v615_v29, 7  ;;  %v617_v32 = vpop.f32.mrb[6].mxu0 }
 0x124   : > { %v883_v60 = vpop.f32.mrb[6].mxu1  ;;  %v1198_v33 = vsel %vm1190_vm0, %v1193_v57, %v1197_v28  ;;  %v1201_v34 = vrot.slane %v617_v32, 7  ;;  %v619_v35 = vpop.f32.mrb[7].mxu0 }
 0x125   : > { %v885_v3 = vpop.f32.mrb[7].mxu1  ;;  %v2470_v37 = vadd.f32 %v1198_v33, %v879_v27  ;;  %v1200_v38 = vsel %vm1190_vm0, %v1195_v19, %v1199_v31  ;;  %v1203_v39 = vrot.slane %v619_v35, 7 }
 0x126   : > { %v2473_v41 = vadd.f32 %v1200_v38, %v881_v30  ;;  %v1202_v42 = vsel %vm1190_vm0, %v1197_v28, %v1201_v34 }
 0x127   : > { %v2476_v17 = vadd.f32 %v1202_v42, %v883_v60  ;;  %v1204_v43 = vsel %vm1190_vm0, %v1199_v31, %v1203_v39 }
 0x128   : > { %v2479_v44 = vadd.f32 %v1204_v43, %v885_v3 }
 0x129   : > { %v623_v45 = vpop.f32.mrb[8].mxu0 }
 0x12a   : > { %v889_v46 = vpop.f32.mrb[8].mxu1  ;;  %v1205_v48 = vrot.slane %v623_v45, 7  ;;  %v625_v49 = vpop.f32.mrb[9].mxu0 }
 0x12b   : > { %v891_v50 = vpop.f32.mrb[9].mxu1  ;;  %v1207_v51 = vrot.slane %v625_v49, 7  ;;  %v627_v52 = vpop.f32.mrb[10].mxu0 }
 0x12c   : > { %v893_v53 = vpop.f32.mrb[10].mxu1  ;;  %v1206_v20 = vsel %vm1190_vm0, %v1201_v34, %v1205_v48  ;;  %v1209_v54 = vrot.slane %v627_v52, 7  ;;  %v629_v55 = vpop.f32.mrb[11].mxu0  ;;  %v1336_v34 = vld [vmem:[%s2617_s4] sm:$0x3] }
 0x12d   : > { %v895_v58 = vpop.f32.mrb[11].mxu1  ;;  %v1312_v61 = vadd.f32 %v1206_v20, %v889_v46  ;;  %v1208_v62 = vsel %vm1190_vm0, %v1203_v39, %v1207_v51  ;;  %v1211_v63 = vrot.slane %v629_v55, 7  ;;  %v2511_v49 = vrot.slane %v1336_v34, %v2226_v56 }
 0x12e   : > { %v1313_v0 = vadd.f32 %v1208_v62, %v891_v50  ;;  %v1210_v2 = vsel %vm1190_vm0, %v1205_v48, %v1209_v54  ;;  %v2518_v20 = vrot.slane %v1336_v34, %v2206_v47 }
 0x12f   : > { %v2484_v4 = vadd.f32 %v1210_v2, %v893_v53  ;;  %v1212_v5 = vsel %vm1190_vm0, %v1207_v51, %v1211_v63 }
 0x130   : > { %v2487_v6 = vadd.f32 %v1212_v5, %v895_v58 }
 0x131   : > { %v633_v7 = vpop.f32.mrb[12].mxu0 }
 0x132   : > { %v899_v8 = vpop.f32.mrb[12].mxu1  ;;  %v1213_v9 = vrot.slane %v633_v7, 7  ;;  %v635_v10 = vpop.f32.mrb[13].mxu0 }
 0x133   : > { %v901_v11 = vpop.f32.mrb[13].mxu1  ;;  %v1215_v13 = vrot.slane %v635_v10, 7  ;;  %v637_v14 = vpop.f32.mrb[14].mxu0 }
 0x134   : > { %v903_v15 = vpop.f32.mrb[14].mxu1  ;;  %v1214_v57 = vsel %vm1190_vm0, %v1209_v54, %v1213_v9  ;;  %v1217_v16 = vrot.slane %v637_v14, 7  ;;  %v639_v18 = vpop.f32.mrb[15].mxu0 }
 0x135   : > { %v905_v1 = vpop.f32.mrb[15].mxu1  ;;  %v2490_v19 = vadd.f32 %v1214_v57, %v899_v8  ;;  %v1216_v12 = vsel %vm1190_vm0, %v1211_v63, %v1215_v13  ;;  %v1219_v23 = vrot.slane %v639_v18, 7 }
 0x136   : > { %v2493_v25 = vadd.f32 %v1216_v12, %v901_v11  ;;  %v1218_v59 = vsel %vm1190_vm0, %v1213_v9, %v1217_v16 }
 0x137   : > { %v2496_v27 = vadd.f32 %v1218_v59, %v903_v15  ;;  %v1220_v28 = vsel %vm1190_vm0, %v1215_v13, %v1219_v23 }
 0x138   : > { %v2499_v29 = vadd.f32 %v1220_v28, %v905_v1 }
 0x159   : > { %v1135_v30 = vpop.f32.mrb[16].mxu0 }
 0x15a   : > { %v2501_v31 = vpop.f32.mrb[16].mxu1  ;;  %v1137_v60 = vpop.f32.mrb[17].mxu0  ;;  %v1256_v39 = vrot.slane %v1135_v30, 1 }
 0x15b   : > { %v1270_v32 = vrot.slane %v2501_v31, 1  ;;  %v2504_v33 = vpop.f32.mrb[17].mxu1  ;;  %v1139_v3 = vpop.f32.mrb[18].mxu0  ;;  %v1259_v48 = vrot.slane %v1137_v60, 1 }
 0x15c   : > { %v1272_v35 = vrot.slane %v2504_v33, 1  ;;  %v1159_v38 = vpop.f32.mrb[18].mxu1  ;;  %v1257_v42 = vrot.slane %v1139_v3, 1  ;;  %v1141_v45 = vpop.f32.mrb[19].mxu0 }
 0x15d   : > { %v1274_v43 = vrot.slane %v1159_v38, 1  ;;  %v1161_v46 = vpop.f32.mrb[19].mxu1  ;;  %v1260_v50 = vrot.slane %v1141_v45, 1 }
 0x15e   : > { %v1276_v51 = vrot.slane %v1161_v46, 1  ;;  %v1258_v52 = vsel %vm1255_vm1, %v1256_v39, %v1257_v42 }
 0x15f   : > { %v1275_v53 = vsel %vm1255_vm1, %v1270_v32, %v1274_v43  ;;  %v1320_v54 = vadd.f32 %v2458_v21, %v1258_v52  ;;  %v1261_v58 = vsel %vm1255_vm1, %v1259_v48, %v1260_v50 }
 0x160   : > { %v1328_v55 = vadd.f32 %v1312_v61, %v1275_v53  ;;  %v1277_v56 = vsel %vm1255_vm1, %v1272_v35, %v1276_v51  ;;  %v1321_v62 = vadd.f32 %v2461_v22, %v1261_v58 }
 0x161   : > { %v1329_v63 = vadd.f32 %v1313_v0, %v1277_v56  ;;  %v1348_v2 = vadd.f32 %v2511_v49, %v1320_v54  ;;  %v1145_v47 = vpop.f32.mrb[20].mxu0 }
 0x162   : > { %v2528_v5 = vadd.f32 %v2511_v49, %v1328_v55  ;;  %v1165_v7 = vpop.f32.mrb[20].mxu1  ;;  %v1349_v21 = vadd.f32 %v2518_v20, %v1321_v62  ;;  %v1262_v8 = vrot.slane %v1145_v47, 1  ;;  %v1147_v10 = vpop.f32.mrb[21].mxu0 }
 0x163   : > { %v2532_v61 = vadd.f32 %v2518_v20, %v1329_v63  ;;  %v1278_v9 = vrot.slane %v1165_v7, 1  ;;  %v1167_v11 = vpop.f32.mrb[21].mxu1  ;;  %v1264_v22 = vrot.slane %v1147_v10, 1  ;;  %v1149_v13 = vpop.f32.mrb[22].mxu0  ;;  %v1469_v3 = vmul.f32 %v1348_v2, %v1348_v2 }
 0x164   : > { %v1280_v0 = vrot.slane %v1167_v11, 1  ;;  %v1169_v14 = vpop.f32.mrb[22].mxu1  ;;  %v1809_v15 = vpack.c.bf16 %v1349_v21, %v1348_v2  ;;  %v1151_v16 = vpop.f32.mrb[23].mxu0  ;;  %v1263_v1 = vsel %vm1255_vm1, %v1257_v42, %v1262_v8  ;;  %v1470_v38 = vmul.f32 %v1349_v21, %v1349_v21 }
 0x165   : > { %v1813_v57 = vpack.c.bf16 %v2532_v61, %v2528_v5  ;;  %v1171_v18 = vpop.f32.mrb[23].mxu1  ;;  %v1279_v12 = vsel %vm1255_vm1, %v1274_v43, %v1278_v9  ;;  %v1265_v23 = vsel %vm1255_vm1, %v1260_v50, %v1264_v22  ;;  %v1322_v28 = vadd.f32 %v2464_v24, %v1263_v1 }
 0x166   : > { %v1281_v59 = vsel %vm1255_vm1, %v1276_v51, %v1280_v0  ;;  %1412 = vst [vmem:[%s2539_s20] sm:$0xff] %v1809_v15  ;;  %v1330_v30 = vadd.f32 %v2484_v4, %v1279_v12  ;;  %v1323_v60 = vadd.f32 %v2467_v26, %v1265_v23  ;;  %v1266_v39 = vrot.slane %v1149_v13, 1 }
 0x167   : > { %1416 = vst [vmem:[%s2539_s20 + $0x20] sm:$0xff] %v1813_v57  ;;  %v1331_v34 = vadd.f32 %v2487_v6, %v1281_v59  ;;  %v1282_v42 = vrot.slane %v1169_v14, 1  ;;  %v1350_v43 = vadd.f32 %v2511_v49, %v1322_v28  ;;  %v1268_v6 = vrot.slane %v1151_v16, 1 }
 0x168   : > { %v1358_v45 = vadd.f32 %v2511_v49, %v1330_v30  ;;  %v1351_v46 = vadd.f32 %v2518_v20, %v1323_v60  ;;  %v1267_v24 = vsel %vm1255_vm1, %v1262_v8, %v1266_v39  ;;  %v1271_v26 = vsel %vm1255_vm1, %v1266_v39, %v1270_v32 }
 0x169   : > { %v2557_v48 = vadd.f32 %v2518_v20, %v1331_v34  ;;  %v1283_v4 = vsel %vm1255_vm1, %v1278_v9, %v1282_v42  ;;  %v1420_v50 = vadd.f32 %v1350_v43, %v1348_v2  ;;  %v1471_v51 = vmul.f32 %v1350_v43, %v1350_v43 }
 0x16a   : > { %v1810_v52 = vpack.c.bf16 %v1351_v46, %v1350_v43  ;;  %v1302_v53 = vsel %vm1255_vm1, %v1282_v42, 0.0  ;;  %v1433_v54 = vadd.f32 %v1351_v46, %v1349_v21  ;;  %v1472_v55 = vmul.f32 %v1351_v46, %v1351_v46 }
 0x16b   : > { %v1814_v58 = vpack.c.bf16 %v2557_v48, %v1358_v45  ;;  %v1284_v56 = vrot.slane %v1171_v18, 1  ;;  %v1485_v62 = vadd.f32 %v1471_v51, %v1469_v3  ;;  %v1324_v31 = vadd.f32 %v2470_v37, %v1267_v24 }
 0x16c   : > { %1413 = vst [vmem:[%s2539_s20 + $0x8] sm:$0xff] %v1810_v52  ;;  %v1326_v32 = vadd.f32 %v2476_v17, %v1271_v26  ;;  %v1332_v63 = vadd.f32 %v2490_v19, %v1283_v4  ;;  %v1498_v47 = vadd.f32 %v1472_v55, %v1470_v38  ;;  %v1334_v2 = vadd.f32 %v2496_v27, %v1302_v53 }
 0x16d   : > { %1417 = vst [vmem:[%s2539_s20 + $0x28] sm:$0xff] %v1814_v58  ;;  %v1269_v7 = vsel %vm1255_vm1, %v1264_v22, %v1268_v6  ;;  %v1273_v21 = vsel %vm1255_vm1, %v1268_v6, %v1272_v35  ;;  %v1352_v8 = vadd.f32 %v2511_v49, %v1324_v31  ;;  %v1285_v19 = vsel %vm1255_vm1, %v1280_v0, %v1284_v56 }
 0x16e   : > { %v1354_v9 = vadd.f32 %v2511_v49, %v1326_v32  ;;  %v1325_v37 = vadd.f32 %v2473_v41, %v1269_v7  ;;  %v1327_v17 = vadd.f32 %v2479_v44, %v1273_v21  ;;  %v1303_v10 = vsel %vm1255_vm1, %v1284_v56, 0.0 }
 0x16f   : > { %v1421_v11 = vadd.f32 %v1420_v50, %v1352_v8  ;;  %v1473_v27 = vmul.f32 %v1352_v8, %v1352_v8  ;;  %v1360_v22 = vadd.f32 %v2511_v49, %v1332_v63  ;;  %v1362_v33 = vadd.f32 %v2511_v49, %v1334_v2 }
 0x170   : > { %v1353_v35 = vadd.f32 %v2518_v20, %v1325_v37  ;;  %v1355_v13 = vadd.f32 %v2518_v20, %v1327_v17  ;;  %v1333_v41 = vadd.f32 %v2493_v25, %v1285_v19  ;;  %v1475_v44 = vmul.f32 %v1354_v9, %v1354_v9 }
 0x171   : > { %v1422_v14 = vadd.f32 %v1421_v11, %v1354_v9  ;;  %v1486_v15 = vadd.f32 %v1485_v62, %v1473_v27  ;;  %v1335_v0 = vadd.f32 %v2499_v29, %v1303_v10  ;;  %v1477_v49 = vmul.f32 %v2528_v5, %v2528_v5 }
 0x172   : > { %v1811_v57 = vpack.c.bf16 %v1353_v35, %v1352_v8  ;;  %v1812_v16 = vpack.c.bf16 %v1355_v13, %v1354_v9  ;;  %v1434_v18 = vadd.f32 %v1433_v54, %v1353_v35  ;;  %v1474_v1 = vmul.f32 %v1353_v35, %v1353_v35 }
 0x173   : > { %v1423_v12 = vadd.f32 %v1422_v14, %v2528_v5  ;;  %v1487_v23 = vadd.f32 %v1486_v15, %v1475_v44  ;;  %v1361_v59 = vadd.f32 %v2518_v20, %v1333_v41  ;;  %v1476_v28 = vmul.f32 %v1355_v13, %v1355_v13 }
 0x174   : > { %1414 = vst [vmem:[%s2539_s20 + $0x10] sm:$0xff] %v1811_v57  ;;  %1415 = vst [vmem:[%s2539_s20 + $0x18] sm:$0xff] %v1812_v16  ;;  %v1435_v25 = vadd.f32 %v1434_v18, %v1355_v13  ;;  %v1499_v30 = vadd.f32 %v1498_v47, %v1474_v1  ;;  %v1363_v29 = vadd.f32 %v2518_v20, %v1335_v0 }
 0x175   : > { %v1479_v60 = vmul.f32 %v1358_v45, %v1358_v45  ;;  %v1488_v34 = vadd.f32 %v1487_v23, %v1477_v49  ;;  %v1424_v3 = vadd.f32 %v1423_v12, %v1358_v45  ;;  %v1815_v38 = vpack.c.bf16 %v1361_v59, %v1360_v22 }
 0x176   : > { %v1478_v39 = vmul.f32 %v2532_v61, %v2532_v61  ;;  %v1436_v5 = vadd.f32 %v1435_v25, %v2532_v61  ;;  %v1500_v42 = vadd.f32 %v1499_v30, %v1476_v28  ;;  %v1816_v43 = vpack.c.bf16 %v1363_v29, %v1362_v33 }
 0x177   : > { %v1425_v46 = vadd.f32 %v1424_v3, %v1360_v22  ;;  %v1481_v24 = vmul.f32 %v1360_v22, %v1360_v22  ;;  %v1489_v26 = vadd.f32 %v1488_v34, %v1479_v60  ;;  %1418 = vst [vmem:[%s2539_s20 + $0x30] sm:$0xff] %v1815_v38  ;;  %v1480_v4 = vmul.f32 %v2557_v48, %v2557_v48 }
 0x178   : > { %v1501_v6 = vadd.f32 %v1500_v42, %v1478_v39  ;;  %1419 = vst [vmem:[%s2539_s20 + $0x38] sm:$0xff] %v1816_v43  ;;  %v1437_v20 = vadd.f32 %v1436_v5, %v2557_v48  ;;  %v1483_v50 = vmul.f32 %v1362_v33, %v1362_v33  ;;  %v1482_v53 = vmul.f32 %v1361_v59, %v1361_v59 }
 0x179   : > { %v1426_v45 = vadd.f32 %v1425_v46, %v1362_v33  ;;  %v1490_v51 = vadd.f32 %v1489_v26, %v1481_v24  ;;  %v1484_v56 = vmul.f32 %v1363_v29, %v1363_v29  ;;  %v2010_v48 = vmov 1966171168  }
 0x17a   : > { %v1438_v52 = vadd.f32 %v1437_v20, %v1361_v59  ;;  %v1502_v54 = vadd.f32 %v1501_v6, %v1480_v4  ;;  %v1450_v8 = vunpack.c.l.s4 %v2010_v48 }
 0x17b   : > { %v1427_v61 = vrot.slane %v1426_v45, 4  ;;  %v1491_v55 = vadd.f32 %v1490_v51, %v1483_v50 }
 0x17c   : > { %v1439_v58 = vadd.f32 %v1438_v52, %v1363_v29  ;;  %v1503_v62 = vadd.f32 %v1502_v54, %v1482_v53  ;;  %v1451_v33 = vunpack.c.0.s8 %v1450_v8 }
 0x17d   : > { %v1428_v31 = vadd.f32 %v1427_v61, %v1426_v45  ;;  %v1492_v32 = vrot.slane %v1491_v55, 4 }
 0x17e   : > { %v1440_v63 = vrot.slane %v1439_v58, 4  ;;  %v1504_v47 = vadd.f32 %v1503_v62, %v1484_v56  ;;  %v1454_v57 = vsub.s32 %v1451_v33, %v2177_v40 }
 0x17f   : > { %v1429_v2 = vrot.slane %v1428_v31, 2  ;;  %v1493_v7 = vadd.f32 %v1492_v32, %v1491_v55 }
 0x180   : > { %v1441_v21 = vadd.f32 %v1440_v63, %v1439_v58  ;;  %v1505_v9 = vrot.slane %v1504_v47, 4 }
 0x181   : > { %v1430_v37 = vadd.f32 %v1429_v2, %v1428_v31  ;;  %v1494_v17 = vrot.slane %v1493_v7, 2 }
 0x182   : > { %v1442_v19 = vrot.slane %v1441_v21, 2  ;;  %v1506_v10 = vadd.f32 %v1505_v9, %v1504_v47 }
 0x183   : > { %v1431_v11 = vrot.slane %v1430_v37, 1  ;;  %v1495_v27 = vadd.f32 %v1494_v17, %v1493_v7 }
 0x184   : > { %v1443_v22 = vadd.f32 %v1442_v19, %v1441_v21  ;;  %v1507_v35 = vrot.slane %v1506_v10, 2 }
 0x185   : > { %v1496_v13 = vrot.slane %v1495_v27, 1  ;;  %v1432_v41 = vadd.f32 %v1431_v11, %v1430_v37 }
 0x186   : > { %v1444_v14 = vrot.slane %v1443_v22, 1  ;;  %v1508_v44 = vadd.f32 %v1507_v35, %v1506_v10 }
 0x187   : > { %v1497_v15 = vadd.f32 %v1496_v13, %v1495_v27 }
 0x188   : > { %v1445_v0 = vadd.f32 %v1444_v14, %v1443_v22  ;;  %v1509_v16 = vrot.slane %v1508_v44, 1 }
 0x18a   : > { %v1448_v18 = vcombine.low %v1432_v41, %v1445_v0  ;;  %v1510_v1 = vadd.f32 %v1509_v16, %v1508_v44 }
 0x18c   : > { %v1455_v49 = vrot.slane %v1448_v18, %v1454_v57  ;;  %v1513_v12 = vcombine.low %v1497_v15, %v1510_v1 }
 0x18e   : > { %v1462_v23 = vrot.slane %v1455_v49, %v1454_v57  ;;  %v1520_v59 = vrot.slane %v1513_v12, %v1454_v57 }
 0x190   : > { %1468 = vst.msk [vmem:[%s272_s24] ss:$2 sm:$0x3] %vm1466_vm2, %v1462_v23  ;;  %v1527_v25 = vrot.slane %v1520_v59, %v1454_v57 }
 0x192   : > { %1803 = vst.msk [vmem:[%s272_s24 + $0x1] ss:$2 sm:$0x3] %vm1466_vm2, %v1527_v25 }
 0x193 PF: > { %s17_s21 = sadd.s32 1, %s2008_s21  }
 0x194   : > { %p14_p5 = scmp.ge.s32.totalorder %s17_s21, 4  }
 0x196   :  { %16 = sbr.rel (!%p14_p5) target bundleno = 1 (0x1), region = 85 }

</bundles_post_ra>
